<compile_context>
chip_gen: v7x
topology: tpu7x:2x2x1
jax: 0.10.0
libtpu: 0.0.40
codegen_flags: <defaults>
</compile_context>

<pallas_src>
import functools

import numpy as np

import jax
import jax.numpy as jnp
from jax.experimental import pallas as pl
from jax.experimental.pallas import tpu as pltpu


CHANNELS = (32, 64, 128, 256)                  # c = [32, 64, 128, 256, 1]
ARCH_STAGES = (("conv2", 2), ("conv3", 3), ("conv4", 4))
LANE = 128


def _cpad(c):
    """Pad a channel count up to a multiple of the 128-lane vreg width."""
    return max(LANE, ((c + LANE - 1) // LANE) * LANE)


def _rpad(m):
    """Pad a row (flattened-spatial) count up to a multiple of 8 sublanes."""
    return max(8, ((m + 7) // 8) * 8)


# ----------------------------------------------------------------------------
# The single fused Pallas kernel (whole network, one sample per grid step)
# ----------------------------------------------------------------------------
def _net_kernel(*refs, ds_flags, pool_rows):
    """Stem matmul + 9 fused Bottleneck blocks + AdaptiveAvgPool2d(1)."""
    f32, bf16 = jnp.float32, jnp.bfloat16
    o_ref = refs[-1]
    it = iter(refs[:-1])

    # ---- stem: (im2col'd 5x5 conv, K padded to 128) @ W(BN-folded) + b, ReLU
    cols = next(it)[...]                                     # (m0_pad, 128) bf16
    stem_w = next(it)[...]
    stem_b = next(it)[...]
    feat = jnp.maximum(
        jnp.dot(cols, stem_w, preferred_element_type=f32) + stem_b, 0.0
    ).astype(bf16)

    out_f32 = None
    for need_ds in ds_flags:
        w1 = next(it)[...]
        b1 = next(it)[...]
        w2 = next(it)[...]
        b2 = next(it)[...]
        w3 = next(it)[...]
        b3 = next(it)[...]
        p_ref = next(it)                                     # (9, m_out, m_in)
        wd = next(it)[...] if need_ds else None

        # conv1: 1x1 + folded BN + ReLU
        h1 = jnp.maximum(
            jnp.dot(feat, w1, preferred_element_type=f32) + b1, 0.0
        ).astype(bf16)

        # conv2: 3x3 / stride / pad=1.  Tap gather via exact 0/1 selection
        # matrices, packed into a (m_out, 9*cin_p) im2col tensor (single bf16
        # cast), then ONE deep-K matmul against the pre-flattened taps.
        cols9 = jnp.concatenate(
            [jnp.dot(p_ref[t], h1, preferred_element_type=f32)
             for t in range(9)],
            axis=-1,
        ).astype(bf16)
        h2 = jnp.maximum(
            jnp.dot(cols9, w2, preferred_element_type=f32) + b2, 0.0
        ).astype(bf16)

        # conv3: 1x1 + folded BN (no activation)
        h3 = jnp.dot(h2, w3, preferred_element_type=f32) + b3

        # residual: downsample = centre-tap (stride) selection @ wd, in-kernel
        if need_ds:
            xs = jnp.dot(p_ref[4], feat, preferred_element_type=f32).astype(bf16)
            res = jnp.dot(xs, wd, preferred_element_type=f32)
        else:
            res = feat.astype(f32)

        # ReLU -> Sigmoid (exact EUP reciprocal), fused into one expression
        out_f32 = pl.reciprocal(
            1.0 + jnp.exp(-jnp.maximum(h3 + res, 0.0)), approx=False)
        feat = out_f32.astype(bf16)

    # AdaptiveAvgPool2d(1): one reduction over the valid rows, one lane-dense
    # (1, 256) store.
    o_ref[...] = jnp.mean(
        out_f32[:pool_rows, :], axis=0, keepdims=True).astype(o_ref.dtype)


# ----------------------------------------------------------------------------
# Trace-time constants: 3x3-conv tap selection matrices (per sample)
# ----------------------------------------------------------------------------
@functools.lru_cache(maxsize=None)
def _tap_select_mats(h, w, stride):
    """P[t] (t = 3*di+dj) are 0/1 matrices so that P[t] @ flat_HWC(x) equals the
    (di, dj) tap of a 3x3 / pad-1 / stride-`stride` conv.  Rows/cols beyond the
    valid h*w (8-row sublane padding) stay zero, so padded rows never leak into
    valid rows.  P[4] (centre tap) doubles as the stride-s 1x1 downsample
    selector."""
    ho = (h - 1) // stride + 1
    wo = (w - 1) // stride + 1
    m_in, m_out = _rpad(h * w), _rpad(ho * wo)
    p = np.zeros((9, m_out, m_in), np.float32)
    for di in range(3):
        for dj in range(3):
            t = di * 3 + dj
            for i in range(ho):
                hi = stride * i + di - 1
                if not 0 <= hi < h:
                    continue
                for j in range(wo):
                    wj = stride * j + dj - 1
                    if not 0 <= wj < w:
                        continue
                    p[t, i * wo + j, hi * w + wj] = 1.0
    return p, ho, wo


# ----------------------------------------------------------------------------
# Plain-JAX glue (stem im2col only) and parameter construction (BN pre-folded)
# ----------------------------------------------------------------------------
def _im2col(x, k, stride, pad):
    """x: (N,H,W,C) -> patches (N,Ho,Wo,k*k*C), column order (kh, kw, cin)."""
    n, h, w, c = x.shape
    xp = jnp.pad(x, ((0, 0), (pad, pad), (pad, pad), (0, 0)))
    ho = (h + 2 * pad - k) // stride + 1
    wo = (w + 2 * pad - k) // stride + 1
    cols = []
    for di in range(k):
        for dj in range(k):
            cols.append(xp[:, di:di + stride * ho:stride,
                           dj:dj + stride * wo:stride, :])
    return jnp.concatenate(cols, axis=-1), ho, wo


def _conv_w(key, cout, cin, k):
    fan_in = cin * k * k
    return jax.random.normal(key, (cout, cin, k, k), jnp.float32) / jnp.sqrt(fan_in)


def _bn_params(key, c):
    k1, k2 = jax.random.split(key)
    gamma = 1.0 + 0.05 * jax.random.normal(k1, (c,), jnp.float32)
    beta = 0.05 * jax.random.normal(k2, (c,), jnp.float32)
    return gamma, beta, jnp.zeros((c,), jnp.float32), jnp.ones((c,), jnp.float32)


def _fold_bn(gamma, beta, mean, var, eps=1e-5):
    scale = gamma / jnp.sqrt(var + eps)
    return scale, beta - mean * scale


def _pad_mat(w, rows, cols):
    return jnp.zeros((rows, cols), jnp.float32).at[:w.shape[0], :w.shape[1]].set(w)


def _pad_bias(b, cols):
    return jnp.zeros((1, cols), jnp.float32).at[0, :b.shape[0]].set(b)


def make_bottleneck(key, in_c, out_c):
    cin_p, cout_p = _cpad(in_c), _cpad(out_c)
    ks = jax.random.split(key, 7)

    # conv1: Conv2d(in_c, in_c, 1, bias=False) + BN + ReLU
    w1 = _conv_w(ks[0], in_c, in_c, 1)[:, :, 0, 0]
    s1, sh1 = _fold_bn(*_bn_params(ks[1], in_c))
    # conv2: Conv2d(in_c, in_c, 3, stride, pad=1, bias=False) + BN + ReLU
    w2 = _conv_w(ks[2], in_c, in_c, 3)
    s2, sh2 = _fold_bn(*_bn_params(ks[3], in_c))
    taps = [_pad_mat(w2[:, :, di, dj].T * s2[None, :], cin_p, cin_p)
            for di in range(3) for dj in range(3)]
    # conv3: Conv2d(in_c, out_c, 1, bias=False) + BN
    w3 = _conv_w(ks[4], out_c, in_c, 1)[:, :, 0, 0]
    s3, sh3 = _fold_bn(*_bn_params(ks[5], out_c))
    # downsample: Conv2d(in_c, out_c, 1, stride, bias=False)  (no BN, no bias)
    wd = _conv_w(ks[6], out_c, in_c, 1)[:, :, 0, 0]

    return {
        "w1": _pad_mat(w1.T * s1[None, :], cin_p, cin_p).astype(jnp.bfloat16),
        "b1": _pad_bias(sh1, cin_p),
        # taps pre-flattened to (9*cin_p, cin_p) for the single deep-K matmul
        "w2": jnp.concatenate(taps, axis=0).astype(jnp.bfloat16),
        "b2": _pad_bias(sh2, cin_p),
        "w3": _pad_mat(w3.T * s3[None, :], cin_p, cout_p).astype(jnp.bfloat16),
        "b3": _pad_bias(sh3, cout_p),
        "wd": _pad_mat(wd.T, cin_p, cout_p).astype(jnp.bfloat16),
    }


def make_params(key):
    ks = jax.random.split(key, 6)
    params = {}
    # stem: Conv2d(3, 32, k=5, s=2, p=2, bias=True) + BN + ReLU
    c0, c0p = CHANNELS[0], _cpad(CHANNELS[0])
    w = _conv_w(ks[0], c0, 3, 5)
    conv_bias = 0.05 * jax.random.normal(ks[1], (c0,), jnp.float32)
    s0, sh0 = _fold_bn(*_bn_params(ks[2], c0))
    w_mat = jnp.transpose(w, (2, 3, 1, 0)).reshape(5 * 5 * 3, c0) * s0[None, :]
    # K (=75) zero-padded to 128 so the stem is a lane-dense 128-K matmul
    params["stem_w"] = _pad_mat(w_mat, LANE, c0p).astype(jnp.bfloat16)
    params["stem_b"] = _pad_bias(sh0 + conv_bias * s0, c0p)
    # bottleneck stages
    for si, (stage, num) in enumerate(ARCH_STAGES):
        in_c, out_c = CHANNELS[si], CHANNELS[si + 1]
        bkeys = jax.random.split(ks[3 + si], num)
        blocks = [make_bottleneck(bkeys[i], in_c, in_c) for i in range(num - 1)]
        blocks.append(make_bottleneck(bkeys[num - 1], in_c, out_c))
        params[stage] = blocks
    return params


# ----------------------------------------------------------------------------
# Forward pass: one pallas_call for the whole network
# ----------------------------------------------------------------------------
def _bcast_spec(a):
    """Full-array block, grid-invariant (same block index for every sample)."""
    zeros = (0,) * a.ndim
    return pl.BlockSpec(a.shape, lambda b, _z=zeros: _z)


def _forward(params, x_nchw):
    x = jnp.transpose(x_nchw, (0, 2, 3, 1)).astype(jnp.float32)   # NCHW -> NHWC
    batch = x.shape[0]

    # stem im2col (tiny, one XLA fusion); rows padded to a sublane multiple,
    # K padded to a full 128-lane group.
    cols, h, w = _im2col(x, 5, 2, 2)
    m0, k0 = h * w, cols.shape[-1]
    m0p = _rpad(m0)
    cols = cols.reshape(batch, m0, k0)
    cols = jnp.pad(cols, ((0, 0), (0, m0p - m0),
                          (0, LANE - k0))).astype(jnp.bfloat16)

    inputs = [cols, params["stem_w"], params["stem_b"]]
    in_specs = [pl.BlockSpec((None, m0p, LANE), lambda b: (b, 0, 0)),
                _bcast_spec(params["stem_w"]),
                _bcast_spec(params["stem_b"])]

    ds_flags = []
    flops = 2 * m0p * LANE * LANE
    trans = 0
    for si, (stage, num) in enumerate(ARCH_STAGES):
        for bi, blk in enumerate(params[stage]):
            last = bi == num - 1
            stride = 2 if last else 1
            p_np, ho, wo = _tap_select_mats(h, w, stride)
            blk_in = [blk["w1"], blk["b1"], blk["w2"], blk["b2"],
                      blk["w3"], blk["b3"], jnp.asarray(p_np, jnp.bfloat16)]
            if last:      # need_downsample == (stride > 1 or in_c != out_c)
                blk_in.append(blk["wd"])
            inputs += blk_in
            in_specs += [_bcast_spec(a) for a in blk_in]
            ds_flags.append(last)

            m_in, m_out = _rpad(h * w), _rpad(ho * wo)
            cin_p, cout_p = blk["w1"].shape[0], blk["w3"].shape[1]
            flops += (2 * m_in * cin_p * cin_p             # conv1
                      + 9 * 2 * m_out * m_in * cin_p       # tap gather
                      + 2 * m_out * 9 * cin_p * cin_p      # conv2 deep-K
                      + 2 * m_out * cin_p * cout_p)        # conv3
            if last:
                flops += 2 * m_out * m_in * cin_p + 2 * m_out * cin_p * cout_p
            trans += m_out * cout_p
            h, w = ho, wo

    cout_last = params[ARCH_STAGES[-1][0]][-1]["w3"].shape[1]
    bytes_accessed = (sum(int(a.size) * a.dtype.itemsize for a in inputs)
                      + batch * cout_last * 4)

    kern = functools.partial(_net_kernel, ds_flags=tuple(ds_flags),
                             pool_rows=h * w)

    out = pl.pallas_call(
        kern,
        out_shape=jax.ShapeDtypeStruct((batch, 1, cout_last), jnp.float32),
        grid_spec=pltpu.PrefetchScalarGridSpec(
            num_scalar_prefetch=0,
            grid=(batch,),
            in_specs=in_specs,
            out_specs=pl.BlockSpec((None, 1, cout_last), lambda b: (b, 0, 0))),
        compiler_params=pltpu.CompilerParams(
            dimension_semantics=("parallel",),          # v7x: 2nd TC gets work
            vmem_limit_bytes=32 * 1024 * 1024),
        cost_estimate=pl.CostEstimate(
            flops=int(batch * flops),
            transcendentals=int(batch * trans),
            bytes_accessed=int(bytes_accessed)),
    )(*inputs)
    return out[:, 0, :]                                   # (batch, 256) float32


shallow_net_d_logit_forward = jax.jit(_forward)


# ----------------------------------------------------------------------------
# Main
# ----------------------------------------------------------------------------
if __name__ == "__main__":
    key = jax.random.PRNGKey(0)
    kp, kx = jax.random.split(key)
    params = make_params(kp)

    # NCHW input, as the PyTorch module expects (3 input channels).
    x = jax.random.normal(kx, (2, 3, 16, 16), jnp.float32)

    out = jax.block_until_ready(shallow_net_d_logit_forward(params, x))

    assert out.shape == (2, 256), out.shape
    assert out.dtype == jnp.float32
    assert bool(jnp.all(jnp.isfinite(out)))
    # every block output is sigmoid(relu(.)) in [0.5, 1); the mean preserves it
    assert bool(jnp.all((out > 0.45) & (out < 1.05)))
    print("KERNEL_OK")
</pallas_src>

<mosaic_0001>
module attributes {stable_mosaic.version = 11 : i64} {
  func.func @_net_kernel(%arg0: i32, %arg1: memref<1x64x128xbf16, #tpu.memory_space<vmem>>, %arg2: memref<128x128xbf16, #tpu.memory_space<vmem>>, %arg3: memref<1x128xf32, #tpu.memory_space<vmem>>, %arg4: memref<128x128xbf16, #tpu.memory_space<vmem>>, %arg5: memref<1x128xf32, #tpu.memory_space<vmem>>, %arg6: memref<1152x128xbf16, #tpu.memory_space<vmem>>, %arg7: memref<1x128xf32, #tpu.memory_space<vmem>>, %arg8: memref<128x128xbf16, #tpu.memory_space<vmem>>, %arg9: memref<1x128xf32, #tpu.memory_space<vmem>>, %arg10: memref<9x64x64xbf16, #tpu.memory_space<vmem>>, %arg11: memref<128x128xbf16, #tpu.memory_space<vmem>>, %arg12: memref<1x128xf32, #tpu.memory_space<vmem>>, %arg13: memref<1152x128xbf16, #tpu.memory_space<vmem>>, %arg14: memref<1x128xf32, #tpu.memory_space<vmem>>, %arg15: memref<128x128xbf16, #tpu.memory_space<vmem>>, %arg16: memref<1x128xf32, #tpu.memory_space<vmem>>, %arg17: memref<9x16x64xbf16, #tpu.memory_space<vmem>>, %arg18: memref<128x128xbf16, #tpu.memory_space<vmem>>, %arg19: memref<128x128xbf16, #tpu.memory_space<vmem>>, %arg20: memref<1x128xf32, #tpu.memory_space<vmem>>, %arg21: memref<1152x128xbf16, #tpu.memory_space<vmem>>, %arg22: memref<1x128xf32, #tpu.memory_space<vmem>>, %arg23: memref<128x128xbf16, #tpu.memory_space<vmem>>, %arg24: memref<1x128xf32, #tpu.memory_space<vmem>>, %arg25: memref<9x16x16xbf16, #tpu.memory_space<vmem>>, %arg26: memref<128x128xbf16, #tpu.memory_space<vmem>>, %arg27: memref<1x128xf32, #tpu.memory_space<vmem>>, %arg28: memref<1152x128xbf16, #tpu.memory_space<vmem>>, %arg29: memref<1x128xf32, #tpu.memory_space<vmem>>, %arg30: memref<128x128xbf16, #tpu.memory_space<vmem>>, %arg31: memref<1x128xf32, #tpu.memory_space<vmem>>, %arg32: memref<9x16x16xbf16, #tpu.memory_space<vmem>>, %arg33: memref<128x128xbf16, #tpu.memory_space<vmem>>, %arg34: memref<1x128xf32, #tpu.memory_space<vmem>>, %arg35: memref<1152x128xbf16, #tpu.memory_space<vmem>>, %arg36: memref<1x128xf32, #tpu.memory_space<vmem>>, %arg37: memref<128x128xbf16, #tpu.memory_space<vmem>>, %arg38: memref<1x128xf32, #tpu.memory_space<vmem>>, %arg39: memref<9x8x16xbf16, #tpu.memory_space<vmem>>, %arg40: memref<128x128xbf16, #tpu.memory_space<vmem>>, %arg41: memref<128x128xbf16, #tpu.memory_space<vmem>>, %arg42: memref<1x128xf32, #tpu.memory_space<vmem>>, %arg43: memref<1152x128xbf16, #tpu.memory_space<vmem>>, %arg44: memref<1x128xf32, #tpu.memory_space<vmem>>, %arg45: memref<128x128xbf16, #tpu.memory_space<vmem>>, %arg46: memref<1x128xf32, #tpu.memory_space<vmem>>, %arg47: memref<9x8x8xbf16, #tpu.memory_space<vmem>>, %arg48: memref<128x128xbf16, #tpu.memory_space<vmem>>, %arg49: memref<1x128xf32, #tpu.memory_space<vmem>>, %arg50: memref<1152x128xbf16, #tpu.memory_space<vmem>>, %arg51: memref<1x128xf32, #tpu.memory_space<vmem>>, %arg52: memref<128x128xbf16, #tpu.memory_space<vmem>>, %arg53: memref<1x128xf32, #tpu.memory_space<vmem>>, %arg54: memref<9x8x8xbf16, #tpu.memory_space<vmem>>, %arg55: memref<128x128xbf16, #tpu.memory_space<vmem>>, %arg56: memref<1x128xf32, #tpu.memory_space<vmem>>, %arg57: memref<1152x128xbf16, #tpu.memory_space<vmem>>, %arg58: memref<1x128xf32, #tpu.memory_space<vmem>>, %arg59: memref<128x128xbf16, #tpu.memory_space<vmem>>, %arg60: memref<1x128xf32, #tpu.memory_space<vmem>>, %arg61: memref<9x8x8xbf16, #tpu.memory_space<vmem>>, %arg62: memref<128x128xbf16, #tpu.memory_space<vmem>>, %arg63: memref<1x128xf32, #tpu.memory_space<vmem>>, %arg64: memref<1152x128xbf16, #tpu.memory_space<vmem>>, %arg65: memref<1x128xf32, #tpu.memory_space<vmem>>, %arg66: memref<128x256xbf16, #tpu.memory_space<vmem>>, %arg67: memref<1x256xf32, #tpu.memory_space<vmem>>, %arg68: memref<9x8x8xbf16, #tpu.memory_space<vmem>>, %arg69: memref<128x256xbf16, #tpu.memory_space<vmem>>, %arg70: memref<1x1x256xf32, #tpu.memory_space<vmem>>) attributes {dimension_semantics = [#tpu.dimension_semantics<parallel>], iteration_bounds = array<i64: 2>, scalar_prefetch = 0 : i64, scratch_operands = 0 : i64, tpu.core_type = #tpu.core_type<tc>, window_params = [{transform_indices = @transform_0, window_bounds = array<i64: 1, 64, 128>}, {pipeline_mode = #tpu.pipeline_mode<synchronous>, transform_indices = @transform_1, window_bounds = array<i64: 128, 128>}, {pipeline_mode = #tpu.pipeline_mode<synchronous>, transform_indices = @transform_2, window_bounds = array<i64: 1, 128>}, {pipeline_mode = #tpu.pipeline_mode<synchronous>, transform_indices = @transform_3, window_bounds = array<i64: 128, 128>}, {pipeline_mode = #tpu.pipeline_mode<synchronous>, transform_indices = @transform_4, window_bounds = array<i64: 1, 128>}, {pipeline_mode = #tpu.pipeline_mode<synchronous>, transform_indices = @transform_5, window_bounds = array<i64: 1152, 128>}, {pipeline_mode = #tpu.pipeline_mode<synchronous>, transform_indices = @transform_6, window_bounds = array<i64: 1, 128>}, {pipeline_mode = #tpu.pipeline_mode<synchronous>, transform_indices = @transform_7, window_bounds = array<i64: 128, 128>}, {pipeline_mode = #tpu.pipeline_mode<synchronous>, transform_indices = @transform_8, window_bounds = array<i64: 1, 128>}, {pipeline_mode = #tpu.pipeline_mode<synchronous>, transform_indices = @transform_9, window_bounds = array<i64: 9, 64, 64>}, {pipeline_mode = #tpu.pipeline_mode<synchronous>, transform_indices = @transform_10, window_bounds = array<i64: 128, 128>}, {pipeline_mode = #tpu.pipeline_mode<synchronous>, transform_indices = @transform_11, window_bounds = array<i64: 1, 128>}, {pipeline_mode = #tpu.pipeline_mode<synchronous>, transform_indices = @transform_12, window_bounds = array<i64: 1152, 128>}, {pipeline_mode = #tpu.pipeline_mode<synchronous>, transform_indices = @transform_13, window_bounds = array<i64: 1, 128>}, {pipeline_mode = #tpu.pipeline_mode<synchronous>, transform_indices = @transform_14, window_bounds = array<i64: 128, 128>}, {pipeline_mode = #tpu.pipeline_mode<synchronous>, transform_indices = @transform_15, window_bounds = array<i64: 1, 128>}, {pipeline_mode = #tpu.pipeline_mode<synchronous>, transform_indices = @transform_16, window_bounds = array<i64: 9, 16, 64>}, {pipeline_mode = #tpu.pipeline_mode<synchronous>, transform_indices = @transform_17, window_bounds = array<i64: 128, 128>}, {pipeline_mode = #tpu.pipeline_mode<synchronous>, transform_indices = @transform_18, window_bounds = array<i64: 128, 128>}, {pipeline_mode = #tpu.pipeline_mode<synchronous>, transform_indices = @transform_19, window_bounds = array<i64: 1, 128>}, {pipeline_mode = #tpu.pipeline_mode<synchronous>, transform_indices = @transform_20, window_bounds = array<i64: 1152, 128>}, {pipeline_mode = #tpu.pipeline_mode<synchronous>, transform_indices = @transform_21, window_bounds = array<i64: 1, 128>}, {pipeline_mode = #tpu.pipeline_mode<synchronous>, transform_indices = @transform_22, window_bounds = array<i64: 128, 128>}, {pipeline_mode = #tpu.pipeline_mode<synchronous>, transform_indices = @transform_23, window_bounds = array<i64: 1, 128>}, {pipeline_mode = #tpu.pipeline_mode<synchronous>, transform_indices = @transform_24, window_bounds = array<i64: 9, 16, 16>}, {pipeline_mode = #tpu.pipeline_mode<synchronous>, transform_indices = @transform_25, window_bounds = array<i64: 128, 128>}, {pipeline_mode = #tpu.pipeline_mode<synchronous>, transform_indices = @transform_26, window_bounds = array<i64: 1, 128>}, {pipeline_mode = #tpu.pipeline_mode<synchronous>, transform_indices = @transform_27, window_bounds = array<i64: 1152, 128>}, {pipeline_mode = #tpu.pipeline_mode<synchronous>, transform_indices = @transform_28, window_bounds = array<i64: 1, 128>}, {pipeline_mode = #tpu.pipeline_mode<synchronous>, transform_indices = @transform_29, window_bounds = array<i64: 128, 128>}, {pipeline_mode = #tpu.pipeline_mode<synchronous>, transform_indices = @transform_30, window_bounds = array<i64: 1, 128>}, {pipeline_mode = #tpu.pipeline_mode<synchronous>, transform_indices = @transform_31, window_bounds = array<i64: 9, 16, 16>}, {pipeline_mode = #tpu.pipeline_mode<synchronous>, transform_indices = @transform_32, window_bounds = array<i64: 128, 128>}, {pipeline_mode = #tpu.pipeline_mode<synchronous>, transform_indices = @transform_33, window_bounds = array<i64: 1, 128>}, {pipeline_mode = #tpu.pipeline_mode<synchronous>, transform_indices = @transform_34, window_bounds = array<i64: 1152, 128>}, {pipeline_mode = #tpu.pipeline_mode<synchronous>, transform_indices = @transform_35, window_bounds = array<i64: 1, 128>}, {pipeline_mode = #tpu.pipeline_mode<synchronous>, transform_indices = @transform_36, window_bounds = array<i64: 128, 128>}, {pipeline_mode = #tpu.pipeline_mode<synchronous>, transform_indices = @transform_37, window_bounds = array<i64: 1, 128>}, {pipeline_mode = #tpu.pipeline_mode<synchronous>, transform_indices = @transform_38, window_bounds = array<i64: 9, 8, 16>}, {pipeline_mode = #tpu.pipeline_mode<synchronous>, transform_indices = @transform_39, window_bounds = array<i64: 128, 128>}, {pipeline_mode = #tpu.pipeline_mode<synchronous>, transform_indices = @transform_40, window_bounds = array<i64: 128, 128>}, {pipeline_mode = #tpu.pipeline_mode<synchronous>, transform_indices = @transform_41, window_bounds = array<i64: 1, 128>}, {pipeline_mode = #tpu.pipeline_mode<synchronous>, transform_indices = @transform_42, window_bounds = array<i64: 1152, 128>}, {pipeline_mode = #tpu.pipeline_mode<synchronous>, transform_indices = @transform_43, window_bounds = array<i64: 1, 128>}, {pipeline_mode = #tpu.pipeline_mode<synchronous>, transform_indices = @transform_44, window_bounds = array<i64: 128, 128>}, {pipeline_mode = #tpu.pipeline_mode<synchronous>, transform_indices = @transform_45, window_bounds = array<i64: 1, 128>}, {pipeline_mode = #tpu.pipeline_mode<synchronous>, transform_indices = @transform_46, window_bounds = array<i64: 9, 8, 8>}, {pipeline_mode = #tpu.pipeline_mode<synchronous>, transform_indices = @transform_47, window_bounds = array<i64: 128, 128>}, {pipeline_mode = #tpu.pipeline_mode<synchronous>, transform_indices = @transform_48, window_bounds = array<i64: 1, 128>}, {pipeline_mode = #tpu.pipeline_mode<synchronous>, transform_indices = @transform_49, window_bounds = array<i64: 1152, 128>}, {pipeline_mode = #tpu.pipeline_mode<synchronous>, transform_indices = @transform_50, window_bounds = array<i64: 1, 128>}, {pipeline_mode = #tpu.pipeline_mode<synchronous>, transform_indices = @transform_51, window_bounds = array<i64: 128, 128>}, {pipeline_mode = #tpu.pipeline_mode<synchronous>, transform_indices = @transform_52, window_bounds = array<i64: 1, 128>}, {pipeline_mode = #tpu.pipeline_mode<synchronous>, transform_indices = @transform_53, window_bounds = array<i64: 9, 8, 8>}, {pipeline_mode = #tpu.pipeline_mode<synchronous>, transform_indices = @transform_54, window_bounds = array<i64: 128, 128>}, {pipeline_mode = #tpu.pipeline_mode<synchronous>, transform_indices = @transform_55, window_bounds = array<i64: 1, 128>}, {pipeline_mode = #tpu.pipeline_mode<synchronous>, transform_indices = @transform_56, window_bounds = array<i64: 1152, 128>}, {pipeline_mode = #tpu.pipeline_mode<synchronous>, transform_indices = @transform_57, window_bounds = array<i64: 1, 128>}, {pipeline_mode = #tpu.pipeline_mode<synchronous>, transform_indices = @transform_58, window_bounds = array<i64: 128, 128>}, {pipeline_mode = #tpu.pipeline_mode<synchronous>, transform_indices = @transform_59, window_bounds = array<i64: 1, 128>}, {pipeline_mode = #tpu.pipeline_mode<synchronous>, transform_indices = @transform_60, window_bounds = array<i64: 9, 8, 8>}, {pipeline_mode = #tpu.pipeline_mode<synchronous>, transform_indices = @transform_61, window_bounds = array<i64: 128, 128>}, {pipeline_mode = #tpu.pipeline_mode<synchronous>, transform_indices = @transform_62, window_bounds = array<i64: 1, 128>}, {pipeline_mode = #tpu.pipeline_mode<synchronous>, transform_indices = @transform_63, window_bounds = array<i64: 1152, 128>}, {pipeline_mode = #tpu.pipeline_mode<synchronous>, transform_indices = @transform_64, window_bounds = array<i64: 1, 128>}, {pipeline_mode = #tpu.pipeline_mode<synchronous>, transform_indices = @transform_65, window_bounds = array<i64: 128, 256>}, {pipeline_mode = #tpu.pipeline_mode<synchronous>, transform_indices = @transform_66, window_bounds = array<i64: 1, 256>}, {pipeline_mode = #tpu.pipeline_mode<synchronous>, transform_indices = @transform_67, window_bounds = array<i64: 9, 8, 8>}, {pipeline_mode = #tpu.pipeline_mode<synchronous>, transform_indices = @transform_68, window_bounds = array<i64: 128, 256>}, {transform_indices = @transform_69, window_bounds = array<i64: 1, 1, 256>}]} {
    %c0 = arith.constant 0 : index
    %c0_0 = arith.constant 0 : index
    %c0_1 = arith.constant 0 : index
    %0 = vector.load %arg1[%c0, %c0_0, %c0_1] : memref<1x64x128xbf16, #tpu.memory_space<vmem>>, vector<1x64x128xbf16>
    %1 = vector.shape_cast %0 : vector<1x64x128xbf16> to vector<64x128xbf16>
    %c0_2 = arith.constant 0 : index
    %c0_3 = arith.constant 0 : index
    %2 = vector.load %arg2[%c0_2, %c0_3] : memref<128x128xbf16, #tpu.memory_space<vmem>>, vector<128x128xbf16>
    %c0_4 = arith.constant 0 : index
    %c0_5 = arith.constant 0 : index
    %3 = vector.load %arg3[%c0_4, %c0_5] : memref<1x128xf32, #tpu.memory_space<vmem>>, vector<1x128xf32>
    %cst = arith.constant dense<0.000000e+00> : vector<64x128xf32>
    %4 = tpu.matmul %1, %2, %cst {dimension_numbers = #tpu.dot_dimension_numbers<[1], [0], [0], [1], [0, 0, 1, 1], [], []>} : vector<64x128xbf16>, vector<128x128xbf16>, vector<64x128xf32> -> vector<64x128xf32>
    %5 = vector.broadcast %3 : vector<1x128xf32> to vector<64x128xf32>
    %6 = arith.addf %4, %5 : vector<64x128xf32>
    %cst_6 = arith.constant 0.000000e+00 : f32
    %7 = vector.broadcast %cst_6 : f32 to vector<64x128xf32>
    %8 = arith.maximumf %6, %7 : vector<64x128xf32>
    %9 = arith.truncf %8 : vector<64x128xf32> to vector<64x128xbf16>
    %c0_7 = arith.constant 0 : index
    %c0_8 = arith.constant 0 : index
    %10 = vector.load %arg4[%c0_7, %c0_8] : memref<128x128xbf16, #tpu.memory_space<vmem>>, vector<128x128xbf16>
    %c0_9 = arith.constant 0 : index
    %c0_10 = arith.constant 0 : index
    %11 = vector.load %arg5[%c0_9, %c0_10] : memref<1x128xf32, #tpu.memory_space<vmem>>, vector<1x128xf32>
    %c0_11 = arith.constant 0 : index
    %c0_12 = arith.constant 0 : index
    %12 = vector.load %arg6[%c0_11, %c0_12] : memref<1152x128xbf16, #tpu.memory_space<vmem>>, vector<1152x128xbf16>
    %c0_13 = arith.constant 0 : index
    %c0_14 = arith.constant 0 : index
    %13 = vector.load %arg7[%c0_13, %c0_14] : memref<1x128xf32, #tpu.memory_space<vmem>>, vector<1x128xf32>
    %c0_15 = arith.constant 0 : index
    %c0_16 = arith.constant 0 : index
    %14 = vector.load %arg8[%c0_15, %c0_16] : memref<128x128xbf16, #tpu.memory_space<vmem>>, vector<128x128xbf16>
    %c0_17 = arith.constant 0 : index
    %c0_18 = arith.constant 0 : index
    %15 = vector.load %arg9[%c0_17, %c0_18] : memref<1x128xf32, #tpu.memory_space<vmem>>, vector<1x128xf32>
    %cst_19 = arith.constant dense<0.000000e+00> : vector<64x128xf32>
    %16 = tpu.matmul %9, %10, %cst_19 {dimension_numbers = #tpu.dot_dimension_numbers<[1], [0], [0], [1], [0, 0, 1, 1], [], []>} : vector<64x128xbf16>, vector<128x128xbf16>, vector<64x128xf32> -> vector<64x128xf32>
    %17 = vector.broadcast %11 : vector<1x128xf32> to vector<64x128xf32>
    %18 = arith.addf %16, %17 : vector<64x128xf32>
    %cst_20 = arith.constant 0.000000e+00 : f32
    %19 = vector.broadcast %cst_20 : f32 to vector<64x128xf32>
    %20 = arith.maximumf %18, %19 : vector<64x128xf32>
    %21 = arith.truncf %20 : vector<64x128xf32> to vector<64x128xbf16>
    %c0_21 = arith.constant 0 : index
    %c0_22 = arith.constant 0 : index
    %c0_23 = arith.constant 0 : index
    %22 = vector.load %arg10[%c0_21, %c0_22, %c0_23] : memref<9x64x64xbf16, #tpu.memory_space<vmem>>, vector<1x64x64xbf16>
    %23 = vector.shape_cast %22 : vector<1x64x64xbf16> to vector<64x64xbf16>
    %cst_24 = arith.constant dense<0.000000e+00> : vector<64x128xf32>
    %24 = tpu.matmul %23, %21, %cst_24 {dimension_numbers = #tpu.dot_dimension_numbers<[1], [0], [0], [1], [0, 0, 1, 1], [], []>} : vector<64x64xbf16>, vector<64x128xbf16>, vector<64x128xf32> -> vector<64x128xf32>
    %c1 = arith.constant 1 : index
    %c0_25 = arith.constant 0 : index
    %c0_26 = arith.constant 0 : index
    %25 = vector.load %arg10[%c1, %c0_25, %c0_26] : memref<9x64x64xbf16, #tpu.memory_space<vmem>>, vector<1x64x64xbf16>
    %26 = vector.shape_cast %25 : vector<1x64x64xbf16> to vector<64x64xbf16>
    %cst_27 = arith.constant dense<0.000000e+00> : vector<64x128xf32>
    %27 = tpu.matmul %26, %21, %cst_27 {dimension_numbers = #tpu.dot_dimension_numbers<[1], [0], [0], [1], [0, 0, 1, 1], [], []>} : vector<64x64xbf16>, vector<64x128xbf16>, vector<64x128xf32> -> vector<64x128xf32>
    %c2 = arith.constant 2 : index
    %c0_28 = arith.constant 0 : index
    %c0_29 = arith.constant 0 : index
    %28 = vector.load %arg10[%c2, %c0_28, %c0_29] : memref<9x64x64xbf16, #tpu.memory_space<vmem>>, vector<1x64x64xbf16>
    %29 = vector.shape_cast %28 : vector<1x64x64xbf16> to vector<64x64xbf16>
    %cst_30 = arith.constant dense<0.000000e+00> : vector<64x128xf32>
    %30 = tpu.matmul %29, %21, %cst_30 {dimension_numbers = #tpu.dot_dimension_numbers<[1], [0], [0], [1], [0, 0, 1, 1], [], []>} : vector<64x64xbf16>, vector<64x128xbf16>, vector<64x128xf32> -> vector<64x128xf32>
    %c3 = arith.constant 3 : index
    %c0_31 = arith.constant 0 : index
    %c0_32 = arith.constant 0 : index
    %31 = vector.load %arg10[%c3, %c0_31, %c0_32] : memref<9x64x64xbf16, #tpu.memory_space<vmem>>, vector<1x64x64xbf16>
    %32 = vector.shape_cast %31 : vector<1x64x64xbf16> to vector<64x64xbf16>
    %cst_33 = arith.constant dense<0.000000e+00> : vector<64x128xf32>
    %33 = tpu.matmul %32, %21, %cst_33 {dimension_numbers = #tpu.dot_dimension_numbers<[1], [0], [0], [1], [0, 0, 1, 1], [], []>} : vector<64x64xbf16>, vector<64x128xbf16>, vector<64x128xf32> -> vector<64x128xf32>
    %c4 = arith.constant 4 : index
    %c0_34 = arith.constant 0 : index
    %c0_35 = arith.constant 0 : index
    %34 = vector.load %arg10[%c4, %c0_34, %c0_35] : memref<9x64x64xbf16, #tpu.memory_space<vmem>>, vector<1x64x64xbf16>
    %35 = vector.shape_cast %34 : vector<1x64x64xbf16> to vector<64x64xbf16>
    %cst_36 = arith.constant dense<0.000000e+00> : vector<64x128xf32>
    %36 = tpu.matmul %35, %21, %cst_36 {dimension_numbers = #tpu.dot_dimension_numbers<[1], [0], [0], [1], [0, 0, 1, 1], [], []>} : vector<64x64xbf16>, vector<64x128xbf16>, vector<64x128xf32> -> vector<64x128xf32>
    %c5 = arith.constant 5 : index
    %c0_37 = arith.constant 0 : index
    %c0_38 = arith.constant 0 : index
    %37 = vector.load %arg10[%c5, %c0_37, %c0_38] : memref<9x64x64xbf16, #tpu.memory_space<vmem>>, vector<1x64x64xbf16>
    %38 = vector.shape_cast %37 : vector<1x64x64xbf16> to vector<64x64xbf16>
    %cst_39 = arith.constant dense<0.000000e+00> : vector<64x128xf32>
    %39 = tpu.matmul %38, %21, %cst_39 {dimension_numbers = #tpu.dot_dimension_numbers<[1], [0], [0], [1], [0, 0, 1, 1], [], []>} : vector<64x64xbf16>, vector<64x128xbf16>, vector<64x128xf32> -> vector<64x128xf32>
    %c6 = arith.constant 6 : index
    %c0_40 = arith.constant 0 : index
    %c0_41 = arith.constant 0 : index
    %40 = vector.load %arg10[%c6, %c0_40, %c0_41] : memref<9x64x64xbf16, #tpu.memory_space<vmem>>, vector<1x64x64xbf16>
    %41 = vector.shape_cast %40 : vector<1x64x64xbf16> to vector<64x64xbf16>
    %cst_42 = arith.constant dense<0.000000e+00> : vector<64x128xf32>
    %42 = tpu.matmul %41, %21, %cst_42 {dimension_numbers = #tpu.dot_dimension_numbers<[1], [0], [0], [1], [0, 0, 1, 1], [], []>} : vector<64x64xbf16>, vector<64x128xbf16>, vector<64x128xf32> -> vector<64x128xf32>
    %c7 = arith.constant 7 : index
    %c0_43 = arith.constant 0 : index
    %c0_44 = arith.constant 0 : index
    %43 = vector.load %arg10[%c7, %c0_43, %c0_44] : memref<9x64x64xbf16, #tpu.memory_space<vmem>>, vector<1x64x64xbf16>
    %44 = vector.shape_cast %43 : vector<1x64x64xbf16> to vector<64x64xbf16>
    %cst_45 = arith.constant dense<0.000000e+00> : vector<64x128xf32>
    %45 = tpu.matmul %44, %21, %cst_45 {dimension_numbers = #tpu.dot_dimension_numbers<[1], [0], [0], [1], [0, 0, 1, 1], [], []>} : vector<64x64xbf16>, vector<64x128xbf16>, vector<64x128xf32> -> vector<64x128xf32>
    %c8 = arith.constant 8 : index
    %c0_46 = arith.constant 0 : index
    %c0_47 = arith.constant 0 : index
    %46 = vector.load %arg10[%c8, %c0_46, %c0_47] : memref<9x64x64xbf16, #tpu.memory_space<vmem>>, vector<1x64x64xbf16>
    %47 = vector.shape_cast %46 : vector<1x64x64xbf16> to vector<64x64xbf16>
    %cst_48 = arith.constant dense<0.000000e+00> : vector<64x128xf32>
    %48 = tpu.matmul %47, %21, %cst_48 {dimension_numbers = #tpu.dot_dimension_numbers<[1], [0], [0], [1], [0, 0, 1, 1], [], []>} : vector<64x64xbf16>, vector<64x128xbf16>, vector<64x128xf32> -> vector<64x128xf32>
    %49 = tpu.concatenate %24, %27, %30, %33, %36, %39, %42, %45, %48 in 1 : vector<64x128xf32>, vector<64x128xf32>, vector<64x128xf32>, vector<64x128xf32>, vector<64x128xf32>, vector<64x128xf32>, vector<64x128xf32>, vector<64x128xf32>, vector<64x128xf32> -> vector<64x1152xf32>
    %50 = arith.truncf %49 : vector<64x1152xf32> to vector<64x1152xbf16>
    %cst_49 = arith.constant dense<0.000000e+00> : vector<64x128xf32>
    %51 = tpu.matmul %50, %12, %cst_49 {dimension_numbers = #tpu.dot_dimension_numbers<[1], [0], [0], [1], [0, 0, 1, 1], [], []>} : vector<64x1152xbf16>, vector<1152x128xbf16>, vector<64x128xf32> -> vector<64x128xf32>
    %52 = vector.broadcast %13 : vector<1x128xf32> to vector<64x128xf32>
    %53 = arith.addf %51, %52 : vector<64x128xf32>
    %cst_50 = arith.constant 0.000000e+00 : f32
    %54 = vector.broadcast %cst_50 : f32 to vector<64x128xf32>
    %55 = arith.maximumf %53, %54 : vector<64x128xf32>
    %56 = arith.truncf %55 : vector<64x128xf32> to vector<64x128xbf16>
    %cst_51 = arith.constant dense<0.000000e+00> : vector<64x128xf32>
    %57 = tpu.matmul %56, %14, %cst_51 {dimension_numbers = #tpu.dot_dimension_numbers<[1], [0], [0], [1], [0, 0, 1, 1], [], []>} : vector<64x128xbf16>, vector<128x128xbf16>, vector<64x128xf32> -> vector<64x128xf32>
    %58 = vector.broadcast %15 : vector<1x128xf32> to vector<64x128xf32>
    %59 = arith.addf %57, %58 : vector<64x128xf32>
    %60 = arith.extf %9 : vector<64x128xbf16> to vector<64x128xf32>
    %61 = arith.addf %59, %60 : vector<64x128xf32>
    %cst_52 = arith.constant 0.000000e+00 : f32
    %62 = vector.broadcast %cst_52 : f32 to vector<64x128xf32>
    %63 = arith.maximumf %61, %62 : vector<64x128xf32>
    %cst_53 = arith.constant 0.000000e+00 : f32
    %64 = vector.broadcast %cst_53 : f32 to vector<64x128xf32>
    %65 = arith.subf %64, %63 : vector<64x128xf32>
    %66 = math.exp %65 : vector<64x128xf32>
    %cst_54 = arith.constant 1.000000e+00 : f32
    %67 = vector.broadcast %cst_54 : f32 to vector<64x128xf32>
    %68 = arith.addf %67, %66 : vector<64x128xf32>
    %69 = tpu.reciprocal %68 : vector<64x128xf32> -> vector<64x128xf32>
    %70 = arith.truncf %69 : vector<64x128xf32> to vector<64x128xbf16>
    %c0_55 = arith.constant 0 : index
    %c0_56 = arith.constant 0 : index
    %71 = vector.load %arg11[%c0_55, %c0_56] : memref<128x128xbf16, #tpu.memory_space<vmem>>, vector<128x128xbf16>
    %c0_57 = arith.constant 0 : index
    %c0_58 = arith.constant 0 : index
    %72 = vector.load %arg12[%c0_57, %c0_58] : memref<1x128xf32, #tpu.memory_space<vmem>>, vector<1x128xf32>
    %c0_59 = arith.constant 0 : index
    %c0_60 = arith.constant 0 : index
    %73 = vector.load %arg13[%c0_59, %c0_60] : memref<1152x128xbf16, #tpu.memory_space<vmem>>, vector<1152x128xbf16>
    %c0_61 = arith.constant 0 : index
    %c0_62 = arith.constant 0 : index
    %74 = vector.load %arg14[%c0_61, %c0_62] : memref<1x128xf32, #tpu.memory_space<vmem>>, vector<1x128xf32>
    %c0_63 = arith.constant 0 : index
    %c0_64 = arith.constant 0 : index
    %75 = vector.load %arg15[%c0_63, %c0_64] : memref<128x128xbf16, #tpu.memory_space<vmem>>, vector<128x128xbf16>
    %c0_65 = arith.constant 0 : index
    %c0_66 = arith.constant 0 : index
    %76 = vector.load %arg16[%c0_65, %c0_66] : memref<1x128xf32, #tpu.memory_space<vmem>>, vector<1x128xf32>
    %c0_67 = arith.constant 0 : index
    %c0_68 = arith.constant 0 : index
    %77 = vector.load %arg18[%c0_67, %c0_68] : memref<128x128xbf16, #tpu.memory_space<vmem>>, vector<128x128xbf16>
    %cst_69 = arith.constant dense<0.000000e+00> : vector<64x128xf32>
    %78 = tpu.matmul %70, %71, %cst_69 {dimension_numbers = #tpu.dot_dimension_numbers<[1], [0], [0], [1], [0, 0, 1, 1], [], []>} : vector<64x128xbf16>, vector<128x128xbf16>, vector<64x128xf32> -> vector<64x128xf32>
    %79 = vector.broadcast %72 : vector<1x128xf32> to vector<64x128xf32>
    %80 = arith.addf %78, %79 : vector<64x128xf32>
    %cst_70 = arith.constant 0.000000e+00 : f32
    %81 = vector.broadcast %cst_70 : f32 to vector<64x128xf32>
    %82 = arith.maximumf %80, %81 : vector<64x128xf32>
    %83 = arith.truncf %82 : vector<64x128xf32> to vector<64x128xbf16>
    %c0_71 = arith.constant 0 : index
    %c0_72 = arith.constant 0 : index
    %c0_73 = arith.constant 0 : index
    %84 = vector.load %arg17[%c0_71, %c0_72, %c0_73] : memref<9x16x64xbf16, #tpu.memory_space<vmem>>, vector<1x16x64xbf16>
    %85 = vector.shape_cast %84 : vector<1x16x64xbf16> to vector<16x64xbf16>
    %cst_74 = arith.constant dense<0.000000e+00> : vector<16x128xf32>
    %86 = tpu.matmul %85, %83, %cst_74 {dimension_numbers = #tpu.dot_dimension_numbers<[1], [0], [0], [1], [0, 0, 1, 1], [], []>} : vector<16x64xbf16>, vector<64x128xbf16>, vector<16x128xf32> -> vector<16x128xf32>
    %c1_75 = arith.constant 1 : index
    %c0_76 = arith.constant 0 : index
    %c0_77 = arith.constant 0 : index
    %87 = vector.load %arg17[%c1_75, %c0_76, %c0_77] : memref<9x16x64xbf16, #tpu.memory_space<vmem>>, vector<1x16x64xbf16>
    %88 = vector.shape_cast %87 : vector<1x16x64xbf16> to vector<16x64xbf16>
    %cst_78 = arith.constant dense<0.000000e+00> : vector<16x128xf32>
    %89 = tpu.matmul %88, %83, %cst_78 {dimension_numbers = #tpu.dot_dimension_numbers<[1], [0], [0], [1], [0, 0, 1, 1], [], []>} : vector<16x64xbf16>, vector<64x128xbf16>, vector<16x128xf32> -> vector<16x128xf32>
    %c2_79 = arith.constant 2 : index
    %c0_80 = arith.constant 0 : index
    %c0_81 = arith.constant 0 : index
    %90 = vector.load %arg17[%c2_79, %c0_80, %c0_81] : memref<9x16x64xbf16, #tpu.memory_space<vmem>>, vector<1x16x64xbf16>
    %91 = vector.shape_cast %90 : vector<1x16x64xbf16> to vector<16x64xbf16>
    %cst_82 = arith.constant dense<0.000000e+00> : vector<16x128xf32>
    %92 = tpu.matmul %91, %83, %cst_82 {dimension_numbers = #tpu.dot_dimension_numbers<[1], [0], [0], [1], [0, 0, 1, 1], [], []>} : vector<16x64xbf16>, vector<64x128xbf16>, vector<16x128xf32> -> vector<16x128xf32>
    %c3_83 = arith.constant 3 : index
    %c0_84 = arith.constant 0 : index
    %c0_85 = arith.constant 0 : index
    %93 = vector.load %arg17[%c3_83, %c0_84, %c0_85] : memref<9x16x64xbf16, #tpu.memory_space<vmem>>, vector<1x16x64xbf16>
    %94 = vector.shape_cast %93 : vector<1x16x64xbf16> to vector<16x64xbf16>
    %cst_86 = arith.constant dense<0.000000e+00> : vector<16x128xf32>
    %95 = tpu.matmul %94, %83, %cst_86 {dimension_numbers = #tpu.dot_dimension_numbers<[1], [0], [0], [1], [0, 0, 1, 1], [], []>} : vector<16x64xbf16>, vector<64x128xbf16>, vector<16x128xf32> -> vector<16x128xf32>
    %c4_87 = arith.constant 4 : index
    %c0_88 = arith.constant 0 : index
    %c0_89 = arith.constant 0 : index
    %96 = vector.load %arg17[%c4_87, %c0_88, %c0_89] : memref<9x16x64xbf16, #tpu.memory_space<vmem>>, vector<1x16x64xbf16>
    %97 = vector.shape_cast %96 : vector<1x16x64xbf16> to vector<16x64xbf16>
    %cst_90 = arith.constant dense<0.000000e+00> : vector<16x128xf32>
    %98 = tpu.matmul %97, %83, %cst_90 {dimension_numbers = #tpu.dot_dimension_numbers<[1], [0], [0], [1], [0, 0, 1, 1], [], []>} : vector<16x64xbf16>, vector<64x128xbf16>, vector<16x128xf32> -> vector<16x128xf32>
    %c5_91 = arith.constant 5 : index
    %c0_92 = arith.constant 0 : index
    %c0_93 = arith.constant 0 : index
    %99 = vector.load %arg17[%c5_91, %c0_92, %c0_93] : memref<9x16x64xbf16, #tpu.memory_space<vmem>>, vector<1x16x64xbf16>
    %100 = vector.shape_cast %99 : vector<1x16x64xbf16> to vector<16x64xbf16>
    %cst_94 = arith.constant dense<0.000000e+00> : vector<16x128xf32>
    %101 = tpu.matmul %100, %83, %cst_94 {dimension_numbers = #tpu.dot_dimension_numbers<[1], [0], [0], [1], [0, 0, 1, 1], [], []>} : vector<16x64xbf16>, vector<64x128xbf16>, vector<16x128xf32> -> vector<16x128xf32>
    %c6_95 = arith.constant 6 : index
    %c0_96 = arith.constant 0 : index
    %c0_97 = arith.constant 0 : index
    %102 = vector.load %arg17[%c6_95, %c0_96, %c0_97] : memref<9x16x64xbf16, #tpu.memory_space<vmem>>, vector<1x16x64xbf16>
    %103 = vector.shape_cast %102 : vector<1x16x64xbf16> to vector<16x64xbf16>
    %cst_98 = arith.constant dense<0.000000e+00> : vector<16x128xf32>
    %104 = tpu.matmul %103, %83, %cst_98 {dimension_numbers = #tpu.dot_dimension_numbers<[1], [0], [0], [1], [0, 0, 1, 1], [], []>} : vector<16x64xbf16>, vector<64x128xbf16>, vector<16x128xf32> -> vector<16x128xf32>
    %c7_99 = arith.constant 7 : index
    %c0_100 = arith.constant 0 : index
    %c0_101 = arith.constant 0 : index
    %105 = vector.load %arg17[%c7_99, %c0_100, %c0_101] : memref<9x16x64xbf16, #tpu.memory_space<vmem>>, vector<1x16x64xbf16>
    %106 = vector.shape_cast %105 : vector<1x16x64xbf16> to vector<16x64xbf16>
    %cst_102 = arith.constant dense<0.000000e+00> : vector<16x128xf32>
    %107 = tpu.matmul %106, %83, %cst_102 {dimension_numbers = #tpu.dot_dimension_numbers<[1], [0], [0], [1], [0, 0, 1, 1], [], []>} : vector<16x64xbf16>, vector<64x128xbf16>, vector<16x128xf32> -> vector<16x128xf32>
    %c8_103 = arith.constant 8 : index
    %c0_104 = arith.constant 0 : index
    %c0_105 = arith.constant 0 : index
    %108 = vector.load %arg17[%c8_103, %c0_104, %c0_105] : memref<9x16x64xbf16, #tpu.memory_space<vmem>>, vector<1x16x64xbf16>
    %109 = vector.shape_cast %108 : vector<1x16x64xbf16> to vector<16x64xbf16>
    %cst_106 = arith.constant dense<0.000000e+00> : vector<16x128xf32>
    %110 = tpu.matmul %109, %83, %cst_106 {dimension_numbers = #tpu.dot_dimension_numbers<[1], [0], [0], [1], [0, 0, 1, 1], [], []>} : vector<16x64xbf16>, vector<64x128xbf16>, vector<16x128xf32> -> vector<16x128xf32>
    %111 = tpu.concatenate %86, %89, %92, %95, %98, %101, %104, %107, %110 in 1 : vector<16x128xf32>, vector<16x128xf32>, vector<16x128xf32>, vector<16x128xf32>, vector<16x128xf32>, vector<16x128xf32>, vector<16x128xf32>, vector<16x128xf32>, vector<16x128xf32> -> vector<16x1152xf32>
    %112 = arith.truncf %111 : vector<16x1152xf32> to vector<16x1152xbf16>
    %cst_107 = arith.constant dense<0.000000e+00> : vector<16x128xf32>
    %113 = tpu.matmul %112, %73, %cst_107 {dimension_numbers = #tpu.dot_dimension_numbers<[1], [0], [0], [1], [0, 0, 1, 1], [], []>} : vector<16x1152xbf16>, vector<1152x128xbf16>, vector<16x128xf32> -> vector<16x128xf32>
    %114 = vector.broadcast %74 : vector<1x128xf32> to vector<16x128xf32>
    %115 = arith.addf %113, %114 : vector<16x128xf32>
    %cst_108 = arith.constant 0.000000e+00 : f32
    %116 = vector.broadcast %cst_108 : f32 to vector<16x128xf32>
    %117 = arith.maximumf %115, %116 : vector<16x128xf32>
    %118 = arith.truncf %117 : vector<16x128xf32> to vector<16x128xbf16>
    %cst_109 = arith.constant dense<0.000000e+00> : vector<16x128xf32>
    %119 = tpu.matmul %118, %75, %cst_109 {dimension_numbers = #tpu.dot_dimension_numbers<[1], [0], [0], [1], [0, 0, 1, 1], [], []>} : vector<16x128xbf16>, vector<128x128xbf16>, vector<16x128xf32> -> vector<16x128xf32>
    %120 = vector.broadcast %76 : vector<1x128xf32> to vector<16x128xf32>
    %121 = arith.addf %119, %120 : vector<16x128xf32>
    %c4_110 = arith.constant 4 : index
    %c0_111 = arith.constant 0 : index
    %c0_112 = arith.constant 0 : index
    %122 = vector.load %arg17[%c4_110, %c0_111, %c0_112] : memref<9x16x64xbf16, #tpu.memory_space<vmem>>, vector<1x16x64xbf16>
    %123 = vector.shape_cast %122 : vector<1x16x64xbf16> to vector<16x64xbf16>
    %cst_113 = arith.constant dense<0.000000e+00> : vector<16x128xf32>
    %124 = tpu.matmul %123, %70, %cst_113 {dimension_numbers = #tpu.dot_dimension_numbers<[1], [0], [0], [1], [0, 0, 1, 1], [], []>} : vector<16x64xbf16>, vector<64x128xbf16>, vector<16x128xf32> -> vector<16x128xf32>
    %125 = arith.truncf %124 : vector<16x128xf32> to vector<16x128xbf16>
    %cst_114 = arith.constant dense<0.000000e+00> : vector<16x128xf32>
    %126 = tpu.matmul %125, %77, %cst_114 {dimension_numbers = #tpu.dot_dimension_numbers<[1], [0], [0], [1], [0, 0, 1, 1], [], []>} : vector<16x128xbf16>, vector<128x128xbf16>, vector<16x128xf32> -> vector<16x128xf32>
    %127 = arith.addf %121, %126 : vector<16x128xf32>
    %cst_115 = arith.constant 0.000000e+00 : f32
    %128 = vector.broadcast %cst_115 : f32 to vector<16x128xf32>
    %129 = arith.maximumf %127, %128 : vector<16x128xf32>
    %cst_116 = arith.constant 0.000000e+00 : f32
    %130 = vector.broadcast %cst_116 : f32 to vector<16x128xf32>
    %131 = arith.subf %130, %129 : vector<16x128xf32>
    %132 = math.exp %131 : vector<16x128xf32>
    %cst_117 = arith.constant 1.000000e+00 : f32
    %133 = vector.broadcast %cst_117 : f32 to vector<16x128xf32>
    %134 = arith.addf %133, %132 : vector<16x128xf32>
    %135 = tpu.reciprocal %134 : vector<16x128xf32> -> vector<16x128xf32>
    %136 = arith.truncf %135 : vector<16x128xf32> to vector<16x128xbf16>
    %c0_118 = arith.constant 0 : index
    %c0_119 = arith.constant 0 : index
    %137 = vector.load %arg19[%c0_118, %c0_119] : memref<128x128xbf16, #tpu.memory_space<vmem>>, vector<128x128xbf16>
    %c0_120 = arith.constant 0 : index
    %c0_121 = arith.constant 0 : index
    %138 = vector.load %arg20[%c0_120, %c0_121] : memref<1x128xf32, #tpu.memory_space<vmem>>, vector<1x128xf32>
    %c0_122 = arith.constant 0 : index
    %c0_123 = arith.constant 0 : index
    %139 = vector.load %arg21[%c0_122, %c0_123] : memref<1152x128xbf16, #tpu.memory_space<vmem>>, vector<1152x128xbf16>
    %c0_124 = arith.constant 0 : index
    %c0_125 = arith.constant 0 : index
    %140 = vector.load %arg22[%c0_124, %c0_125] : memref<1x128xf32, #tpu.memory_space<vmem>>, vector<1x128xf32>
    %c0_126 = arith.constant 0 : index
    %c0_127 = arith.constant 0 : index
    %141 = vector.load %arg23[%c0_126, %c0_127] : memref<128x128xbf16, #tpu.memory_space<vmem>>, vector<128x128xbf16>
    %c0_128 = arith.constant 0 : index
    %c0_129 = arith.constant 0 : index
    %142 = vector.load %arg24[%c0_128, %c0_129] : memref<1x128xf32, #tpu.memory_space<vmem>>, vector<1x128xf32>
    %cst_130 = arith.constant dense<0.000000e+00> : vector<16x128xf32>
    %143 = tpu.matmul %136, %137, %cst_130 {dimension_numbers = #tpu.dot_dimension_numbers<[1], [0], [0], [1], [0, 0, 1, 1], [], []>} : vector<16x128xbf16>, vector<128x128xbf16>, vector<16x128xf32> -> vector<16x128xf32>
    %144 = vector.broadcast %138 : vector<1x128xf32> to vector<16x128xf32>
    %145 = arith.addf %143, %144 : vector<16x128xf32>
    %cst_131 = arith.constant 0.000000e+00 : f32
    %146 = vector.broadcast %cst_131 : f32 to vector<16x128xf32>
    %147 = arith.maximumf %145, %146 : vector<16x128xf32>
    %148 = arith.truncf %147 : vector<16x128xf32> to vector<16x128xbf16>
    %c0_132 = arith.constant 0 : index
    %c0_133 = arith.constant 0 : index
    %c0_134 = arith.constant 0 : index
    %149 = vector.load %arg25[%c0_132, %c0_133, %c0_134] : memref<9x16x16xbf16, #tpu.memory_space<vmem>>, vector<1x16x16xbf16>
    %150 = vector.shape_cast %149 : vector<1x16x16xbf16> to vector<16x16xbf16>
    %cst_135 = arith.constant dense<0.000000e+00> : vector<16x128xf32>
    %151 = tpu.matmul %150, %148, %cst_135 {dimension_numbers = #tpu.dot_dimension_numbers<[1], [0], [0], [1], [0, 0, 1, 1], [], []>} : vector<16x16xbf16>, vector<16x128xbf16>, vector<16x128xf32> -> vector<16x128xf32>
    %c1_136 = arith.constant 1 : index
    %c0_137 = arith.constant 0 : index
    %c0_138 = arith.constant 0 : index
    %152 = vector.load %arg25[%c1_136, %c0_137, %c0_138] : memref<9x16x16xbf16, #tpu.memory_space<vmem>>, vector<1x16x16xbf16>
    %153 = vector.shape_cast %152 : vector<1x16x16xbf16> to vector<16x16xbf16>
    %cst_139 = arith.constant dense<0.000000e+00> : vector<16x128xf32>
    %154 = tpu.matmul %153, %148, %cst_139 {dimension_numbers = #tpu.dot_dimension_numbers<[1], [0], [0], [1], [0, 0, 1, 1], [], []>} : vector<16x16xbf16>, vector<16x128xbf16>, vector<16x128xf32> -> vector<16x128xf32>
    %c2_140 = arith.constant 2 : index
    %c0_141 = arith.constant 0 : index
    %c0_142 = arith.constant 0 : index
    %155 = vector.load %arg25[%c2_140, %c0_141, %c0_142] : memref<9x16x16xbf16, #tpu.memory_space<vmem>>, vector<1x16x16xbf16>
    %156 = vector.shape_cast %155 : vector<1x16x16xbf16> to vector<16x16xbf16>
    %cst_143 = arith.constant dense<0.000000e+00> : vector<16x128xf32>
    %157 = tpu.matmul %156, %148, %cst_143 {dimension_numbers = #tpu.dot_dimension_numbers<[1], [0], [0], [1], [0, 0, 1, 1], [], []>} : vector<16x16xbf16>, vector<16x128xbf16>, vector<16x128xf32> -> vector<16x128xf32>
    %c3_144 = arith.constant 3 : index
    %c0_145 = arith.constant 0 : index
    %c0_146 = arith.constant 0 : index
    %158 = vector.load %arg25[%c3_144, %c0_145, %c0_146] : memref<9x16x16xbf16, #tpu.memory_space<vmem>>, vector<1x16x16xbf16>
    %159 = vector.shape_cast %158 : vector<1x16x16xbf16> to vector<16x16xbf16>
    %cst_147 = arith.constant dense<0.000000e+00> : vector<16x128xf32>
    %160 = tpu.matmul %159, %148, %cst_147 {dimension_numbers = #tpu.dot_dimension_numbers<[1], [0], [0], [1], [0, 0, 1, 1], [], []>} : vector<16x16xbf16>, vector<16x128xbf16>, vector<16x128xf32> -> vector<16x128xf32>
    %c4_148 = arith.constant 4 : index
    %c0_149 = arith.constant 0 : index
    %c0_150 = arith.constant 0 : index
    %161 = vector.load %arg25[%c4_148, %c0_149, %c0_150] : memref<9x16x16xbf16, #tpu.memory_space<vmem>>, vector<1x16x16xbf16>
    %162 = vector.shape_cast %161 : vector<1x16x16xbf16> to vector<16x16xbf16>
    %cst_151 = arith.constant dense<0.000000e+00> : vector<16x128xf32>
    %163 = tpu.matmul %162, %148, %cst_151 {dimension_numbers = #tpu.dot_dimension_numbers<[1], [0], [0], [1], [0, 0, 1, 1], [], []>} : vector<16x16xbf16>, vector<16x128xbf16>, vector<16x128xf32> -> vector<16x128xf32>
    %c5_152 = arith.constant 5 : index
    %c0_153 = arith.constant 0 : index
    %c0_154 = arith.constant 0 : index
    %164 = vector.load %arg25[%c5_152, %c0_153, %c0_154] : memref<9x16x16xbf16, #tpu.memory_space<vmem>>, vector<1x16x16xbf16>
    %165 = vector.shape_cast %164 : vector<1x16x16xbf16> to vector<16x16xbf16>
    %cst_155 = arith.constant dense<0.000000e+00> : vector<16x128xf32>
    %166 = tpu.matmul %165, %148, %cst_155 {dimension_numbers = #tpu.dot_dimension_numbers<[1], [0], [0], [1], [0, 0, 1, 1], [], []>} : vector<16x16xbf16>, vector<16x128xbf16>, vector<16x128xf32> -> vector<16x128xf32>
    %c6_156 = arith.constant 6 : index
    %c0_157 = arith.constant 0 : index
    %c0_158 = arith.constant 0 : index
    %167 = vector.load %arg25[%c6_156, %c0_157, %c0_158] : memref<9x16x16xbf16, #tpu.memory_space<vmem>>, vector<1x16x16xbf16>
    %168 = vector.shape_cast %167 : vector<1x16x16xbf16> to vector<16x16xbf16>
    %cst_159 = arith.constant dense<0.000000e+00> : vector<16x128xf32>
    %169 = tpu.matmul %168, %148, %cst_159 {dimension_numbers = #tpu.dot_dimension_numbers<[1], [0], [0], [1], [0, 0, 1, 1], [], []>} : vector<16x16xbf16>, vector<16x128xbf16>, vector<16x128xf32> -> vector<16x128xf32>
    %c7_160 = arith.constant 7 : index
    %c0_161 = arith.constant 0 : index
    %c0_162 = arith.constant 0 : index
    %170 = vector.load %arg25[%c7_160, %c0_161, %c0_162] : memref<9x16x16xbf16, #tpu.memory_space<vmem>>, vector<1x16x16xbf16>
    %171 = vector.shape_cast %170 : vector<1x16x16xbf16> to vector<16x16xbf16>
    %cst_163 = arith.constant dense<0.000000e+00> : vector<16x128xf32>
    %172 = tpu.matmul %171, %148, %cst_163 {dimension_numbers = #tpu.dot_dimension_numbers<[1], [0], [0], [1], [0, 0, 1, 1], [], []>} : vector<16x16xbf16>, vector<16x128xbf16>, vector<16x128xf32> -> vector<16x128xf32>
    %c8_164 = arith.constant 8 : index
    %c0_165 = arith.constant 0 : index
    %c0_166 = arith.constant 0 : index
    %173 = vector.load %arg25[%c8_164, %c0_165, %c0_166] : memref<9x16x16xbf16, #tpu.memory_space<vmem>>, vector<1x16x16xbf16>
    %174 = vector.shape_cast %173 : vector<1x16x16xbf16> to vector<16x16xbf16>
    %cst_167 = arith.constant dense<0.000000e+00> : vector<16x128xf32>
    %175 = tpu.matmul %174, %148, %cst_167 {dimension_numbers = #tpu.dot_dimension_numbers<[1], [0], [0], [1], [0, 0, 1, 1], [], []>} : vector<16x16xbf16>, vector<16x128xbf16>, vector<16x128xf32> -> vector<16x128xf32>
    %176 = tpu.concatenate %151, %154, %157, %160, %163, %166, %169, %172, %175 in 1 : vector<16x128xf32>, vector<16x128xf32>, vector<16x128xf32>, vector<16x128xf32>, vector<16x128xf32>, vector<16x128xf32>, vector<16x128xf32>, vector<16x128xf32>, vector<16x128xf32> -> vector<16x1152xf32>
    %177 = arith.truncf %176 : vector<16x1152xf32> to vector<16x1152xbf16>
    %cst_168 = arith.constant dense<0.000000e+00> : vector<16x128xf32>
    %178 = tpu.matmul %177, %139, %cst_168 {dimension_numbers = #tpu.dot_dimension_numbers<[1], [0], [0], [1], [0, 0, 1, 1], [], []>} : vector<16x1152xbf16>, vector<1152x128xbf16>, vector<16x128xf32> -> vector<16x128xf32>
    %179 = vector.broadcast %140 : vector<1x128xf32> to vector<16x128xf32>
    %180 = arith.addf %178, %179 : vector<16x128xf32>
    %cst_169 = arith.constant 0.000000e+00 : f32
    %181 = vector.broadcast %cst_169 : f32 to vector<16x128xf32>
    %182 = arith.maximumf %180, %181 : vector<16x128xf32>
    %183 = arith.truncf %182 : vector<16x128xf32> to vector<16x128xbf16>
    %cst_170 = arith.constant dense<0.000000e+00> : vector<16x128xf32>
    %184 = tpu.matmul %183, %141, %cst_170 {dimension_numbers = #tpu.dot_dimension_numbers<[1], [0], [0], [1], [0, 0, 1, 1], [], []>} : vector<16x128xbf16>, vector<128x128xbf16>, vector<16x128xf32> -> vector<16x128xf32>
    %185 = vector.broadcast %142 : vector<1x128xf32> to vector<16x128xf32>
    %186 = arith.addf %184, %185 : vector<16x128xf32>
    %187 = arith.extf %136 : vector<16x128xbf16> to vector<16x128xf32>
    %188 = arith.addf %186, %187 : vector<16x128xf32>
    %cst_171 = arith.constant 0.000000e+00 : f32
    %189 = vector.broadcast %cst_171 : f32 to vector<16x128xf32>
    %190 = arith.maximumf %188, %189 : vector<16x128xf32>
    %cst_172 = arith.constant 0.000000e+00 : f32
    %191 = vector.broadcast %cst_172 : f32 to vector<16x128xf32>
    %192 = arith.subf %191, %190 : vector<16x128xf32>
    %193 = math.exp %192 : vector<16x128xf32>
    %cst_173 = arith.constant 1.000000e+00 : f32
    %194 = vector.broadcast %cst_173 : f32 to vector<16x128xf32>
    %195 = arith.addf %194, %193 : vector<16x128xf32>
    %196 = tpu.reciprocal %195 : vector<16x128xf32> -> vector<16x128xf32>
    %197 = arith.truncf %196 : vector<16x128xf32> to vector<16x128xbf16>
    %c0_174 = arith.constant 0 : index
    %c0_175 = arith.constant 0 : index
    %198 = vector.load %arg26[%c0_174, %c0_175] : memref<128x128xbf16, #tpu.memory_space<vmem>>, vector<128x128xbf16>
    %c0_176 = arith.constant 0 : index
    %c0_177 = arith.constant 0 : index
    %199 = vector.load %arg27[%c0_176, %c0_177] : memref<1x128xf32, #tpu.memory_space<vmem>>, vector<1x128xf32>
    %c0_178 = arith.constant 0 : index
    %c0_179 = arith.constant 0 : index
    %200 = vector.load %arg28[%c0_178, %c0_179] : memref<1152x128xbf16, #tpu.memory_space<vmem>>, vector<1152x128xbf16>
    %c0_180 = arith.constant 0 : index
    %c0_181 = arith.constant 0 : index
    %201 = vector.load %arg29[%c0_180, %c0_181] : memref<1x128xf32, #tpu.memory_space<vmem>>, vector<1x128xf32>
    %c0_182 = arith.constant 0 : index
    %c0_183 = arith.constant 0 : index
    %202 = vector.load %arg30[%c0_182, %c0_183] : memref<128x128xbf16, #tpu.memory_space<vmem>>, vector<128x128xbf16>
    %c0_184 = arith.constant 0 : index
    %c0_185 = arith.constant 0 : index
    %203 = vector.load %arg31[%c0_184, %c0_185] : memref<1x128xf32, #tpu.memory_space<vmem>>, vector<1x128xf32>
    %cst_186 = arith.constant dense<0.000000e+00> : vector<16x128xf32>
    %204 = tpu.matmul %197, %198, %cst_186 {dimension_numbers = #tpu.dot_dimension_numbers<[1], [0], [0], [1], [0, 0, 1, 1], [], []>} : vector<16x128xbf16>, vector<128x128xbf16>, vector<16x128xf32> -> vector<16x128xf32>
    %205 = vector.broadcast %199 : vector<1x128xf32> to vector<16x128xf32>
    %206 = arith.addf %204, %205 : vector<16x128xf32>
    %cst_187 = arith.constant 0.000000e+00 : f32
    %207 = vector.broadcast %cst_187 : f32 to vector<16x128xf32>
    %208 = arith.maximumf %206, %207 : vector<16x128xf32>
    %209 = arith.truncf %208 : vector<16x128xf32> to vector<16x128xbf16>
    %c0_188 = arith.constant 0 : index
    %c0_189 = arith.constant 0 : index
    %c0_190 = arith.constant 0 : index
    %210 = vector.load %arg32[%c0_188, %c0_189, %c0_190] : memref<9x16x16xbf16, #tpu.memory_space<vmem>>, vector<1x16x16xbf16>
    %211 = vector.shape_cast %210 : vector<1x16x16xbf16> to vector<16x16xbf16>
    %cst_191 = arith.constant dense<0.000000e+00> : vector<16x128xf32>
    %212 = tpu.matmul %211, %209, %cst_191 {dimension_numbers = #tpu.dot_dimension_numbers<[1], [0], [0], [1], [0, 0, 1, 1], [], []>} : vector<16x16xbf16>, vector<16x128xbf16>, vector<16x128xf32> -> vector<16x128xf32>
    %c1_192 = arith.constant 1 : index
    %c0_193 = arith.constant 0 : index
    %c0_194 = arith.constant 0 : index
    %213 = vector.load %arg32[%c1_192, %c0_193, %c0_194] : memref<9x16x16xbf16, #tpu.memory_space<vmem>>, vector<1x16x16xbf16>
    %214 = vector.shape_cast %213 : vector<1x16x16xbf16> to vector<16x16xbf16>
    %cst_195 = arith.constant dense<0.000000e+00> : vector<16x128xf32>
    %215 = tpu.matmul %214, %209, %cst_195 {dimension_numbers = #tpu.dot_dimension_numbers<[1], [0], [0], [1], [0, 0, 1, 1], [], []>} : vector<16x16xbf16>, vector<16x128xbf16>, vector<16x128xf32> -> vector<16x128xf32>
    %c2_196 = arith.constant 2 : index
    %c0_197 = arith.constant 0 : index
    %c0_198 = arith.constant 0 : index
    %216 = vector.load %arg32[%c2_196, %c0_197, %c0_198] : memref<9x16x16xbf16, #tpu.memory_space<vmem>>, vector<1x16x16xbf16>
    %217 = vector.shape_cast %216 : vector<1x16x16xbf16> to vector<16x16xbf16>
    %cst_199 = arith.constant dense<0.000000e+00> : vector<16x128xf32>
    %218 = tpu.matmul %217, %209, %cst_199 {dimension_numbers = #tpu.dot_dimension_numbers<[1], [0], [0], [1], [0, 0, 1, 1], [], []>} : vector<16x16xbf16>, vector<16x128xbf16>, vector<16x128xf32> -> vector<16x128xf32>
    %c3_200 = arith.constant 3 : index
    %c0_201 = arith.constant 0 : index
    %c0_202 = arith.constant 0 : index
    %219 = vector.load %arg32[%c3_200, %c0_201, %c0_202] : memref<9x16x16xbf16, #tpu.memory_space<vmem>>, vector<1x16x16xbf16>
    %220 = vector.shape_cast %219 : vector<1x16x16xbf16> to vector<16x16xbf16>
    %cst_203 = arith.constant dense<0.000000e+00> : vector<16x128xf32>
    %221 = tpu.matmul %220, %209, %cst_203 {dimension_numbers = #tpu.dot_dimension_numbers<[1], [0], [0], [1], [0, 0, 1, 1], [], []>} : vector<16x16xbf16>, vector<16x128xbf16>, vector<16x128xf32> -> vector<16x128xf32>
    %c4_204 = arith.constant 4 : index
    %c0_205 = arith.constant 0 : index
    %c0_206 = arith.constant 0 : index
    %222 = vector.load %arg32[%c4_204, %c0_205, %c0_206] : memref<9x16x16xbf16, #tpu.memory_space<vmem>>, vector<1x16x16xbf16>
    %223 = vector.shape_cast %222 : vector<1x16x16xbf16> to vector<16x16xbf16>
    %cst_207 = arith.constant dense<0.000000e+00> : vector<16x128xf32>
    %224 = tpu.matmul %223, %209, %cst_207 {dimension_numbers = #tpu.dot_dimension_numbers<[1], [0], [0], [1], [0, 0, 1, 1], [], []>} : vector<16x16xbf16>, vector<16x128xbf16>, vector<16x128xf32> -> vector<16x128xf32>
    %c5_208 = arith.constant 5 : index
    %c0_209 = arith.constant 0 : index
    %c0_210 = arith.constant 0 : index
    %225 = vector.load %arg32[%c5_208, %c0_209, %c0_210] : memref<9x16x16xbf16, #tpu.memory_space<vmem>>, vector<1x16x16xbf16>
    %226 = vector.shape_cast %225 : vector<1x16x16xbf16> to vector<16x16xbf16>
    %cst_211 = arith.constant dense<0.000000e+00> : vector<16x128xf32>
    %227 = tpu.matmul %226, %209, %cst_211 {dimension_numbers = #tpu.dot_dimension_numbers<[1], [0], [0], [1], [0, 0, 1, 1], [], []>} : vector<16x16xbf16>, vector<16x128xbf16>, vector<16x128xf32> -> vector<16x128xf32>
    %c6_212 = arith.constant 6 : index
    %c0_213 = arith.constant 0 : index
    %c0_214 = arith.constant 0 : index
    %228 = vector.load %arg32[%c6_212, %c0_213, %c0_214] : memref<9x16x16xbf16, #tpu.memory_space<vmem>>, vector<1x16x16xbf16>
    %229 = vector.shape_cast %228 : vector<1x16x16xbf16> to vector<16x16xbf16>
    %cst_215 = arith.constant dense<0.000000e+00> : vector<16x128xf32>
    %230 = tpu.matmul %229, %209, %cst_215 {dimension_numbers = #tpu.dot_dimension_numbers<[1], [0], [0], [1], [0, 0, 1, 1], [], []>} : vector<16x16xbf16>, vector<16x128xbf16>, vector<16x128xf32> -> vector<16x128xf32>
    %c7_216 = arith.constant 7 : index
    %c0_217 = arith.constant 0 : index
    %c0_218 = arith.constant 0 : index
    %231 = vector.load %arg32[%c7_216, %c0_217, %c0_218] : memref<9x16x16xbf16, #tpu.memory_space<vmem>>, vector<1x16x16xbf16>
    %232 = vector.shape_cast %231 : vector<1x16x16xbf16> to vector<16x16xbf16>
    %cst_219 = arith.constant dense<0.000000e+00> : vector<16x128xf32>
    %233 = tpu.matmul %232, %209, %cst_219 {dimension_numbers = #tpu.dot_dimension_numbers<[1], [0], [0], [1], [0, 0, 1, 1], [], []>} : vector<16x16xbf16>, vector<16x128xbf16>, vector<16x128xf32> -> vector<16x128xf32>
    %c8_220 = arith.constant 8 : index
    %c0_221 = arith.constant 0 : index
    %c0_222 = arith.constant 0 : index
    %234 = vector.load %arg32[%c8_220, %c0_221, %c0_222] : memref<9x16x16xbf16, #tpu.memory_space<vmem>>, vector<1x16x16xbf16>
    %235 = vector.shape_cast %234 : vector<1x16x16xbf16> to vector<16x16xbf16>
    %cst_223 = arith.constant dense<0.000000e+00> : vector<16x128xf32>
    %236 = tpu.matmul %235, %209, %cst_223 {dimension_numbers = #tpu.dot_dimension_numbers<[1], [0], [0], [1], [0, 0, 1, 1], [], []>} : vector<16x16xbf16>, vector<16x128xbf16>, vector<16x128xf32> -> vector<16x128xf32>
    %237 = tpu.concatenate %212, %215, %218, %221, %224, %227, %230, %233, %236 in 1 : vector<16x128xf32>, vector<16x128xf32>, vector<16x128xf32>, vector<16x128xf32>, vector<16x128xf32>, vector<16x128xf32>, vector<16x128xf32>, vector<16x128xf32>, vector<16x128xf32> -> vector<16x1152xf32>
    %238 = arith.truncf %237 : vector<16x1152xf32> to vector<16x1152xbf16>
    %cst_224 = arith.constant dense<0.000000e+00> : vector<16x128xf32>
    %239 = tpu.matmul %238, %200, %cst_224 {dimension_numbers = #tpu.dot_dimension_numbers<[1], [0], [0], [1], [0, 0, 1, 1], [], []>} : vector<16x1152xbf16>, vector<1152x128xbf16>, vector<16x128xf32> -> vector<16x128xf32>
    %240 = vector.broadcast %201 : vector<1x128xf32> to vector<16x128xf32>
    %241 = arith.addf %239, %240 : vector<16x128xf32>
    %cst_225 = arith.constant 0.000000e+00 : f32
    %242 = vector.broadcast %cst_225 : f32 to vector<16x128xf32>
    %243 = arith.maximumf %241, %242 : vector<16x128xf32>
    %244 = arith.truncf %243 : vector<16x128xf32> to vector<16x128xbf16>
    %cst_226 = arith.constant dense<0.000000e+00> : vector<16x128xf32>
    %245 = tpu.matmul %244, %202, %cst_226 {dimension_numbers = #tpu.dot_dimension_numbers<[1], [0], [0], [1], [0, 0, 1, 1], [], []>} : vector<16x128xbf16>, vector<128x128xbf16>, vector<16x128xf32> -> vector<16x128xf32>
    %246 = vector.broadcast %203 : vector<1x128xf32> to vector<16x128xf32>
    %247 = arith.addf %245, %246 : vector<16x128xf32>
    %248 = arith.extf %197 : vector<16x128xbf16> to vector<16x128xf32>
    %249 = arith.addf %247, %248 : vector<16x128xf32>
    %cst_227 = arith.constant 0.000000e+00 : f32
    %250 = vector.broadcast %cst_227 : f32 to vector<16x128xf32>
    %251 = arith.maximumf %249, %250 : vector<16x128xf32>
    %cst_228 = arith.constant 0.000000e+00 : f32
    %252 = vector.broadcast %cst_228 : f32 to vector<16x128xf32>
    %253 = arith.subf %252, %251 : vector<16x128xf32>
    %254 = math.exp %253 : vector<16x128xf32>
    %cst_229 = arith.constant 1.000000e+00 : f32
    %255 = vector.broadcast %cst_229 : f32 to vector<16x128xf32>
    %256 = arith.addf %255, %254 : vector<16x128xf32>
    %257 = tpu.reciprocal %256 : vector<16x128xf32> -> vector<16x128xf32>
    %258 = arith.truncf %257 : vector<16x128xf32> to vector<16x128xbf16>
    %c0_230 = arith.constant 0 : index
    %c0_231 = arith.constant 0 : index
    %259 = vector.load %arg33[%c0_230, %c0_231] : memref<128x128xbf16, #tpu.memory_space<vmem>>, vector<128x128xbf16>
    %c0_232 = arith.constant 0 : index
    %c0_233 = arith.constant 0 : index
    %260 = vector.load %arg34[%c0_232, %c0_233] : memref<1x128xf32, #tpu.memory_space<vmem>>, vector<1x128xf32>
    %c0_234 = arith.constant 0 : index
    %c0_235 = arith.constant 0 : index
    %261 = vector.load %arg35[%c0_234, %c0_235] : memref<1152x128xbf16, #tpu.memory_space<vmem>>, vector<1152x128xbf16>
    %c0_236 = arith.constant 0 : index
    %c0_237 = arith.constant 0 : index
    %262 = vector.load %arg36[%c0_236, %c0_237] : memref<1x128xf32, #tpu.memory_space<vmem>>, vector<1x128xf32>
    %c0_238 = arith.constant 0 : index
    %c0_239 = arith.constant 0 : index
    %263 = vector.load %arg37[%c0_238, %c0_239] : memref<128x128xbf16, #tpu.memory_space<vmem>>, vector<128x128xbf16>
    %c0_240 = arith.constant 0 : index
    %c0_241 = arith.constant 0 : index
    %264 = vector.load %arg38[%c0_240, %c0_241] : memref<1x128xf32, #tpu.memory_space<vmem>>, vector<1x128xf32>
    %c0_242 = arith.constant 0 : index
    %c0_243 = arith.constant 0 : index
    %265 = vector.load %arg40[%c0_242, %c0_243] : memref<128x128xbf16, #tpu.memory_space<vmem>>, vector<128x128xbf16>
    %cst_244 = arith.constant dense<0.000000e+00> : vector<16x128xf32>
    %266 = tpu.matmul %258, %259, %cst_244 {dimension_numbers = #tpu.dot_dimension_numbers<[1], [0], [0], [1], [0, 0, 1, 1], [], []>} : vector<16x128xbf16>, vector<128x128xbf16>, vector<16x128xf32> -> vector<16x128xf32>
    %267 = vector.broadcast %260 : vector<1x128xf32> to vector<16x128xf32>
    %268 = arith.addf %266, %267 : vector<16x128xf32>
    %cst_245 = arith.constant 0.000000e+00 : f32
    %269 = vector.broadcast %cst_245 : f32 to vector<16x128xf32>
    %270 = arith.maximumf %268, %269 : vector<16x128xf32>
    %271 = arith.truncf %270 : vector<16x128xf32> to vector<16x128xbf16>
    %c0_246 = arith.constant 0 : index
    %c0_247 = arith.constant 0 : index
    %c0_248 = arith.constant 0 : index
    %272 = vector.load %arg39[%c0_246, %c0_247, %c0_248] : memref<9x8x16xbf16, #tpu.memory_space<vmem>>, vector<1x8x16xbf16>
    %273 = vector.shape_cast %272 : vector<1x8x16xbf16> to vector<8x16xbf16>
    %cst_249 = arith.constant dense<0.000000e+00> : vector<8x128xf32>
    %274 = tpu.matmul %273, %271, %cst_249 {dimension_numbers = #tpu.dot_dimension_numbers<[1], [0], [0], [1], [0, 0, 1, 1], [], []>} : vector<8x16xbf16>, vector<16x128xbf16>, vector<8x128xf32> -> vector<8x128xf32>
    %c1_250 = arith.constant 1 : index
    %c0_251 = arith.constant 0 : index
    %c0_252 = arith.constant 0 : index
    %275 = vector.load %arg39[%c1_250, %c0_251, %c0_252] : memref<9x8x16xbf16, #tpu.memory_space<vmem>>, vector<1x8x16xbf16>
    %276 = vector.shape_cast %275 : vector<1x8x16xbf16> to vector<8x16xbf16>
    %cst_253 = arith.constant dense<0.000000e+00> : vector<8x128xf32>
    %277 = tpu.matmul %276, %271, %cst_253 {dimension_numbers = #tpu.dot_dimension_numbers<[1], [0], [0], [1], [0, 0, 1, 1], [], []>} : vector<8x16xbf16>, vector<16x128xbf16>, vector<8x128xf32> -> vector<8x128xf32>
    %c2_254 = arith.constant 2 : index
    %c0_255 = arith.constant 0 : index
    %c0_256 = arith.constant 0 : index
    %278 = vector.load %arg39[%c2_254, %c0_255, %c0_256] : memref<9x8x16xbf16, #tpu.memory_space<vmem>>, vector<1x8x16xbf16>
    %279 = vector.shape_cast %278 : vector<1x8x16xbf16> to vector<8x16xbf16>
    %cst_257 = arith.constant dense<0.000000e+00> : vector<8x128xf32>
    %280 = tpu.matmul %279, %271, %cst_257 {dimension_numbers = #tpu.dot_dimension_numbers<[1], [0], [0], [1], [0, 0, 1, 1], [], []>} : vector<8x16xbf16>, vector<16x128xbf16>, vector<8x128xf32> -> vector<8x128xf32>
    %c3_258 = arith.constant 3 : index
    %c0_259 = arith.constant 0 : index
    %c0_260 = arith.constant 0 : index
    %281 = vector.load %arg39[%c3_258, %c0_259, %c0_260] : memref<9x8x16xbf16, #tpu.memory_space<vmem>>, vector<1x8x16xbf16>
    %282 = vector.shape_cast %281 : vector<1x8x16xbf16> to vector<8x16xbf16>
    %cst_261 = arith.constant dense<0.000000e+00> : vector<8x128xf32>
    %283 = tpu.matmul %282, %271, %cst_261 {dimension_numbers = #tpu.dot_dimension_numbers<[1], [0], [0], [1], [0, 0, 1, 1], [], []>} : vector<8x16xbf16>, vector<16x128xbf16>, vector<8x128xf32> -> vector<8x128xf32>
    %c4_262 = arith.constant 4 : index
    %c0_263 = arith.constant 0 : index
    %c0_264 = arith.constant 0 : index
    %284 = vector.load %arg39[%c4_262, %c0_263, %c0_264] : memref<9x8x16xbf16, #tpu.memory_space<vmem>>, vector<1x8x16xbf16>
    %285 = vector.shape_cast %284 : vector<1x8x16xbf16> to vector<8x16xbf16>
    %cst_265 = arith.constant dense<0.000000e+00> : vector<8x128xf32>
    %286 = tpu.matmul %285, %271, %cst_265 {dimension_numbers = #tpu.dot_dimension_numbers<[1], [0], [0], [1], [0, 0, 1, 1], [], []>} : vector<8x16xbf16>, vector<16x128xbf16>, vector<8x128xf32> -> vector<8x128xf32>
    %c5_266 = arith.constant 5 : index
    %c0_267 = arith.constant 0 : index
    %c0_268 = arith.constant 0 : index
    %287 = vector.load %arg39[%c5_266, %c0_267, %c0_268] : memref<9x8x16xbf16, #tpu.memory_space<vmem>>, vector<1x8x16xbf16>
    %288 = vector.shape_cast %287 : vector<1x8x16xbf16> to vector<8x16xbf16>
    %cst_269 = arith.constant dense<0.000000e+00> : vector<8x128xf32>
    %289 = tpu.matmul %288, %271, %cst_269 {dimension_numbers = #tpu.dot_dimension_numbers<[1], [0], [0], [1], [0, 0, 1, 1], [], []>} : vector<8x16xbf16>, vector<16x128xbf16>, vector<8x128xf32> -> vector<8x128xf32>
    %c6_270 = arith.constant 6 : index
    %c0_271 = arith.constant 0 : index
    %c0_272 = arith.constant 0 : index
    %290 = vector.load %arg39[%c6_270, %c0_271, %c0_272] : memref<9x8x16xbf16, #tpu.memory_space<vmem>>, vector<1x8x16xbf16>
    %291 = vector.shape_cast %290 : vector<1x8x16xbf16> to vector<8x16xbf16>
    %cst_273 = arith.constant dense<0.000000e+00> : vector<8x128xf32>
    %292 = tpu.matmul %291, %271, %cst_273 {dimension_numbers = #tpu.dot_dimension_numbers<[1], [0], [0], [1], [0, 0, 1, 1], [], []>} : vector<8x16xbf16>, vector<16x128xbf16>, vector<8x128xf32> -> vector<8x128xf32>
    %c7_274 = arith.constant 7 : index
    %c0_275 = arith.constant 0 : index
    %c0_276 = arith.constant 0 : index
    %293 = vector.load %arg39[%c7_274, %c0_275, %c0_276] : memref<9x8x16xbf16, #tpu.memory_space<vmem>>, vector<1x8x16xbf16>
    %294 = vector.shape_cast %293 : vector<1x8x16xbf16> to vector<8x16xbf16>
    %cst_277 = arith.constant dense<0.000000e+00> : vector<8x128xf32>
    %295 = tpu.matmul %294, %271, %cst_277 {dimension_numbers = #tpu.dot_dimension_numbers<[1], [0], [0], [1], [0, 0, 1, 1], [], []>} : vector<8x16xbf16>, vector<16x128xbf16>, vector<8x128xf32> -> vector<8x128xf32>
    %c8_278 = arith.constant 8 : index
    %c0_279 = arith.constant 0 : index
    %c0_280 = arith.constant 0 : index
    %296 = vector.load %arg39[%c8_278, %c0_279, %c0_280] : memref<9x8x16xbf16, #tpu.memory_space<vmem>>, vector<1x8x16xbf16>
    %297 = vector.shape_cast %296 : vector<1x8x16xbf16> to vector<8x16xbf16>
    %cst_281 = arith.constant dense<0.000000e+00> : vector<8x128xf32>
    %298 = tpu.matmul %297, %271, %cst_281 {dimension_numbers = #tpu.dot_dimension_numbers<[1], [0], [0], [1], [0, 0, 1, 1], [], []>} : vector<8x16xbf16>, vector<16x128xbf16>, vector<8x128xf32> -> vector<8x128xf32>
    %299 = tpu.concatenate %274, %277, %280, %283, %286, %289, %292, %295, %298 in 1 : vector<8x128xf32>, vector<8x128xf32>, vector<8x128xf32>, vector<8x128xf32>, vector<8x128xf32>, vector<8x128xf32>, vector<8x128xf32>, vector<8x128xf32>, vector<8x128xf32> -> vector<8x1152xf32>
    %300 = arith.truncf %299 : vector<8x1152xf32> to vector<8x1152xbf16>
    %cst_282 = arith.constant dense<0.000000e+00> : vector<8x128xf32>
    %301 = tpu.matmul %300, %261, %cst_282 {dimension_numbers = #tpu.dot_dimension_numbers<[1], [0], [0], [1], [0, 0, 1, 1], [], []>} : vector<8x1152xbf16>, vector<1152x128xbf16>, vector<8x128xf32> -> vector<8x128xf32>
    %302 = vector.broadcast %262 : vector<1x128xf32> to vector<8x128xf32>
    %303 = arith.addf %301, %302 : vector<8x128xf32>
    %cst_283 = arith.constant 0.000000e+00 : f32
    %304 = vector.broadcast %cst_283 : f32 to vector<8x128xf32>
    %305 = arith.maximumf %303, %304 : vector<8x128xf32>
    %306 = arith.truncf %305 : vector<8x128xf32> to vector<8x128xbf16>
    %cst_284 = arith.constant dense<0.000000e+00> : vector<8x128xf32>
    %307 = tpu.matmul %306, %263, %cst_284 {dimension_numbers = #tpu.dot_dimension_numbers<[1], [0], [0], [1], [0, 0, 1, 1], [], []>} : vector<8x128xbf16>, vector<128x128xbf16>, vector<8x128xf32> -> vector<8x128xf32>
    %308 = vector.broadcast %264 : vector<1x128xf32> to vector<8x128xf32>
    %309 = arith.addf %307, %308 : vector<8x128xf32>
    %c4_285 = arith.constant 4 : index
    %c0_286 = arith.constant 0 : index
    %c0_287 = arith.constant 0 : index
    %310 = vector.load %arg39[%c4_285, %c0_286, %c0_287] : memref<9x8x16xbf16, #tpu.memory_space<vmem>>, vector<1x8x16xbf16>
    %311 = vector.shape_cast %310 : vector<1x8x16xbf16> to vector<8x16xbf16>
    %cst_288 = arith.constant dense<0.000000e+00> : vector<8x128xf32>
    %312 = tpu.matmul %311, %258, %cst_288 {dimension_numbers = #tpu.dot_dimension_numbers<[1], [0], [0], [1], [0, 0, 1, 1], [], []>} : vector<8x16xbf16>, vector<16x128xbf16>, vector<8x128xf32> -> vector<8x128xf32>
    %313 = arith.truncf %312 : vector<8x128xf32> to vector<8x128xbf16>
    %cst_289 = arith.constant dense<0.000000e+00> : vector<8x128xf32>
    %314 = tpu.matmul %313, %265, %cst_289 {dimension_numbers = #tpu.dot_dimension_numbers<[1], [0], [0], [1], [0, 0, 1, 1], [], []>} : vector<8x128xbf16>, vector<128x128xbf16>, vector<8x128xf32> -> vector<8x128xf32>
    %315 = arith.addf %309, %314 : vector<8x128xf32>
    %cst_290 = arith.constant 0.000000e+00 : f32
    %316 = vector.broadcast %cst_290 : f32 to vector<8x128xf32>
    %317 = arith.maximumf %315, %316 : vector<8x128xf32>
    %cst_291 = arith.constant 0.000000e+00 : f32
    %318 = vector.broadcast %cst_291 : f32 to vector<8x128xf32>
    %319 = arith.subf %318, %317 : vector<8x128xf32>
    %320 = math.exp %319 : vector<8x128xf32>
    %cst_292 = arith.constant 1.000000e+00 : f32
    %321 = vector.broadcast %cst_292 : f32 to vector<8x128xf32>
    %322 = arith.addf %321, %320 : vector<8x128xf32>
    %323 = tpu.reciprocal %322 : vector<8x128xf32> -> vector<8x128xf32>
    %324 = arith.truncf %323 : vector<8x128xf32> to vector<8x128xbf16>
    %c0_293 = arith.constant 0 : index
    %c0_294 = arith.constant 0 : index
    %325 = vector.load %arg41[%c0_293, %c0_294] : memref<128x128xbf16, #tpu.memory_space<vmem>>, vector<128x128xbf16>
    %c0_295 = arith.constant 0 : index
    %c0_296 = arith.constant 0 : index
    %326 = vector.load %arg42[%c0_295, %c0_296] : memref<1x128xf32, #tpu.memory_space<vmem>>, vector<1x128xf32>
    %c0_297 = arith.constant 0 : index
    %c0_298 = arith.constant 0 : index
    %327 = vector.load %arg43[%c0_297, %c0_298] : memref<1152x128xbf16, #tpu.memory_space<vmem>>, vector<1152x128xbf16>
    %c0_299 = arith.constant 0 : index
    %c0_300 = arith.constant 0 : index
    %328 = vector.load %arg44[%c0_299, %c0_300] : memref<1x128xf32, #tpu.memory_space<vmem>>, vector<1x128xf32>
    %c0_301 = arith.constant 0 : index
    %c0_302 = arith.constant 0 : index
    %329 = vector.load %arg45[%c0_301, %c0_302] : memref<128x128xbf16, #tpu.memory_space<vmem>>, vector<128x128xbf16>
    %c0_303 = arith.constant 0 : index
    %c0_304 = arith.constant 0 : index
    %330 = vector.load %arg46[%c0_303, %c0_304] : memref<1x128xf32, #tpu.memory_space<vmem>>, vector<1x128xf32>
    %cst_305 = arith.constant dense<0.000000e+00> : vector<8x128xf32>
    %331 = tpu.matmul %324, %325, %cst_305 {dimension_numbers = #tpu.dot_dimension_numbers<[1], [0], [0], [1], [0, 0, 1, 1], [], []>} : vector<8x128xbf16>, vector<128x128xbf16>, vector<8x128xf32> -> vector<8x128xf32>
    %332 = vector.broadcast %326 : vector<1x128xf32> to vector<8x128xf32>
    %333 = arith.addf %331, %332 : vector<8x128xf32>
    %cst_306 = arith.constant 0.000000e+00 : f32
    %334 = vector.broadcast %cst_306 : f32 to vector<8x128xf32>
    %335 = arith.maximumf %333, %334 : vector<8x128xf32>
    %336 = arith.truncf %335 : vector<8x128xf32> to vector<8x128xbf16>
    %c0_307 = arith.constant 0 : index
    %c0_308 = arith.constant 0 : index
    %c0_309 = arith.constant 0 : index
    %337 = vector.load %arg47[%c0_307, %c0_308, %c0_309] : memref<9x8x8xbf16, #tpu.memory_space<vmem>>, vector<1x8x8xbf16>
    %338 = vector.shape_cast %337 : vector<1x8x8xbf16> to vector<8x8xbf16>
    %cst_310 = arith.constant dense<0.000000e+00> : vector<8x128xf32>
    %339 = tpu.matmul %338, %336, %cst_310 {dimension_numbers = #tpu.dot_dimension_numbers<[1], [0], [0], [1], [0, 0, 1, 1], [], []>} : vector<8x8xbf16>, vector<8x128xbf16>, vector<8x128xf32> -> vector<8x128xf32>
    %c1_311 = arith.constant 1 : index
    %c0_312 = arith.constant 0 : index
    %c0_313 = arith.constant 0 : index
    %340 = vector.load %arg47[%c1_311, %c0_312, %c0_313] : memref<9x8x8xbf16, #tpu.memory_space<vmem>>, vector<1x8x8xbf16>
    %341 = vector.shape_cast %340 : vector<1x8x8xbf16> to vector<8x8xbf16>
    %cst_314 = arith.constant dense<0.000000e+00> : vector<8x128xf32>
    %342 = tpu.matmul %341, %336, %cst_314 {dimension_numbers = #tpu.dot_dimension_numbers<[1], [0], [0], [1], [0, 0, 1, 1], [], []>} : vector<8x8xbf16>, vector<8x128xbf16>, vector<8x128xf32> -> vector<8x128xf32>
    %c2_315 = arith.constant 2 : index
    %c0_316 = arith.constant 0 : index
    %c0_317 = arith.constant 0 : index
    %343 = vector.load %arg47[%c2_315, %c0_316, %c0_317] : memref<9x8x8xbf16, #tpu.memory_space<vmem>>, vector<1x8x8xbf16>
    %344 = vector.shape_cast %343 : vector<1x8x8xbf16> to vector<8x8xbf16>
    %cst_318 = arith.constant dense<0.000000e+00> : vector<8x128xf32>
    %345 = tpu.matmul %344, %336, %cst_318 {dimension_numbers = #tpu.dot_dimension_numbers<[1], [0], [0], [1], [0, 0, 1, 1], [], []>} : vector<8x8xbf16>, vector<8x128xbf16>, vector<8x128xf32> -> vector<8x128xf32>
    %c3_319 = arith.constant 3 : index
    %c0_320 = arith.constant 0 : index
    %c0_321 = arith.constant 0 : index
    %346 = vector.load %arg47[%c3_319, %c0_320, %c0_321] : memref<9x8x8xbf16, #tpu.memory_space<vmem>>, vector<1x8x8xbf16>
    %347 = vector.shape_cast %346 : vector<1x8x8xbf16> to vector<8x8xbf16>
    %cst_322 = arith.constant dense<0.000000e+00> : vector<8x128xf32>
    %348 = tpu.matmul %347, %336, %cst_322 {dimension_numbers = #tpu.dot_dimension_numbers<[1], [0], [0], [1], [0, 0, 1, 1], [], []>} : vector<8x8xbf16>, vector<8x128xbf16>, vector<8x128xf32> -> vector<8x128xf32>
    %c4_323 = arith.constant 4 : index
    %c0_324 = arith.constant 0 : index
    %c0_325 = arith.constant 0 : index
    %349 = vector.load %arg47[%c4_323, %c0_324, %c0_325] : memref<9x8x8xbf16, #tpu.memory_space<vmem>>, vector<1x8x8xbf16>
    %350 = vector.shape_cast %349 : vector<1x8x8xbf16> to vector<8x8xbf16>
    %cst_326 = arith.constant dense<0.000000e+00> : vector<8x128xf32>
    %351 = tpu.matmul %350, %336, %cst_326 {dimension_numbers = #tpu.dot_dimension_numbers<[1], [0], [0], [1], [0, 0, 1, 1], [], []>} : vector<8x8xbf16>, vector<8x128xbf16>, vector<8x128xf32> -> vector<8x128xf32>
    %c5_327 = arith.constant 5 : index
    %c0_328 = arith.constant 0 : index
    %c0_329 = arith.constant 0 : index
    %352 = vector.load %arg47[%c5_327, %c0_328, %c0_329] : memref<9x8x8xbf16, #tpu.memory_space<vmem>>, vector<1x8x8xbf16>
    %353 = vector.shape_cast %352 : vector<1x8x8xbf16> to vector<8x8xbf16>
    %cst_330 = arith.constant dense<0.000000e+00> : vector<8x128xf32>
    %354 = tpu.matmul %353, %336, %cst_330 {dimension_numbers = #tpu.dot_dimension_numbers<[1], [0], [0], [1], [0, 0, 1, 1], [], []>} : vector<8x8xbf16>, vector<8x128xbf16>, vector<8x128xf32> -> vector<8x128xf32>
    %c6_331 = arith.constant 6 : index
    %c0_332 = arith.constant 0 : index
    %c0_333 = arith.constant 0 : index
    %355 = vector.load %arg47[%c6_331, %c0_332, %c0_333] : memref<9x8x8xbf16, #tpu.memory_space<vmem>>, vector<1x8x8xbf16>
    %356 = vector.shape_cast %355 : vector<1x8x8xbf16> to vector<8x8xbf16>
    %cst_334 = arith.constant dense<0.000000e+00> : vector<8x128xf32>
    %357 = tpu.matmul %356, %336, %cst_334 {dimension_numbers = #tpu.dot_dimension_numbers<[1], [0], [0], [1], [0, 0, 1, 1], [], []>} : vector<8x8xbf16>, vector<8x128xbf16>, vector<8x128xf32> -> vector<8x128xf32>
    %c7_335 = arith.constant 7 : index
    %c0_336 = arith.constant 0 : index
    %c0_337 = arith.constant 0 : index
    %358 = vector.load %arg47[%c7_335, %c0_336, %c0_337] : memref<9x8x8xbf16, #tpu.memory_space<vmem>>, vector<1x8x8xbf16>
    %359 = vector.shape_cast %358 : vector<1x8x8xbf16> to vector<8x8xbf16>
    %cst_338 = arith.constant dense<0.000000e+00> : vector<8x128xf32>
    %360 = tpu.matmul %359, %336, %cst_338 {dimension_numbers = #tpu.dot_dimension_numbers<[1], [0], [0], [1], [0, 0, 1, 1], [], []>} : vector<8x8xbf16>, vector<8x128xbf16>, vector<8x128xf32> -> vector<8x128xf32>
    %c8_339 = arith.constant 8 : index
    %c0_340 = arith.constant 0 : index
    %c0_341 = arith.constant 0 : index
    %361 = vector.load %arg47[%c8_339, %c0_340, %c0_341] : memref<9x8x8xbf16, #tpu.memory_space<vmem>>, vector<1x8x8xbf16>
    %362 = vector.shape_cast %361 : vector<1x8x8xbf16> to vector<8x8xbf16>
    %cst_342 = arith.constant dense<0.000000e+00> : vector<8x128xf32>
    %363 = tpu.matmul %362, %336, %cst_342 {dimension_numbers = #tpu.dot_dimension_numbers<[1], [0], [0], [1], [0, 0, 1, 1], [], []>} : vector<8x8xbf16>, vector<8x128xbf16>, vector<8x128xf32> -> vector<8x128xf32>
    %364 = tpu.concatenate %339, %342, %345, %348, %351, %354, %357, %360, %363 in 1 : vector<8x128xf32>, vector<8x128xf32>, vector<8x128xf32>, vector<8x128xf32>, vector<8x128xf32>, vector<8x128xf32>, vector<8x128xf32>, vector<8x128xf32>, vector<8x128xf32> -> vector<8x1152xf32>
    %365 = arith.truncf %364 : vector<8x1152xf32> to vector<8x1152xbf16>
    %cst_343 = arith.constant dense<0.000000e+00> : vector<8x128xf32>
    %366 = tpu.matmul %365, %327, %cst_343 {dimension_numbers = #tpu.dot_dimension_numbers<[1], [0], [0], [1], [0, 0, 1, 1], [], []>} : vector<8x1152xbf16>, vector<1152x128xbf16>, vector<8x128xf32> -> vector<8x128xf32>
    %367 = vector.broadcast %328 : vector<1x128xf32> to vector<8x128xf32>
    %368 = arith.addf %366, %367 : vector<8x128xf32>
    %cst_344 = arith.constant 0.000000e+00 : f32
    %369 = vector.broadcast %cst_344 : f32 to vector<8x128xf32>
    %370 = arith.maximumf %368, %369 : vector<8x128xf32>
    %371 = arith.truncf %370 : vector<8x128xf32> to vector<8x128xbf16>
    %cst_345 = arith.constant dense<0.000000e+00> : vector<8x128xf32>
    %372 = tpu.matmul %371, %329, %cst_345 {dimension_numbers = #tpu.dot_dimension_numbers<[1], [0], [0], [1], [0, 0, 1, 1], [], []>} : vector<8x128xbf16>, vector<128x128xbf16>, vector<8x128xf32> -> vector<8x128xf32>
    %373 = vector.broadcast %330 : vector<1x128xf32> to vector<8x128xf32>
    %374 = arith.addf %372, %373 : vector<8x128xf32>
    %375 = arith.extf %324 : vector<8x128xbf16> to vector<8x128xf32>
    %376 = arith.addf %374, %375 : vector<8x128xf32>
    %cst_346 = arith.constant 0.000000e+00 : f32
    %377 = vector.broadcast %cst_346 : f32 to vector<8x128xf32>
    %378 = arith.maximumf %376, %377 : vector<8x128xf32>
    %cst_347 = arith.constant 0.000000e+00 : f32
    %379 = vector.broadcast %cst_347 : f32 to vector<8x128xf32>
    %380 = arith.subf %379, %378 : vector<8x128xf32>
    %381 = math.exp %380 : vector<8x128xf32>
    %cst_348 = arith.constant 1.000000e+00 : f32
    %382 = vector.broadcast %cst_348 : f32 to vector<8x128xf32>
    %383 = arith.addf %382, %381 : vector<8x128xf32>
    %384 = tpu.reciprocal %383 : vector<8x128xf32> -> vector<8x128xf32>
    %385 = arith.truncf %384 : vector<8x128xf32> to vector<8x128xbf16>
    %c0_349 = arith.constant 0 : index
    %c0_350 = arith.constant 0 : index
    %386 = vector.load %arg48[%c0_349, %c0_350] : memref<128x128xbf16, #tpu.memory_space<vmem>>, vector<128x128xbf16>
    %c0_351 = arith.constant 0 : index
    %c0_352 = arith.constant 0 : index
    %387 = vector.load %arg49[%c0_351, %c0_352] : memref<1x128xf32, #tpu.memory_space<vmem>>, vector<1x128xf32>
    %c0_353 = arith.constant 0 : index
    %c0_354 = arith.constant 0 : index
    %388 = vector.load %arg50[%c0_353, %c0_354] : memref<1152x128xbf16, #tpu.memory_space<vmem>>, vector<1152x128xbf16>
    %c0_355 = arith.constant 0 : index
    %c0_356 = arith.constant 0 : index
    %389 = vector.load %arg51[%c0_355, %c0_356] : memref<1x128xf32, #tpu.memory_space<vmem>>, vector<1x128xf32>
    %c0_357 = arith.constant 0 : index
    %c0_358 = arith.constant 0 : index
    %390 = vector.load %arg52[%c0_357, %c0_358] : memref<128x128xbf16, #tpu.memory_space<vmem>>, vector<128x128xbf16>
    %c0_359 = arith.constant 0 : index
    %c0_360 = arith.constant 0 : index
    %391 = vector.load %arg53[%c0_359, %c0_360] : memref<1x128xf32, #tpu.memory_space<vmem>>, vector<1x128xf32>
    %cst_361 = arith.constant dense<0.000000e+00> : vector<8x128xf32>
    %392 = tpu.matmul %385, %386, %cst_361 {dimension_numbers = #tpu.dot_dimension_numbers<[1], [0], [0], [1], [0, 0, 1, 1], [], []>} : vector<8x128xbf16>, vector<128x128xbf16>, vector<8x128xf32> -> vector<8x128xf32>
    %393 = vector.broadcast %387 : vector<1x128xf32> to vector<8x128xf32>
    %394 = arith.addf %392, %393 : vector<8x128xf32>
    %cst_362 = arith.constant 0.000000e+00 : f32
    %395 = vector.broadcast %cst_362 : f32 to vector<8x128xf32>
    %396 = arith.maximumf %394, %395 : vector<8x128xf32>
    %397 = arith.truncf %396 : vector<8x128xf32> to vector<8x128xbf16>
    %c0_363 = arith.constant 0 : index
    %c0_364 = arith.constant 0 : index
    %c0_365 = arith.constant 0 : index
    %398 = vector.load %arg54[%c0_363, %c0_364, %c0_365] : memref<9x8x8xbf16, #tpu.memory_space<vmem>>, vector<1x8x8xbf16>
    %399 = vector.shape_cast %398 : vector<1x8x8xbf16> to vector<8x8xbf16>
    %cst_366 = arith.constant dense<0.000000e+00> : vector<8x128xf32>
    %400 = tpu.matmul %399, %397, %cst_366 {dimension_numbers = #tpu.dot_dimension_numbers<[1], [0], [0], [1], [0, 0, 1, 1], [], []>} : vector<8x8xbf16>, vector<8x128xbf16>, vector<8x128xf32> -> vector<8x128xf32>
    %c1_367 = arith.constant 1 : index
    %c0_368 = arith.constant 0 : index
    %c0_369 = arith.constant 0 : index
    %401 = vector.load %arg54[%c1_367, %c0_368, %c0_369] : memref<9x8x8xbf16, #tpu.memory_space<vmem>>, vector<1x8x8xbf16>
    %402 = vector.shape_cast %401 : vector<1x8x8xbf16> to vector<8x8xbf16>
    %cst_370 = arith.constant dense<0.000000e+00> : vector<8x128xf32>
    %403 = tpu.matmul %402, %397, %cst_370 {dimension_numbers = #tpu.dot_dimension_numbers<[1], [0], [0], [1], [0, 0, 1, 1], [], []>} : vector<8x8xbf16>, vector<8x128xbf16>, vector<8x128xf32> -> vector<8x128xf32>
    %c2_371 = arith.constant 2 : index
    %c0_372 = arith.constant 0 : index
    %c0_373 = arith.constant 0 : index
    %404 = vector.load %arg54[%c2_371, %c0_372, %c0_373] : memref<9x8x8xbf16, #tpu.memory_space<vmem>>, vector<1x8x8xbf16>
    %405 = vector.shape_cast %404 : vector<1x8x8xbf16> to vector<8x8xbf16>
    %cst_374 = arith.constant dense<0.000000e+00> : vector<8x128xf32>
    %406 = tpu.matmul %405, %397, %cst_374 {dimension_numbers = #tpu.dot_dimension_numbers<[1], [0], [0], [1], [0, 0, 1, 1], [], []>} : vector<8x8xbf16>, vector<8x128xbf16>, vector<8x128xf32> -> vector<8x128xf32>
    %c3_375 = arith.constant 3 : index
    %c0_376 = arith.constant 0 : index
    %c0_377 = arith.constant 0 : index
    %407 = vector.load %arg54[%c3_375, %c0_376, %c0_377] : memref<9x8x8xbf16, #tpu.memory_space<vmem>>, vector<1x8x8xbf16>
    %408 = vector.shape_cast %407 : vector<1x8x8xbf16> to vector<8x8xbf16>
    %cst_378 = arith.constant dense<0.000000e+00> : vector<8x128xf32>
    %409 = tpu.matmul %408, %397, %cst_378 {dimension_numbers = #tpu.dot_dimension_numbers<[1], [0], [0], [1], [0, 0, 1, 1], [], []>} : vector<8x8xbf16>, vector<8x128xbf16>, vector<8x128xf32> -> vector<8x128xf32>
    %c4_379 = arith.constant 4 : index
    %c0_380 = arith.constant 0 : index
    %c0_381 = arith.constant 0 : index
    %410 = vector.load %arg54[%c4_379, %c0_380, %c0_381] : memref<9x8x8xbf16, #tpu.memory_space<vmem>>, vector<1x8x8xbf16>
    %411 = vector.shape_cast %410 : vector<1x8x8xbf16> to vector<8x8xbf16>
    %cst_382 = arith.constant dense<0.000000e+00> : vector<8x128xf32>
    %412 = tpu.matmul %411, %397, %cst_382 {dimension_numbers = #tpu.dot_dimension_numbers<[1], [0], [0], [1], [0, 0, 1, 1], [], []>} : vector<8x8xbf16>, vector<8x128xbf16>, vector<8x128xf32> -> vector<8x128xf32>
    %c5_383 = arith.constant 5 : index
    %c0_384 = arith.constant 0 : index
    %c0_385 = arith.constant 0 : index
    %413 = vector.load %arg54[%c5_383, %c0_384, %c0_385] : memref<9x8x8xbf16, #tpu.memory_space<vmem>>, vector<1x8x8xbf16>
    %414 = vector.shape_cast %413 : vector<1x8x8xbf16> to vector<8x8xbf16>
    %cst_386 = arith.constant dense<0.000000e+00> : vector<8x128xf32>
    %415 = tpu.matmul %414, %397, %cst_386 {dimension_numbers = #tpu.dot_dimension_numbers<[1], [0], [0], [1], [0, 0, 1, 1], [], []>} : vector<8x8xbf16>, vector<8x128xbf16>, vector<8x128xf32> -> vector<8x128xf32>
    %c6_387 = arith.constant 6 : index
    %c0_388 = arith.constant 0 : index
    %c0_389 = arith.constant 0 : index
    %416 = vector.load %arg54[%c6_387, %c0_388, %c0_389] : memref<9x8x8xbf16, #tpu.memory_space<vmem>>, vector<1x8x8xbf16>
    %417 = vector.shape_cast %416 : vector<1x8x8xbf16> to vector<8x8xbf16>
    %cst_390 = arith.constant dense<0.000000e+00> : vector<8x128xf32>
    %418 = tpu.matmul %417, %397, %cst_390 {dimension_numbers = #tpu.dot_dimension_numbers<[1], [0], [0], [1], [0, 0, 1, 1], [], []>} : vector<8x8xbf16>, vector<8x128xbf16>, vector<8x128xf32> -> vector<8x128xf32>
    %c7_391 = arith.constant 7 : index
    %c0_392 = arith.constant 0 : index
    %c0_393 = arith.constant 0 : index
    %419 = vector.load %arg54[%c7_391, %c0_392, %c0_393] : memref<9x8x8xbf16, #tpu.memory_space<vmem>>, vector<1x8x8xbf16>
    %420 = vector.shape_cast %419 : vector<1x8x8xbf16> to vector<8x8xbf16>
    %cst_394 = arith.constant dense<0.000000e+00> : vector<8x128xf32>
    %421 = tpu.matmul %420, %397, %cst_394 {dimension_numbers = #tpu.dot_dimension_numbers<[1], [0], [0], [1], [0, 0, 1, 1], [], []>} : vector<8x8xbf16>, vector<8x128xbf16>, vector<8x128xf32> -> vector<8x128xf32>
    %c8_395 = arith.constant 8 : index
    %c0_396 = arith.constant 0 : index
    %c0_397 = arith.constant 0 : index
    %422 = vector.load %arg54[%c8_395, %c0_396, %c0_397] : memref<9x8x8xbf16, #tpu.memory_space<vmem>>, vector<1x8x8xbf16>
    %423 = vector.shape_cast %422 : vector<1x8x8xbf16> to vector<8x8xbf16>
    %cst_398 = arith.constant dense<0.000000e+00> : vector<8x128xf32>
    %424 = tpu.matmul %423, %397, %cst_398 {dimension_numbers = #tpu.dot_dimension_numbers<[1], [0], [0], [1], [0, 0, 1, 1], [], []>} : vector<8x8xbf16>, vector<8x128xbf16>, vector<8x128xf32> -> vector<8x128xf32>
    %425 = tpu.concatenate %400, %403, %406, %409, %412, %415, %418, %421, %424 in 1 : vector<8x128xf32>, vector<8x128xf32>, vector<8x128xf32>, vector<8x128xf32>, vector<8x128xf32>, vector<8x128xf32>, vector<8x128xf32>, vector<8x128xf32>, vector<8x128xf32> -> vector<8x1152xf32>
    %426 = arith.truncf %425 : vector<8x1152xf32> to vector<8x1152xbf16>
    %cst_399 = arith.constant dense<0.000000e+00> : vector<8x128xf32>
    %427 = tpu.matmul %426, %388, %cst_399 {dimension_numbers = #tpu.dot_dimension_numbers<[1], [0], [0], [1], [0, 0, 1, 1], [], []>} : vector<8x1152xbf16>, vector<1152x128xbf16>, vector<8x128xf32> -> vector<8x128xf32>
    %428 = vector.broadcast %389 : vector<1x128xf32> to vector<8x128xf32>
    %429 = arith.addf %427, %428 : vector<8x128xf32>
    %cst_400 = arith.constant 0.000000e+00 : f32
    %430 = vector.broadcast %cst_400 : f32 to vector<8x128xf32>
    %431 = arith.maximumf %429, %430 : vector<8x128xf32>
    %432 = arith.truncf %431 : vector<8x128xf32> to vector<8x128xbf16>
    %cst_401 = arith.constant dense<0.000000e+00> : vector<8x128xf32>
    %433 = tpu.matmul %432, %390, %cst_401 {dimension_numbers = #tpu.dot_dimension_numbers<[1], [0], [0], [1], [0, 0, 1, 1], [], []>} : vector<8x128xbf16>, vector<128x128xbf16>, vector<8x128xf32> -> vector<8x128xf32>
    %434 = vector.broadcast %391 : vector<1x128xf32> to vector<8x128xf32>
    %435 = arith.addf %433, %434 : vector<8x128xf32>
    %436 = arith.extf %385 : vector<8x128xbf16> to vector<8x128xf32>
    %437 = arith.addf %435, %436 : vector<8x128xf32>
    %cst_402 = arith.constant 0.000000e+00 : f32
    %438 = vector.broadcast %cst_402 : f32 to vector<8x128xf32>
    %439 = arith.maximumf %437, %438 : vector<8x128xf32>
    %cst_403 = arith.constant 0.000000e+00 : f32
    %440 = vector.broadcast %cst_403 : f32 to vector<8x128xf32>
    %441 = arith.subf %440, %439 : vector<8x128xf32>
    %442 = math.exp %441 : vector<8x128xf32>
    %cst_404 = arith.constant 1.000000e+00 : f32
    %443 = vector.broadcast %cst_404 : f32 to vector<8x128xf32>
    %444 = arith.addf %443, %442 : vector<8x128xf32>
    %445 = tpu.reciprocal %444 : vector<8x128xf32> -> vector<8x128xf32>
    %446 = arith.truncf %445 : vector<8x128xf32> to vector<8x128xbf16>
    %c0_405 = arith.constant 0 : index
    %c0_406 = arith.constant 0 : index
    %447 = vector.load %arg55[%c0_405, %c0_406] : memref<128x128xbf16, #tpu.memory_space<vmem>>, vector<128x128xbf16>
    %c0_407 = arith.constant 0 : index
    %c0_408 = arith.constant 0 : index
    %448 = vector.load %arg56[%c0_407, %c0_408] : memref<1x128xf32, #tpu.memory_space<vmem>>, vector<1x128xf32>
    %c0_409 = arith.constant 0 : index
    %c0_410 = arith.constant 0 : index
    %449 = vector.load %arg57[%c0_409, %c0_410] : memref<1152x128xbf16, #tpu.memory_space<vmem>>, vector<1152x128xbf16>
    %c0_411 = arith.constant 0 : index
    %c0_412 = arith.constant 0 : index
    %450 = vector.load %arg58[%c0_411, %c0_412] : memref<1x128xf32, #tpu.memory_space<vmem>>, vector<1x128xf32>
    %c0_413 = arith.constant 0 : index
    %c0_414 = arith.constant 0 : index
    %451 = vector.load %arg59[%c0_413, %c0_414] : memref<128x128xbf16, #tpu.memory_space<vmem>>, vector<128x128xbf16>
    %c0_415 = arith.constant 0 : index
    %c0_416 = arith.constant 0 : index
    %452 = vector.load %arg60[%c0_415, %c0_416] : memref<1x128xf32, #tpu.memory_space<vmem>>, vector<1x128xf32>
    %cst_417 = arith.constant dense<0.000000e+00> : vector<8x128xf32>
    %453 = tpu.matmul %446, %447, %cst_417 {dimension_numbers = #tpu.dot_dimension_numbers<[1], [0], [0], [1], [0, 0, 1, 1], [], []>} : vector<8x128xbf16>, vector<128x128xbf16>, vector<8x128xf32> -> vector<8x128xf32>
    %454 = vector.broadcast %448 : vector<1x128xf32> to vector<8x128xf32>
    %455 = arith.addf %453, %454 : vector<8x128xf32>
    %cst_418 = arith.constant 0.000000e+00 : f32
    %456 = vector.broadcast %cst_418 : f32 to vector<8x128xf32>
    %457 = arith.maximumf %455, %456 : vector<8x128xf32>
    %458 = arith.truncf %457 : vector<8x128xf32> to vector<8x128xbf16>
    %c0_419 = arith.constant 0 : index
    %c0_420 = arith.constant 0 : index
    %c0_421 = arith.constant 0 : index
    %459 = vector.load %arg61[%c0_419, %c0_420, %c0_421] : memref<9x8x8xbf16, #tpu.memory_space<vmem>>, vector<1x8x8xbf16>
    %460 = vector.shape_cast %459 : vector<1x8x8xbf16> to vector<8x8xbf16>
    %cst_422 = arith.constant dense<0.000000e+00> : vector<8x128xf32>
    %461 = tpu.matmul %460, %458, %cst_422 {dimension_numbers = #tpu.dot_dimension_numbers<[1], [0], [0], [1], [0, 0, 1, 1], [], []>} : vector<8x8xbf16>, vector<8x128xbf16>, vector<8x128xf32> -> vector<8x128xf32>
    %c1_423 = arith.constant 1 : index
    %c0_424 = arith.constant 0 : index
    %c0_425 = arith.constant 0 : index
    %462 = vector.load %arg61[%c1_423, %c0_424, %c0_425] : memref<9x8x8xbf16, #tpu.memory_space<vmem>>, vector<1x8x8xbf16>
    %463 = vector.shape_cast %462 : vector<1x8x8xbf16> to vector<8x8xbf16>
    %cst_426 = arith.constant dense<0.000000e+00> : vector<8x128xf32>
    %464 = tpu.matmul %463, %458, %cst_426 {dimension_numbers = #tpu.dot_dimension_numbers<[1], [0], [0], [1], [0, 0, 1, 1], [], []>} : vector<8x8xbf16>, vector<8x128xbf16>, vector<8x128xf32> -> vector<8x128xf32>
    %c2_427 = arith.constant 2 : index
    %c0_428 = arith.constant 0 : index
    %c0_429 = arith.constant 0 : index
    %465 = vector.load %arg61[%c2_427, %c0_428, %c0_429] : memref<9x8x8xbf16, #tpu.memory_space<vmem>>, vector<1x8x8xbf16>
    %466 = vector.shape_cast %465 : vector<1x8x8xbf16> to vector<8x8xbf16>
    %cst_430 = arith.constant dense<0.000000e+00> : vector<8x128xf32>
    %467 = tpu.matmul %466, %458, %cst_430 {dimension_numbers = #tpu.dot_dimension_numbers<[1], [0], [0], [1], [0, 0, 1, 1], [], []>} : vector<8x8xbf16>, vector<8x128xbf16>, vector<8x128xf32> -> vector<8x128xf32>
    %c3_431 = arith.constant 3 : index
    %c0_432 = arith.constant 0 : index
    %c0_433 = arith.constant 0 : index
    %468 = vector.load %arg61[%c3_431, %c0_432, %c0_433] : memref<9x8x8xbf16, #tpu.memory_space<vmem>>, vector<1x8x8xbf16>
    %469 = vector.shape_cast %468 : vector<1x8x8xbf16> to vector<8x8xbf16>
    %cst_434 = arith.constant dense<0.000000e+00> : vector<8x128xf32>
    %470 = tpu.matmul %469, %458, %cst_434 {dimension_numbers = #tpu.dot_dimension_numbers<[1], [0], [0], [1], [0, 0, 1, 1], [], []>} : vector<8x8xbf16>, vector<8x128xbf16>, vector<8x128xf32> -> vector<8x128xf32>
    %c4_435 = arith.constant 4 : index
    %c0_436 = arith.constant 0 : index
    %c0_437 = arith.constant 0 : index
    %471 = vector.load %arg61[%c4_435, %c0_436, %c0_437] : memref<9x8x8xbf16, #tpu.memory_space<vmem>>, vector<1x8x8xbf16>
    %472 = vector.shape_cast %471 : vector<1x8x8xbf16> to vector<8x8xbf16>
    %cst_438 = arith.constant dense<0.000000e+00> : vector<8x128xf32>
    %473 = tpu.matmul %472, %458, %cst_438 {dimension_numbers = #tpu.dot_dimension_numbers<[1], [0], [0], [1], [0, 0, 1, 1], [], []>} : vector<8x8xbf16>, vector<8x128xbf16>, vector<8x128xf32> -> vector<8x128xf32>
    %c5_439 = arith.constant 5 : index
    %c0_440 = arith.constant 0 : index
    %c0_441 = arith.constant 0 : index
    %474 = vector.load %arg61[%c5_439, %c0_440, %c0_441] : memref<9x8x8xbf16, #tpu.memory_space<vmem>>, vector<1x8x8xbf16>
    %475 = vector.shape_cast %474 : vector<1x8x8xbf16> to vector<8x8xbf16>
    %cst_442 = arith.constant dense<0.000000e+00> : vector<8x128xf32>
    %476 = tpu.matmul %475, %458, %cst_442 {dimension_numbers = #tpu.dot_dimension_numbers<[1], [0], [0], [1], [0, 0, 1, 1], [], []>} : vector<8x8xbf16>, vector<8x128xbf16>, vector<8x128xf32> -> vector<8x128xf32>
    %c6_443 = arith.constant 6 : index
    %c0_444 = arith.constant 0 : index
    %c0_445 = arith.constant 0 : index
    %477 = vector.load %arg61[%c6_443, %c0_444, %c0_445] : memref<9x8x8xbf16, #tpu.memory_space<vmem>>, vector<1x8x8xbf16>
    %478 = vector.shape_cast %477 : vector<1x8x8xbf16> to vector<8x8xbf16>
    %cst_446 = arith.constant dense<0.000000e+00> : vector<8x128xf32>
    %479 = tpu.matmul %478, %458, %cst_446 {dimension_numbers = #tpu.dot_dimension_numbers<[1], [0], [0], [1], [0, 0, 1, 1], [], []>} : vector<8x8xbf16>, vector<8x128xbf16>, vector<8x128xf32> -> vector<8x128xf32>
    %c7_447 = arith.constant 7 : index
    %c0_448 = arith.constant 0 : index
    %c0_449 = arith.constant 0 : index
    %480 = vector.load %arg61[%c7_447, %c0_448, %c0_449] : memref<9x8x8xbf16, #tpu.memory_space<vmem>>, vector<1x8x8xbf16>
    %481 = vector.shape_cast %480 : vector<1x8x8xbf16> to vector<8x8xbf16>
    %cst_450 = arith.constant dense<0.000000e+00> : vector<8x128xf32>
    %482 = tpu.matmul %481, %458, %cst_450 {dimension_numbers = #tpu.dot_dimension_numbers<[1], [0], [0], [1], [0, 0, 1, 1], [], []>} : vector<8x8xbf16>, vector<8x128xbf16>, vector<8x128xf32> -> vector<8x128xf32>
    %c8_451 = arith.constant 8 : index
    %c0_452 = arith.constant 0 : index
    %c0_453 = arith.constant 0 : index
    %483 = vector.load %arg61[%c8_451, %c0_452, %c0_453] : memref<9x8x8xbf16, #tpu.memory_space<vmem>>, vector<1x8x8xbf16>
    %484 = vector.shape_cast %483 : vector<1x8x8xbf16> to vector<8x8xbf16>
    %cst_454 = arith.constant dense<0.000000e+00> : vector<8x128xf32>
    %485 = tpu.matmul %484, %458, %cst_454 {dimension_numbers = #tpu.dot_dimension_numbers<[1], [0], [0], [1], [0, 0, 1, 1], [], []>} : vector<8x8xbf16>, vector<8x128xbf16>, vector<8x128xf32> -> vector<8x128xf32>
    %486 = tpu.concatenate %461, %464, %467, %470, %473, %476, %479, %482, %485 in 1 : vector<8x128xf32>, vector<8x128xf32>, vector<8x128xf32>, vector<8x128xf32>, vector<8x128xf32>, vector<8x128xf32>, vector<8x128xf32>, vector<8x128xf32>, vector<8x128xf32> -> vector<8x1152xf32>
    %487 = arith.truncf %486 : vector<8x1152xf32> to vector<8x1152xbf16>
    %cst_455 = arith.constant dense<0.000000e+00> : vector<8x128xf32>
    %488 = tpu.matmul %487, %449, %cst_455 {dimension_numbers = #tpu.dot_dimension_numbers<[1], [0], [0], [1], [0, 0, 1, 1], [], []>} : vector<8x1152xbf16>, vector<1152x128xbf16>, vector<8x128xf32> -> vector<8x128xf32>
    %489 = vector.broadcast %450 : vector<1x128xf32> to vector<8x128xf32>
    %490 = arith.addf %488, %489 : vector<8x128xf32>
    %cst_456 = arith.constant 0.000000e+00 : f32
    %491 = vector.broadcast %cst_456 : f32 to vector<8x128xf32>
    %492 = arith.maximumf %490, %491 : vector<8x128xf32>
    %493 = arith.truncf %492 : vector<8x128xf32> to vector<8x128xbf16>
    %cst_457 = arith.constant dense<0.000000e+00> : vector<8x128xf32>
    %494 = tpu.matmul %493, %451, %cst_457 {dimension_numbers = #tpu.dot_dimension_numbers<[1], [0], [0], [1], [0, 0, 1, 1], [], []>} : vector<8x128xbf16>, vector<128x128xbf16>, vector<8x128xf32> -> vector<8x128xf32>
    %495 = vector.broadcast %452 : vector<1x128xf32> to vector<8x128xf32>
    %496 = arith.addf %494, %495 : vector<8x128xf32>
    %497 = arith.extf %446 : vector<8x128xbf16> to vector<8x128xf32>
    %498 = arith.addf %496, %497 : vector<8x128xf32>
    %cst_458 = arith.constant 0.000000e+00 : f32
    %499 = vector.broadcast %cst_458 : f32 to vector<8x128xf32>
    %500 = arith.maximumf %498, %499 : vector<8x128xf32>
    %cst_459 = arith.constant 0.000000e+00 : f32
    %501 = vector.broadcast %cst_459 : f32 to vector<8x128xf32>
    %502 = arith.subf %501, %500 : vector<8x128xf32>
    %503 = math.exp %502 : vector<8x128xf32>
    %cst_460 = arith.constant 1.000000e+00 : f32
    %504 = vector.broadcast %cst_460 : f32 to vector<8x128xf32>
    %505 = arith.addf %504, %503 : vector<8x128xf32>
    %506 = tpu.reciprocal %505 : vector<8x128xf32> -> vector<8x128xf32>
    %507 = arith.truncf %506 : vector<8x128xf32> to vector<8x128xbf16>
    %c0_461 = arith.constant 0 : index
    %c0_462 = arith.constant 0 : index
    %508 = vector.load %arg62[%c0_461, %c0_462] : memref<128x128xbf16, #tpu.memory_space<vmem>>, vector<128x128xbf16>
    %c0_463 = arith.constant 0 : index
    %c0_464 = arith.constant 0 : index
    %509 = vector.load %arg63[%c0_463, %c0_464] : memref<1x128xf32, #tpu.memory_space<vmem>>, vector<1x128xf32>
    %c0_465 = arith.constant 0 : index
    %c0_466 = arith.constant 0 : index
    %510 = vector.load %arg64[%c0_465, %c0_466] : memref<1152x128xbf16, #tpu.memory_space<vmem>>, vector<1152x128xbf16>
    %c0_467 = arith.constant 0 : index
    %c0_468 = arith.constant 0 : index
    %511 = vector.load %arg65[%c0_467, %c0_468] : memref<1x128xf32, #tpu.memory_space<vmem>>, vector<1x128xf32>
    %c0_469 = arith.constant 0 : index
    %c0_470 = arith.constant 0 : index
    %512 = vector.load %arg66[%c0_469, %c0_470] : memref<128x256xbf16, #tpu.memory_space<vmem>>, vector<128x256xbf16>
    %c0_471 = arith.constant 0 : index
    %c0_472 = arith.constant 0 : index
    %513 = vector.load %arg67[%c0_471, %c0_472] : memref<1x256xf32, #tpu.memory_space<vmem>>, vector<1x256xf32>
    %c0_473 = arith.constant 0 : index
    %c0_474 = arith.constant 0 : index
    %514 = vector.load %arg69[%c0_473, %c0_474] : memref<128x256xbf16, #tpu.memory_space<vmem>>, vector<128x256xbf16>
    %cst_475 = arith.constant dense<0.000000e+00> : vector<8x128xf32>
    %515 = tpu.matmul %507, %508, %cst_475 {dimension_numbers = #tpu.dot_dimension_numbers<[1], [0], [0], [1], [0, 0, 1, 1], [], []>} : vector<8x128xbf16>, vector<128x128xbf16>, vector<8x128xf32> -> vector<8x128xf32>
    %516 = vector.broadcast %509 : vector<1x128xf32> to vector<8x128xf32>
    %517 = arith.addf %515, %516 : vector<8x128xf32>
    %cst_476 = arith.constant 0.000000e+00 : f32
    %518 = vector.broadcast %cst_476 : f32 to vector<8x128xf32>
    %519 = arith.maximumf %517, %518 : vector<8x128xf32>
    %520 = arith.truncf %519 : vector<8x128xf32> to vector<8x128xbf16>
    %c0_477 = arith.constant 0 : index
    %c0_478 = arith.constant 0 : index
    %c0_479 = arith.constant 0 : index
    %521 = vector.load %arg68[%c0_477, %c0_478, %c0_479] : memref<9x8x8xbf16, #tpu.memory_space<vmem>>, vector<1x8x8xbf16>
    %522 = vector.shape_cast %521 : vector<1x8x8xbf16> to vector<8x8xbf16>
    %cst_480 = arith.constant dense<0.000000e+00> : vector<8x128xf32>
    %523 = tpu.matmul %522, %520, %cst_480 {dimension_numbers = #tpu.dot_dimension_numbers<[1], [0], [0], [1], [0, 0, 1, 1], [], []>} : vector<8x8xbf16>, vector<8x128xbf16>, vector<8x128xf32> -> vector<8x128xf32>
    %c1_481 = arith.constant 1 : index
    %c0_482 = arith.constant 0 : index
    %c0_483 = arith.constant 0 : index
    %524 = vector.load %arg68[%c1_481, %c0_482, %c0_483] : memref<9x8x8xbf16, #tpu.memory_space<vmem>>, vector<1x8x8xbf16>
    %525 = vector.shape_cast %524 : vector<1x8x8xbf16> to vector<8x8xbf16>
    %cst_484 = arith.constant dense<0.000000e+00> : vector<8x128xf32>
    %526 = tpu.matmul %525, %520, %cst_484 {dimension_numbers = #tpu.dot_dimension_numbers<[1], [0], [0], [1], [0, 0, 1, 1], [], []>} : vector<8x8xbf16>, vector<8x128xbf16>, vector<8x128xf32> -> vector<8x128xf32>
    %c2_485 = arith.constant 2 : index
    %c0_486 = arith.constant 0 : index
    %c0_487 = arith.constant 0 : index
    %527 = vector.load %arg68[%c2_485, %c0_486, %c0_487] : memref<9x8x8xbf16, #tpu.memory_space<vmem>>, vector<1x8x8xbf16>
    %528 = vector.shape_cast %527 : vector<1x8x8xbf16> to vector<8x8xbf16>
    %cst_488 = arith.constant dense<0.000000e+00> : vector<8x128xf32>
    %529 = tpu.matmul %528, %520, %cst_488 {dimension_numbers = #tpu.dot_dimension_numbers<[1], [0], [0], [1], [0, 0, 1, 1], [], []>} : vector<8x8xbf16>, vector<8x128xbf16>, vector<8x128xf32> -> vector<8x128xf32>
    %c3_489 = arith.constant 3 : index
    %c0_490 = arith.constant 0 : index
    %c0_491 = arith.constant 0 : index
    %530 = vector.load %arg68[%c3_489, %c0_490, %c0_491] : memref<9x8x8xbf16, #tpu.memory_space<vmem>>, vector<1x8x8xbf16>
    %531 = vector.shape_cast %530 : vector<1x8x8xbf16> to vector<8x8xbf16>
    %cst_492 = arith.constant dense<0.000000e+00> : vector<8x128xf32>
    %532 = tpu.matmul %531, %520, %cst_492 {dimension_numbers = #tpu.dot_dimension_numbers<[1], [0], [0], [1], [0, 0, 1, 1], [], []>} : vector<8x8xbf16>, vector<8x128xbf16>, vector<8x128xf32> -> vector<8x128xf32>
    %c4_493 = arith.constant 4 : index
    %c0_494 = arith.constant 0 : index
    %c0_495 = arith.constant 0 : index
    %533 = vector.load %arg68[%c4_493, %c0_494, %c0_495] : memref<9x8x8xbf16, #tpu.memory_space<vmem>>, vector<1x8x8xbf16>
    %534 = vector.shape_cast %533 : vector<1x8x8xbf16> to vector<8x8xbf16>
    %cst_496 = arith.constant dense<0.000000e+00> : vector<8x128xf32>
    %535 = tpu.matmul %534, %520, %cst_496 {dimension_numbers = #tpu.dot_dimension_numbers<[1], [0], [0], [1], [0, 0, 1, 1], [], []>} : vector<8x8xbf16>, vector<8x128xbf16>, vector<8x128xf32> -> vector<8x128xf32>
    %c5_497 = arith.constant 5 : index
    %c0_498 = arith.constant 0 : index
    %c0_499 = arith.constant 0 : index
    %536 = vector.load %arg68[%c5_497, %c0_498, %c0_499] : memref<9x8x8xbf16, #tpu.memory_space<vmem>>, vector<1x8x8xbf16>
    %537 = vector.shape_cast %536 : vector<1x8x8xbf16> to vector<8x8xbf16>
    %cst_500 = arith.constant dense<0.000000e+00> : vector<8x128xf32>
    %538 = tpu.matmul %537, %520, %cst_500 {dimension_numbers = #tpu.dot_dimension_numbers<[1], [0], [0], [1], [0, 0, 1, 1], [], []>} : vector<8x8xbf16>, vector<8x128xbf16>, vector<8x128xf32> -> vector<8x128xf32>
    %c6_501 = arith.constant 6 : index
    %c0_502 = arith.constant 0 : index
    %c0_503 = arith.constant 0 : index
    %539 = vector.load %arg68[%c6_501, %c0_502, %c0_503] : memref<9x8x8xbf16, #tpu.memory_space<vmem>>, vector<1x8x8xbf16>
    %540 = vector.shape_cast %539 : vector<1x8x8xbf16> to vector<8x8xbf16>
    %cst_504 = arith.constant dense<0.000000e+00> : vector<8x128xf32>
    %541 = tpu.matmul %540, %520, %cst_504 {dimension_numbers = #tpu.dot_dimension_numbers<[1], [0], [0], [1], [0, 0, 1, 1], [], []>} : vector<8x8xbf16>, vector<8x128xbf16>, vector<8x128xf32> -> vector<8x128xf32>
    %c7_505 = arith.constant 7 : index
    %c0_506 = arith.constant 0 : index
    %c0_507 = arith.constant 0 : index
    %542 = vector.load %arg68[%c7_505, %c0_506, %c0_507] : memref<9x8x8xbf16, #tpu.memory_space<vmem>>, vector<1x8x8xbf16>
    %543 = vector.shape_cast %542 : vector<1x8x8xbf16> to vector<8x8xbf16>
    %cst_508 = arith.constant dense<0.000000e+00> : vector<8x128xf32>
    %544 = tpu.matmul %543, %520, %cst_508 {dimension_numbers = #tpu.dot_dimension_numbers<[1], [0], [0], [1], [0, 0, 1, 1], [], []>} : vector<8x8xbf16>, vector<8x128xbf16>, vector<8x128xf32> -> vector<8x128xf32>
    %c8_509 = arith.constant 8 : index
    %c0_510 = arith.constant 0 : index
    %c0_511 = arith.constant 0 : index
    %545 = vector.load %arg68[%c8_509, %c0_510, %c0_511] : memref<9x8x8xbf16, #tpu.memory_space<vmem>>, vector<1x8x8xbf16>
    %546 = vector.shape_cast %545 : vector<1x8x8xbf16> to vector<8x8xbf16>
    %cst_512 = arith.constant dense<0.000000e+00> : vector<8x128xf32>
    %547 = tpu.matmul %546, %520, %cst_512 {dimension_numbers = #tpu.dot_dimension_numbers<[1], [0], [0], [1], [0, 0, 1, 1], [], []>} : vector<8x8xbf16>, vector<8x128xbf16>, vector<8x128xf32> -> vector<8x128xf32>
    %548 = tpu.concatenate %523, %526, %529, %532, %535, %538, %541, %544, %547 in 1 : vector<8x128xf32>, vector<8x128xf32>, vector<8x128xf32>, vector<8x128xf32>, vector<8x128xf32>, vector<8x128xf32>, vector<8x128xf32>, vector<8x128xf32>, vector<8x128xf32> -> vector<8x1152xf32>
    %549 = arith.truncf %548 : vector<8x1152xf32> to vector<8x1152xbf16>
    %cst_513 = arith.constant dense<0.000000e+00> : vector<8x128xf32>
    %550 = tpu.matmul %549, %510, %cst_513 {dimension_numbers = #tpu.dot_dimension_numbers<[1], [0], [0], [1], [0, 0, 1, 1], [], []>} : vector<8x1152xbf16>, vector<1152x128xbf16>, vector<8x128xf32> -> vector<8x128xf32>
    %551 = vector.broadcast %511 : vector<1x128xf32> to vector<8x128xf32>
    %552 = arith.addf %550, %551 : vector<8x128xf32>
    %cst_514 = arith.constant 0.000000e+00 : f32
    %553 = vector.broadcast %cst_514 : f32 to vector<8x128xf32>
    %554 = arith.maximumf %552, %553 : vector<8x128xf32>
    %555 = arith.truncf %554 : vector<8x128xf32> to vector<8x128xbf16>
    %cst_515 = arith.constant dense<0.000000e+00> : vector<8x256xf32>
    %556 = tpu.matmul %555, %512, %cst_515 {dimension_numbers = #tpu.dot_dimension_numbers<[1], [0], [0], [1], [0, 0, 1, 1], [], []>} : vector<8x128xbf16>, vector<128x256xbf16>, vector<8x256xf32> -> vector<8x256xf32>
    %557 = vector.broadcast %513 : vector<1x256xf32> to vector<8x256xf32>
    %558 = arith.addf %556, %557 : vector<8x256xf32>
    %c4_516 = arith.constant 4 : index
    %c0_517 = arith.constant 0 : index
    %c0_518 = arith.constant 0 : index
    %559 = vector.load %arg68[%c4_516, %c0_517, %c0_518] : memref<9x8x8xbf16, #tpu.memory_space<vmem>>, vector<1x8x8xbf16>
    %560 = vector.shape_cast %559 : vector<1x8x8xbf16> to vector<8x8xbf16>
    %cst_519 = arith.constant dense<0.000000e+00> : vector<8x128xf32>
    %561 = tpu.matmul %560, %507, %cst_519 {dimension_numbers = #tpu.dot_dimension_numbers<[1], [0], [0], [1], [0, 0, 1, 1], [], []>} : vector<8x8xbf16>, vector<8x128xbf16>, vector<8x128xf32> -> vector<8x128xf32>
    %562 = arith.truncf %561 : vector<8x128xf32> to vector<8x128xbf16>
    %cst_520 = arith.constant dense<0.000000e+00> : vector<8x256xf32>
    %563 = tpu.matmul %562, %514, %cst_520 {dimension_numbers = #tpu.dot_dimension_numbers<[1], [0], [0], [1], [0, 0, 1, 1], [], []>} : vector<8x128xbf16>, vector<128x256xbf16>, vector<8x256xf32> -> vector<8x256xf32>
    %564 = arith.addf %558, %563 : vector<8x256xf32>
    %cst_521 = arith.constant 0.000000e+00 : f32
    %565 = vector.broadcast %cst_521 : f32 to vector<8x256xf32>
    %566 = arith.maximumf %564, %565 : vector<8x256xf32>
    %cst_522 = arith.constant 0.000000e+00 : f32
    %567 = vector.broadcast %cst_522 : f32 to vector<8x256xf32>
    %568 = arith.subf %567, %566 : vector<8x256xf32>
    %569 = math.exp %568 : vector<8x256xf32>
    %cst_523 = arith.constant 1.000000e+00 : f32
    %570 = vector.broadcast %cst_523 : f32 to vector<8x256xf32>
    %571 = arith.addf %570, %569 : vector<8x256xf32>
    %572 = tpu.reciprocal %571 : vector<8x256xf32> -> vector<8x256xf32>
    %573 = vector.extract_strided_slice %572 {offsets = [0, 0], sizes = [1, 256], strides = [1, 1]} : vector<8x256xf32> to vector<1x256xf32>
    %cst_524 = arith.constant dense<0.000000e+00> : vector<256xf32>
    %574 = vector.multi_reduction <add>, %573, %cst_524 [0] : vector<1x256xf32> to vector<256xf32>
    %575 = vector.shape_cast %574 : vector<256xf32> to vector<1x256xf32>
    %cst_525 = arith.constant 1.000000e+00 : f32
    %576 = vector.broadcast %cst_525 : f32 to vector<1x256xf32>
    %577 = arith.divf %575, %576 : vector<1x256xf32>
    %c0_526 = arith.constant 0 : index
    %c0_527 = arith.constant 0 : index
    %c0_528 = arith.constant 0 : index
    %578 = vector.load %arg70[%c0_526, %c0_527, %c0_528] : memref<1x1x256xf32, #tpu.memory_space<vmem>>, vector<1x1x256xf32>
    %579 = vector.shape_cast %578 : vector<1x1x256xf32> to vector<1x256xf32>
    %580 = vector.shape_cast %577 : vector<1x256xf32> to vector<1x1x256xf32>
    tpu.vector_store %arg70[%c0_526, %c0_527, %c0_528], %580 {strides = array<i32>} : memref<1x1x256xf32, #tpu.memory_space<vmem>>, vector<1x1x256xf32>,
    return
  }
  func.func @transform_0(%arg0: i32) -> (i32, i32, i32) {
    %c0_i32 = arith.constant 0 : i32
    %c0_i32_0 = arith.constant 0 : i32
    %c0_i32_1 = arith.constant 0 : i32
    return %arg0, %c0_i32, %c0_i32_0 : i32, i32, i32
  }
  func.func @transform_1(%arg0: i32) -> (i32, i32) {
    %c0_i32 = arith.constant 0 : i32
    %c0_i32_0 = arith.constant 0 : i32
    %c0_i32_1 = arith.constant 0 : i32
    return %c0_i32, %c0_i32_0 : i32, i32
  }
  func.func @transform_2(%arg0: i32) -> (i32, i32) {
    %c0_i32 = arith.constant 0 : i32
    %c0_i32_0 = arith.constant 0 : i32
    %c0_i32_1 = arith.constant 0 : i32
    return %c0_i32, %c0_i32_0 : i32, i32
  }
  func.func @transform_3(%arg0: i32) -> (i32, i32) {
    %c0_i32 = arith.constant 0 : i32
    %c0_i32_0 = arith.constant 0 : i32
    %c0_i32_1 = arith.constant 0 : i32
    return %c0_i32, %c0_i32_0 : i32, i32
  }
  func.func @transform_4(%arg0: i32) -> (i32, i32) {
    %c0_i32 = arith.constant 0 : i32
    %c0_i32_0 = arith.constant 0 : i32
    %c0_i32_1 = arith.constant 0 : i32
    return %c0_i32, %c0_i32_0 : i32, i32
  }
  func.func @transform_5(%arg0: i32) -> (i32, i32) {
    %c0_i32 = arith.constant 0 : i32
    %c0_i32_0 = arith.constant 0 : i32
    %c0_i32_1 = arith.constant 0 : i32
    return %c0_i32, %c0_i32_0 : i32, i32
  }
  func.func @transform_6(%arg0: i32) -> (i32, i32) {
    %c0_i32 = arith.constant 0 : i32
    %c0_i32_0 = arith.constant 0 : i32
    %c0_i32_1 = arith.constant 0 : i32
    return %c0_i32, %c0_i32_0 : i32, i32
  }
  func.func @transform_7(%arg0: i32) -> (i32, i32) {
    %c0_i32 = arith.constant 0 : i32
    %c0_i32_0 = arith.constant 0 : i32
    %c0_i32_1 = arith.constant 0 : i32
    return %c0_i32, %c0_i32_0 : i32, i32
  }
  func.func @transform_8(%arg0: i32) -> (i32, i32) {
    %c0_i32 = arith.constant 0 : i32
    %c0_i32_0 = arith.constant 0 : i32
    %c0_i32_1 = arith.constant 0 : i32
    return %c0_i32, %c0_i32_0 : i32, i32
  }
  func.func @transform_9(%arg0: i32) -> (i32, i32, i32) {
    %c0_i32 = arith.constant 0 : i32
    %c0_i32_0 = arith.constant 0 : i32
    %c0_i32_1 = arith.constant 0 : i32
    %c0_i32_2 = arith.constant 0 : i32
    return %c0_i32, %c0_i32_0, %c0_i32_1 : i32, i32, i32
  }
  func.func @transform_10(%arg0: i32) -> (i32, i32) {
    %c0_i32 = arith.constant 0 : i32
    %c0_i32_0 = arith.constant 0 : i32
    %c0_i32_1 = arith.constant 0 : i32
    return %c0_i32, %c0_i32_0 : i32, i32
  }
  func.func @transform_11(%arg0: i32) -> (i32, i32) {
    %c0_i32 = arith.constant 0 : i32
    %c0_i32_0 = arith.constant 0 : i32
    %c0_i32_1 = arith.constant 0 : i32
    return %c0_i32, %c0_i32_0 : i32, i32
  }
  func.func @transform_12(%arg0: i32) -> (i32, i32) {
    %c0_i32 = arith.constant 0 : i32
    %c0_i32_0 = arith.constant 0 : i32
    %c0_i32_1 = arith.constant 0 : i32
    return %c0_i32, %c0_i32_0 : i32, i32
  }
  func.func @transform_13(%arg0: i32) -> (i32, i32) {
    %c0_i32 = arith.constant 0 : i32
    %c0_i32_0 = arith.constant 0 : i32
    %c0_i32_1 = arith.constant 0 : i32
    return %c0_i32, %c0_i32_0 : i32, i32
  }
  func.func @transform_14(%arg0: i32) -> (i32, i32) {
    %c0_i32 = arith.constant 0 : i32
    %c0_i32_0 = arith.constant 0 : i32
    %c0_i32_1 = arith.constant 0 : i32
    return %c0_i32, %c0_i32_0 : i32, i32
  }
  func.func @transform_15(%arg0: i32) -> (i32, i32) {
    %c0_i32 = arith.constant 0 : i32
    %c0_i32_0 = arith.constant 0 : i32
    %c0_i32_1 = arith.constant 0 : i32
    return %c0_i32, %c0_i32_0 : i32, i32
  }
  func.func @transform_16(%arg0: i32) -> (i32, i32, i32) {
    %c0_i32 = arith.constant 0 : i32
    %c0_i32_0 = arith.constant 0 : i32
    %c0_i32_1 = arith.constant 0 : i32
    %c0_i32_2 = arith.constant 0 : i32
    return %c0_i32, %c0_i32_0, %c0_i32_1 : i32, i32, i32
  }
  func.func @transform_17(%arg0: i32) -> (i32, i32) {
    %c0_i32 = arith.constant 0 : i32
    %c0_i32_0 = arith.constant 0 : i32
    %c0_i32_1 = arith.constant 0 : i32
    return %c0_i32, %c0_i32_0 : i32, i32
  }
  func.func @transform_18(%arg0: i32) -> (i32, i32) {
    %c0_i32 = arith.constant 0 : i32
    %c0_i32_0 = arith.constant 0 : i32
    %c0_i32_1 = arith.constant 0 : i32
    return %c0_i32, %c0_i32_0 : i32, i32
  }
  func.func @transform_19(%arg0: i32) -> (i32, i32) {
    %c0_i32 = arith.constant 0 : i32
    %c0_i32_0 = arith.constant 0 : i32
    %c0_i32_1 = arith.constant 0 : i32
    return %c0_i32, %c0_i32_0 : i32, i32
  }
  func.func @transform_20(%arg0: i32) -> (i32, i32) {
    %c0_i32 = arith.constant 0 : i32
    %c0_i32_0 = arith.constant 0 : i32
    %c0_i32_1 = arith.constant 0 : i32
    return %c0_i32, %c0_i32_0 : i32, i32
  }
  func.func @transform_21(%arg0: i32) -> (i32, i32) {
    %c0_i32 = arith.constant 0 : i32
    %c0_i32_0 = arith.constant 0 : i32
    %c0_i32_1 = arith.constant 0 : i32
    return %c0_i32, %c0_i32_0 : i32, i32
  }
  func.func @transform_22(%arg0: i32) -> (i32, i32) {
    %c0_i32 = arith.constant 0 : i32
    %c0_i32_0 = arith.constant 0 : i32
    %c0_i32_1 = arith.constant 0 : i32
    return %c0_i32, %c0_i32_0 : i32, i32
  }
  func.func @transform_23(%arg0: i32) -> (i32, i32) {
    %c0_i32 = arith.constant 0 : i32
    %c0_i32_0 = arith.constant 0 : i32
    %c0_i32_1 = arith.constant 0 : i32
    return %c0_i32, %c0_i32_0 : i32, i32
  }
  func.func @transform_24(%arg0: i32) -> (i32, i32, i32) {
    %c0_i32 = arith.constant 0 : i32
    %c0_i32_0 = arith.constant 0 : i32
    %c0_i32_1 = arith.constant 0 : i32
    %c0_i32_2 = arith.constant 0 : i32
    return %c0_i32, %c0_i32_0, %c0_i32_1 : i32, i32, i32
  }
  func.func @transform_25(%arg0: i32) -> (i32, i32) {
    %c0_i32 = arith.constant 0 : i32
    %c0_i32_0 = arith.constant 0 : i32
    %c0_i32_1 = arith.constant 0 : i32
    return %c0_i32, %c0_i32_0 : i32, i32
  }
  func.func @transform_26(%arg0: i32) -> (i32, i32) {
    %c0_i32 = arith.constant 0 : i32
    %c0_i32_0 = arith.constant 0 : i32
    %c0_i32_1 = arith.constant 0 : i32
    return %c0_i32, %c0_i32_0 : i32, i32
  }
  func.func @transform_27(%arg0: i32) -> (i32, i32) {
    %c0_i32 = arith.constant 0 : i32
    %c0_i32_0 = arith.constant 0 : i32
    %c0_i32_1 = arith.constant 0 : i32
    return %c0_i32, %c0_i32_0 : i32, i32
  }
  func.func @transform_28(%arg0: i32) -> (i32, i32) {
    %c0_i32 = arith.constant 0 : i32
    %c0_i32_0 = arith.constant 0 : i32
    %c0_i32_1 = arith.constant 0 : i32
    return %c0_i32, %c0_i32_0 : i32, i32
  }
  func.func @transform_29(%arg0: i32) -> (i32, i32) {
    %c0_i32 = arith.constant 0 : i32
    %c0_i32_0 = arith.constant 0 : i32
    %c0_i32_1 = arith.constant 0 : i32
    return %c0_i32, %c0_i32_0 : i32, i32
  }
  func.func @transform_30(%arg0: i32) -> (i32, i32) {
    %c0_i32 = arith.constant 0 : i32
    %c0_i32_0 = arith.constant 0 : i32
    %c0_i32_1 = arith.constant 0 : i32
    return %c0_i32, %c0_i32_0 : i32, i32
  }
  func.func @transform_31(%arg0: i32) -> (i32, i32, i32) {
    %c0_i32 = arith.constant 0 : i32
    %c0_i32_0 = arith.constant 0 : i32
    %c0_i32_1 = arith.constant 0 : i32
    %c0_i32_2 = arith.constant 0 : i32
    return %c0_i32, %c0_i32_0, %c0_i32_1 : i32, i32, i32
  }
  func.func @transform_32(%arg0: i32) -> (i32, i32) {
    %c0_i32 = arith.constant 0 : i32
    %c0_i32_0 = arith.constant 0 : i32
    %c0_i32_1 = arith.constant 0 : i32
    return %c0_i32, %c0_i32_0 : i32, i32
  }
  func.func @transform_33(%arg0: i32) -> (i32, i32) {
    %c0_i32 = arith.constant 0 : i32
    %c0_i32_0 = arith.constant 0 : i32
    %c0_i32_1 = arith.constant 0 : i32
    return %c0_i32, %c0_i32_0 : i32, i32
  }
  func.func @transform_34(%arg0: i32) -> (i32, i32) {
    %c0_i32 = arith.constant 0 : i32
    %c0_i32_0 = arith.constant 0 : i32
    %c0_i32_1 = arith.constant 0 : i32
    return %c0_i32, %c0_i32_0 : i32, i32
  }
  func.func @transform_35(%arg0: i32) -> (i32, i32) {
    %c0_i32 = arith.constant 0 : i32
    %c0_i32_0 = arith.constant 0 : i32
    %c0_i32_1 = arith.constant 0 : i32
    return %c0_i32, %c0_i32_0 : i32, i32
  }
  func.func @transform_36(%arg0: i32) -> (i32, i32) {
    %c0_i32 = arith.constant 0 : i32
    %c0_i32_0 = arith.constant 0 : i32
    %c0_i32_1 = arith.constant 0 : i32
    return %c0_i32, %c0_i32_0 : i32, i32
  }
  func.func @transform_37(%arg0: i32) -> (i32, i32) {
    %c0_i32 = arith.constant 0 : i32
    %c0_i32_0 = arith.constant 0 : i32
    %c0_i32_1 = arith.constant 0 : i32
    return %c0_i32, %c0_i32_0 : i32, i32
  }
  func.func @transform_38(%arg0: i32) -> (i32, i32, i32) {
    %c0_i32 = arith.constant 0 : i32
    %c0_i32_0 = arith.constant 0 : i32
    %c0_i32_1 = arith.constant 0 : i32
    %c0_i32_2 = arith.constant 0 : i32
    return %c0_i32, %c0_i32_0, %c0_i32_1 : i32, i32, i32
  }
  func.func @transform_39(%arg0: i32) -> (i32, i32) {
    %c0_i32 = arith.constant 0 : i32
    %c0_i32_0 = arith.constant 0 : i32
    %c0_i32_1 = arith.constant 0 : i32
    return %c0_i32, %c0_i32_0 : i32, i32
  }
  func.func @transform_40(%arg0: i32) -> (i32, i32) {
    %c0_i32 = arith.constant 0 : i32
    %c0_i32_0 = arith.constant 0 : i32
    %c0_i32_1 = arith.constant 0 : i32
    return %c0_i32, %c0_i32_0 : i32, i32
  }
  func.func @transform_41(%arg0: i32) -> (i32, i32) {
    %c0_i32 = arith.constant 0 : i32
    %c0_i32_0 = arith.constant 0 : i32
    %c0_i32_1 = arith.constant 0 : i32
    return %c0_i32, %c0_i32_0 : i32, i32
  }
  func.func @transform_42(%arg0: i32) -> (i32, i32) {
    %c0_i32 = arith.constant 0 : i32
    %c0_i32_0 = arith.constant 0 : i32
    %c0_i32_1 = arith.constant 0 : i32
    return %c0_i32, %c0_i32_0 : i32, i32
  }
  func.func @transform_43(%arg0: i32) -> (i32, i32) {
    %c0_i32 = arith.constant 0 : i32
    %c0_i32_0 = arith.constant 0 : i32
    %c0_i32_1 = arith.constant 0 : i32
    return %c0_i32, %c0_i32_0 : i32, i32
  }
  func.func @transform_44(%arg0: i32) -> (i32, i32) {
    %c0_i32 = arith.constant 0 : i32
    %c0_i32_0 = arith.constant 0 : i32
    %c0_i32_1 = arith.constant 0 : i32
    return %c0_i32, %c0_i32_0 : i32, i32
  }
  func.func @transform_45(%arg0: i32) -> (i32, i32) {
    %c0_i32 = arith.constant 0 : i32
    %c0_i32_0 = arith.constant 0 : i32
    %c0_i32_1 = arith.constant 0 : i32
    return %c0_i32, %c0_i32_0 : i32, i32
  }
  func.func @transform_46(%arg0: i32) -> (i32, i32, i32) {
    %c0_i32 = arith.constant 0 : i32
    %c0_i32_0 = arith.constant 0 : i32
    %c0_i32_1 = arith.constant 0 : i32
    %c0_i32_2 = arith.constant 0 : i32
    return %c0_i32, %c0_i32_0, %c0_i32_1 : i32, i32, i32
  }
  func.func @transform_47(%arg0: i32) -> (i32, i32) {
    %c0_i32 = arith.constant 0 : i32
    %c0_i32_0 = arith.constant 0 : i32
    %c0_i32_1 = arith.constant 0 : i32
    return %c0_i32, %c0_i32_0 : i32, i32
  }
  func.func @transform_48(%arg0: i32) -> (i32, i32) {
    %c0_i32 = arith.constant 0 : i32
    %c0_i32_0 = arith.constant 0 : i32
    %c0_i32_1 = arith.constant 0 : i32
    return %c0_i32, %c0_i32_0 : i32, i32
  }
  func.func @transform_49(%arg0: i32) -> (i32, i32) {
    %c0_i32 = arith.constant 0 : i32
    %c0_i32_0 = arith.constant 0 : i32
    %c0_i32_1 = arith.constant 0 : i32
    return %c0_i32, %c0_i32_0 : i32, i32
  }
  func.func @transform_50(%arg0: i32) -> (i32, i32) {
    %c0_i32 = arith.constant 0 : i32
    %c0_i32_0 = arith.constant 0 : i32
    %c0_i32_1 = arith.constant 0 : i32
    return %c0_i32, %c0_i32_0 : i32, i32
  }
  func.func @transform_51(%arg0: i32) -> (i32, i32) {
    %c0_i32 = arith.constant 0 : i32
    %c0_i32_0 = arith.constant 0 : i32
    %c0_i32_1 = arith.constant 0 : i32
    return %c0_i32, %c0_i32_0 : i32, i32
  }
  func.func @transform_52(%arg0: i32) -> (i32, i32) {
    %c0_i32 = arith.constant 0 : i32
    %c0_i32_0 = arith.constant 0 : i32
    %c0_i32_1 = arith.constant 0 : i32
    return %c0_i32, %c0_i32_0 : i32, i32
  }
  func.func @transform_53(%arg0: i32) -> (i32, i32, i32) {
    %c0_i32 = arith.constant 0 : i32
    %c0_i32_0 = arith.constant 0 : i32
    %c0_i32_1 = arith.constant 0 : i32
    %c0_i32_2 = arith.constant 0 : i32
    return %c0_i32, %c0_i32_0, %c0_i32_1 : i32, i32, i32
  }
  func.func @transform_54(%arg0: i32) -> (i32, i32) {
    %c0_i32 = arith.constant 0 : i32
    %c0_i32_0 = arith.constant 0 : i32
    %c0_i32_1 = arith.constant 0 : i32
    return %c0_i32, %c0_i32_0 : i32, i32
  }
  func.func @transform_55(%arg0: i32) -> (i32, i32) {
    %c0_i32 = arith.constant 0 : i32
    %c0_i32_0 = arith.constant 0 : i32
    %c0_i32_1 = arith.constant 0 : i32
    return %c0_i32, %c0_i32_0 : i32, i32
  }
  func.func @transform_56(%arg0: i32) -> (i32, i32) {
    %c0_i32 = arith.constant 0 : i32
    %c0_i32_0 = arith.constant 0 : i32
    %c0_i32_1 = arith.constant 0 : i32
    return %c0_i32, %c0_i32_0 : i32, i32
  }
  func.func @transform_57(%arg0: i32) -> (i32, i32) {
    %c0_i32 = arith.constant 0 : i32
    %c0_i32_0 = arith.constant 0 : i32
    %c0_i32_1 = arith.constant 0 : i32
    return %c0_i32, %c0_i32_0 : i32, i32
  }
  func.func @transform_58(%arg0: i32) -> (i32, i32) {
    %c0_i32 = arith.constant 0 : i32
    %c0_i32_0 = arith.constant 0 : i32
    %c0_i32_1 = arith.constant 0 : i32
    return %c0_i32, %c0_i32_0 : i32, i32
  }
  func.func @transform_59(%arg0: i32) -> (i32, i32) {
    %c0_i32 = arith.constant 0 : i32
    %c0_i32_0 = arith.constant 0 : i32
    %c0_i32_1 = arith.constant 0 : i32
    return %c0_i32, %c0_i32_0 : i32, i32
  }
  func.func @transform_60(%arg0: i32) -> (i32, i32, i32) {
    %c0_i32 = arith.constant 0 : i32
    %c0_i32_0 = arith.constant 0 : i32
    %c0_i32_1 = arith.constant 0 : i32
    %c0_i32_2 = arith.constant 0 : i32
    return %c0_i32, %c0_i32_0, %c0_i32_1 : i32, i32, i32
  }
  func.func @transform_61(%arg0: i32) -> (i32, i32) {
    %c0_i32 = arith.constant 0 : i32
    %c0_i32_0 = arith.constant 0 : i32
    %c0_i32_1 = arith.constant 0 : i32
    return %c0_i32, %c0_i32_0 : i32, i32
  }
  func.func @transform_62(%arg0: i32) -> (i32, i32) {
    %c0_i32 = arith.constant 0 : i32
    %c0_i32_0 = arith.constant 0 : i32
    %c0_i32_1 = arith.constant 0 : i32
    return %c0_i32, %c0_i32_0 : i32, i32
  }
  func.func @transform_63(%arg0: i32) -> (i32, i32) {
    %c0_i32 = arith.constant 0 : i32
    %c0_i32_0 = arith.constant 0 : i32
    %c0_i32_1 = arith.constant 0 : i32
    return %c0_i32, %c0_i32_0 : i32, i32
  }
  func.func @transform_64(%arg0: i32) -> (i32, i32) {
    %c0_i32 = arith.constant 0 : i32
    %c0_i32_0 = arith.constant 0 : i32
    %c0_i32_1 = arith.constant 0 : i32
    return %c0_i32, %c0_i32_0 : i32, i32
  }
  func.func @transform_65(%arg0: i32) -> (i32, i32) {
    %c0_i32 = arith.constant 0 : i32
    %c0_i32_0 = arith.constant 0 : i32
    %c0_i32_1 = arith.constant 0 : i32
    return %c0_i32, %c0_i32_0 : i32, i32
  }
  func.func @transform_66(%arg0: i32) -> (i32, i32) {
    %c0_i32 = arith.constant 0 : i32
    %c0_i32_0 = arith.constant 0 : i32
    %c0_i32_1 = arith.constant 0 : i32
    return %c0_i32, %c0_i32_0 : i32, i32
  }
  func.func @transform_67(%arg0: i32) -> (i32, i32, i32) {
    %c0_i32 = arith.constant 0 : i32
    %c0_i32_0 = arith.constant 0 : i32
    %c0_i32_1 = arith.constant 0 : i32
    %c0_i32_2 = arith.constant 0 : i32
    return %c0_i32, %c0_i32_0, %c0_i32_1 : i32, i32, i32
  }
  func.func @transform_68(%arg0: i32) -> (i32, i32) {
    %c0_i32 = arith.constant 0 : i32
    %c0_i32_0 = arith.constant 0 : i32
    %c0_i32_1 = arith.constant 0 : i32
    return %c0_i32, %c0_i32_0 : i32, i32
  }
  func.func @transform_69(%arg0: i32) -> (i32, i32, i32) {
    %c0_i32 = arith.constant 0 : i32
    %c0_i32_0 = arith.constant 0 : i32
    %c0_i32_1 = arith.constant 0 : i32
    return %arg0, %c0_i32, %c0_i32_0 : i32, i32, i32
  }
}

</mosaic_0001>

<bundles_post_ra>
// kernel: _forward.1
= control target key start
LH: loop header
LB: loop body
LE: loop exit
PB: predicated region body
PF: predicated region fallthrough
CT: control target
= control target key end

     0   :  { %s23520_s6 = smov 1   ;;  %s23521_s10 = smov 2   ;;  %s26299_s0 = inlined_call_operand.smem [shape: u32[70], index: -1, kind: input, shape index: {}] }
   0x1   :  { %s23629_s5 = sld [smem:[%s26299_s0]]   ;;  %s23522_s14 = smov 3  }
   0x2   :  { %s23634_s9 = sld [smem:[%s26299_s0 + %s23520_s6]]   ;;  %s23523_s18 = smov 4  }
   0x3   :  { %s23639_s13 = sld [smem:[%s26299_s0 + %s23521_s10]]   ;;  %s23524_s22 = smov 5  }
   0x4   :  { %s23644_s17 = sld [smem:[%s26299_s0 + %s23522_s14]]   ;;  %s23525_s26 = smov 6  }
   0x5   :  { %s23649_s21 = sld [smem:[%s26299_s0 + %s23523_s18]]   ;;  %s23526_s30 = smov 7  }
   0x6   :  { %s23654_s25 = sld [smem:[%s26299_s0 + %s23524_s22]]   ;;  %s23527_s4 = smov 8  }
   0x7   :  { %26361 = sst [smem:[#allocation56_spill]] %s23629_s5  ;;  %s23528_s10 = smov 9  }
   0x8   :  { %26362 = sst [smem:[#allocation57_spill]] %s23634_s9  ;;  %s23529_s15 = smov 10  }
   0x9   :  { %26363 = sst [smem:[#allocation58_spill]] %s23639_s13  ;;  %s23530_s20 = smov 11  }
   0xa   :  { %26364 = sst [smem:[#allocation59_spill]] %s23644_s17  ;;  %s23532_s1 = smov 13  }
   0xb   :  { %26365 = sst [smem:[#allocation60_spill]] %s23649_s21  ;;  %s23533_s7 = smov 14  }
   0xc   :  { %26366 = sst [smem:[#allocation61_spill]] %s23654_s25  ;;  %s23535_s22 = smov 16  }
   0xd   :  { %s23659_s29 = sld [smem:[%s26299_s0 + %s23525_s26]]   ;;  %s23531_s26 = smov 12  }
   0xe   :  { %s23664_s3 = sld [smem:[%s26299_s0 + %s23526_s30]]   ;;  %s23536_s28 = smov 17  }
   0xf   :  { %s23669_s8 = sld [smem:[%s26299_s0 + %s23527_s4]]  }
  0x10   :  { %s23674_s14 = sld [smem:[%s26299_s0 + %s23528_s10]]  }
  0x11   :  { %s23679_s19 = sld [smem:[%s26299_s0 + %s23529_s15]]   ;;  %s23534_s15 = smov 15  }
  0x12   :  { %s23684_s24 = sld [smem:[%s26299_s0 + %s23530_s20]]  }
  0x13   :  { %26367 = sst [smem:[#allocation62_spill]] %s23659_s29 }
  0x14   :  { %26368 = sst [smem:[#allocation63_spill]] %s23664_s3 }
  0x15   :  { %26369 = sst [smem:[#allocation64_spill]] %s23669_s8 }
  0x16   :  { %26370 = sst [smem:[#allocation65_spill]] %s23674_s14 }
  0x17   :  { %s23689_s30 = sld [smem:[%s26299_s0 + %s23531_s26]]  }
  0x18   :  { %26371 = sst [smem:[#allocation66_spill]] %s23684_s24 }
  0x19   :  { %s23694_s6 = sld [smem:[%s26299_s0 + %s23532_s1]]  }
  0x1a   :  { %s23699_s12 = sld [smem:[%s26299_s0 + %s23533_s7]]   ;;  %s23537_s7 = smov 18  }
  0x1b   :  { %s23704_s20 = sld [smem:[%s26299_s0 + %s23534_s15]]   ;;  %s23538_s15 = smov 19  }
  0x1c   :  { %s23709_s27 = sld [smem:[%s26299_s0 + %s23535_s22]]   ;;  %s23539_s22 = smov 20  }
  0x1d   :  { %26372 = sst [smem:[#allocation67_spill]] %s23689_s30 }
  0x1e   :  { %s23714_s4 = sld [smem:[%s26299_s0 + %s23536_s28]]   ;;  %s23540_s28 = smov 21  }
  0x1f   :  { %26373 = sst [smem:[#allocation68_spill]] %s23694_s6 }
  0x20   :  { %26374 = sst [smem:[#allocation69_spill]] %s23699_s12 }
  0x21   :  { %26375 = sst [smem:[#allocation70_spill]] %s23704_s20 }
  0x22   :  { %26376 = sst [smem:[#allocation71_spill]] %s23709_s27 }
  0x23   :  { %s23719_s6 = sld [smem:[%s26299_s0 + %s23537_s7]]   ;;  %s23541_s7 = smov 22  }
  0x24   :  { %26377 = sst [smem:[#allocation72_spill]] %s23714_s4 }
  0x25   :  { %s23724_s20 = sld [smem:[%s26299_s0 + %s23538_s15]]   ;;  %s23542_s15 = smov 23  }
  0x26   :  { %s23729_s30 = sld [smem:[%s26299_s0 + %s23539_s22]]   ;;  %s23543_s22 = smov 24  }
  0x27   :  { %s23734_s27 = sld [smem:[%s26299_s0 + %s23540_s28]]   ;;  %s23544_s28 = smov 25  }
  0x29   :  { %26378 = sst [smem:[#allocation73_spill]] %s23719_s6 }
  0x2a   :  { %s23739_s6 = sld [smem:[%s26299_s0 + %s23541_s7]]   ;;  %s23545_s7 = smov 26  }
  0x2b   :  { %26379 = sst [smem:[#allocation74_spill]] %s23724_s20 }
  0x2c   :  { %26380 = sst [smem:[#allocation75_spill]] %s23729_s30 }
  0x2d   :  { %26381 = sst [smem:[#allocation76_spill]] %s23734_s27 }
  0x2e   :  { %s23744_s20 = sld [smem:[%s26299_s0 + %s23542_s15]]   ;;  %s23546_s15 = smov 27  }
  0x2f   :  { %s23749_s30 = sld [smem:[%s26299_s0 + %s23543_s22]]   ;;  %s23547_s22 = smov 28  }
  0x30   :  { %26382 = sst [smem:[#allocation77_spill]] %s23739_s6 }
  0x31   :  { %s23754_s27 = sld [smem:[%s26299_s0 + %s23544_s28]]   ;;  %s23548_s28 = smov 29  }
  0x32   :  { %s23759_s24 = sld [smem:[%s26299_s0 + %s23545_s7]]   ;;  %s23549_s7 = smov 30  }
  0x33   :  { %s23774_s8 = sld [smem:[%s26299_s0 + %s23548_s28]]   ;;  %s23552_s28 = smov 33  }
  0x34   :  { %26383 = sst [smem:[#allocation78_spill]] %s23744_s20 }
  0x35   :  { %26384 = sst [smem:[#allocation79_spill]] %s23749_s30 }
  0x36   :  { %s23764_s20 = sld [smem:[%s26299_s0 + %s23546_s15]]   ;;  %s23550_s15 = smov 31  }
  0x37   :  { %s23769_s30 = sld [smem:[%s26299_s0 + %s23547_s22]]   ;;  %s23551_s22 = smov 32  }
  0x38   :  { %26385 = sst [smem:[#allocation80_spill]] %s23759_s24 }
  0x39   :  { %26388 = sst [smem:[#allocation83_spill]] %s23774_s8 }
  0x3a   :  { %s23779_s24 = sld [smem:[%s26299_s0 + %s23549_s7]]   ;;  %s23553_s7 = smov 34  }
  0x3b   :  { %s23794_s29 = sld [smem:[%s26299_s0 + %s23552_s28]]   ;;  %s23556_s28 = smov 37  }
  0x3c   :  { %26386 = sst [smem:[#allocation81_spill]] %s23764_s20 }
  0x3d   :  { %26387 = sst [smem:[#allocation82_spill]] %s23769_s30 }
  0x3e   :  { %s23784_s20 = sld [smem:[%s26299_s0 + %s23550_s15]]   ;;  %s23554_s15 = smov 35  }
  0x3f   :  { %s23789_s30 = sld [smem:[%s26299_s0 + %s23551_s22]]   ;;  %s23555_s22 = smov 36  }
  0x40   :  { %26389 = sst [smem:[#allocation84_spill]] %s23779_s24 }
  0x41   :  { %26391 = sst [smem:[#allocation86_spill]] %s23794_s29 }
  0x42   :  { %s23799_s24 = sld [smem:[%s26299_s0 + %s23553_s7]]   ;;  %s23557_s7 = smov 38  }
  0x43   :  { %s23809_s25 = sld [smem:[%s26299_s0 + %s23555_s22]]   ;;  %s23559_s22 = smov 40  }
  0x44   :  { %26390 = sst [smem:[#allocation85_spill]] %s23784_s20 }
  0x45   :  { %s23804_s20 = sld [smem:[%s26299_s0 + %s23554_s15]]   ;;  %s23558_s15 = smov 39  }
  0x46   :  { %s23814_s29 = sld [smem:[%s26299_s0 + %s23556_s28]]   ;;  %s23560_s28 = smov 41  }
  0x48   :  { %26392 = sst [smem:[#allocation87_spill]] %s23799_s24 }
  0x49   :  { %26394 = sst [smem:[#allocation89_spill]] %s23809_s25 }
  0x4a   :  { %s23819_s24 = sld [smem:[%s26299_s0 + %s23557_s7]]   ;;  %s23561_s7 = smov 42  }
  0x4b   :  { %26393 = sst [smem:[#allocation88_spill]] %s23804_s20 }
  0x4c   :  { %26395 = sst [smem:[#allocation90_spill]] %s23814_s29 }
  0x4d   :  { %s23824_s20 = sld [smem:[%s26299_s0 + %s23558_s15]]   ;;  %s23562_s15 = smov 43  }
  0x4e   :  { %s23829_s25 = sld [smem:[%s26299_s0 + %s23559_s22]]   ;;  %s23563_s22 = smov 44  }
  0x4f   :  { %s23834_s29 = sld [smem:[%s26299_s0 + %s23560_s28]]   ;;  %s23564_s28 = smov 45  }
  0x50   :  { %26396 = sst [smem:[#allocation91_spill]] %s23819_s24 }
  0x51   :  { %s23839_s21 = sld [smem:[%s26299_s0 + %s23561_s7]]   ;;  %s23565_s7 = smov 46  }
  0x52   :  { %s23844_s14 = sld [smem:[%s26299_s0 + %s23562_s15]]   ;;  %s23566_s15 = smov 47  }
  0x53   :  { %s23849_s13 = sld [smem:[%s26299_s0 + %s23563_s22]]   ;;  %s23567_s22 = smov 48  }
  0x54   :  { %26397 = sst [smem:[#allocation92_spill]] %s23829_s25 }
  0x55   :  { %26398 = sst [smem:[#allocation93_spill]] %s23834_s29 }
  0x56   :  { %s23854_s29 = sld [smem:[%s26299_s0 + %s23564_s28]]   ;;  %s23568_s28 = smov 49  }
  0x57   :  { %26399 = sst [smem:[#allocation94_spill]] %s23839_s21 }
  0x58   :  { %26400 = sst [smem:[#allocation95_spill]] %s23844_s14 }
  0x59   :  { %26401 = sst [smem:[#allocation96_spill]] %s23849_s13 }
  0x5a   :  { %s23859_s21 = sld [smem:[%s26299_s0 + %s23565_s7]]   ;;  %s23569_s7 = smov 50  }
  0x5b   :  { %s23864_s14 = sld [smem:[%s26299_s0 + %s23566_s15]]   ;;  %s23570_s15 = smov 51  }
  0x5c   :  { %26402 = sst [smem:[#allocation97_spill]] %s23854_s29 }
  0x5d   :  { %s23869_s17 = sld [smem:[%s26299_s0 + %s23567_s22]]   ;;  %s23571_s22 = smov 52  }
  0x5e   :  { %s23874_s29 = sld [smem:[%s26299_s0 + %s23568_s28]]   ;;  %s23572_s28 = smov 53  }
  0x5f   :  { %s23884_s5 = sld [smem:[%s26299_s0 + %s23570_s15]]   ;;  %s23574_s15 = smov 55  }
  0x60   :  { %26403 = sst [smem:[#allocation98_spill]] %s23859_s21 }
  0x61   :  { %26404 = sst [smem:[#allocation99_spill]] %s23864_s14 }
  0x62   :  { %s23879_s21 = sld [smem:[%s26299_s0 + %s23569_s7]]   ;;  %s23573_s7 = smov 54  }
  0x63   :  { %26405 = sst [smem:[#allocation100_spill]] %s23869_s17 }
  0x64   :  { %26406 = sst [smem:[#allocation101_spill]] %s23874_s29 }
  0x65   :  { %26408 = sst [smem:[#allocation103_spill]] %s23884_s5 }
  0x66   :  { %s23889_s9 = sld [smem:[%s26299_s0 + %s23571_s22]]   ;;  %s23575_s22 = smov 56  }
  0x67   :  { %s23894_s29 = sld [smem:[%s26299_s0 + %s23572_s28]]   ;;  %s23576_s28 = smov 57  }
  0x68   :  { %26407 = sst [smem:[#allocation102_spill]] %s23879_s21 }
  0x69   :  { %s23899_s21 = sld [smem:[%s26299_s0 + %s23573_s7]]   ;;  %s23577_s7 = smov 58  }
  0x6a   :  { %s23904_s14 = sld [smem:[%s26299_s0 + %s23574_s15]]   ;;  %s23578_s15 = smov 59  }
  0x6b   :  { %s23919_s25 = sld [smem:[%s26299_s0 + %s23577_s7]]   ;;  %s23581_s7 = smov 62  }
  0x6c   :  { %26409 = sst [smem:[#allocation104_spill]] %s23889_s9 }
  0x6d   :  { %26410 = sst [smem:[#allocation105_spill]] %s23894_s29 }
  0x6e   :  { %s23909_s9 = sld [smem:[%s26299_s0 + %s23575_s22]]   ;;  %s23579_s22 = smov 60  }
  0x6f   :  { %s23914_s29 = sld [smem:[%s26299_s0 + %s23576_s28]]   ;;  %s23580_s28 = smov 61  }
  0x70   :  { %26411 = sst [smem:[#allocation106_spill]] %s23904_s14 }
  0x71   :  { %26413 = sst [smem:[#allocation108_spill]] %s23919_s25 }
  0x72   :  { %s23924_s14 = sld [smem:[%s26299_s0 + %s23578_s15]]   ;;  %s23582_s15 = smov 63  }
  0x73   :  { %s23934_s24 = sld [smem:[%s26299_s0 + %s23580_s28]]   ;;  %s23584_s28 = smov 65  }
  0x74   :  { %26412 = sst [smem:[#allocation107_spill]] %s23909_s9 }
  0x75   :  { %s23929_s9 = sld [smem:[%s26299_s0 + %s23579_s22]]   ;;  %s23583_s22 = smov 64  }
  0x76   :  { %s23939_s25 = sld [smem:[%s26299_s0 + %s23581_s7]]   ;;  %s23585_s7 = smov 66  }
  0x77   :  { %s23944_s8 = sld [smem:[%s26299_s0 + %s23582_s15]]   ;;  %s23586_s15 = smov 67  }
  0x78   :  { %26414 = sst [smem:[#allocation109_spill]] %s23924_s14 }
  0x79   :  { %26416 = sst [smem:[#allocation111_spill]] %s23934_s24 }
  0x7a   :  { %s23954_s24 = sld [smem:[%s26299_s0 + %s23584_s28]]   ;;  %s23588_s28 = smov 69  }
  0x7b   :  { %26415 = sst [smem:[#allocation110_spill]] %s23929_s9 }
  0x7c   :  { %s23949_s9 = sld [smem:[%s26299_s0 + %s23583_s22]]   ;;  %s23587_s22 = smov 68  }
  0x7d   :  { %26417 = sst [smem:[#allocation112_spill]] %s23944_s8 }
  0x7e   :  { %s23959_s6 = sld [smem:[%s26299_s0 + %s23585_s7]]  }
  0x7f   :  { %s23964_s8 = sld [smem:[%s26299_s0 + %s23586_s15]]  }
  0x80   :  { %26419 = sst [smem:[#allocation114_spill]] %s23954_s24 }
  0x81   :  { %s23974_s24 = sld [smem:[%s26299_s0 + %s23588_s28]]  }
  0x82   :  { %26418 = sst [smem:[#allocation113_spill]] %s23949_s9 }
  0x83   :  { %s23969_s9 = sld [smem:[%s26299_s0 + %s23587_s22]]  }
  0x84   :  { %144 = vsyncpa [#allocation3], 0 }
  0x85   :  { %145 = vsyncpa [#allocation5], 0 }
  0x86   :  { %146 = vsyncpa [#allocation8], 0 }
  0x87   :  { %147 = vsyncpa [#allocation11], 0 }
  0x88   :  { %148 = vsyncpa [#allocation14], 0 }
  0x89   :  { %149 = vsyncpa [#allocation17], 0 }
  0x8a   :  { %150 = vsyncpa [#allocation20], 0 }
  0x8b   :  { %151 = vsyncpa [#allocation23], 0 }
  0x8c   :  { %152 = vsyncpa [#allocation26], 0 }
  0x8d   :  { %153 = vsyncpa [#allocation29], 0 }
  0x8e   :  { %154 = vsyncpa [#allocation32], 0 }
  0x8f   :  { %155 = vsyncpa [#allocation35], 0 }
  0x90   :  { %156 = vsyncpa [#allocation38], 0 }
  0x91   :  { %157 = vsyncpa [#allocation41], 0  ;;  %s23976_s7 = smov 0  }
  0x92 LB: > { %s26420_s17 = sld [smem:[#allocation100_spill]]  ;;  %s26421_s14 = sld [smem:[#allocation109_spill]]  ;;  %s23518_s7 = sphi %s23976_s7, %s163_s7  }
  0x93   : > { %s26422_s13 = sld [smem:[#allocation96_spill]]  ;;  %s26423_s12 = sld [smem:[#allocation69_spill]] }
  0x94   : > { %s26424_s5 = sld [smem:[#allocation103_spill]]  ;;  %s26426_s4 = sld [smem:[#allocation72_spill]] }
  0x95   : > { %s26425_s3 = sld [smem:[#allocation63_spill]]  ;;  %s23982_s0 = sadd.s32 4294967295, %s23518_s7  }
  0x96   : > { %p17476_p0 = scmp.ge.s32.totalorder %s23518_s7, 1  ;;  %p1648_p1 = scmp.lt.s32.totalorder %s23518_s7, 3 }
  0x97   : > { %p26332_p2 = scmp.eq.s32.totalorder %s23982_s0, 0  ;;  %s23589_s11 = smov [#allocation4]  }
  0x98   : > { %p23987_p3 = pnand %p17476_p0, %p1648_p1  ;;  %s1697_s15 = sshll.u32 %s23589_s11, 4  ;;  %s23991_s15 = int_to_ptr.vmem [resolvable:$true] %s1697_s15 }
  0x99   : > { %s23590_s16 = smov [#allocation7]   ;;  %s23591_s23 = smov [#allocation10]  }
  0x9a   : > { %s26427_s10 = scalar_select %p23987_p3, 1, 0 }
  0x9b   : > { %p21485_p4 = pneg %p23987_p3  ;;  %s1738_s18 = sshll.u32 %s23590_s16, 4  ;;  %s23995_s18 = int_to_ptr.vmem [resolvable:$true] %s1738_s18 }
  0x9c   : > { %s1782_s26 = sshll.u32 %s23591_s23, 4  ;;  %s23592_s28 = smov [#allocation13]   ;;  %s24003_s26 = int_to_ptr.vmem [resolvable:$true] %s1782_s26 }
  0x9d   : > { %p23999_p5 = pnand %p26332_p2, %p21485_p4  ;;  %s24005_s1 = sshll.u32 %s23592_s28, 4  ;;  %s1824_s1 = int_to_ptr.vmem [resolvable:$true] %s24005_s1 }
  0x9e   : > { %s22728_s2 = scalar_lea.hbm %s23679_s19, 1024 }
  0x9f   : > { %p22729_p6 = scmp.ne.s32.totalorder %s23679_s19, %s22728_s2  ;;  %p24011_p7 = pneg %p23999_p5 }
  0xa0   : > { %p22735_p10 = scmp.lt.u32.totalorder %s22728_s2, %s23679_s19 }
  0xa1   : > { %p22731_p8 = pnand %p24011_p7, %p22729_p6 }
  0xa3   : > { %p22732_p9 = pneg %p22731_p8 }
  0xa5   : > { %p22737_p11 = pnand %p22735_p10, %p22732_p9 }
  0xa7   : > { %22740 = shalt.err (!%p22737_p11)
}
  0xa8   : > { %s22741_s16 = scalar_lea.vmem %s23991_s15, 1024  ;;  %p22749_p1 = scmp.lt.s32.totalorder %s23991_s15, %s23991_s15 }
  0xa9   : > { %p22742_p12 = scmp.ne.s32.totalorder %s23991_s15, %s22741_s16  ;;  %p22750_p4 = scmp.lt.s32.totalorder %s22741_s16, %s22741_s16 }
  0xab   : > { %p22744_p13 = pnand %p22742_p12, %p24011_p7  ;;  %p22751_p2 = por %p22750_p4, %p22749_p1 }
  0xad   : > { %p22745_p0 = pneg %p22744_p13 }
  0xaf   : > { %p22752_p3 = pnand %p22751_p2, %p22745_p0 }
  0xb1   : > { %22755 = shalt.err (!%p22752_p3)
}
  0xb2   : > { %s26335_s23 = smov 64   ;;  %s26342_s28 = smov 4  }
  0xb3   : > { %21491 = dma.hbm_to_vmem [thread:$0]  (!%p23999_p5), %s23679_s19, 1024, %s23991_s15, [#allocation5], %s26335_s23, %s26335_s23, %s26342_s28  }
  0xb4   : > { %s22756_s2 = scalar_lea.hbm %s26426_s4, 1024 }
  0xb5   : > { %p22757_p6 = scmp.ne.s32.totalorder %s26426_s4, %s22756_s2  ;;  %p22763_p3 = scmp.lt.u32.totalorder %s22756_s2, %s26426_s4 }
  0xb7   : > { %p22759_p8 = pnand %p22757_p6, %p24011_p7 }
  0xb9   : > { %p22760_p2 = pneg %p22759_p8 }
  0xbb   : > { %p22765_p9 = pnand %p22763_p3, %p22760_p2 }
  0xbd   : > { %22768 = shalt.err (!%p22765_p9)
}
  0xbe   : > { %s22769_s16 = scalar_lea.vmem %s23995_s18, 1024  ;;  %p22777_p13 = scmp.lt.s32.totalorder %s23995_s18, %s23995_s18 }
  0xbf   : > { %p22770_p10 = scmp.ne.s32.totalorder %s23995_s18, %s22769_s16  ;;  %p22778_p0 = scmp.lt.s32.totalorder %s22769_s16, %s22769_s16 }
  0xc1   : > { %p22772_p11 = pnand %p22770_p10, %p24011_p7  ;;  %p22779_p1 = por %p22778_p0, %p22777_p13 }
  0xc3   : > { %p22773_p12 = pneg %p22772_p11 }
  0xc5   : > { %p22780_p4 = pnand %p22779_p1, %p22773_p12 }
  0xc7   : > { %22783 = shalt.err (!%p22780_p4)
}
  0xc8   : > { %21497 = dma.hbm_to_vmem [thread:$0]  (!%p23999_p5), %s26426_s4, 1024, %s23995_s18, [#allocation8], %s26335_s23, %s26335_s23, %s26342_s28  }
  0xc9   : > { %s22784_s15 = scalar_lea.hbm %s23754_s27, 1024 }
  0xca   : > { %p22785_p6 = scmp.ne.s32.totalorder %s23754_s27, %s22784_s15  ;;  %p22791_p3 = scmp.lt.u32.totalorder %s22784_s15, %s23754_s27 }
  0xcc   : > { %p22787_p8 = pnand %p22785_p6, %p24011_p7 }
  0xce   : > { %p22788_p2 = pneg %p22787_p8 }
  0xd0   : > { %p22793_p9 = pnand %p22791_p3, %p22788_p2 }
  0xd2   : > { %22796 = shalt.err (!%p22793_p9)
}
  0xd3   : > { %s22797_s2 = scalar_lea.vmem %s24003_s26, 1024  ;;  %p22805_p13 = scmp.lt.s32.totalorder %s24003_s26, %s24003_s26 }
  0xd4   : > { %p22798_p10 = scmp.ne.s32.totalorder %s24003_s26, %s22797_s2  ;;  %p22806_p0 = scmp.lt.s32.totalorder %s22797_s2, %s22797_s2 }
  0xd6   : > { %p22800_p11 = pnand %p22798_p10, %p24011_p7  ;;  %p22807_p1 = por %p22806_p0, %p22805_p13 }
  0xd8   : > { %p22801_p12 = pneg %p22800_p11 }
  0xda   : > { %p22808_p4 = pnand %p22807_p1, %p22801_p12 }
  0xdc   : > { %22811 = shalt.err (!%p22808_p4)
}
  0xdd   : > { %21503 = dma.hbm_to_vmem [thread:$0]  (!%p23999_p5), %s23754_s27, 1024, %s24003_s26, [#allocation11], %s26335_s23, %s26335_s23, %s26342_s28  }
  0xde   : > { %s22812_s18 = scalar_lea.hbm %s23789_s30, 1024 }
  0xdf   : > { %p22813_p6 = scmp.ne.s32.totalorder %s23789_s30, %s22812_s18  ;;  %p22819_p3 = scmp.lt.u32.totalorder %s22812_s18, %s23789_s30 }
  0xe1   : > { %p22815_p8 = pnand %p22813_p6, %p24011_p7 }
  0xe3   : > { %p22816_p2 = pneg %p22815_p8 }
  0xe5   : > { %p22821_p9 = pnand %p22819_p3, %p22816_p2 }
  0xe7   : > { %22824 = shalt.err (!%p22821_p9)
}
  0xe8   : > { %s22825_s16 = scalar_lea.vmem %s1824_s1, 1024  ;;  %p22833_p13 = scmp.lt.s32.totalorder %s1824_s1, %s1824_s1 }
  0xe9   : > { %p22826_p10 = scmp.ne.s32.totalorder %s1824_s1, %s22825_s16  ;;  %p22834_p0 = scmp.lt.s32.totalorder %s22825_s16, %s22825_s16 }
  0xeb   : > { %p22828_p11 = pnand %p22826_p10, %p24011_p7  ;;  %p22835_p1 = por %p22834_p0, %p22833_p13 }
  0xed   : > { %p22829_p12 = pneg %p22828_p11 }
  0xef   : > { %p22836_p4 = pnand %p22835_p1, %p22829_p12 }
  0xf1   : > { %22839 = shalt.err (!%p22836_p4)
}
  0xf2   : > { %21509 = dma.hbm_to_vmem [thread:$0]  (!%p23999_p5), %s23789_s30, 1024, %s1824_s1, [#allocation14], %s26335_s23, %s26335_s23, %s26342_s28  }
  0xf3   : > { %s23595_s26 = smov [#allocation16]   ;;  %s23596_s2 = smov [#allocation19]  }
  0xf4   : > { %s1864_s15 = sshll.u32 %s23595_s26, 4  ;;  %s1899_s18 = sshll.u32 %s23596_s2, 4  ;;  %s1865_s15 = int_to_ptr.vmem [resolvable:$true] %s1864_s15  ;;  %s1900_s18 = int_to_ptr.vmem [resolvable:$true] %s1899_s18 }
  0xf5   : > { %s22840_s16 = scalar_lea.hbm %s23824_s20, 1024 }
  0xf6   : > { %p22841_p6 = scmp.ne.s32.totalorder %s23824_s20, %s22840_s16  ;;  %p22847_p3 = scmp.lt.u32.totalorder %s22840_s16, %s23824_s20 }
  0xf8   : > { %p22843_p8 = pnand %p22841_p6, %p24011_p7 }
  0xfa   : > { %p22844_p2 = pneg %p22843_p8 }
  0xfc   : > { %p22849_p9 = pnand %p22847_p3, %p22844_p2 }
  0xfe   : > { %22852 = shalt.err (!%p22849_p9)
}
  0xff   : > { %s22853_s4 = scalar_lea.vmem %s1865_s15, 1024  ;;  %p22861_p13 = scmp.lt.s32.totalorder %s1865_s15, %s1865_s15 }
 0x100   : > { %p22854_p10 = scmp.ne.s32.totalorder %s1865_s15, %s22853_s4  ;;  %p22862_p0 = scmp.lt.s32.totalorder %s22853_s4, %s22853_s4 }
 0x102   : > { %p22856_p11 = pnand %p22854_p10, %p24011_p7  ;;  %p22863_p1 = por %p22862_p0, %p22861_p13 }
 0x104   : > { %p22857_p12 = pneg %p22856_p11 }
 0x106   : > { %p22864_p4 = pnand %p22863_p1, %p22857_p12 }
 0x108   : > { %22867 = shalt.err (!%p22864_p4)
}
 0x109   : > { %21515 = dma.hbm_to_vmem [thread:$0]  (!%p23999_p5), %s23824_s20, 1024, %s1865_s15, [#allocation17], %s26335_s23, %s26335_s23, %s26342_s28  }
 0x10a   : > { %s22868_s1 = scalar_lea.hbm %s26422_s13, 1024 }
 0x10b   : > { %p22869_p6 = scmp.ne.s32.totalorder %s26422_s13, %s22868_s1  ;;  %p22875_p3 = scmp.lt.u32.totalorder %s22868_s1, %s26422_s13 }
 0x10d   : > { %p22871_p8 = pnand %p22869_p6, %p24011_p7 }
 0x10f   : > { %p22872_p2 = pneg %p22871_p8 }
 0x111   : > { %p22877_p9 = pnand %p22875_p3, %p22872_p2 }
 0x113   : > { %22880 = shalt.err (!%p22877_p9)
}
 0x114   : > { %s22881_s4 = scalar_lea.vmem %s1900_s18, 1024  ;;  %p22889_p13 = scmp.lt.s32.totalorder %s1900_s18, %s1900_s18 }
 0x115   : > { %p22882_p10 = scmp.ne.s32.totalorder %s1900_s18, %s22881_s4  ;;  %p22890_p0 = scmp.lt.s32.totalorder %s22881_s4, %s22881_s4 }
 0x117   : > { %p22884_p11 = pnand %p22882_p10, %p24011_p7  ;;  %p22891_p1 = por %p22890_p0, %p22889_p13 }
 0x119   : > { %p22885_p12 = pneg %p22884_p11 }
 0x11b   : > { %p22892_p4 = pnand %p22891_p1, %p22885_p12 }
 0x11d   : > { %22895 = shalt.err (!%p22892_p4)
}
 0x11e   : > { %21521 = dma.hbm_to_vmem [thread:$0]  (!%p23999_p5), %s26422_s13, 1024, %s1900_s18, [#allocation20], %s26335_s23, %s26335_s23, %s26342_s28  }
 0x11f   : > { %s23597_s26 = smov [#allocation22]   ;;  %s23598_s2 = smov [#allocation25]  }
 0x120   : > { %s1932_s15 = sshll.u32 %s23597_s26, 4  ;;  %s1956_s16 = sshll.u32 %s23598_s2, 4  ;;  %s1933_s15 = int_to_ptr.vmem [resolvable:$true] %s1932_s15  ;;  %s1957_s16 = int_to_ptr.vmem [resolvable:$true] %s1956_s16 }
 0x121   : > { %s22896_s1 = scalar_lea.hbm %s26420_s17, 16 }
 0x122   : > { %p22897_p6 = scmp.ne.s32.totalorder %s26420_s17, %s22896_s1  ;;  %p22903_p3 = scmp.lt.u32.totalorder %s22896_s1, %s26420_s17 }
 0x124   : > { %p22899_p8 = pnand %p22897_p6, %p24011_p7 }
 0x126   : > { %p22900_p2 = pneg %p22899_p8 }
 0x128   : > { %p22905_p9 = pnand %p22903_p3, %p22900_p2 }
 0x12a   : > { %22908 = shalt.err (!%p22905_p9)
}
 0x12b   : > { %s22909_s4 = scalar_lea.vmem %s1933_s15, 16  ;;  %s22916_s18 = scalar_lea.vmem %s1933_s15, 32 }
 0x12c   : > { %p22910_p10 = scmp.ne.s32.totalorder %s1933_s15, %s22909_s4  ;;  %p22917_p13 = scmp.lt.s32.totalorder %s1933_s15, %s1933_s15 }
 0x12d   : > { %p22918_p0 = scmp.lt.s32.totalorder %s22916_s18, %s22909_s4 }
 0x12e   : > { %p22912_p11 = pnand %p22910_p10, %p24011_p7 }
 0x12f   : > { %p22919_p1 = por %p22918_p0, %p22917_p13 }
 0x130   : > { %p22913_p12 = pneg %p22912_p11 }
 0x132   : > { %p22920_p4 = pnand %p22919_p1, %p22913_p12 }
 0x134   : > { %22923 = shalt.err (!%p22920_p4)
}
 0x135   : > { %21527 = dma.hbm_to_vmem [thread:$0]  (!%p23999_p5), %s26420_s17, 16, %s1933_s15, [#allocation23]  }
 0x136   : > { %s22924_s26 = scalar_lea.hbm %s26424_s5, 1024 }
 0x137   : > { %p22925_p6 = scmp.ne.s32.totalorder %s26424_s5, %s22924_s26  ;;  %p22931_p3 = scmp.lt.u32.totalorder %s22924_s26, %s26424_s5 }
 0x139   : > { %p22927_p8 = pnand %p22925_p6, %p24011_p7 }
 0x13b   : > { %p22928_p2 = pneg %p22927_p8 }
 0x13d   : > { %p22933_p9 = pnand %p22931_p3, %p22928_p2 }
 0x13f   : > { %22936 = shalt.err (!%p22933_p9)
}
 0x140   : > { %s22937_s2 = scalar_lea.vmem %s1957_s16, 1024  ;;  %p22945_p13 = scmp.lt.s32.totalorder %s1957_s16, %s1957_s16 }
 0x141   : > { %p22938_p10 = scmp.ne.s32.totalorder %s1957_s16, %s22937_s2  ;;  %p22946_p0 = scmp.lt.s32.totalorder %s22937_s2, %s22937_s2 }
 0x143   : > { %p22940_p11 = pnand %p22938_p10, %p24011_p7  ;;  %p22947_p1 = por %p22946_p0, %p22945_p13 }
 0x145   : > { %p22941_p12 = pneg %p22940_p11 }
 0x147   : > { %p22948_p4 = pnand %p22947_p1, %p22941_p12 }
 0x149   : > { %22951 = shalt.err (!%p22948_p4)
}
 0x14a   : > { %21533 = dma.hbm_to_vmem [thread:$0]  (!%p23999_p5), %s26424_s5, 1024, %s1957_s16, [#allocation26], %s26335_s23, %s26335_s23, %s26342_s28  }
 0x14b   : > { %s23599_s15 = smov [#allocation28]   ;;  %s23600_s4 = smov [#allocation31]  }
 0x14c   : > { %s1983_s1 = sshll.u32 %s23599_s15, 4  ;;  %s2011_s18 = sshll.u32 %s23600_s4, 4  ;;  %s1984_s1 = int_to_ptr.vmem [resolvable:$true] %s1983_s1  ;;  %s2012_s18 = int_to_ptr.vmem [resolvable:$true] %s2011_s18 }
 0x14d   : > { %s22952_s26 = scalar_lea.hbm %s23899_s21, 1024 }
 0x14e   : > { %p22953_p6 = scmp.ne.s32.totalorder %s23899_s21, %s22952_s26  ;;  %p22959_p3 = scmp.lt.u32.totalorder %s22952_s26, %s23899_s21 }
 0x150   : > { %p22955_p8 = pnand %p22953_p6, %p24011_p7 }
 0x152   : > { %p22956_p2 = pneg %p22955_p8 }
 0x154   : > { %p22961_p9 = pnand %p22959_p3, %p22956_p2 }
 0x156   : > { %22964 = shalt.err (!%p22961_p9)
}
 0x157   : > { %s22965_s2 = scalar_lea.vmem %s1984_s1, 1024  ;;  %p22973_p13 = scmp.lt.s32.totalorder %s1984_s1, %s1984_s1 }
 0x158   : > { %p22966_p10 = scmp.ne.s32.totalorder %s1984_s1, %s22965_s2  ;;  %p22974_p0 = scmp.lt.s32.totalorder %s22965_s2, %s22965_s2 }
 0x15a   : > { %p22968_p11 = pnand %p22966_p10, %p24011_p7  ;;  %p22975_p1 = por %p22974_p0, %p22973_p13 }
 0x15c   : > { %p22969_p12 = pneg %p22968_p11 }
 0x15e   : > { %p22976_p4 = pnand %p22975_p1, %p22969_p12 }
 0x160   : > { %22979 = shalt.err (!%p22976_p4)
}
 0x161   : > { %21539 = dma.hbm_to_vmem [thread:$0]  (!%p23999_p5), %s23899_s21, 1024, %s1984_s1, [#allocation29], %s26335_s23, %s26335_s23, %s26342_s28  }
 0x162   : > { %s22980_s16 = scalar_lea.hbm %s23914_s29, 16 }
 0x163   : > { %p22981_p6 = scmp.ne.s32.totalorder %s23914_s29, %s22980_s16  ;;  %p22987_p3 = scmp.lt.u32.totalorder %s22980_s16, %s23914_s29 }
 0x165   : > { %p22983_p8 = pnand %p22981_p6, %p24011_p7 }
 0x167   : > { %p22984_p2 = pneg %p22983_p8 }
 0x169   : > { %p22989_p9 = pnand %p22987_p3, %p22984_p2 }
 0x16b   : > { %22992 = shalt.err (!%p22989_p9)
}
 0x16c   : > { %s22993_s15 = scalar_lea.vmem %s2012_s18, 16  ;;  %s23000_s4 = scalar_lea.vmem %s2012_s18, 32 }
 0x16d   : > { %p22994_p10 = scmp.ne.s32.totalorder %s2012_s18, %s22993_s15  ;;  %p23001_p13 = scmp.lt.s32.totalorder %s2012_s18, %s2012_s18 }
 0x16e   : > { %p23002_p0 = scmp.lt.s32.totalorder %s23000_s4, %s22993_s15 }
 0x16f   : > { %p22996_p11 = pnand %p22994_p10, %p24011_p7 }
 0x170   : > { %p23003_p1 = por %p23002_p0, %p23001_p13 }
 0x171   : > { %p22997_p12 = pneg %p22996_p11 }
 0x173   : > { %p23004_p4 = pnand %p23003_p1, %p22997_p12 }
 0x175   : > { %23007 = shalt.err (!%p23004_p4)
}
 0x176   : > { %21545 = dma.hbm_to_vmem [thread:$0]  (!%p23999_p5), %s23914_s29, 16, %s2012_s18, [#allocation32]  }
 0x177   : > { %s23601_s1 = smov [#allocation34]   ;;  %s23602_s2 = smov [#allocation37]  }
 0x178   : > { %s2035_s26 = sshll.u32 %s23601_s1, 4  ;;  %s2062_s16 = sshll.u32 %s23602_s2, 4  ;;  %s2036_s26 = int_to_ptr.vmem [resolvable:$true] %s2035_s26  ;;  %s2063_s16 = int_to_ptr.vmem [resolvable:$true] %s2062_s16 }
 0x179   : > { %s23008_s23 = scalar_lea.hbm %s26421_s14, 16 }
 0x17a   : > { %p23009_p6 = scmp.ne.s32.totalorder %s26421_s14, %s23008_s23  ;;  %p23015_p3 = scmp.lt.u32.totalorder %s23008_s23, %s26421_s14 }
 0x17c   : > { %p23011_p8 = pnand %p23009_p6, %p24011_p7 }
 0x17e   : > { %p23012_p2 = pneg %p23011_p8 }
 0x180   : > { %p23017_p9 = pnand %p23015_p3, %p23012_p2 }
 0x182   : > { %23020 = shalt.err (!%p23017_p9)
}
 0x183   : > { %s23021_s15 = scalar_lea.vmem %s2036_s26, 16  ;;  %s23028_s18 = scalar_lea.vmem %s2036_s26, 32 }
 0x184   : > { %p23022_p10 = scmp.ne.s32.totalorder %s2036_s26, %s23021_s15  ;;  %p23029_p13 = scmp.lt.s32.totalorder %s2036_s26, %s2036_s26 }
 0x185   : > { %p23030_p0 = scmp.lt.s32.totalorder %s23028_s18, %s23021_s15 }
 0x186   : > { %p23024_p11 = pnand %p23022_p10, %p24011_p7 }
 0x187   : > { %p23031_p1 = por %p23030_p0, %p23029_p13 }
 0x188   : > { %p23025_p12 = pneg %p23024_p11 }
 0x18a   : > { %p23032_p4 = pnand %p23031_p1, %p23025_p12 }
 0x18c   : > { %23035 = shalt.err (!%p23032_p4)
}
 0x18d   : > { %21551 = dma.hbm_to_vmem [thread:$0]  (!%p23999_p5), %s26421_s14, 16, %s2036_s26, [#allocation35]  }
 0x18e   : > { %s23036_s23 = scalar_lea.hbm %s23939_s25, 16 }
 0x18f   : > { %p23037_p6 = scmp.ne.s32.totalorder %s23939_s25, %s23036_s23  ;;  %p23043_p3 = scmp.lt.u32.totalorder %s23036_s23, %s23939_s25 }
 0x191   : > { %p23039_p8 = pnand %p23037_p6, %p24011_p7 }
 0x193   : > { %p23040_p2 = pneg %p23039_p8 }
 0x195   : > { %p23045_p9 = pnand %p23043_p3, %p23040_p2 }
 0x197   : > { %23048 = shalt.err (!%p23045_p9)
}
 0x198   : > { %s23049_s4 = scalar_lea.vmem %s2063_s16, 16  ;;  %s23056_s1 = scalar_lea.vmem %s2063_s16, 32 }
 0x199   : > { %p23050_p10 = scmp.ne.s32.totalorder %s2063_s16, %s23049_s4  ;;  %p23057_p13 = scmp.lt.s32.totalorder %s2063_s16, %s2063_s16 }
 0x19a   : > { %p23058_p0 = scmp.lt.s32.totalorder %s23056_s1, %s23049_s4 }
 0x19b   : > { %p23052_p11 = pnand %p23050_p10, %p24011_p7 }
 0x19c   : > { %p23059_p1 = por %p23058_p0, %p23057_p13 }
 0x19d   : > { %p23053_p12 = pneg %p23052_p11 }
 0x19f   : > { %p23060_p4 = pnand %p23059_p1, %p23053_p12 }
 0x1a1   : > { %23063 = shalt.err (!%p23060_p4)
}
 0x1a2   : > { %21557 = dma.hbm_to_vmem [thread:$0]  (!%p23999_p5), %s23939_s25, 16, %s2063_s16, [#allocation38]  }
 0x1a3   : > { %s23603_s26 = smov [#allocation2]   ;;  %s23604_s15 = smov [#allocation6]  }
 0x1a4   : > { %s1678_s2 = sshll.u32 %s23603_s26, 4  ;;  %s1719_s18 = sshll.u32 %s23604_s15, 4  ;;  %s1679_s2 = int_to_ptr.vmem [resolvable:$true] %s1678_s2  ;;  %s1720_s18 = int_to_ptr.vmem [resolvable:$true] %s1719_s18 }
 0x1a5   : > { %s23064_s23 = scalar_lea.hbm %s26425_s3, 1024 }
 0x1a6   : > { %p23065_p6 = scmp.ne.s32.totalorder %s26425_s3, %s23064_s23  ;;  %p23071_p3 = scmp.lt.u32.totalorder %s23064_s23, %s26425_s3 }
 0x1a8   : > { %p23067_p8 = pnand %p23065_p6, %p24011_p7 }
 0x1aa   : > { %p23068_p2 = pneg %p23067_p8 }
 0x1ac   : > { %p23073_p9 = pnand %p23071_p3, %p23068_p2 }
 0x1ae   : > { %23076 = shalt.err (!%p23073_p9)
}
 0x1af   : > { %s23077_s4 = scalar_lea.vmem %s1679_s2, 1024  ;;  %p23085_p13 = scmp.lt.s32.totalorder %s1679_s2, %s1679_s2 }
 0x1b0   : > { %p23078_p10 = scmp.ne.s32.totalorder %s1679_s2, %s23077_s4  ;;  %p23086_p0 = scmp.lt.s32.totalorder %s23077_s4, %s23077_s4 }
 0x1b2   : > { %p23080_p11 = pnand %p23078_p10, %p24011_p7  ;;  %p23087_p1 = por %p23086_p0, %p23085_p13 }
 0x1b4   : > { %p23081_p12 = pneg %p23080_p11 }
 0x1b6   : > { %p23088_p4 = pnand %p23087_p1, %p23081_p12 }
 0x1b8   : > { %23091 = shalt.err (!%p23088_p4)
}
 0x1b9   : > { %s26430_s16 = smov 64   ;;  %s23092_s1 = scalar_lea.hbm %s26423_s12, 1024 }
 0x1ba   : > { %21488 = dma.hbm_to_vmem [thread:$0]  (!%p23999_p5), %s26425_s3, 1024, %s1679_s2, [#allocation3], %s26430_s16, %s26430_s16, %s26342_s28  }
 0x1bb   : > { %p23093_p6 = scmp.ne.s32.totalorder %s26423_s12, %s23092_s1  ;;  %p23099_p3 = scmp.lt.u32.totalorder %s23092_s1, %s26423_s12 }
 0x1bd   : > { %p23095_p8 = pnand %p23093_p6, %p24011_p7 }
 0x1bf   : > { %p23096_p2 = pneg %p23095_p8 }
 0x1c1   : > { %p23101_p9 = pnand %p23099_p3, %p23096_p2 }
 0x1c3   : > { %23104 = shalt.err (!%p23101_p9)
}
 0x1c4   : > { %s23105_s26 = scalar_lea.vmem %s1720_s18, 1024  ;;  %p23113_p13 = scmp.lt.s32.totalorder %s1720_s18, %s1720_s18 }
 0x1c5   : > { %p23106_p10 = scmp.ne.s32.totalorder %s1720_s18, %s23105_s26  ;;  %p23114_p0 = scmp.lt.s32.totalorder %s23105_s26, %s23105_s26 }
 0x1c7   : > { %p23108_p11 = pnand %p23106_p10, %p24011_p7  ;;  %p23115_p1 = por %p23114_p0, %p23113_p13 }
 0x1c9   : > { %p23109_p12 = pneg %p23108_p11 }
 0x1cb   : > { %p23116_p4 = pnand %p23115_p1, %p23109_p12 }
 0x1cd   : > { %23119 = shalt.err (!%p23116_p4)
}
 0x1ce   : > { %s26431_s2 = sld [smem:[#allocation77_spill]]  ;;  %s23605_s15 = smov [#allocation9]  }
 0x1cf   : > { %21494 = dma.hbm_to_vmem [thread:$0]  (!%p23999_p5), %s26423_s12, 1024, %s1720_s18, [#allocation5], %s26430_s16, %s26430_s16, %s26342_s28  }
 0x1d0   : > { %s1763_s23 = sshll.u32 %s23605_s15, 4  ;;  %s23606_s4 = smov [#allocation12]   ;;  %s1764_s23 = int_to_ptr.vmem [resolvable:$true] %s1763_s23 }
 0x1d1   : > { %s1804_s1 = sshll.u32 %s23606_s4, 4  ;;  %s1805_s1 = int_to_ptr.vmem [resolvable:$true] %s1804_s1 }
 0x1d4   : > { %s23120_s26 = scalar_lea.hbm %s26431_s2, 1024 }
 0x1d5   : > { %p23121_p6 = scmp.ne.s32.totalorder %s26431_s2, %s23120_s26  ;;  %p23127_p3 = scmp.lt.u32.totalorder %s23120_s26, %s26431_s2 }
 0x1d7   : > { %p23123_p8 = pnand %p23121_p6, %p24011_p7 }
 0x1d9   : > { %p23124_p2 = pneg %p23123_p8 }
 0x1db   : > { %p23129_p9 = pnand %p23127_p3, %p23124_p2 }
 0x1dd   : > { %23132 = shalt.err (!%p23129_p9)
}
 0x1de   : > { %s23133_s3 = scalar_lea.vmem %s1764_s23, 1024  ;;  %p23141_p13 = scmp.lt.s32.totalorder %s1764_s23, %s1764_s23 }
 0x1df   : > { %p23134_p10 = scmp.ne.s32.totalorder %s1764_s23, %s23133_s3  ;;  %p23142_p0 = scmp.lt.s32.totalorder %s23133_s3, %s23133_s3 }
 0x1e1   : > { %p23136_p11 = pnand %p23134_p10, %p24011_p7  ;;  %p23143_p1 = por %p23142_p0, %p23141_p13 }
 0x1e3   : > { %p23137_p12 = pneg %p23136_p11 }
 0x1e5   : > { %p23144_p4 = pnand %p23143_p1, %p23137_p12 }
 0x1e7   : > { %23147 = shalt.err (!%p23144_p4)
}
 0x1e8   : > { %s26432_s18 = sld [smem:[#allocation83_spill]] }
 0x1e9   : > { %21500 = dma.hbm_to_vmem [thread:$0]  (!%p23999_p5), %s26431_s2, 1024, %s1764_s23, [#allocation8], %s26430_s16, %s26430_s16, %s26342_s28  }
 0x1ee   : > { %s23148_s15 = scalar_lea.hbm %s26432_s18, 1024 }
 0x1ef   : > { %p23149_p6 = scmp.ne.s32.totalorder %s26432_s18, %s23148_s15  ;;  %p23155_p3 = scmp.lt.u32.totalorder %s23148_s15, %s26432_s18 }
 0x1f1   : > { %p23151_p8 = pnand %p23149_p6, %p24011_p7 }
 0x1f3   : > { %p23152_p2 = pneg %p23151_p8 }
 0x1f5   : > { %p23157_p9 = pnand %p23155_p3, %p23152_p2 }
 0x1f7   : > { %23160 = shalt.err (!%p23157_p9)
}
 0x1f8   : > { %s23161_s3 = scalar_lea.vmem %s1805_s1, 1024  ;;  %p23169_p13 = scmp.lt.s32.totalorder %s1805_s1, %s1805_s1 }
 0x1f9   : > { %p23162_p10 = scmp.ne.s32.totalorder %s1805_s1, %s23161_s3  ;;  %p23170_p0 = scmp.lt.s32.totalorder %s23161_s3, %s23161_s3 }
 0x1fb   : > { %p23164_p11 = pnand %p23162_p10, %p24011_p7  ;;  %p23171_p1 = por %p23170_p0, %p23169_p13 }
 0x1fd   : > { %p23165_p12 = pneg %p23164_p11 }
 0x1ff   : > { %p23172_p4 = pnand %p23171_p1, %p23165_p12 }
 0x201   : > { %23175 = shalt.err (!%p23172_p4)
}
 0x202   : > { %s26433_s23 = sld [smem:[#allocation91_spill]]  ;;  %s23607_s4 = smov [#allocation15]  }
 0x203   : > { %21506 = dma.hbm_to_vmem [thread:$0]  (!%p23999_p5), %s26432_s18, 1024, %s1805_s1, [#allocation11], %s26430_s16, %s26430_s16, %s26342_s28  }
 0x204   : > { %s1851_s26 = sshll.u32 %s23607_s4, 4  ;;  %s23608_s15 = smov [#allocation18]   ;;  %s1852_s26 = int_to_ptr.vmem [resolvable:$true] %s1851_s26 }
 0x205   : > { %s1877_s2 = sshll.u32 %s23608_s15, 4  ;;  %s1878_s2 = int_to_ptr.vmem [resolvable:$true] %s1877_s2 }
 0x208   : > { %s23176_s3 = scalar_lea.hbm %s26433_s23, 576 }
 0x209   : > { %p23177_p6 = scmp.ne.s32.totalorder %s26433_s23, %s23176_s3  ;;  %p23183_p3 = scmp.lt.u32.totalorder %s23176_s3, %s26433_s23 }
 0x20b   : > { %p23179_p8 = pnand %p23177_p6, %p24011_p7 }
 0x20d   : > { %p23180_p2 = pneg %p23179_p8 }
 0x20f   : > { %p23185_p9 = pnand %p23183_p3, %p23180_p2 }
 0x211   : > { %23188 = shalt.err (!%p23185_p9)
}
 0x212   : > { %s23189_s5 = scalar_lea.vmem %s1852_s26, 576  ;;  %p23197_p13 = scmp.lt.s32.totalorder %s1852_s26, %s1852_s26 }
 0x213   : > { %p23190_p10 = scmp.ne.s32.totalorder %s1852_s26, %s23189_s5  ;;  %p23198_p0 = scmp.lt.s32.totalorder %s23189_s5, %s23189_s5 }
 0x215   : > { %p23192_p11 = pnand %p23190_p10, %p24011_p7  ;;  %p23199_p1 = por %p23198_p0, %p23197_p13 }
 0x217   : > { %p23193_p12 = pneg %p23192_p11 }
 0x219   : > { %p23200_p4 = pnand %p23199_p1, %p23193_p12 }
 0x21b   : > { %23203 = shalt.err (!%p23200_p4)
}
 0x21c   : > { %s26434_s1 = sld [smem:[#allocation92_spill]] }
 0x21d   : > { %21512 = dma.hbm_to_vmem [thread:$0]  (!%p23999_p5), %s26433_s23, 576, %s1852_s26, [#allocation14], %s26430_s16, %s26430_s16, %s26342_s28  }
 0x222   : > { %s23204_s4 = scalar_lea.hbm %s26434_s1, 1024 }
 0x223   : > { %p23205_p6 = scmp.ne.s32.totalorder %s26434_s1, %s23204_s4  ;;  %p23211_p3 = scmp.lt.u32.totalorder %s23204_s4, %s26434_s1 }
 0x225   : > { %p23207_p8 = pnand %p23205_p6, %p24011_p7 }
 0x227   : > { %p23208_p2 = pneg %p23207_p8 }
 0x229   : > { %p23213_p9 = pnand %p23211_p3, %p23208_p2 }
 0x22b   : > { %23216 = shalt.err (!%p23213_p9)
}
 0x22c   : > { %s23217_s5 = scalar_lea.vmem %s1878_s2, 1024  ;;  %p23225_p13 = scmp.lt.s32.totalorder %s1878_s2, %s1878_s2 }
 0x22d   : > { %p23218_p10 = scmp.ne.s32.totalorder %s1878_s2, %s23217_s5  ;;  %p23226_p0 = scmp.lt.s32.totalorder %s23217_s5, %s23217_s5 }
 0x22f   : > { %p23220_p11 = pnand %p23218_p10, %p24011_p7  ;;  %p23227_p1 = por %p23226_p0, %p23225_p13 }
 0x231   : > { %p23221_p12 = pneg %p23220_p11 }
 0x233   : > { %p23228_p4 = pnand %p23227_p1, %p23221_p12 }
 0x235   : > { %23231 = shalt.err (!%p23228_p4)
}
 0x236   : > { %s26435_s26 = sld [smem:[#allocation99_spill]]  ;;  %s23609_s15 = smov [#allocation21]  }
 0x237   : > { %21518 = dma.hbm_to_vmem [thread:$0]  (!%p23999_p5), %s26434_s1, 1024, %s1878_s2, [#allocation17], %s26430_s16, %s26430_s16, %s26342_s28  }
 0x238   : > { %s1918_s3 = sshll.u32 %s23609_s15, 4  ;;  %s23610_s4 = smov [#allocation24]   ;;  %s1919_s3 = int_to_ptr.vmem [resolvable:$true] %s1918_s3 }
 0x239   : > { %s1946_s12 = sshll.u32 %s23610_s4, 4  ;;  %s1947_s12 = int_to_ptr.vmem [resolvable:$true] %s1946_s12 }
 0x23c   : > { %s23232_s5 = scalar_lea.hbm %s26435_s26, 1024 }
 0x23d   : > { %p23233_p6 = scmp.ne.s32.totalorder %s26435_s26, %s23232_s5  ;;  %p23239_p3 = scmp.lt.u32.totalorder %s23232_s5, %s26435_s26 }
 0x23f   : > { %p23235_p8 = pnand %p23233_p6, %p24011_p7 }
 0x241   : > { %p23236_p2 = pneg %p23235_p8 }
 0x243   : > { %p23241_p9 = pnand %p23239_p3, %p23236_p2 }
 0x245   : > { %23244 = shalt.err (!%p23241_p9)
}
 0x246   : > { %s23245_s13 = scalar_lea.vmem %s1919_s3, 1024  ;;  %p23253_p13 = scmp.lt.s32.totalorder %s1919_s3, %s1919_s3 }
 0x247   : > { %p23246_p10 = scmp.ne.s32.totalorder %s1919_s3, %s23245_s13  ;;  %p23254_p0 = scmp.lt.s32.totalorder %s23245_s13, %s23245_s13 }
 0x249   : > { %p23248_p11 = pnand %p23246_p10, %p24011_p7  ;;  %p23255_p1 = por %p23254_p0, %p23253_p13 }
 0x24b   : > { %p23249_p12 = pneg %p23248_p11 }
 0x24d   : > { %p23256_p4 = pnand %p23255_p1, %p23249_p12 }
 0x24f   : > { %23259 = shalt.err (!%p23256_p4)
}
 0x250   : > { %s26436_s2 = sld [smem:[#allocation102_spill]] }
 0x251   : > { %21524 = dma.hbm_to_vmem [thread:$0]  (!%p23999_p5), %s26435_s26, 1024, %s1919_s3, [#allocation20], %s26430_s16, %s26430_s16, %s26342_s28  }
 0x256   : > { %s23260_s15 = scalar_lea.hbm %s26436_s2, 16 }
 0x257   : > { %p23261_p6 = scmp.ne.s32.totalorder %s26436_s2, %s23260_s15  ;;  %p23267_p3 = scmp.lt.u32.totalorder %s23260_s15, %s26436_s2 }
 0x259   : > { %p23263_p8 = pnand %p23261_p6, %p24011_p7 }
 0x25b   : > { %p23264_p2 = pneg %p23263_p8 }
 0x25d   : > { %p23269_p9 = pnand %p23267_p3, %p23264_p2 }
 0x25f   : > { %23272 = shalt.err (!%p23269_p9)
}
 0x260   : > { %s23273_s13 = scalar_lea.vmem %s1947_s12, 16  ;;  %s23280_s4 = scalar_lea.vmem %s1947_s12, 32 }
 0x261   : > { %p23274_p10 = scmp.ne.s32.totalorder %s1947_s12, %s23273_s13  ;;  %p23281_p13 = scmp.lt.s32.totalorder %s1947_s12, %s1947_s12 }
 0x262   : > { %p23282_p0 = scmp.lt.s32.totalorder %s23280_s4, %s23273_s13 }
 0x263   : > { %p23276_p11 = pnand %p23274_p10, %p24011_p7 }
 0x264   : > { %p23283_p1 = por %p23282_p0, %p23281_p13 }
 0x265   : > { %p23277_p12 = pneg %p23276_p11 }
 0x267   : > { %p23284_p4 = pnand %p23283_p1, %p23277_p12 }
 0x269   : > { %23287 = shalt.err (!%p23284_p4)
}
 0x26a   : > { %s26437_s3 = sld [smem:[#allocation104_spill]]  ;;  %s23611_s5 = smov [#allocation27]  }
 0x26b   : > { %21530 = dma.hbm_to_vmem [thread:$0]  (!%p23999_p5), %s26436_s2, 16, %s1947_s12, [#allocation23]  }
 0x26c   : > { %s1970_s15 = sshll.u32 %s23611_s5, 4  ;;  %s23612_s28 = smov [#allocation30]   ;;  %s1971_s15 = int_to_ptr.vmem [resolvable:$true] %s1970_s15 }
 0x26d   : > { %s1997_s1 = sshll.u32 %s23612_s28, 4  ;;  %s1998_s1 = int_to_ptr.vmem [resolvable:$true] %s1997_s1 }
 0x270   : > { %s23288_s14 = scalar_lea.hbm %s26437_s3, 16 }
 0x271   : > { %p23289_p6 = scmp.ne.s32.totalorder %s26437_s3, %s23288_s14  ;;  %p23295_p3 = scmp.lt.u32.totalorder %s23288_s14, %s26437_s3 }
 0x273   : > { %p23291_p8 = pnand %p23289_p6, %p24011_p7 }
 0x275   : > { %p23292_p2 = pneg %p23291_p8 }
 0x277   : > { %p23297_p9 = pnand %p23295_p3, %p23292_p2 }
 0x279   : > { %23300 = shalt.err (!%p23297_p9)
}
 0x27a   : > { %s23301_s13 = scalar_lea.vmem %s1971_s15, 16  ;;  %s23308_s12 = scalar_lea.vmem %s1971_s15, 32 }
 0x27b   : > { %p23302_p10 = scmp.ne.s32.totalorder %s1971_s15, %s23301_s13  ;;  %p23309_p13 = scmp.lt.s32.totalorder %s1971_s15, %s1971_s15 }
 0x27c   : > { %p23310_p0 = scmp.lt.s32.totalorder %s23308_s12, %s23301_s13 }
 0x27d   : > { %p23304_p11 = pnand %p23302_p10, %p24011_p7 }
 0x27e   : > { %p23311_p1 = por %p23310_p0, %p23309_p13 }
 0x27f   : > { %p23305_p12 = pneg %p23304_p11 }
 0x281   : > { %p23312_p4 = pnand %p23311_p1, %p23305_p12 }
 0x283   : > { %23315 = shalt.err (!%p23312_p4)
}
 0x284   : > { %s26438_s28 = sld [smem:[#allocation106_spill]] }
 0x285   : > { %21536 = dma.hbm_to_vmem [thread:$0]  (!%p23999_p5), %s26437_s3, 16, %s1971_s15, [#allocation26]  }
 0x28a   : > { %s23316_s14 = scalar_lea.hbm %s26438_s28, 16 }
 0x28b   : > { %p23317_p6 = scmp.ne.s32.totalorder %s26438_s28, %s23316_s14  ;;  %p23323_p3 = scmp.lt.u32.totalorder %s23316_s14, %s26438_s28 }
 0x28d   : > { %p23319_p8 = pnand %p23317_p6, %p24011_p7 }
 0x28f   : > { %p23320_p2 = pneg %p23319_p8 }
 0x291   : > { %p23325_p9 = pnand %p23323_p3, %p23320_p2 }
 0x293   : > { %23328 = shalt.err (!%p23325_p9)
}
 0x294   : > { %s23329_s4 = scalar_lea.vmem %s1998_s1, 16  ;;  %s23336_s5 = scalar_lea.vmem %s1998_s1, 32 }
 0x295   : > { %p23330_p10 = scmp.ne.s32.totalorder %s1998_s1, %s23329_s4  ;;  %p23337_p13 = scmp.lt.s32.totalorder %s1998_s1, %s1998_s1 }
 0x296   : > { %p23338_p0 = scmp.lt.s32.totalorder %s23336_s5, %s23329_s4 }
 0x297   : > { %p23332_p11 = pnand %p23330_p10, %p24011_p7 }
 0x298   : > { %p23339_p1 = por %p23338_p0, %p23337_p13 }
 0x299   : > { %p23333_p12 = pneg %p23332_p11 }
 0x29b   : > { %p23340_p4 = pnand %p23339_p1, %p23333_p12 }
 0x29d   : > { %23343 = shalt.err (!%p23340_p4)
}
 0x29e   : > { %s26439_s15 = sld [smem:[#allocation108_spill]]  ;;  %s23613_s13 = smov [#allocation33]  }
 0x29f   : > { %21542 = dma.hbm_to_vmem [thread:$0]  (!%p23999_p5), %s26438_s28, 16, %s1998_s1, [#allocation29]  }
 0x2a0   : > { %s2021_s12 = sshll.u32 %s23613_s13, 4  ;;  %s23614_s14 = smov [#allocation36]   ;;  %s2022_s12 = int_to_ptr.vmem [resolvable:$true] %s2021_s12 }
 0x2a1   : > { %s2048_s2 = sshll.u32 %s23614_s14, 4  ;;  %s2049_s2 = int_to_ptr.vmem [resolvable:$true] %s2048_s2 }
 0x2a4   : > { %s23344_s3 = scalar_lea.hbm %s26439_s15, 1024 }
 0x2a5   : > { %p23345_p6 = scmp.ne.s32.totalorder %s26439_s15, %s23344_s3  ;;  %p23351_p3 = scmp.lt.u32.totalorder %s23344_s3, %s26439_s15 }
 0x2a7   : > { %p23347_p8 = pnand %p23345_p6, %p24011_p7 }
 0x2a9   : > { %p23348_p2 = pneg %p23347_p8 }
 0x2ab   : > { %p23353_p9 = pnand %p23351_p3, %p23348_p2 }
 0x2ad   : > { %23356 = shalt.err (!%p23353_p9)
}
 0x2ae   : > { %s23357_s4 = scalar_lea.vmem %s2022_s12, 1024  ;;  %p23365_p13 = scmp.lt.s32.totalorder %s2022_s12, %s2022_s12 }
 0x2af   : > { %p23358_p10 = scmp.ne.s32.totalorder %s2022_s12, %s23357_s4  ;;  %p23366_p0 = scmp.lt.s32.totalorder %s23357_s4, %s23357_s4 }
 0x2b1   : > { %p23360_p11 = pnand %p23358_p10, %p24011_p7  ;;  %p23367_p1 = por %p23366_p0, %p23365_p13 }
 0x2b3   : > { %p23361_p12 = pneg %p23360_p11 }
 0x2b5   : > { %p23368_p4 = pnand %p23367_p1, %p23361_p12 }
 0x2b7   : > { %23371 = shalt.err (!%p23368_p4)
}
 0x2b8   : > { %s26440_s1 = smov 4   ;;  %s26441_s3 = sld [smem:[#allocation111_spill]] }
 0x2b9   : > { %21548 = dma.hbm_to_vmem [thread:$0]  (!%p23999_p5), %s26439_s15, 1024, %s2022_s12, [#allocation32], %s26430_s16, %s26430_s16, %s26440_s1  }
 0x2be   : > { %s23372_s5 = scalar_lea.hbm %s26441_s3, 1024 }
 0x2bf   : > { %p23373_p6 = scmp.ne.s32.totalorder %s26441_s3, %s23372_s5  ;;  %p23379_p3 = scmp.lt.u32.totalorder %s23372_s5, %s26441_s3 }
 0x2c1   : > { %p23375_p8 = pnand %p23373_p6, %p24011_p7 }
 0x2c3   : > { %p23376_p2 = pneg %p23375_p8 }
 0x2c5   : > { %p23381_p9 = pnand %p23379_p3, %p23376_p2 }
 0x2c7   : > { %23384 = shalt.err (!%p23381_p9)
}
 0x2c8   : > { %s23385_s13 = scalar_lea.vmem %s2049_s2, 1024  ;;  %p23393_p13 = scmp.lt.s32.totalorder %s2049_s2, %s2049_s2 }
 0x2c9   : > { %p23386_p10 = scmp.ne.s32.totalorder %s2049_s2, %s23385_s13  ;;  %p23394_p0 = scmp.lt.s32.totalorder %s23385_s13, %s23385_s13 }
 0x2cb   : > { %p23388_p11 = pnand %p23386_p10, %p24011_p7  ;;  %p23395_p1 = por %p23394_p0, %p23393_p13 }
 0x2cd   : > { %p23389_p12 = pneg %p23388_p11 }
 0x2cf   : > { %p23396_p4 = pnand %p23395_p1, %p23389_p12 }
 0x2d1   : > { %23399 = shalt.err (!%p23396_p4)
}
 0x2d2   : > { %s26442_s12 = sld [smem:[#allocation113_spill]]  ;;  %s23615_s14 = smov [#allocation39]  }
 0x2d3   : > { %21554 = dma.hbm_to_vmem [thread:$0]  (!%p23999_p5), %s26441_s3, 1024, %s2049_s2, [#allocation35], %s26430_s16, %s26430_s16, %s26440_s1  }
 0x2d4   : > { %s2076_s4 = sshll.u32 %s23615_s14, 4  ;;  %s23616_s5 = smov [#allocation40]   ;;  %s2077_s4 = int_to_ptr.vmem [resolvable:$true] %s2076_s4 }
 0x2d5   : > { %s2092_s15 = sshll.u32 %s23616_s5, 4  ;;  %s2093_s15 = int_to_ptr.vmem [resolvable:$true] %s2092_s15 }
 0x2d8   : > { %s23400_s13 = scalar_lea.hbm %s26442_s12, 16 }
 0x2d9   : > { %p23401_p6 = scmp.ne.s32.totalorder %s26442_s12, %s23400_s13  ;;  %p23407_p3 = scmp.lt.u32.totalorder %s23400_s13, %s26442_s12 }
 0x2db   : > { %p23403_p8 = pnand %p23401_p6, %p24011_p7 }
 0x2dd   : > { %p23404_p2 = pneg %p23403_p8 }
 0x2df   : > { %p23409_p9 = pnand %p23407_p3, %p23404_p2 }
 0x2e1   : > { %23412 = shalt.err (!%p23409_p9)
}
 0x2e2   : > { %s23413_s17 = scalar_lea.vmem %s2077_s4, 16  ;;  %s23420_s2 = scalar_lea.vmem %s2077_s4, 32 }
 0x2e3   : > { %p23414_p10 = scmp.ne.s32.totalorder %s2077_s4, %s23413_s17  ;;  %p23421_p13 = scmp.lt.s32.totalorder %s2077_s4, %s2077_s4 }
 0x2e4   : > { %p23422_p0 = scmp.lt.s32.totalorder %s23420_s2, %s23413_s17 }
 0x2e5   : > { %p23416_p11 = pnand %p23414_p10, %p24011_p7 }
 0x2e6   : > { %p23423_p1 = por %p23422_p0, %p23421_p13 }
 0x2e7   : > { %p23417_p12 = pneg %p23416_p11 }
 0x2e9   : > { %p23424_p4 = pnand %p23423_p1, %p23417_p12 }
 0x2eb   : > { %23427 = shalt.err (!%p23424_p4)
}
 0x2ec   : > { %21560 = dma.hbm_to_vmem [thread:$0]  (!%p23999_p5), %s26442_s12, 16, %s2077_s4, [#allocation38]  }
 0x2ed   : > { %s23428_s14 = scalar_lea.hbm %s23964_s8, 576 }
 0x2ee   : > { %p23429_p6 = scmp.ne.s32.totalorder %s23964_s8, %s23428_s14  ;;  %p23435_p3 = scmp.lt.u32.totalorder %s23428_s14, %s23964_s8 }
 0x2f0   : > { %p23431_p8 = pnand %p23429_p6, %p24011_p7 }
 0x2f2   : > { %p23432_p2 = pneg %p23431_p8 }
 0x2f4   : > { %p23437_p9 = pnand %p23435_p3, %p23432_p2 }
 0x2f6   : > { %23440 = shalt.err (!%p23437_p9)
}
 0x2f7   : > { %s23441_s17 = scalar_lea.vmem %s2093_s15, 576  ;;  %p23449_p13 = scmp.lt.s32.totalorder %s2093_s15, %s2093_s15 }
 0x2f8   : > { %p23442_p10 = scmp.ne.s32.totalorder %s2093_s15, %s23441_s17  ;;  %p23450_p0 = scmp.lt.s32.totalorder %s23441_s17, %s23441_s17 }
 0x2fa   : > { %p23444_p11 = pnand %p23442_p10, %p24011_p7  ;;  %p23451_p1 = por %p23450_p0, %p23449_p13 }
 0x2fc   : > { %p23445_p12 = pneg %p23444_p11 }
 0x2fe   : > { %p23452_p4 = pnand %p23451_p1, %p23445_p12 }
 0x300   : > { %23455 = shalt.err (!%p23452_p4)
}
 0x301   : > { %21563 = dma.hbm_to_vmem [thread:$0]  (!%p23999_p5), %s23964_s8, 576, %s2093_s15, [#allocation41], %s26430_s16, %s26430_s16, %s26440_s1  }
 0x302   : > { %p26443_p6 = scmp.ne.s32.totalorder %s26427_s10, 0 }
 0x303   : > { %p26444_p8 = scmp.eq.s32.totalorder (!%p26443_p6), %s23982_s0, 0 }
 0x304   : > { %2119 = sbr.rel (%p26443_p6) target bundleno = 10028 (0x272c), region = 296 }
 0x30b   : > { %23461 = dma.done.wait (%p26444_p8), [#allocation3], 1024   ;;  %p26445_p7 = pmov %p26444_p8 }
 0x30d   : > { %23463 = vsyncadd (%p26445_p7), [#allocation3], 4294966272  ;;  %p26446_p2 = pmov %p26445_p7 }
 0x30f   : > { %23465 = dma.done.wait (%p26446_p2), [#allocation5], 2048   ;;  %p26447_p3 = pmov %p26446_p2 }
 0x310   : > { %p26448_p9 = pmov %p26446_p2 }
 0x311   : > { %23467 = vsyncadd (%p26447_p3), [#allocation5], 4294965248 }
 0x312   : > { %23469 = dma.done.wait (%p26448_p9), [#allocation8], 2048   ;;  %p26449_p5 = pmov %p26446_p2 }
 0x313   : > { %p26450_p10 = pmov %p26446_p2 }
 0x314   : > { %23471 = vsyncadd (%p26449_p5), [#allocation8], 4294965248 }
 0x315   : > { %23473 = dma.done.wait (%p26450_p10), [#allocation11], 2048   ;;  %p26451_p11 = pmov %p26446_p2 }
 0x316   : > { %p26452_p12 = pmov %p26446_p2 }
 0x317   : > { %23475 = vsyncadd (%p26451_p11), [#allocation11], 4294965248 }
 0x318   : > { %23477 = dma.done.wait (%p26452_p12), [#allocation14], 1600   ;;  %p26453_p13 = pmov %p26446_p2 }
 0x319   : > { %p26454_p0 = pmov %p26446_p2 }
 0x31a   : > { %23479 = vsyncadd (%p26453_p13), [#allocation14], 4294965696 }
 0x31b   : > { %23481 = dma.done.wait (%p26454_p0), [#allocation17], 2048   ;;  %p26455_p1 = pmov %p26454_p0 }
 0x31c   : > { %p26456_p4 = pmov %p26454_p0 }
 0x31d   : > { %23483 = vsyncadd (%p26455_p1), [#allocation17], 4294965248 }
 0x31e   : > { %23485 = dma.done.wait (%p26456_p4), [#allocation20], 2048   ;;  %p26457_p6 = pmov %p26454_p0 }
 0x31f   : > { %p26458_p8 = pmov %p26454_p0 }
 0x320   : > { %23487 = vsyncadd (%p26457_p6), [#allocation20], 4294965248 }
 0x321   : > { %23489 = dma.done.wait (%p26458_p8), [#allocation23], 32   ;;  %p26459_p7 = pmov %p26454_p0 }
 0x322   : > { %p26460_p2 = pmov %p26454_p0 }
 0x323   : > { %23491 = vsyncadd (%p26459_p7), [#allocation23], 4294967264 }
 0x324   : > { %23493 = dma.done.wait (%p26460_p2), [#allocation26], 1040   ;;  %p26461_p3 = pmov %p26454_p0 }
 0x325   : > { %p26462_p9 = pmov %p26454_p0 }
 0x326   : > { %23495 = vsyncadd (%p26461_p3), [#allocation26], 4294966256 }
 0x327   : > { %23497 = dma.done.wait (%p26462_p9), [#allocation29], 1040   ;;  %p26463_p5 = pmov %p26454_p0 }
 0x328   : > { %p26464_p10 = pmov %p26454_p0 }
 0x329   : > { %23499 = vsyncadd (%p26463_p5), [#allocation29], 4294966256 }
 0x32a   : > { %23501 = dma.done.wait (%p26464_p10), [#allocation32], 1040   ;;  %p26465_p11 = pmov %p26454_p0 }
 0x32b   : > { %p26466_p12 = pmov %p26454_p0 }
 0x32c   : > { %23503 = vsyncadd (%p26465_p11), [#allocation32], 4294966256 }
 0x32d   : > { %23505 = dma.done.wait (%p26466_p12), [#allocation35], 1040   ;;  %p26467_p13 = pmov %p26454_p0 }
 0x32f   : > { %23507 = vsyncadd (%p26467_p13), [#allocation35], 4294966256 }
 0x330   : > { %23509 = dma.done.wait (%p26454_p0), [#allocation38], 32   ;;  %p26468_p1 = pmov %p26454_p0 }
 0x331   : > { %p26469_p4 = pmov %p26454_p0 }
 0x332   : > { %23511 = vsyncadd (%p26468_p1), [#allocation38], 4294967264 }
 0x333   : > { %23513 = dma.done.wait (%p26469_p4), [#allocation41], 576   ;;  %p26470_p6 = pmov %p26454_p0 }
 0x334   : > { %s26471_s10 = sld [smem:[#allocation57_spill]]  ;;  %s26472_s22 = sld [smem:[#allocation56_spill]]  ;;  %vm2902_vm0 = vcmask 523264   ;;  %vm23618_vm1 = vmmov 0   ;;  %vm6799_vm2 = vcmask 130048   ;;  %vm11395_vm3 = vcmask 1043456  }
 0x335   : > { %23515 = vsyncadd (%p26470_p6), [#allocation41], 4294966720  ;;  %p2374_p8 = scmp.lt.s32.totalorder %s23982_s0, 1  ;;  %s26473_s11 = sld [smem:[#allocation59_spill]]  ;;  %vm11391_vm4 = vcmask 64512  }
 0x336   : > { %s26474_s1 = sld [smem:[#allocation58_spill]]  ;;  %s26475_s4 = sld [smem:[#allocation65_spill]] }
 0x337   : > { %s26513_s0 = smov (!%p2374_p8, %s23982_s0), 1  ;;  %s26476_s5 = sld [smem:[#allocation60_spill]] }
 0x338   : > { %s18717_s16 = sshll.u32 %s26513_s0, 5  ;;  %s26477_s13 = sld [smem:[#allocation61_spill]] }
 0x339   : > { %s26478_s2 = sld [smem:[#allocation62_spill]]  ;;  %s26479_s14 = sld [smem:[#allocation64_spill]] }
 0x33a   : > { %v21725_v0 = vld [vmem:[%s26471_s10] sm:$0xff]   ;;  %v21726_v1 = vld [vmem:[%s26471_s10 + $0x8] sm:$0xff]   ;;  %v21727_v2 = vld [vmem:[%s26471_s10 + $0x10] sm:$0xff]   ;;  %s24410_s15 = scalar_lea.vmem %s26472_s22, %s18717_s16  ;;  %s26480_s17 = sld [smem:[#allocation66_spill]] }
 0x33b   : > { %20110 = vmatprep.subr.bf16.mxu0 %v21725_v0  ;;  %v21728_v3 = vld [vmem:[%s26471_s10 + $0x18] sm:$0xff]   ;;  %v21733_v4 = vld [vmem:[%s24410_s15] sm:$0xff]   ;;  %v21738_v7 = vld [vmem:[%s26473_s11 + $0x8] sm:$0xff]   ;;  %s26481_s22 = sld [smem:[#allocation71_spill]]  ;;  %s26482_s16 = sld [smem:[#allocation67_spill]] }
 0x33c   : > { %20111 = vmatpush3.bf16.msra.mxu0 %v21725_v0  ;;  %20126 = vmatprep.mubr.bf16.mxu0 %v21733_v4  ;;  %v21729_v5 = vld [vmem:[%s26471_s10 + $0x20] sm:$0xff]   ;;  %v21730_v8 = vld [vmem:[%s26471_s10 + $0x28] sm:$0xff]   ;;  %v21739_v9 = vld [vmem:[%s26473_s11 + $0x10] sm:$0xff]   ;;  %s26502_s3 = sld [smem:[#allocation98_spill]] }
 0x33d   : > { %20112 = vmatprep.subr.bf16.mxu0 %v21726_v1  ;;  %v21737_v6 = vld [vmem:[%s26473_s11] sm:$0xff]   ;;  %v21731_v10 = vld [vmem:[%s26471_s10 + $0x30] sm:$0xff]   ;;  %v21740_v11 = vld [vmem:[%s26473_s11 + $0x18] sm:$0xff]  }
 0x33e   : > { %20134 = vmatprep.subr.bf16.mxu1 %v21737_v6  ;;  %v21732_v12 = vld [vmem:[%s26471_s10 + $0x38] sm:$0xff]   ;;  %v21741_v13 = vld [vmem:[%s26473_s11 + $0x20] sm:$0xff]   ;;  %v21742_v14 = vld [vmem:[%s26473_s11 + $0x28] sm:$0xff]  }
 0x33f   : > { %20135 = vmatpush3.bf16.msra.mxu1 %v21737_v6  ;;  %v21734_v15 = vld [vmem:[%s24410_s15 + $0x8] sm:$0xff]   ;;  %v21735_v16 = vld [vmem:[%s24410_s15 + $0x10] sm:$0xff]   ;;  %v21736_v17 = vld [vmem:[%s24410_s15 + $0x18] sm:$0xff]   ;;  %s26483_s15 = sld [smem:[#allocation68_spill]] }
 0x340   : > { %20113 = vmatpush3.bf16.msra.mxu0 %v21726_v1  ;;  %20136 = vmatprep.subr.bf16.mxu1 %v21738_v7  ;;  %v21743_v18 = vld [vmem:[%s26473_s11 + $0x30] sm:$0xff]   ;;  %v21744_v19 = vld [vmem:[%s26473_s11 + $0x38] sm:$0xff]   ;;  %v17534_v20 = vld [vmem:[%s26474_s1] ss:$0 sm:$0xff]  ;;  %s26484_s1 = sld [smem:[#allocation73_spill]] }
 0x341   : > { %20114 = vmatprep.subr.bf16.mxu0 %v21727_v2  ;;  %v21745_v49 = vld [vmem:[%s26475_s4] sm:$0xff]  }
 0x342   : > { %v21747_v50 = vld [vmem:[%s26475_s4 + $0x60] sm:$0xff]  }
 0x343   : > { %20137 = vmatpush3.bf16.msra.mxu1 %v21738_v7  ;;  %v17547_v51 = vld [vmem:[%s26476_s5] ss:$0 sm:$0xff]  ;;  %s26485_s5 = sld [smem:[#allocation70_spill]] }
 0x344   : > { %20115 = vmatpush3.bf16.msra.mxu0 %v21727_v2  ;;  %20138 = vmatprep.subr.bf16.mxu1 %v21739_v9 }
 0x345   : > { %20116 = vmatprep.subr.bf16.mxu0 %v21728_v3 }
 0x347   : > { %20139 = vmatpush3.bf16.msra.mxu1 %v21739_v9 }
 0x348   : > { %20117 = vmatpush3.bf16.msra.mxu0 %v21728_v3  ;;  %20140 = vmatprep.subr.bf16.mxu1 %v21740_v11 }
 0x349   : > { %20118 = vmatprep.subr.bf16.mxu0 %v21729_v5 }
 0x34b   : > { %20141 = vmatpush3.bf16.msra.mxu1 %v21740_v11 }
 0x34c   : > { %20119 = vmatpush3.bf16.msra.mxu0 %v21729_v5  ;;  %20142 = vmatprep.subr.bf16.mxu1 %v21741_v13 }
 0x34d   : > { %20120 = vmatprep.subr.bf16.mxu0 %v21730_v8 }
 0x34f   : > { %20143 = vmatpush3.bf16.msra.mxu1 %v21741_v13 }
 0x350   : > { %20121 = vmatpush3.bf16.msra.mxu0 %v21730_v8  ;;  %20144 = vmatprep.subr.bf16.mxu1 %v21742_v14 }
 0x351   : > { %20122 = vmatprep.subr.bf16.mxu0 %v21731_v10 }
 0x353   : > { %20145 = vmatpush3.bf16.msra.mxu1 %v21742_v14 }
 0x354   : > { %20123 = vmatpush3.bf16.msra.mxu0 %v21731_v10  ;;  %20146 = vmatprep.subr.bf16.mxu1 %v21743_v18 }
 0x355   : > { %20124 = vmatprep.subr.bf16.mxu0 %v21732_v12 }
 0x357   : > { %20147 = vmatpush3.bf16.msra.mxu1 %v21743_v18  ;;  %v21749_v18 = vld [vmem:[%s26475_s4 + $0x10] sm:$0xff]  }
 0x358   : > { %20125 = vmatpush3.bf16.msra.mxu0 %v21732_v12  ;;  %20148 = vmatprep.subr.bf16.mxu1 %v21744_v19 }
 0x35b   : > { %20127 = vmatmul.mubr.bf16.vlgmr.msra.gmra.mrb[0].mxu0 %v21734_v15  ;;  %20149 = vmatpush3.bf16.msra.mxu1 %v21744_v19  ;;  %v21751_v19 = vld [vmem:[%s26475_s4 + $0x70] sm:$0xff]  }
 0x35c   : > { %20130 = vmatprep.mubr.bf16.mxu0 %v21735_v16  ;;  %v21746_v16 = vld [vmem:[%s26475_s4 + $0x8] sm:$0xff]  }
 0x363   : > { %20131 = vmatmul.mubr.bf16.gmra.mrb[4].mxu0 %v21736_v17  ;;  %v21748_v17 = vld [vmem:[%s26475_s4 + $0x68] sm:$0xff]  }
 0x364   : > { %20166 = vmatprep.mubr.msk.bf16.mxu0 %vm2902_vm0, %v21745_v49  ;;  %v21767_v49 = vld [vmem:[%s26475_s4 + $0x90] sm:$0xff]  }
 0x42e   : > { %v20128_v21 = vpop.f32.mrb[0].mxu0 }
 0x42f   : > { %v2530_v22 = vadd.f32 %v20128_v21, %v17534_v20  ;;  %v2521_v23 = vpop.f32.mrb[1].mxu0  ;;  %v21752_v21 = vld [vmem:[%s26475_s4 + $0x78] sm:$0xff]  }
 0x430   : > { %v2522_v24 = vadd.f32 %v17534_v20, %v2521_v23  ;;  %v20129_v25 = vpop.f32.mrb[2].mxu0  ;;  %v21755_v23 = vld [vmem:[%s26475_s4 + $0xa0] sm:$0xff]  }
 0x431   : > { %v2554_v26 = vmax.f32 %v2530_v22, 0.0  ;;  %v2533_v27 = vadd.f32 %v20129_v25, %v17534_v20  ;;  %v2524_v28 = vpop.f32.mrb[3].mxu0  ;;  %v21753_v22 = vld [vmem:[%s26475_s4 + $0x20] sm:$0xff]   ;;  %v21756_v25 = vld [vmem:[%s26475_s4 + $0xa8] sm:$0xff]  }
 0x432   : > { %v2552_v29 = vmax.f32 %v2522_v24, 0.0  ;;  %v2525_v30 = vadd.f32 %v17534_v20, %v2524_v28  ;;  %v21754_v24 = vld [vmem:[%s26475_s4 + $0x28] sm:$0xff]   ;;  %v21758_v28 = vld [vmem:[%s26475_s4 + $0x38] sm:$0xff]  }
 0x433   : > { %v2555_v31 = vmax.f32 %v2533_v27, 0.0  ;;  %v21765_v27 = vld [vmem:[%s26475_s4 + $0xb0] sm:$0xff]  }
 0x434   : > { %v2553_v32 = vmax.f32 %v2525_v30, 0.0  ;;  %v21759_v30 = vld [vmem:[%s26475_s4 + $0x40] sm:$0xff]  }
 0x435   : > { %v24430_v33 = vpack.c.bf16 %v2555_v31, %v2554_v26  ;;  %v21757_v26 = vld [vmem:[%s26475_s4 + $0x30] sm:$0xff]   ;;  %v21769_v31 = vld [vmem:[%s26475_s4 + $0xe0] sm:$0xff]  }
 0x436   : > { %v20132_v34 = vpop.f32.mrb[4].mxu0  ;;  %v24432_v35 = vpack.c.bf16 %v2553_v32, %v2552_v29  ;;  %v21766_v29 = vld [vmem:[%s26475_s4 + $0xb8] sm:$0xff]   ;;  %v21781_v32 = vld [vmem:[%s26477_s13 + $0x40] sm:$0xff]  }
 0x437   : > { %v2546_v36 = vadd.f32 %v20132_v34, %v17534_v20  ;;  %v2537_v37 = vpop.f32.mrb[5].mxu0  ;;  %v21760_v34 = vld [vmem:[%s26475_s4 + $0x48] sm:$0xff]  }
 0x438   : > { %v2538_v38 = vadd.f32 %v17534_v20, %v2537_v37  ;;  %v20133_v39 = vpop.f32.mrb[6].mxu0  ;;  %20150 = vmatprep.mubr.bf16.mxu1 %v24432_v35  ;;  %v21761_v37 = vld [vmem:[%s26475_s4 + $0x50] sm:$0xff]  }
 0x439   : > { %v2558_v40 = vmax.f32 %v2546_v36, 0.0  ;;  %v2549_v41 = vadd.f32 %v20133_v39, %v17534_v20  ;;  %v2540_v42 = vpop.f32.mrb[7].mxu0  ;;  %20151 = vmatmul.mubr.bf16.vlgmr.msra.gmra.mrb[0].mxu1 %v24430_v33  ;;  %v21770_v36 = vld [vmem:[%s26475_s4 + $0xe8] sm:$0xff]   ;;  %v21782_v39 = vld [vmem:[%s26477_s13] sm:$0xff]  }
 0x43a   : > { %v2556_v43 = vmax.f32 %v2538_v38, 0.0  ;;  %v2541_v44 = vadd.f32 %v17534_v20, %v2540_v42  ;;  %v21750_v20 = vld [vmem:[%s26475_s4 + $0x18] sm:$0xff]   ;;  %v21775_v38 = vld [vmem:[%s26475_s4 + $0xf0] sm:$0xff]  }
 0x43b   : > { %v2559_v45 = vmax.f32 %v2549_v41, 0.0  ;;  %v21784_v41 = vld [vmem:[%s26477_s13 + $0x8] sm:$0xff]   ;;  %v21762_v42 = vld [vmem:[%s26475_s4 + $0x58] sm:$0xff]  }
 0x43c   : > { %v2557_v46 = vmax.f32 %v2541_v44, 0.0  ;;  %v21763_v44 = vld [vmem:[%s26475_s4 + $0x80] sm:$0xff]  }
 0x43d   : > { %v24436_v47 = vpack.c.bf16 %v2559_v45, %v2558_v40  ;;  %v21783_v40 = vld [vmem:[%s26477_s13 + $0x48] sm:$0xff]   ;;  %v21785_v45 = vld [vmem:[%s26477_s13 + $0x50] sm:$0xff]  }
 0x43e   : > { %v24438_v48 = vpack.c.bf16 %v2557_v46, %v2556_v43  ;;  %v21776_v43 = vld [vmem:[%s26475_s4 + $0xf8] sm:$0xff]   ;;  %v21764_v46 = vld [vmem:[%s26475_s4 + $0x88] sm:$0xff]  }
 0x440   : > { %20154 = vmatprep.mubr.bf16.mxu1 %v24438_v48 }
 0x441   : > { %20155 = vmatmul.mubr.bf16.gmra.mrb[4].mxu1 %v24436_v47 }
 0x442   : > { %20214 = vmatprep.mubr.msk.bf16.mxu1 %vm2902_vm0, %v21747_v50  ;;  %v21768_v50 = vld [vmem:[%s26475_s4 + $0x98] sm:$0xff]  }
 0x50c   : > { %v20152_v52 = vpop.f32.mrb[0].mxu1 }
 0x50d   : > { %v2840_v53 = vadd.f32 %v20152_v52, %v17547_v51  ;;  %v2831_v54 = vpop.f32.mrb[1].mxu1  ;;  %v21772_v52 = vld [vmem:[%s26475_s4 + $0xc8] sm:$0xff]  }
 0x50e   : > { %v2832_v55 = vadd.f32 %v17547_v51, %v2831_v54  ;;  %v20153_v56 = vpop.f32.mrb[2].mxu1  ;;  %v21774_v54 = vld [vmem:[%s26475_s4 + $0xd8] sm:$0xff]  }
 0x50f   : > { %v2864_v57 = vmax.f32 %v2840_v53, 0.0  ;;  %v2843_v58 = vadd.f32 %v20153_v56, %v17547_v51  ;;  %v2834_v59 = vpop.f32.mrb[3].mxu1  ;;  %v21773_v53 = vld [vmem:[%s26475_s4 + $0xd0] sm:$0xff]   ;;  %v21778_v56 = vld [vmem:[%s26475_s4 + $0x108] sm:$0xff]  }
 0x510   : > { %v2862_v60 = vmax.f32 %v2832_v55, 0.0  ;;  %v2835_v61 = vadd.f32 %v17547_v51, %v2834_v59  ;;  %v21777_v55 = vld [vmem:[%s26475_s4 + $0x100] sm:$0xff]   ;;  %v21780_v59 = vld [vmem:[%s26475_s4 + $0x118] sm:$0xff]  }
 0x511   : > { %v2865_v62 = vmax.f32 %v2843_v58, 0.0  ;;  %v21786_v58 = vld [vmem:[%s26477_s13 + $0x10] sm:$0xff]  }
 0x512   : > { %v2863_v63 = vmax.f32 %v2835_v61, 0.0  ;;  %v21788_v61 = vld [vmem:[%s26477_s13 + $0x18] sm:$0xff]  }
 0x513   : > { %v24447_v0 = vpack.c.bf16 %v2865_v62, %v2864_v57  ;;  %v21779_v57 = vld [vmem:[%s26475_s4 + $0x110] sm:$0xff]   ;;  %v21789_v62 = vld [vmem:[%s26477_s13 + $0xc0] sm:$0xff]  }
 0x514   : > { %v24449_v1 = vpack.c.bf16 %v2863_v63, %v2862_v60  ;;  %v20156_v2 = vpop.f32.mrb[4].mxu1  ;;  %v21787_v60 = vld [vmem:[%s26477_s13 + $0x58] sm:$0xff]   ;;  %v21790_v63 = vld [vmem:[%s26477_s13 + $0x60] sm:$0xff]  }
 0x515   : > { %v2856_v3 = vadd.f32 %v20156_v2, %v17547_v51  ;;  %v2847_v4 = vpop.f32.mrb[5].mxu1  ;;  %v21793_v2 = vld [vmem:[%s26477_s13 + $0xc8] sm:$0xff]  }
 0x516   : > { %v2848_v5 = vadd.f32 %v17547_v51, %v2847_v4  ;;  %v20157_v6 = vpop.f32.mrb[6].mxu1  ;;  %20158 = vmatprep.subr.bf16.mxu0 %v24449_v1  ;;  %20206 = vmatprep.subr.bf16.mxu1 %v24449_v1  ;;  %v21795_v4 = vld [vmem:[%s26477_s13 + $0x88] sm:$0xff]  }
 0x517   : > { %v2868_v7 = vmax.f32 %v2856_v3, 0.0  ;;  %v2859_v8 = vadd.f32 %v20157_v6, %v17547_v51  ;;  %v2850_v9 = vpop.f32.mrb[7].mxu1  ;;  %20159 = vmatpush3.bf16.msra.mxu0 %v24449_v1  ;;  %20207 = vmatpush3.bf16.msra.mxu1 %v24449_v1  ;;  %v21794_v3 = vld [vmem:[%s26477_s13 + $0x68] sm:$0xff]   ;;  %v21797_v6 = vld [vmem:[%s26477_s13 + $0xd0] sm:$0xff]  }
 0x518   : > { %v2866_v10 = vmax.f32 %v2848_v5, 0.0  ;;  %v2851_v11 = vadd.f32 %v17547_v51, %v2850_v9  ;;  %20160 = vmatprep.subr.bf16.mxu0 %v24447_v0  ;;  %20208 = vmatprep.subr.bf16.mxu1 %v24447_v0  ;;  %v21771_v51 = vld [vmem:[%s26475_s4 + $0xc0] sm:$0xff]   ;;  %v21796_v5 = vld [vmem:[%s26477_s13 + $0x28] sm:$0xff]   ;;  %v21800_v9 = vld [vmem:[%s26477_s13 + $0x30] sm:$0xff]  }
 0x519   : > { %v2869_v12 = vmax.f32 %v2859_v8, 0.0  ;;  %v21799_v8 = vld [vmem:[%s26477_s13 + $0x90] sm:$0xff]  }
 0x51a   : > { %v2867_v13 = vmax.f32 %v2851_v11, 0.0  ;;  %v21802_v11 = vld [vmem:[%s26477_s13 + $0x78] sm:$0xff]  }
 0x51b   : > { %v24457_v14 = vpack.c.bf16 %v2869_v12, %v2868_v7  ;;  %20161 = vmatpush3.bf16.msra.mxu0 %v24447_v0  ;;  %20209 = vmatpush3.bf16.msra.mxu1 %v24447_v0  ;;  %v21798_v7 = vld [vmem:[%s26477_s13 + $0x70] sm:$0xff]   ;;  %v21803_v12 = vld [vmem:[%s26477_s13 + $0x98] sm:$0xff]  }
 0x51c   : > { %v24461_v15 = vpack.c.bf16 %v2867_v13, %v2866_v10  ;;  %v21801_v10 = vld [vmem:[%s26477_s13 + $0xd8] sm:$0xff]  }
 0x51d   : > { %v21804_v13 = vld [vmem:[%s26477_s13 + $0x38] sm:$0xff]  }
 0x51e   : > { %20162 = vmatprep.subr.bf16.mxu0 %v24461_v15  ;;  %20210 = vmatprep.subr.bf16.mxu1 %v24461_v15 }
 0x51f   : > { %20163 = vmatpush3.bf16.msra.mxu0 %v24461_v15  ;;  %20211 = vmatpush3.bf16.msra.mxu1 %v24461_v15 }
 0x520   : > { %20164 = vmatprep.subr.bf16.mxu0 %v24457_v14  ;;  %20212 = vmatprep.subr.bf16.mxu1 %v24457_v14 }
 0x523   : > { %20165 = vmatpush3.bf16.msra.mxu0 %v24457_v14  ;;  %20213 = vmatpush3.bf16.msra.mxu1 %v24457_v14 }
 0x524   : > { %20174 = vmatprep.subr.bf16.mxu0 %v24449_v1  ;;  %20238 = vmatprep.subr.bf16.mxu1 %v24449_v1 }
 0x526   : > { %20167 = vmatmul.mubr.msk.bf16.vlgmr.msra.gmra.mrb[8].mxu0 %vm2902_vm0, %v21746_v16  ;;  %20215 = vmatmul.mubr.msk.bf16.vlgmr.msra.gmra.mrb[8].mxu1 %vm2902_vm0, %v21748_v17  ;;  %v21807_v16 = vld [vmem:[%s26477_s13 + $0x140] sm:$0xff]   ;;  %v21809_v17 = vld [vmem:[%s26477_s13 + $0xe8] sm:$0xff]  }
 0x527   : > { %20175 = vmatpush3.bf16.msra.mxu0 %v24449_v1  ;;  %20239 = vmatpush3.bf16.msra.mxu1 %v24449_v1 }
 0x528   : > { %20176 = vmatprep.subr.bf16.mxu0 %v24447_v0  ;;  %20240 = vmatprep.subr.bf16.mxu1 %v24447_v0 }
 0x529   : > { %20170 = vmatprep.mubr.msk.bf16.mxu0 %vm2902_vm0, %v21749_v18  ;;  %20218 = vmatprep.mubr.msk.bf16.mxu1 %vm2902_vm0, %v21751_v19  ;;  %v21810_v18 = vld [vmem:[%s26477_s13 + $0xa8] sm:$0xff]   ;;  %v21813_v19 = vld [vmem:[%s26477_s13 + $0xf0] sm:$0xff]  }
 0x52b   : > { %20177 = vmatpush3.bf16.msra.mxu0 %v24447_v0  ;;  %20241 = vmatpush3.bf16.msra.mxu1 %v24447_v0 }
 0x52c   : > { %20178 = vmatprep.subr.bf16.mxu0 %v24461_v15  ;;  %20242 = vmatprep.subr.bf16.mxu1 %v24461_v15 }
 0x52e   : > { %20171 = vmatmul.mubr.msk.bf16.gmra.mrb[12].mxu0 %vm2902_vm0, %v21750_v20  ;;  %20219 = vmatmul.mubr.msk.bf16.gmra.mrb[12].mxu1 %vm2902_vm0, %v21752_v21  ;;  %v21814_v20 = vld [vmem:[%s26477_s13 + $0xb0] sm:$0xff]   ;;  %v21817_v21 = vld [vmem:[%s26477_s13 + $0xf8] sm:$0xff]  }
 0x52f   : > { %20179 = vmatpush3.bf16.msra.mxu0 %v24461_v15  ;;  %20243 = vmatpush3.bf16.msra.mxu1 %v24461_v15 }
 0x530   : > { %20180 = vmatprep.subr.bf16.mxu0 %v24457_v14  ;;  %20244 = vmatprep.subr.bf16.mxu1 %v24457_v14 }
 0x531   : > { %20182 = vmatprep.mubr.msk.bf16.mxu0 %vm2902_vm0, %v21753_v22  ;;  %20246 = vmatprep.mubr.msk.bf16.mxu1 %vm2902_vm0, %v21755_v23  ;;  %v21818_v22 = vld [vmem:[%s26477_s13 + $0xb8] sm:$0xff]   ;;  %v21821_v23 = vld [vmem:[%s26477_s13 + $0x1c0] sm:$0xff]  }
 0x533   : > { %20181 = vmatpush3.bf16.msra.mxu0 %v24457_v14  ;;  %20245 = vmatpush3.bf16.msra.mxu1 %v24457_v14 }
 0x534   : > { %20190 = vmatprep.subr.bf16.mxu0 %v24449_v1  ;;  %20270 = vmatprep.subr.bf16.mxu1 %v24449_v1 }
 0x536   : > { %20183 = vmatmul.mubr.msk.bf16.vlgmr.msra.gmra.mrb[16].mxu0 %vm2902_vm0, %v21754_v24  ;;  %20247 = vmatmul.mubr.msk.bf16.vlgmr.msra.gmra.mrb[16].mxu1 %vm2902_vm0, %v21756_v25 }
 0x537   : > { %20191 = vmatpush3.bf16.msra.mxu0 %v24449_v1  ;;  %20271 = vmatpush3.bf16.msra.mxu1 %v24449_v1 }
 0x538   : > { %20192 = vmatprep.subr.bf16.mxu0 %v24447_v0  ;;  %20272 = vmatprep.subr.bf16.mxu1 %v24447_v0 }
 0x539   : > { %20186 = vmatprep.mubr.msk.bf16.mxu0 %vm2902_vm0, %v21757_v26  ;;  %20250 = vmatprep.mubr.msk.bf16.mxu1 %vm2902_vm0, %v21765_v27 }
 0x53b   : > { %20193 = vmatpush3.bf16.msra.mxu0 %v24447_v0  ;;  %20273 = vmatpush3.bf16.msra.mxu1 %v24447_v0 }
 0x53c   : > { %20194 = vmatprep.subr.bf16.mxu0 %v24461_v15  ;;  %20274 = vmatprep.subr.bf16.mxu1 %v24461_v15 }
 0x53e   : > { %20187 = vmatmul.mubr.msk.bf16.gmra.mrb[20].mxu0 %vm2902_vm0, %v21758_v28  ;;  %20251 = vmatmul.mubr.msk.bf16.gmra.mrb[20].mxu1 %vm2902_vm0, %v21766_v29 }
 0x53f   : > { %20195 = vmatpush3.bf16.msra.mxu0 %v24461_v15  ;;  %20275 = vmatpush3.bf16.msra.mxu1 %v24461_v15 }
 0x540   : > { %20196 = vmatprep.subr.bf16.mxu0 %v24457_v14  ;;  %20276 = vmatprep.subr.bf16.mxu1 %v24457_v14 }
 0x541   : > { %20198 = vmatprep.mubr.msk.bf16.mxu0 %vm2902_vm0, %v21759_v30  ;;  %20278 = vmatprep.mubr.msk.bf16.mxu1 %vm2902_vm0, %v21769_v31 }
 0x543   : > { %20197 = vmatpush3.bf16.msra.mxu0 %v24457_v14  ;;  %20277 = vmatpush3.bf16.msra.mxu1 %v24457_v14 }
 0x544   : > { %20222 = vmatprep.subr.bf16.mxu0 %v24449_v1  ;;  %18814 = vmatprep.subr.bf16.mxu1 %v21781_v32 }
 0x546   : > { %20199 = vmatmul.mubr.msk.bf16.vlgmr.msra.gmra.mrb[24].mxu0 %vm2902_vm0, %v21760_v34  ;;  %20279 = vmatmul.mubr.msk.bf16.vlgmr.msra.gmra.mrb[24].mxu1 %vm2902_vm0, %v21770_v36 }
 0x547   : > { %20223 = vmatpush3.bf16.msra.mxu0 %v24449_v1  ;;  %20202 = vmatprep.mubr.msk.bf16.mxu0 %vm2902_vm0, %v21761_v37 }
 0x548   : > { %20224 = vmatprep.subr.bf16.mxu0 %v24447_v0  ;;  %20282 = vmatprep.mubr.msk.bf16.mxu1 %vm2902_vm0, %v21775_v38 }
 0x549   : > { %18815 = vmatpush3.bf16.msra.mxu1 %v21782_v39 }
 0x54a   : > { %18816 = vmatprep.subr.bf16.mxu1 %v21783_v40 }
 0x54b   : > { %20225 = vmatpush3.bf16.msra.mxu0 %v24447_v0 }
 0x54c   : > { %20226 = vmatprep.subr.bf16.mxu0 %v24461_v15 }
 0x54d   : > { %18817 = vmatpush3.bf16.msra.mxu1 %v21784_v41 }
 0x54e   : > { %20203 = vmatmul.mubr.msk.bf16.gmra.mrb[28].mxu0 %vm2902_vm0, %v21762_v42  ;;  %20283 = vmatmul.mubr.msk.bf16.gmra.mrb[28].mxu1 %vm2902_vm0, %v21776_v43 }
 0x54f   : > { %20227 = vmatpush3.bf16.msra.mxu0 %v24461_v15  ;;  %20230 = vmatprep.mubr.msk.bf16.mxu0 %vm2902_vm0, %v21763_v44 }
 0x550   : > { %20228 = vmatprep.subr.bf16.mxu0 %v24457_v14  ;;  %18818 = vmatprep.subr.bf16.mxu1 %v21785_v45 }
 0x551   : > { %18819 = vmatpush3.bf16.msra.mxu1 %v21786_v58 }
 0x552   : > { %18820 = vmatprep.subr.bf16.mxu1 %v21787_v60 }
 0x553   : > { %20229 = vmatpush3.bf16.msra.mxu0 %v24457_v14 }
 0x554   : > { %20254 = vmatprep.subr.bf16.mxu0 %v24449_v1 }
 0x555   : > { %18821 = vmatpush3.bf16.msra.mxu1 %v21788_v61 }
 0x556   : > { %20231 = vmatmul.mubr.msk.bf16.vlgmr.msra.gmra.mrb[32].mxu0 %vm2902_vm0, %v21764_v46  ;;  %18822 = vmatprep.subr.bf16.mxu1 %v21790_v63  ;;  %v21808_v63 = vld [vmem:[%s26477_s13 + $0x100] sm:$0xff]  }
 0x557   : > { %20255 = vmatpush3.bf16.msra.mxu0 %v24449_v1  ;;  %20234 = vmatprep.mubr.msk.bf16.mxu0 %vm2902_vm0, %v21767_v49 }
 0x558   : > { %20256 = vmatprep.subr.bf16.mxu0 %v24447_v0 }
 0x55b   : > { %20257 = vmatpush3.bf16.msra.mxu0 %v24447_v0 }
 0x55c   : > { %20258 = vmatprep.subr.bf16.mxu0 %v24461_v15 }
 0x55e   : > { %20235 = vmatmul.mubr.msk.bf16.gmra.mrb[36].mxu0 %vm2902_vm0, %v21768_v50 }
 0x55f   : > { %20259 = vmatpush3.bf16.msra.mxu0 %v24461_v15  ;;  %20262 = vmatprep.mubr.msk.bf16.mxu0 %vm2902_vm0, %v21771_v51 }
 0x560   : > { %20260 = vmatprep.subr.bf16.mxu0 %v24457_v14 }
 0x563   : > { %20261 = vmatpush3.bf16.msra.mxu0 %v24457_v14 }
 0x564   : > { %20286 = vmatprep.subr.bf16.mxu0 %v24449_v1 }
 0x566   : > { %20263 = vmatmul.mubr.msk.bf16.vlgmr.msra.gmra.mrb[40].mxu0 %vm2902_vm0, %v21772_v52 }
 0x567   : > { %20287 = vmatpush3.bf16.msra.mxu0 %v24449_v1  ;;  %20266 = vmatprep.mubr.msk.bf16.mxu0 %vm2902_vm0, %v21773_v53  ;;  %v21792_v1 = vld [vmem:[%s26477_s13 + $0x20] sm:$0xff]  }
 0x568   : > { %20288 = vmatprep.subr.bf16.mxu0 %v24447_v0  ;;  %18823 = vmatpush3.bf16.msra.mxu1 %v21792_v1  ;;  %v21811_v1 = vld [vmem:[%s26477_s13 + $0x148] sm:$0xff]  }
 0x569   : > { %18824 = vmatprep.subr.bf16.mxu1 %v21794_v3  ;;  %v21812_v3 = vld [vmem:[%s26477_s13 + $0x108] sm:$0xff]  }
 0x56b   : > { %20289 = vmatpush3.bf16.msra.mxu0 %v24447_v0  ;;  %v21791_v0 = vld [vmem:[%s26477_s13 + $0x80] sm:$0xff]  }
 0x56c   : > { %20290 = vmatprep.subr.bf16.mxu0 %v24461_v15  ;;  %18825 = vmatpush3.bf16.msra.mxu1 %v21796_v5 }
 0x56d   : > { %18826 = vmatprep.subr.bf16.mxu1 %v21798_v7 }
 0x56e   : > { %20267 = vmatmul.mubr.msk.bf16.gmra.mrb[44].mxu0 %vm2902_vm0, %v21774_v54 }
 0x56f   : > { %20291 = vmatpush3.bf16.msra.mxu0 %v24461_v15  ;;  %20294 = vmatprep.mubr.msk.bf16.mxu0 %vm2902_vm0, %v21777_v55  ;;  %v21806_v15 = vld [vmem:[%s26477_s13 + $0xa0] sm:$0xff]  }
 0x570   : > { %20292 = vmatprep.subr.bf16.mxu0 %v24457_v14  ;;  %18827 = vmatpush3.bf16.msra.mxu1 %v21800_v9 }
 0x571   : > { %18828 = vmatprep.subr.bf16.mxu1 %v21802_v11 }
 0x573   : > { %20293 = vmatpush3.bf16.msra.mxu0 %v24457_v14  ;;  %v21805_v14 = vld [vmem:[%s26477_s13 + $0xe0] sm:$0xff]  }
 0x574   : > { %18854 = vmatprep.subr.bf16.mxu0 %v21789_v62  ;;  %18829 = vmatpush3.bf16.msra.mxu1 %v21804_v13 }
 0x575   : > { %18894 = vmatprep.subr.bf16.mxu1 %v21807_v16 }
 0x576   : > { %20295 = vmatmul.mubr.msk.bf16.vlgmr.msra.gmra.mrb[48].mxu0 %vm2902_vm0, %v21778_v56 }
 0x577   : > { %20298 = vmatprep.mubr.msk.bf16.mxu0 %vm2902_vm0, %v21779_v57  ;;  %18855 = vmatpush3.bf16.msra.mxu0 %v21791_v0 }
 0x578   : > { %18856 = vmatprep.subr.bf16.mxu0 %v21793_v2 }
 0x57b   : > { %18857 = vmatpush3.bf16.msra.mxu0 %v21795_v4 }
 0x57c   : > { %18858 = vmatprep.subr.bf16.mxu0 %v21797_v6  ;;  %v21815_v6 = vld [vmem:[%s26477_s13 + $0x150] sm:$0xff]  }
 0x57e   : > { %20299 = vmatmul.mubr.msk.bf16.gmra.mrb[52].mxu0 %vm2902_vm0, %v21780_v59 }
 0x57f   : > { %18859 = vmatpush3.bf16.msra.mxu0 %v21799_v8 }
 0x580   : > { %18860 = vmatprep.subr.bf16.mxu0 %v21801_v10 }
 0x583   : > { %18861 = vmatpush3.bf16.msra.mxu0 %v21803_v12 }
 0x584   : > { %18862 = vmatprep.subr.bf16.mxu0 %v21805_v14 }
 0x587   : > { %18863 = vmatpush3.bf16.msra.mxu0 %v21806_v15  ;;  %v21816_v15 = vld [vmem:[%s26477_s13 + $0x110] sm:$0xff]  }
 0x588   : > { %18864 = vmatprep.subr.bf16.mxu0 %v21809_v17  ;;  %v21819_v17 = vld [vmem:[%s26477_s13 + $0x158] sm:$0xff]  }
 0x58b   : > { %18865 = vmatpush3.bf16.msra.mxu0 %v21810_v18 }
 0x58c   : > { %18866 = vmatprep.subr.bf16.mxu0 %v21813_v19  ;;  %v21820_v19 = vld [vmem:[%s26477_s13 + $0x118] sm:$0xff]  }
 0x58f   : > { %18867 = vmatpush3.bf16.msra.mxu0 %v21814_v20 }
 0x590   : > { %18868 = vmatprep.subr.bf16.mxu0 %v21817_v21 }
 0x593   : > { %18869 = vmatpush3.bf16.msra.mxu0 %v21818_v22  ;;  %v21822_v22 = vld [vmem:[%s26477_s13 + $0x160] sm:$0xff]  }
 0x594   : > { %18934 = vmatprep.subr.bf16.mxu0 %v21821_v23 }
 0x5f9   : > { %v20168_v24 = vpop.f32.mrb[8].mxu0  ;;  %v24629_v25 = vpop.f32.mrb[8].mxu1 }
 0x5fa   : > { %v2949_v26 = vpop.f32.mrb[9].mxu0  ;;  %v3267_v27 = vpop.f32.mrb[9].mxu1 }
 0x5fb   : > { %v20169_v28 = vpop.f32.mrb[10].mxu0  ;;  %v24631_v29 = vpop.f32.mrb[10].mxu1 }
 0x5fc   : > { %v3837_v30 = vpack.c.bf16 %v20169_v28, %v20168_v24  ;;  %v2952_v31 = vpop.f32.mrb[11].mxu0  ;;  %v3840_v32 = vpack.c.bf16 %v24631_v29, %v24629_v25  ;;  %v3270_v34 = vpop.f32.mrb[11].mxu1  ;;  %v21830_v25 = vld [vmem:[%s26477_s13 + $0x170] sm:$0xff]  }
 0x5fd   : > { %v3828_v36 = vpack.c.bf16 %v2952_v31, %v2949_v26  ;;  %v3831_v37 = vpack.c.bf16 %v3270_v34, %v3267_v27 }
 0x5ff   : > { %4399 = vmatprep.mubr.bf16.mxu0 %v3831_v37 }
 0x601   : > { %v24635_v38 = vpop.f32.mrb[12].mxu0  ;;  %v24637_v39 = vpop.f32.mrb[12].mxu1 }
 0x602   : > { %v24639_v40 = vpop.f32.mrb[13].mxu0  ;;  %v24641_v41 = vpop.f32.mrb[13].mxu1 }
 0x603   : > { %v24643_v42 = vpop.f32.mrb[14].mxu0  ;;  %v24645_v43 = vpop.f32.mrb[14].mxu1 }
 0x604   : > { %v3855_v44 = vpack.c.bf16 %v24643_v42, %v24635_v38  ;;  %v24649_v45 = vpop.f32.mrb[15].mxu0  ;;  %v3858_v46 = vpack.c.bf16 %v24645_v43, %v24637_v39  ;;  %v24653_v49 = vpop.f32.mrb[15].mxu1  ;;  %v21837_v38 = vld [vmem:[%s26477_s13 + $0x1e0] sm:$0xff]  }
 0x605   : > { %v3846_v50 = vpack.c.bf16 %v24649_v45, %v24639_v40  ;;  %v3849_v51 = vpack.c.bf16 %v24653_v49, %v24641_v41 }
 0x609   : > { %v20184_v52 = vpop.f32.mrb[16].mxu0  ;;  %v24659_v53 = vpop.f32.mrb[16].mxu1 }
 0x60a   : > { %v3055_v54 = vpop.f32.mrb[17].mxu0  ;;  %v24661_v55 = vpop.f32.mrb[17].mxu1 }
 0x60b   : > { %v20185_v56 = vpop.f32.mrb[18].mxu0  ;;  %v24663_v57 = vpop.f32.mrb[18].mxu1 }
 0x60c   : > { %v3838_v58 = vpack.c.bf16 %v20185_v56, %v20184_v52  ;;  %v3058_v59 = vpop.f32.mrb[19].mxu0  ;;  %v3842_v60 = vpack.c.bf16 %v24663_v57, %v24659_v53  ;;  %v24667_v61 = vpop.f32.mrb[19].mxu1  ;;  %v21824_v52 = vld [vmem:[%s26477_s13 + $0x120] sm:$0xff]   ;;  %v21826_v56 = vld [vmem:[%s26477_s13 + $0x168] sm:$0xff]   ;;  %v21846_v53 = vld [vmem:[%s26477_s13 + $0x1f8] sm:$0xff]  }
 0x60d   : > { %v3829_v62 = vpack.c.bf16 %v3058_v59, %v3055_v54  ;;  %v3833_v0 = vpack.c.bf16 %v24667_v61, %v24661_v55  ;;  %v21825_v54 = vld [vmem:[%s26477_s13 + $0x1c8] sm:$0xff]   ;;  %v21848_v57 = vld [vmem:[%s26477_s13 + $0x218] sm:$0xff]  }
 0x60e   : > { %v21827_v59 = vld [vmem:[%s26477_s13 + $0x188] sm:$0xff]  }
 0x60f   : > { %4334 = vmatprep.mubr.bf16.mxu1 %v3829_v62  ;;  %v21840_v55 = vld [vmem:[%s26477_s13 + $0x1e8] sm:$0xff]  }
 0x610   : > { %4335 = vmatmul.mubr.bf16.vlgmr.msra.gmra.mrb[32].mxu1 %v3828_v36  ;;  %v21823_v36 = vld [vmem:[%s26477_s13 + $0x180] sm:$0xff]   ;;  %v21842_v61 = vld [vmem:[%s26477_s13 + $0x208] sm:$0xff]  }
 0x611   : > { %v20188_v2 = vpop.f32.mrb[20].mxu0  ;;  %4342 = vmatprep.mubr.bf16.mxu1 %v3838_v58  ;;  %18895 = vmatpush3.bf16.msra.mxu1 %v21808_v63  ;;  %v24674_v4 = vpop.f32.mrb[20].mxu1 }
 0x612   : > { %v3071_v5 = vpop.f32.mrb[21].mxu0  ;;  %18896 = vmatprep.subr.bf16.mxu1 %v21811_v1  ;;  %v24677_v7 = vpop.f32.mrb[21].mxu1  ;;  %v21828_v1 = vld [vmem:[%s26477_s13 + $0x128] sm:$0xff]  }
 0x613   : > { %v20189_v8 = vpop.f32.mrb[22].mxu0  ;;  %v24679_v9 = vpop.f32.mrb[22].mxu1 }
 0x614   : > { %v3856_v10 = vpack.c.bf16 %v20189_v8, %v20188_v2  ;;  %v3074_v11 = vpop.f32.mrb[23].mxu0  ;;  %v3860_v12 = vpack.c.bf16 %v24679_v9, %v24674_v4  ;;  %v24683_v13 = vpop.f32.mrb[23].mxu1  ;;  %v21829_v2 = vld [vmem:[%s26477_s13 + $0x1d0] sm:$0xff]  }
 0x615   : > { %v3847_v14 = vpack.c.bf16 %v3074_v11, %v3071_v5  ;;  %18897 = vmatpush3.bf16.msra.mxu1 %v21812_v3  ;;  %v3851_v16 = vpack.c.bf16 %v24683_v13, %v24677_v7  ;;  %v21831_v8 = vld [vmem:[%s26477_s13 + $0x190] sm:$0xff]  }
 0x616   : > { %18898 = vmatprep.subr.bf16.mxu1 %v21815_v6  ;;  %v21832_v11 = vld [vmem:[%s26477_s13 + $0x130] sm:$0xff]  }
 0x618   : > { %4343 = vmatmul.mubr.bf16.gmra.mrb[36].mxu1 %v3837_v30 }
 0x619   : > { %v20200_v18 = vpop.f32.mrb[24].mxu0  ;;  %4350 = vmatprep.mubr.bf16.mxu1 %v3847_v14  ;;  %18899 = vmatpush3.bf16.msra.mxu1 %v21816_v15  ;;  %v24690_v20 = vpop.f32.mrb[24].mxu1  ;;  %v21833_v14 = vld [vmem:[%s26477_s13 + $0x1d8] sm:$0xff]  }
 0x61a   : > { %v3161_v21 = vpop.f32.mrb[25].mxu0  ;;  %18900 = vmatprep.subr.bf16.mxu1 %v21819_v17  ;;  %v24693_v23 = vpop.f32.mrb[25].mxu1  ;;  %v21834_v15 = vld [vmem:[%s26477_s13 + $0x178] sm:$0xff]  }
 0x61b   : > { %v20201_v24 = vpop.f32.mrb[26].mxu0  ;;  %v24695_v26 = vpop.f32.mrb[26].mxu1 }
 0x61c   : > { %v3839_v27 = vpack.c.bf16 %v20201_v24, %v20200_v18  ;;  %v3164_v28 = vpop.f32.mrb[27].mxu0  ;;  %v3844_v30 = vpack.c.bf16 %v24695_v26, %v24690_v20  ;;  %v24699_v31 = vpop.f32.mrb[27].mxu1  ;;  %v21835_v18 = vld [vmem:[%s26477_s13 + $0x198] sm:$0xff]   ;;  %v21841_v24 = vld [vmem:[%s26477_s13 + $0x1a8] sm:$0xff]  }
 0x61d   : > { %v3830_v34 = vpack.c.bf16 %v3164_v28, %v3161_v21  ;;  %18901 = vmatpush3.bf16.msra.mxu1 %v21820_v19  ;;  %v3835_v37 = vpack.c.bf16 %v24699_v31, %v24693_v23  ;;  %v21836_v21 = vld [vmem:[%s26477_s13 + $0x138] sm:$0xff]   ;;  %v21843_v28 = vld [vmem:[%s26477_s13 + $0x1f0] sm:$0xff]   ;;  %v21850_v31 = vld [vmem:[%s26477_s13 + $0x228] sm:$0xff]  }
 0x61e   : > { %18902 = vmatprep.subr.bf16.mxu1 %v21822_v22  ;;  %v21838_v22 = vld [vmem:[%s26477_s13 + $0x1a0] sm:$0xff]  }
 0x61f   : > { %4400 = vmatmul.mubr.bf16.vlgmr.msra.gmra.mrb[56].mxu0 %v3830_v34 }
 0x620   : > { %4351 = vmatmul.mubr.bf16.gmra.mrb[40].mxu1 %v3846_v50  ;;  %4407 = vmatprep.mubr.bf16.mxu0 %v3840_v32 }
 0x621   : > { %18935 = vmatpush3.bf16.msra.mxu0 %v21823_v36  ;;  %v24713_v58 = vpop.f32.mrb[28].mxu0  ;;  %4358 = vmatprep.mubr.bf16.mxu1 %v3856_v10  ;;  %v24716_v62 = vpop.f32.mrb[28].mxu1  ;;  %v21845_v36 = vld [vmem:[%s26477_s13 + $0x210] sm:$0xff]  }
 0x622   : > { %18903 = vmatpush3.bf16.msra.mxu1 %v21824_v52  ;;  %v3177_v63 = vpop.f32.mrb[29].mxu0  ;;  %18936 = vmatprep.subr.bf16.mxu0 %v21825_v54  ;;  %v24720_v40 = vpop.f32.mrb[29].mxu1  ;;  %v21844_v52 = vld [vmem:[%s26477_s13 + $0x1b0] sm:$0xff]   ;;  %v21847_v54 = vld [vmem:[%s26477_s13 + $0x1b8] sm:$0xff]  }
 0x623   : > { %v24722_v45 = vpop.f32.mrb[30].mxu0  ;;  %18904 = vmatprep.subr.bf16.mxu1 %v21826_v56  ;;  %v24725_v29 = vpop.f32.mrb[30].mxu1 }
 0x624   : > { %v3857_v32 = vpack.c.bf16 %v24722_v45, %v24713_v58  ;;  %v3180_v50 = vpop.f32.mrb[31].mxu0  ;;  %v3862_v3 = vpack.c.bf16 %v24725_v29, %v24716_v62  ;;  %v24731_v5 = vpop.f32.mrb[31].mxu1  ;;  %v21856_v62 = vld [vmem:[#allocation2 + $0x18] sm:$0xff]   ;;  %v21857_v29 = vld [vmem:[#allocation2 + $0x20] sm:$0xff]  }
 0x625   : > { %v3848_v6 = vpack.c.bf16 %v3180_v50, %v3177_v63  ;;  %18937 = vmatpush3.bf16.msra.mxu0 %v21827_v59  ;;  %v3853_v10 = vpack.c.bf16 %v24731_v5, %v24720_v40  ;;  %v21849_v59 = vld [vmem:[%s26477_s13 + $0x220] sm:$0xff]  }
 0x626   : > { %18905 = vmatpush3.bf16.msra.mxu1 %v21828_v1  ;;  %18938 = vmatprep.subr.bf16.mxu0 %v21829_v2 }
 0x627   : > { %4408 = vmatmul.mubr.bf16.gmra.mrb[60].mxu0 %v3839_v27  ;;  %18906 = vmatprep.subr.bf16.mxu1 %v21830_v25 }
 0x628   : > { %4359 = vmatmul.mubr.bf16.gmra.mrb[44].mxu1 %v3855_v44  ;;  %4415 = vmatprep.mubr.bf16.mxu0 %v3849_v51  ;;  %v21839_v44 = vld [vmem:[%s26477_s13 + $0x200] sm:$0xff]  }
 0x629   : > { %18939 = vmatpush3.bf16.msra.mxu0 %v21831_v8  ;;  %v20232_v17 = vpop.f32.mrb[32].mxu0  ;;  %4464 = vmatprep.mubr.bf16.mxu1 %v3833_v0 }
 0x62a   : > { %18907 = vmatpush3.bf16.msra.mxu1 %v21832_v11  ;;  %v3373_v19 = vpop.f32.mrb[33].mxu0  ;;  %18940 = vmatprep.subr.bf16.mxu0 %v21833_v14  ;;  %v21853_v11 = vld [vmem:[#allocation2] sm:$0xff]   ;;  %v21854_v14 = vld [vmem:[#allocation2 + $0x8] sm:$0xff]  }
 0x62b   : > { %v20233_v42 = vpop.f32.mrb[34].mxu0  ;;  %18908 = vmatprep.subr.bf16.mxu1 %v21834_v15  ;;  %v21855_v15 = vld [vmem:[#allocation2 + $0x10] sm:$0xff]  }
 0x62c   : > { %v3841_v41 = vpack.c.bf16 %v20233_v42, %v20232_v17  ;;  %v3376_v49 = vpop.f32.mrb[35].mxu0  ;;  %v21859_v17 = vld [vmem:[#allocation2 + $0x30] sm:$0xff]  }
 0x62d   : > { %v3832_v51 = vpack.c.bf16 %v3376_v49, %v3373_v19  ;;  %18941 = vmatpush3.bf16.msra.mxu0 %v21835_v18  ;;  %v21860_v18 = vld [vmem:[#allocation2 + $0x38] sm:$0xff]  }
 0x62e   : > { %18909 = vmatpush3.bf16.msra.mxu1 %v21836_v21  ;;  %18942 = vmatprep.subr.bf16.mxu0 %v21837_v38 }
 0x62f   : > { %4416 = vmatmul.mubr.bf16.gmra.mrb[64].mxu0 %v3848_v6  ;;  %20302 = vmatprep.subr.bf16.mxu1 %v21839_v44 }
 0x630   : > { %4423 = vmatprep.mubr.bf16.mxu0 %v3858_v46 }
 0x631   : > { %4465 = vmatmul.mubr.bf16.vlgmr.msra.gmra.mrb[48].mxu1 %v3832_v51  ;;  %18943 = vmatpush3.bf16.msra.mxu0 %v21838_v22  ;;  %v20236_v0 = vpop.f32.mrb[36].mxu0 }
 0x632   : > { %4472 = vmatprep.mubr.bf16.mxu1 %v3842_v60  ;;  %20303 = vmatpush3.bf16.msra.mxu1 %v21839_v44  ;;  %v3389_v27 = vpop.f32.mrb[37].mxu0 }
 0x633   : > { %v20237_v34 = vpop.f32.mrb[38].mxu0  ;;  %18944 = vmatprep.subr.bf16.mxu0 %v21840_v55  ;;  %20304 = vmatprep.subr.bf16.mxu1 %v21842_v61 }
 0x634   : > { %v3859_v39 = vpack.c.bf16 %v20237_v34, %v20236_v0  ;;  %v3392_v43 = vpop.f32.mrb[39].mxu0 }
 0x635   : > { %v3850_v46 = vpack.c.bf16 %v3392_v43, %v3389_v27  ;;  %18945 = vmatpush3.bf16.msra.mxu0 %v21841_v24  ;;  %v17692_v24 = vld [vmem:[%s26478_s2] ss:$0 sm:$0xff]  ;;  %s26486_s2 = sld [smem:[#allocation74_spill]] }
 0x636   : > { %20305 = vmatpush3.bf16.msra.mxu1 %v21842_v61  ;;  %18946 = vmatprep.subr.bf16.mxu0 %v21843_v28 }
 0x637   : > { %4424 = vmatmul.mubr.bf16.gmra.mrb[68].mxu0 %v3857_v32  ;;  %20306 = vmatprep.subr.bf16.mxu1 %v21845_v36  ;;  %v21852_v32 = vld [vmem:[%s26477_s13 + $0x238] sm:$0xff]  }
 0x638   : > { %4529 = vmatprep.mubr.bf16.mxu0 %v3835_v37  ;;  %v21851_v37 = vld [vmem:[%s26477_s13 + $0x230] sm:$0xff]  }
 0x639   : > { %4473 = vmatmul.mubr.bf16.gmra.mrb[52].mxu1 %v3841_v41  ;;  %18947 = vmatpush3.bf16.msra.mxu0 %v21844_v52  ;;  %v20264_v60 = vpop.f32.mrb[40].mxu0 }
 0x63a   : > { %4480 = vmatprep.mubr.bf16.mxu1 %v3851_v16  ;;  %20307 = vmatpush3.bf16.msra.mxu1 %v21845_v36  ;;  %v3585_v56 = vpop.f32.mrb[41].mxu0 }
 0x63b   : > { %v20265_v58 = vpop.f32.mrb[42].mxu0  ;;  %18948 = vmatprep.subr.bf16.mxu0 %v21846_v53  ;;  %20308 = vmatprep.subr.bf16.mxu1 %v21848_v57 }
 0x63c   : > { %v3843_v63 = vpack.c.bf16 %v20265_v58, %v20264_v60  ;;  %v3588_v1 = vpop.f32.mrb[43].mxu0 }
 0x63d   : > { %v3834_v23 = vpack.c.bf16 %v3588_v1, %v3585_v56  ;;  %18949 = vmatpush3.bf16.msra.mxu0 %v21847_v54 }
 0x63e   : > { %20309 = vmatpush3.bf16.msra.mxu1 %v21848_v57  ;;  %20326 = vmatprep.subr.bf16.mxu0 %v21853_v11 }
 0x63f   : > { %20310 = vmatprep.subr.bf16.mxu1 %v21849_v59 }
 0x640   : > { %4530 = vmatmul.mubr.bf16.vlgmr.msra.gmra.mrb[72].mxu0 %v3834_v23 }
 0x641   : > { %4481 = vmatmul.mubr.bf16.gmra.mrb[56].mxu1 %v3850_v46  ;;  %4537 = vmatprep.mubr.bf16.mxu0 %v3844_v30  ;;  %v20268_v7 = vpop.f32.mrb[44].mxu0 }
 0x642   : > { %4488 = vmatprep.mubr.bf16.mxu1 %v3860_v12  ;;  %20311 = vmatpush3.bf16.msra.mxu1 %v21849_v59  ;;  %v3601_v13 = vpop.f32.mrb[45].mxu0 }
 0x643   : > { %v20269_v16 = vpop.f32.mrb[46].mxu0  ;;  %20312 = vmatprep.subr.bf16.mxu1 %v21850_v31  ;;  %20327 = vmatpush3.bf16.msra.mxu0 %v21853_v11 }
 0x644   : > { %v3861_v2 = vpack.c.bf16 %v20269_v16, %v20268_v7  ;;  %v3604_v45 = vpop.f32.mrb[47].mxu0  ;;  %20328 = vmatprep.subr.bf16.mxu0 %v21854_v14 }
 0x645   : > { %v3852_v25 = vpack.c.bf16 %v3604_v45, %v3601_v13 }
 0x646   : > { %20313 = vmatpush3.bf16.msra.mxu1 %v21850_v31 }
 0x647   : > { %20314 = vmatprep.subr.bf16.mxu1 %v21851_v37  ;;  %20329 = vmatpush3.bf16.msra.mxu0 %v21854_v14 }
 0x648   : > { %4538 = vmatmul.mubr.bf16.gmra.mrb[76].mxu0 %v3843_v63  ;;  %20330 = vmatprep.subr.bf16.mxu0 %v21855_v15 }
 0x649   : > { %4489 = vmatmul.mubr.bf16.gmra.mrb[60].mxu1 %v3859_v39  ;;  %v20296_v20 = vpop.f32.mrb[48].mxu0  ;;  %4545 = vmatprep.mubr.bf16.mxu0 %v3853_v10 }
 0x64a   : > { %20315 = vmatpush3.bf16.msra.mxu1 %v21851_v37  ;;  %v3797_v4 = vpop.f32.mrb[49].mxu0 }
 0x64b   : > { %v20297_v9 = vpop.f32.mrb[50].mxu0  ;;  %20316 = vmatprep.subr.bf16.mxu1 %v21852_v32  ;;  %20331 = vmatpush3.bf16.msra.mxu0 %v21855_v15 }
 0x64c   : > { %v3845_v12 = vpack.c.bf16 %v20297_v9, %v20296_v20  ;;  %v3800_v26 = vpop.f32.mrb[51].mxu0  ;;  %20332 = vmatprep.subr.bf16.mxu0 %v21856_v62 }
 0x64d   : > { %v3836_v30 = vpack.c.bf16 %v3800_v26, %v3797_v4 }
 0x64e   : > { %20317 = vmatpush3.bf16.msra.mxu1 %v21852_v32 }
 0x64f   : > { %20318 = vmatprep.mubr.bf16.mxu1 %v3836_v30  ;;  %20333 = vmatpush3.bf16.msra.mxu0 %v21856_v62 }
 0x650   : > { %4546 = vmatmul.mubr.bf16.gmra.mrb[80].mxu0 %v3852_v25  ;;  %20334 = vmatprep.subr.bf16.mxu0 %v21857_v29 }
 0x651   : > { %4553 = vmatprep.mubr.bf16.mxu0 %v3862_v3  ;;  %20319 = vmatmul.mubr.bf16.vlgmr.msra.gmra.mrb[64].mxu1 %v3845_v12  ;;  %v20300_v50 = vpop.f32.mrb[52].mxu0  ;;  %v21858_v3 = vld [vmem:[#allocation2 + $0x28] sm:$0xff]  }
 0x652   : > { %v3813_v6 = vpop.f32.mrb[53].mxu0 }
 0x653   : > { %v20301_v8 = vpop.f32.mrb[54].mxu0  ;;  %20335 = vmatpush3.bf16.msra.mxu0 %v21857_v29 }
 0x654   : > { %v3863_v40 = vpack.c.bf16 %v20301_v8, %v20300_v50  ;;  %v3816_v5 = vpop.f32.mrb[55].mxu0  ;;  %20336 = vmatprep.subr.bf16.mxu0 %v21858_v3 }
 0x655   : > { %v3854_v10 = vpack.c.bf16 %v3816_v5, %v3813_v6 }
 0x657   : > { %20322 = vmatprep.mubr.bf16.mxu1 %v3854_v10  ;;  %20337 = vmatpush3.bf16.msra.mxu0 %v21858_v3 }
 0x658   : > { %4554 = vmatmul.mubr.bf16.gmra.mrb[84].mxu0 %v3861_v2  ;;  %20338 = vmatprep.subr.bf16.mxu0 %v21859_v17 }
 0x659   : > { %20323 = vmatmul.mubr.bf16.gmra.mrb[68].mxu1 %v3863_v40 }
 0x65b   : > { %20339 = vmatpush3.bf16.msra.mxu0 %v21859_v17 }
 0x65c   : > { %20340 = vmatprep.subr.bf16.mxu0 %v21860_v18 }
 0x65f   : > { %20341 = vmatpush3.bf16.msra.mxu0 %v21860_v18 }
 0x6e3   : > { %v18830_v19 = vpop.f32.mrb[32].mxu1 }
 0x6e4   : > { %v18831_v21 = vpop.f32.mrb[33].mxu1 }
 0x6e5   : > { %v18832_v38 = vadd.f32 %v18831_v21, %v18830_v19  ;;  %v18833_v42 = vpop.f32.mrb[34].mxu1 }
 0x6e6   : > { %v18834_v44 = vpop.f32.mrb[35].mxu1 }
 0x6e7   : > { %v18835_v41 = vadd.f32 %v18834_v44, %v18833_v42  ;;  %v4337_v36 = vadd.f32 %v18832_v38, %v17692_v24 }
 0x6e9   : > { %v4340_v60 = vadd.f32 %v18835_v41, %v17692_v24 }
 0x6eb   : > { %v18836_v49 = vpop.f32.mrb[36].mxu1 }
 0x6ec   : > { %v18837_v51 = vpop.f32.mrb[37].mxu1 }
 0x6ed   : > { %v18838_v22 = vadd.f32 %v18837_v51, %v18836_v49  ;;  %v18839_v55 = vpop.f32.mrb[38].mxu1 }
 0x6ee   : > { %v18840_v61 = vpop.f32.mrb[39].mxu1 }
 0x6ef   : > { %v18841_v0 = vadd.f32 %v18840_v61, %v18839_v55  ;;  %v4345_v7 = vadd.f32 %v18838_v22, %v17692_v24 }
 0x6f1   : > { %v4348_v32 = vadd.f32 %v18841_v0, %v17692_v24 }
 0x6f2   : > { %v18870_v27 = vpop.f32.mrb[56].mxu0 }
 0x6f3   : > { %v18842_v28 = vpop.f32.mrb[40].mxu1  ;;  %v18871_v34 = vpop.f32.mrb[57].mxu0 }
 0x6f4   : > { %v18872_v39 = vadd.f32 %v18871_v34, %v18870_v27  ;;  %v18843_v43 = vpop.f32.mrb[41].mxu1  ;;  %v18873_v46 = vpop.f32.mrb[58].mxu0 }
 0x6f5   : > { %v18844_v52 = vadd.f32 %v18843_v43, %v18842_v28  ;;  %v18845_v53 = vpop.f32.mrb[42].mxu1  ;;  %v18874_v57 = vpop.f32.mrb[59].mxu0 }
 0x6f6   : > { %v4402_v54 = vadd.f32 %v18872_v39, %v4337_v36  ;;  %v18875_v56 = vadd.f32 %v18874_v57, %v18873_v46  ;;  %v18846_v58 = vpop.f32.mrb[43].mxu1 }
 0x6f7   : > { %v18847_v59 = vadd.f32 %v18846_v58, %v18845_v53  ;;  %v4353_v6 = vadd.f32 %v18844_v52, %v17692_v24 }
 0x6f8   : > { %v4405_v63 = vadd.f32 %v18875_v56, %v4340_v60 }
 0x6f9   : > { %v4356_v14 = vadd.f32 %v18847_v59, %v17692_v24 }
 0x6fa   : > { %v18876_v1 = vpop.f32.mrb[60].mxu0 }
 0x6fb   : > { %v18848_v23 = vpop.f32.mrb[44].mxu1  ;;  %v18877_v31 = vpop.f32.mrb[61].mxu0 }
 0x6fc   : > { %v18878_v13 = vadd.f32 %v18877_v31, %v18876_v1  ;;  %v18849_v16 = vpop.f32.mrb[45].mxu1  ;;  %v18879_v37 = vpop.f32.mrb[62].mxu0 }
 0x6fd   : > { %v18850_v2 = vadd.f32 %v18849_v16, %v18848_v23  ;;  %v18851_v45 = vpop.f32.mrb[46].mxu1  ;;  %v18880_v25 = vpop.f32.mrb[63].mxu0 }
 0x6fe   : > { %v4410_v20 = vadd.f32 %v18878_v13, %v4345_v7  ;;  %v18881_v4 = vadd.f32 %v18880_v25, %v18879_v37  ;;  %v18852_v9 = vpop.f32.mrb[47].mxu1 }
 0x6ff   : > { %v18853_v12 = vadd.f32 %v18852_v9, %v18851_v45  ;;  %v4361_v41 = vadd.f32 %v18850_v2, %v17692_v24 }
 0x700   : > { %v4413_v26 = vadd.f32 %v18881_v4, %v4348_v32 }
 0x701   : > { %v4364_v0 = vadd.f32 %v18853_v12, %v17692_v24 }
 0x702   : > { %v18882_v30 = vpop.f32.mrb[64].mxu0 }
 0x703   : > { %v18883_v50 = vpop.f32.mrb[65].mxu0 }
 0x704   : > { %v18884_v8 = vadd.f32 %v18883_v50, %v18882_v30  ;;  %v18910_v40 = vpop.f32.mrb[48].mxu1  ;;  %v18885_v5 = vpop.f32.mrb[66].mxu0 }
 0x705   : > { %v18911_v10 = vpop.f32.mrb[49].mxu1  ;;  %v18886_v11 = vpop.f32.mrb[67].mxu0 }
 0x706   : > { %v4418_v15 = vadd.f32 %v18884_v8, %v4353_v6  ;;  %v18912_v62 = vadd.f32 %v18911_v10, %v18910_v40  ;;  %v18887_v29 = vadd.f32 %v18886_v11, %v18885_v5  ;;  %v18913_v3 = vpop.f32.mrb[50].mxu1 }
 0x707   : > { %v18914_v17 = vpop.f32.mrb[51].mxu1 }
 0x708   : > { %v4467_v18 = vadd.f32 %v18912_v62, %v4402_v54  ;;  %v4421_v19 = vadd.f32 %v18887_v29, %v4356_v14  ;;  %v18915_v21 = vadd.f32 %v18914_v17, %v18913_v3 }
 0x70a   : > { %v4470_v38 = vadd.f32 %v18915_v21, %v4405_v63  ;;  %v18888_v42 = vpop.f32.mrb[68].mxu0 }
 0x70b   : > { %v18889_v44 = vpop.f32.mrb[69].mxu0 }
 0x70c   : > { %v18890_v49 = vadd.f32 %v18889_v44, %v18888_v42  ;;  %v18916_v51 = vpop.f32.mrb[52].mxu1  ;;  %v18891_v22 = vpop.f32.mrb[70].mxu0 }
 0x70d   : > { %v18917_v55 = vpop.f32.mrb[53].mxu1  ;;  %v18892_v61 = vpop.f32.mrb[71].mxu0 }
 0x70e   : > { %v4426_v27 = vadd.f32 %v18890_v49, %v4361_v41  ;;  %v18918_v28 = vadd.f32 %v18917_v55, %v18916_v51  ;;  %v18893_v34 = vadd.f32 %v18892_v61, %v18891_v22  ;;  %v18919_v36 = vpop.f32.mrb[54].mxu1 }
 0x70f   : > { %v18920_v39 = vpop.f32.mrb[55].mxu1 }
 0x710   : > { %v4475_v43 = vadd.f32 %v18918_v28, %v4410_v20  ;;  %v4429_v46 = vadd.f32 %v18893_v34, %v4364_v0  ;;  %v18921_v52 = vadd.f32 %v18920_v39, %v18919_v36 }
 0x712   : > { %v4478_v53 = vadd.f32 %v18921_v52, %v4413_v26 }
 0x713   : > { %v18950_v57 = vpop.f32.mrb[72].mxu0 }
 0x714   : > { %v18922_v60 = vpop.f32.mrb[56].mxu1  ;;  %v18951_v54 = vpop.f32.mrb[73].mxu0 }
 0x715   : > { %v18952_v56 = vadd.f32 %v18951_v54, %v18950_v57  ;;  %v18923_v58 = vpop.f32.mrb[57].mxu1  ;;  %v18953_v59 = vpop.f32.mrb[74].mxu0 }
 0x716   : > { %v18924_v63 = vadd.f32 %v18923_v58, %v18922_v60  ;;  %v18925_v1 = vpop.f32.mrb[58].mxu1  ;;  %v18954_v23 = vpop.f32.mrb[75].mxu0 }
 0x717   : > { %v18955_v31 = vadd.f32 %v18954_v23, %v18953_v59  ;;  %v18926_v24 = vpop.f32.mrb[59].mxu1  ;;  %v4532_v7 = vadd.f32 %v18952_v56, %v4467_v18 }
 0x718   : > { %v4483_v13 = vadd.f32 %v18924_v63, %v4418_v15  ;;  %v18927_v16 = vadd.f32 %v18926_v24, %v18925_v1 }
 0x719   : > { %v4535_v37 = vadd.f32 %v18955_v31, %v4470_v38 }
 0x71a   : > { %v4486_v2 = vadd.f32 %v18927_v16, %v4421_v19 }
 0x71b   : > { %v18956_v45 = vpop.f32.mrb[76].mxu0 }
 0x71c   : > { %v18928_v25 = vpop.f32.mrb[60].mxu1  ;;  %v18957_v32 = vpop.f32.mrb[77].mxu0 }
 0x71d   : > { %v18958_v20 = vadd.f32 %v18957_v32, %v18956_v45  ;;  %v18929_v4 = vpop.f32.mrb[61].mxu1  ;;  %v18959_v9 = vpop.f32.mrb[78].mxu0  ;;  %v21861_v45 = vld [vmem:[#allocation4] sm:$0xff]   ;;  %v21863_v32 = vld [vmem:[#allocation4 + $0x10] sm:$0xff]  }
 0x71e   : > { %v18930_v12 = vadd.f32 %v18929_v4, %v18928_v25  ;;  %v18931_v26 = vpop.f32.mrb[62].mxu1  ;;  %v18960_v30 = vpop.f32.mrb[79].mxu0  ;;  %20350 = vmatprep.subr.bf16.mxu1 %v21861_v45  ;;  %v21862_v25 = vld [vmem:[#allocation4 + $0x8] sm:$0xff]   ;;  %v21865_v4 = vld [vmem:[#allocation4 + $0x20] sm:$0xff]  }
 0x71f   : > { %v18961_v50 = vadd.f32 %v18960_v30, %v18959_v9  ;;  %v18932_v6 = vpop.f32.mrb[63].mxu1  ;;  %v4540_v8 = vadd.f32 %v18958_v20, %v4475_v43  ;;  %20351 = vmatpush3.bf16.msra.mxu1 %v21861_v45  ;;  %v21864_v20 = vld [vmem:[#allocation4 + $0x18] sm:$0xff]   ;;  %v21866_v9 = vld [vmem:[#allocation4 + $0x28] sm:$0xff]   ;;  %v17765_v30 = vld [vmem:[%s26479_s14] ss:$0 sm:$0xff]  ;;  %s26487_s14 = sld [smem:[#allocation79_spill]] }
 0x720   : > { %v4491_v40 = vadd.f32 %v18930_v12, %v4426_v27  ;;  %v18933_v5 = vadd.f32 %v18932_v6, %v18931_v26  ;;  %20352 = vmatprep.subr.bf16.mxu1 %v21862_v25  ;;  %v21867_v12 = vld [vmem:[#allocation4 + $0x30] sm:$0xff]   ;;  %v21868_v26 = vld [vmem:[#allocation4 + $0x38] sm:$0xff]  }
 0x721   : > { %v4543_v10 = vadd.f32 %v18961_v50, %v4478_v53 }
 0x722   : > { %v4494_v11 = vadd.f32 %v18933_v5, %v4429_v46 }
 0x723   : > { %v18962_v14 = vpop.f32.mrb[80].mxu0  ;;  %20353 = vmatpush3.bf16.msra.mxu1 %v21862_v25 }
 0x724   : > { %v18963_v15 = vpop.f32.mrb[81].mxu0  ;;  %v20320_v62 = vpop.f32.mrb[64].mxu1  ;;  %20354 = vmatprep.subr.bf16.mxu1 %v21863_v32 }
 0x725   : > { %v18964_v29 = vadd.f32 %v18963_v15, %v18962_v14  ;;  %v4605_v3 = vadd.f32 %v20320_v62, %v4540_v8  ;;  %v18965_v17 = vpop.f32.mrb[82].mxu0  ;;  %v4596_v18 = vpop.f32.mrb[65].mxu1  ;;  %v4760_v8 = vunpack.c.l.bf16 %v24430_v33  ;;  %v4761_v62 = vunpack.c.h.bf16 %v24430_v33 }
 0x726   : > { %v4597_v19 = vadd.f32 %v4596_v18, %v4532_v7  ;;  %v18966_v21 = vpop.f32.mrb[83].mxu0  ;;  %v20321_v38 = vpop.f32.mrb[66].mxu1  ;;  %v4759_v18 = vunpack.c.h.bf16 %v24432_v35 }
 0x727   : > { %v18967_v42 = vadd.f32 %v18966_v21, %v18965_v17  ;;  %v4608_v44 = vadd.f32 %v20321_v38, %v4543_v10  ;;  %v4599_v41 = vpop.f32.mrb[67].mxu1  ;;  %v4548_v49 = vadd.f32 %v18964_v29, %v4483_v13  ;;  %v4629_v22 = vmax.f32 %v4605_v3, 0.0  ;;  %20355 = vmatpush3.bf16.msra.mxu1 %v21863_v32 }
 0x728   : > { %v4600_v51 = vadd.f32 %v4599_v41, %v4535_v37  ;;  %v4627_v0 = vmax.f32 %v4597_v19, 0.0  ;;  %20356 = vmatprep.subr.bf16.mxu1 %v21864_v20  ;;  %v4758_v10 = vunpack.c.l.bf16 %v24432_v35 }
 0x729   : > { %v4630_v55 = vmax.f32 %v4608_v44, 0.0  ;;  %v4551_v61 = vadd.f32 %v18967_v42, %v4486_v2 }
 0x72a   : > { %v4628_v27 = vmax.f32 %v4600_v51, 0.0 }
 0x72b   : > { %v4636_v28 = vpack.c.bf16 %v4630_v55, %v4629_v22  ;;  %v18968_v34 = vpop.f32.mrb[84].mxu0  ;;  %20357 = vmatpush3.bf16.msra.mxu1 %v21864_v20 }
 0x72c   : > { %v18969_v36 = vpop.f32.mrb[85].mxu0  ;;  %v20324_v39 = vpop.f32.mrb[68].mxu1  ;;  %v4635_v43 = vpack.c.bf16 %v4628_v27, %v4627_v0  ;;  %20358 = vmatprep.subr.bf16.mxu1 %v21865_v4 }
 0x72d   : > { %v18970_v46 = vadd.f32 %v18969_v36, %v18968_v34  ;;  %v18971_v52 = vpop.f32.mrb[86].mxu0  ;;  %v4612_v53 = vpop.f32.mrb[69].mxu1  ;;  %v4764_v34 = vunpack.c.l.bf16 %v24436_v47 }
 0x72e   : > { %v4613_v57 = vadd.f32 %v4612_v53, %v4548_v49  ;;  %v18972_v60 = vpop.f32.mrb[87].mxu0  ;;  %v20325_v54 = vpop.f32.mrb[70].mxu1  ;;  %20342 = vmatprep.mubr.bf16.mxu0 %v4635_v43  ;;  %v4762_v43 = vunpack.c.l.bf16 %v24438_v48 }
 0x72f   : > { %v4556_v56 = vadd.f32 %v18970_v46, %v4491_v40  ;;  %v18973_v58 = vadd.f32 %v18972_v60, %v18971_v52  ;;  %v4615_v59 = vpop.f32.mrb[71].mxu1  ;;  %20343 = vmatmul.mubr.bf16.vlgmr.msra.gmra.mrb[88].mxu0 %v4636_v28  ;;  %20359 = vmatpush3.bf16.msra.mxu1 %v21865_v4 }
 0x730   : > { %v4616_v63 = vadd.f32 %v4615_v59, %v4551_v61  ;;  %v4631_v31 = vmax.f32 %v4613_v57, 0.0  ;;  %20360 = vmatprep.subr.bf16.mxu1 %v21866_v9  ;;  %v4765_v57 = vunpack.c.h.bf16 %v24436_v47 }
 0x731   : > { %v4621_v1 = vadd.f32 %v20324_v39, %v4556_v56  ;;  %v4559_v23 = vadd.f32 %v18973_v58, %v4494_v11  ;;  %v4763_v58 = vunpack.c.h.bf16 %v24438_v48 }
 0x732   : > { %v4632_v24 = vmax.f32 %v4616_v63, 0.0 }
 0x733   : > { %v4624_v7 = vadd.f32 %v20325_v54, %v4559_v23  ;;  %v4633_v16 = vmax.f32 %v4621_v1, 0.0  ;;  %20361 = vmatpush3.bf16.msra.mxu1 %v21866_v9 }
 0x734   : > { %v4637_v13 = vpack.c.bf16 %v4632_v24, %v4631_v31  ;;  %20362 = vmatprep.subr.bf16.mxu1 %v21867_v12 }
 0x735   : > { %v4634_v37 = vmax.f32 %v4624_v7, 0.0 }
 0x736   : > { %20346 = vmatprep.mubr.bf16.mxu0 %v4637_v13 }
 0x737   : > { %v4638_v2 = vpack.c.bf16 %v4634_v37, %v4633_v16  ;;  %20363 = vmatpush3.bf16.msra.mxu1 %v21867_v12 }
 0x738   : > { %20364 = vmatprep.subr.bf16.mxu1 %v21868_v26 }
 0x739   : > { %20347 = vmatmul.mubr.bf16.gmra.mrb[92].mxu0 %v4638_v2 }
 0x73b   : > { %20365 = vmatpush3.bf16.msra.mxu1 %v21868_v26 }
 0x802   : > { %v20344_v50 = vpop.f32.mrb[88].mxu0 }
 0x803   : > { %v4736_v6 = vadd.f32 %v20344_v50, %v17765_v30  ;;  %v4727_v40 = vpop.f32.mrb[89].mxu0 }
 0x804   : > { %v4728_v5 = vadd.f32 %v17765_v30, %v4727_v40  ;;  %v20345_v11 = vpop.f32.mrb[90].mxu0 }
 0x805   : > { %v4768_v14 = vadd.f32 %v4760_v8, %v4736_v6  ;;  %v4739_v15 = vadd.f32 %v20345_v11, %v17765_v30  ;;  %v4730_v29 = vpop.f32.mrb[91].mxu0 }
 0x806   : > { %v4766_v3 = vadd.f32 %v4758_v10, %v4728_v5  ;;  %v4731_v17 = vadd.f32 %v17765_v30, %v4730_v29 }
 0x807   : > { %v4776_v19 = vmax.f32 %v4768_v14, 0.0  ;;  %v4769_v21 = vadd.f32 %v4761_v62, %v4739_v15 }
 0x808   : > { %v4774_v38 = vmax.f32 %v4766_v3, 0.0  ;;  %v4767_v42 = vadd.f32 %v4759_v18, %v4731_v17 }
 0x809   : > { %v4784_v44 = vsub.f32 0.0, %v4776_v19  ;;  %v4777_v41 = vmax.f32 %v4769_v21, 0.0 }
 0x80a   : > { %v4782_v49 = vsub.f32 0.0, %v4774_v38  ;;  %v4775_v51 = vmax.f32 %v4767_v42, 0.0 }
 0x80b   : > { %v4794_v22 = vmul.f32 1.442695, %v4784_v44  ;;  %v4785_v55 = vsub.f32 0.0, %v4777_v41 }
 0x80c   : > { %v4790_v61 = vmul.f32 1.442695, %v4782_v49  ;;  %v4783_v0 = vsub.f32 0.0, %v4775_v51  ;;  %v20348_v27 = vpop.f32.mrb[92].mxu0  ;;  %v23617_v49 = vmov 0.0  }
 0x80d   : > { %22648 = vpow2.f32 %v4794_v22  ;;  %v4796_v33 = vmul.f32 1.442695, %v4785_v55  ;;  %v4752_v28 = vadd.f32 %v20348_v27, %v17765_v30  ;;  %v4743_v36 = vpop.f32.mrb[93].mxu0  ;;  %20374 = vmatprep.subr.bf16.mxu0 %v23617_v49  ;;  %20398 = vmatprep.subr.bf16.mxu1 %v23617_v49  ;;  %v17774_v51 = vld [vmem:[%s26480_s17] ss:$0 sm:$0xff]  ;;  %s26488_s17 = sld [smem:[#allocation75_spill]] }
 0x80e   : > { %22650 = vpow2.f32 %v4790_v61  ;;  %v4792_v35 = vmul.f32 1.442695, %v4783_v0  ;;  %v4744_v39 = vadd.f32 %v17765_v30, %v4743_v36  ;;  %v20349_v46 = vpop.f32.mrb[94].mxu0  ;;  %20382 = vmatprep.mubr.msk.bf16.mxu0 %vm23618_vm1, %v23617_v49 }
 0x80f   : > { %22652 = vpow2.f32 %v4796_v33  ;;  %v4772_v52 = vadd.f32 %v4764_v34, %v4752_v28  ;;  %v4755_v53 = vadd.f32 %v20349_v46, %v17765_v30  ;;  %v4746_v60 = vpop.f32.mrb[95].mxu0 }
 0x810   : > { %22654 = vpow2.f32 %v4792_v35  ;;  %v4770_v54 = vadd.f32 %v4762_v43, %v4744_v39  ;;  %v4747_v56 = vadd.f32 %v17765_v30, %v4746_v60 }
 0x811   : > { %v4780_v59 = vmax.f32 %v4772_v52, 0.0  ;;  %v4773_v63 = vadd.f32 %v4765_v57, %v4755_v53 }
 0x812   : > { %v4778_v1 = vmax.f32 %v4770_v54, 0.0  ;;  %v4771_v23 = vadd.f32 %v4763_v58, %v4747_v56 }
 0x813   : > { %v4788_v31 = vsub.f32 0.0, %v4780_v59  ;;  %v4781_v24 = vmax.f32 %v4773_v63, 0.0 }
 0x814   : > { %v4786_v7 = vsub.f32 0.0, %v4778_v1  ;;  %v4779_v13 = vmax.f32 %v4771_v23, 0.0 }
 0x815   : > { %v4802_v16 = vmul.f32 1.442695, %v4788_v31  ;;  %v4789_v37 = vsub.f32 0.0, %v4781_v24 }
 0x816   : > { %v4798_v2 = vmul.f32 1.442695, %v4786_v7  ;;  %v4787_v45 = vsub.f32 0.0, %v4779_v13 }
 0x817   : > { %v22649_v25 = vpop.eup %22648  ;;  %22656 = vpow2.f32 %v4802_v16  ;;  %v4804_v47 = vmul.f32 1.442695, %v4789_v37  ;;  %v21869_v16 = vld [vmem:[%s26481_s22] sm:$0xff]   ;;  %v21870_v37 = vld [vmem:[%s26481_s22 + $0x10] sm:$0xff]  }
 0x818   : > { %v22651_v32 = vpop.eup %22650  ;;  %v4808_v20 = vadd.f32 1.0, %v22649_v25  ;;  %22658 = vpow2.f32 %v4798_v2  ;;  %v4800_v26 = vmul.f32 1.442695, %v4787_v45  ;;  %v21871_v2 = vld [vmem:[%s26481_s22 + $0x8] sm:$0xff]   ;;  %v24865_v45 = vld [vmem:[%s26481_s22 + $0x20] sm:$0xff]   ;;  %v21873_v25 = vld [vmem:[%s26481_s22 + $0x18] sm:$0xff]  }
 0x819   : > { %v22653_v4 = vpop.eup %22652  ;;  %v4806_v48 = vadd.f32 1.0, %v22651_v32  ;;  %22660 = vpow2.f32 %v4804_v47  ;;  %v21874_v47 = vld [vmem:[%s26481_s22 + $0x30] sm:$0xff]   ;;  %v21875_v32 = vld [vmem:[%s26481_s22 + $0x28] sm:$0xff]  }
 0x81a   : > { %v22655_v9 = vpop.eup %22654  ;;  %22662 = vrcp.f32 %v4808_v20  ;;  %v4809_v12 = vadd.f32 1.0, %v22653_v4  ;;  %v21877_v20 = vld [vmem:[%s26481_s22 + $0x40] sm:$0xff]  }
 0x81b   : > { %22664 = vrcp.f32 %v4806_v48  ;;  %v4807_v30 = vadd.f32 1.0, %v22655_v9  ;;  %v21878_v4 = vld [vmem:[%s26482_s16 + $0x40] sm:$0xff]   ;;  %v21876_v48 = vld [vmem:[%s26481_s22 + $0x38] sm:$0xff]  }
 0x81c   : > { %22666 = vrcp.f32 %v4809_v12  ;;  %v21879_v9 = vld [vmem:[%s26482_s16] sm:$0xff]   ;;  %v21880_v12 = vld [vmem:[%s26482_s16 + $0x48] sm:$0xff]  }
 0x81d   : > { %22668 = vrcp.f32 %v4807_v30  ;;  %v21882_v30 = vld [vmem:[%s26482_s16 + $0x50] sm:$0xff]  }
 0x81e   : > { %22670 = vpow2.f32 %v4800_v26  ;;  %v21881_v26 = vld [vmem:[%s26482_s16 + $0x8] sm:$0xff]  }
 0x821   : > { %v22657_v50 = vpop.eup %22656 }
 0x822   : > { %v22659_v6 = vpop.eup %22658  ;;  %v4812_v8 = vadd.f32 1.0, %v22657_v50  ;;  %v21883_v50 = vld [vmem:[%s26482_s16 + $0x10] sm:$0xff]  }
 0x823   : > { %v22661_v40 = vpop.eup %22660  ;;  %v4810_v15 = vadd.f32 1.0, %v22659_v6  ;;  %v21884_v6 = vld [vmem:[%s26482_s16 + $0x58] sm:$0xff]  }
 0x824   : > { %v22663_v5 = vpop.eup %22662  ;;  %v4813_v10 = vadd.f32 1.0, %v22661_v40  ;;  %22672 = vrcp.f32 %v4812_v8  ;;  %v21885_v8 = vld [vmem:[%s26482_s16 + $0x18] sm:$0xff]   ;;  %v21886_v40 = vld [vmem:[%s26482_s16 + $0x60] sm:$0xff]  }
 0x825   : > { %v22665_v11 = vpop.eup %22664 }
 0x826   : > { %v22667_v14 = vpop.eup %22666  ;;  %22674 = vrcp.f32 %v4813_v10  ;;  %v21888_v10 = vld [vmem:[%s26482_s16 + $0xc0] sm:$0xff]  }
 0x827   : > { %v22669_v62 = vpop.eup %22668  ;;  %v24800_v29 = vpack.c.bf16 %v22667_v14, %v22663_v5  ;;  %22676 = vrcp.f32 %v4810_v15  ;;  %v21887_v5 = vld [vmem:[%s26482_s16 + $0x20] sm:$0xff]   ;;  %v21890_v14 = vld [vmem:[%s26482_s16 + $0x68] sm:$0xff]  }
 0x828   : > { %v22671_v3 = vpop.eup %22670  ;;  %v24802_v17 = vpack.c.bf16 %v22669_v62, %v22665_v11  ;;  %v21889_v11 = vld [vmem:[%s26482_s16 + $0x80] sm:$0xff]   ;;  %v21892_v15 = vld [vmem:[%s26482_s16 + $0xc8] sm:$0xff]  }
 0x829   : > { %v4811_v18 = vadd.f32 1.0, %v22671_v3  ;;  %v21891_v62 = vld [vmem:[%s26482_s16 + $0x28] sm:$0xff]  }
 0x82a   : > { %20366 = vmatprep.mubr.bf16.mxu1 %v24802_v17  ;;  %v21893_v3 = vld [vmem:[%s26482_s16 + $0x88] sm:$0xff]  }
 0x82b   : > { %22678 = vrcp.f32 %v4811_v18  ;;  %20367 = vmatmul.mubr.bf16.vlgmr.msra.gmra.mrb[72].mxu1 %v24800_v29  ;;  %v21894_v18 = vld [vmem:[%s26482_s16 + $0x70] sm:$0xff]  }
 0x82e   : > { %v22673_v19 = vpop.eup %22672 }
 0x830   : > { %v22675_v21 = vpop.eup %22674 }
 0x831   : > { %v24806_v38 = vpack.c.bf16 %v22675_v21, %v22673_v19  ;;  %v22677_v42 = vpop.eup %22676  ;;  %v21896_v19 = vld [vmem:[%s26482_s16 + $0xd0] sm:$0xff]  }
 0x832   : > { %v21895_v21 = vld [vmem:[%s26482_s16 + $0x30] sm:$0xff]  }
 0x835   : > { %v22679_v44 = vpop.eup %22678 }
 0x836   : > { %v24808_v41 = vpack.c.bf16 %v22679_v44, %v22677_v42  ;;  %v21897_v42 = vld [vmem:[%s26482_s16 + $0x90] sm:$0xff]   ;;  %v21898_v44 = vld [vmem:[%s26482_s16 + $0x78] sm:$0xff]  }
 0x838   : > { %20370 = vmatprep.mubr.bf16.mxu1 %v24808_v41 }
 0x839   : > { %20371 = vmatmul.mubr.bf16.gmra.mrb[76].mxu1 %v24806_v38 }
 0x83a   : > { %20406 = vmatprep.mubr.msk.bf16.mxu1 %vm23618_vm1, %v23617_v49 }
 0x8fe   : > { %v20368_v22 = vpop.f32.mrb[72].mxu1 }
 0x8ff   : > { %v5118_v55 = vadd.f32 %v20368_v22, %v17774_v51  ;;  %v5109_v61 = vpop.f32.mrb[73].mxu1  ;;  %v21900_v22 = vld [vmem:[%s26482_s16 + $0xd8] sm:$0xff]  }
 0x900   : > { %v5110_v0 = vadd.f32 %v17774_v51, %v5109_v61  ;;  %v20369_v27 = vpop.f32.mrb[74].mxu1  ;;  %v21902_v61 = vld [vmem:[%s26482_s16 + $0x140] sm:$0xff]  }
 0x901   : > { %v5121_v33 = vadd.f32 %v20369_v27, %v17774_v51  ;;  %v5112_v28 = vpop.f32.mrb[75].mxu1  ;;  %v5142_v36 = vmax.f32 %v5118_v55, 0.0  ;;  %v21901_v55 = vld [vmem:[%s26482_s16 + $0x98] sm:$0xff]   ;;  %v21905_v27 = vld [vmem:[%s26482_s16 + $0xa0] sm:$0xff]  }
 0x902   : > { %v5113_v34 = vadd.f32 %v17774_v51, %v5112_v28  ;;  %v5140_v39 = vmax.f32 %v5110_v0, 0.0  ;;  %v21903_v0 = vld [vmem:[%s26482_s16 + $0xe0] sm:$0xff]   ;;  %v21909_v28 = vld [vmem:[%s26482_s16 + $0xa8] sm:$0xff]  }
 0x903   : > { %v5143_v35 = vmax.f32 %v5121_v33, 0.0  ;;  %v21907_v33 = vld [vmem:[%s26482_s16 + $0xe8] sm:$0xff]  }
 0x904   : > { %v5141_v43 = vmax.f32 %v5113_v34, 0.0  ;;  %v21911_v34 = vld [vmem:[%s26482_s16 + $0xf0] sm:$0xff]  }
 0x905   : > { %v24819_v46 = vpack.c.bf16 %v5143_v35, %v5142_v36  ;;  %v21913_v36 = vld [vmem:[%s26482_s16 + $0xb0] sm:$0xff]   ;;  %v21915_v35 = vld [vmem:[%s26482_s16 + $0xf8] sm:$0xff]  }
 0x906   : > { %v24821_v52 = vpack.c.bf16 %v5141_v43, %v5140_v39  ;;  %v21917_v39 = vld [vmem:[%s26482_s16 + $0xb8] sm:$0xff]   ;;  %v21920_v43 = vld [vmem:[%s26482_s16 + $0x1c0] sm:$0xff]  }
 0x908   : > { %20375 = vmatpush3.bf16.msra.mxu0 %v24821_v52  ;;  %20399 = vmatpush3.bf16.msra.mxu1 %v24821_v52 }
 0x909   : > { %20376 = vmatprep.subr.bf16.mxu0 %v23617_v49  ;;  %20400 = vmatprep.subr.bf16.mxu1 %v23617_v49 }
 0x90c   : > { %v20372_v53 = vpop.f32.mrb[76].mxu1  ;;  %20377 = vmatpush3.bf16.msra.mxu0 %v24819_v46  ;;  %20401 = vmatpush3.bf16.msra.mxu1 %v24819_v46 }
 0x90d   : > { %v5134_v57 = vadd.f32 %v20372_v53, %v17774_v51  ;;  %v5125_v60 = vpop.f32.mrb[77].mxu1  ;;  %20378 = vmatprep.subr.bf16.mxu0 %v23617_v49  ;;  %20402 = vmatprep.subr.bf16.mxu1 %v23617_v49 }
 0x90e   : > { %v5126_v54 = vadd.f32 %v17774_v51, %v5125_v60  ;;  %v20373_v56 = vpop.f32.mrb[78].mxu1 }
 0x90f   : > { %v5137_v58 = vadd.f32 %v20373_v56, %v17774_v51  ;;  %v5128_v59 = vpop.f32.mrb[79].mxu1  ;;  %v5146_v1 = vmax.f32 %v5134_v57, 0.0 }
 0x910   : > { %v5129_v63 = vadd.f32 %v17774_v51, %v5128_v59  ;;  %v5144_v31 = vmax.f32 %v5126_v54, 0.0  ;;  %v21899_v51 = vld [vmem:[%s26482_s16 + $0x38] sm:$0xff]  }
 0x911   : > { %v5147_v23 = vmax.f32 %v5137_v58, 0.0 }
 0x912   : > { %v5145_v24 = vmax.f32 %v5129_v63, 0.0 }
 0x913   : > { %v24831_v7 = vpack.c.bf16 %v5147_v23, %v5146_v1 }
 0x914   : > { %v24833_v13 = vpack.c.bf16 %v5145_v24, %v5144_v31 }
 0x916   : > { %20379 = vmatpush3.bf16.msra.mxu0 %v24833_v13  ;;  %20403 = vmatpush3.bf16.msra.mxu1 %v24833_v13 }
 0x917   : > { %20380 = vmatprep.subr.bf16.mxu0 %v23617_v49  ;;  %20404 = vmatprep.subr.bf16.mxu1 %v23617_v49 }
 0x91a   : > { %20381 = vmatpush3.bf16.msra.mxu0 %v24831_v7  ;;  %20405 = vmatpush3.bf16.msra.mxu1 %v24831_v7 }
 0x91b   : > { %20386 = vmatprep.subr.bf16.mxu0 %v23617_v49  ;;  %20422 = vmatprep.subr.bf16.mxu1 %v23617_v49 }
 0x91d   : > { %20383 = vmatmul.mubr.msk.bf16.vlgmr.msra.gmra.mrb[96].mxu0 %vm2902_vm0, %v21869_v16  ;;  %20407 = vmatmul.mubr.msk.bf16.vlgmr.msra.gmra.mrb[80].mxu1 %vm2902_vm0, %v21870_v37 }
 0x91e   : > { %20387 = vmatpush3.bf16.msra.mxu0 %v24821_v52  ;;  %20423 = vmatpush3.bf16.msra.mxu1 %v24821_v52 }
 0x91f   : > { %20388 = vmatprep.subr.bf16.mxu0 %v23617_v49  ;;  %20424 = vmatprep.subr.bf16.mxu1 %v23617_v49 }
 0x920   : > { %20394 = vmatprep.mubr.msk.bf16.mxu0 %vm23618_vm1, %v23617_v49  ;;  %20430 = vmatprep.mubr.msk.bf16.mxu1 %vm23618_vm1, %v23617_v49 }
 0x922   : > { %20389 = vmatpush3.bf16.msra.mxu0 %v24819_v46  ;;  %20425 = vmatpush3.bf16.msra.mxu1 %v24819_v46 }
 0x923   : > { %20390 = vmatprep.subr.bf16.mxu0 %v23617_v49  ;;  %20426 = vmatprep.subr.bf16.mxu1 %v23617_v49 }
 0x926   : > { %20391 = vmatpush3.bf16.msra.mxu0 %v24833_v13  ;;  %20427 = vmatpush3.bf16.msra.mxu1 %v24833_v13 }
 0x927   : > { %20392 = vmatprep.subr.bf16.mxu0 %v23617_v49  ;;  %20428 = vmatprep.subr.bf16.mxu1 %v23617_v49 }
 0x92a   : > { %20393 = vmatpush3.bf16.msra.mxu0 %v24831_v7  ;;  %20429 = vmatpush3.bf16.msra.mxu1 %v24831_v7 }
 0x92b   : > { %20410 = vmatprep.subr.bf16.mxu0 %v23617_v49  ;;  %20446 = vmatprep.subr.bf16.mxu1 %v23617_v49 }
 0x92d   : > { %20395 = vmatmul.mubr.msk.bf16.vlgmr.msra.gmra.mrb[100].mxu0 %vm2902_vm0, %v21871_v2  ;;  %20431 = vmatmul.mubr.msk.bf16.vlgmr.msra.gmra.mrb[84].mxu1 %vm2902_vm0, %v24865_v45  ;;  %v21904_v2 = vld [vmem:[%s26482_s16 + $0x100] sm:$0xff]  }
 0x92e   : > { %20411 = vmatpush3.bf16.msra.mxu0 %v24821_v52  ;;  %20447 = vmatpush3.bf16.msra.mxu1 %v24821_v52 }
 0x92f   : > { %20412 = vmatprep.subr.bf16.mxu0 %v23617_v49  ;;  %20448 = vmatprep.subr.bf16.mxu1 %v23617_v49 }
 0x930   : > { %20418 = vmatprep.mubr.msk.bf16.mxu0 %vm23618_vm1, %v23617_v49  ;;  %20454 = vmatprep.mubr.msk.bf16.mxu1 %vm23618_vm1, %v23617_v49 }
 0x932   : > { %20413 = vmatpush3.bf16.msra.mxu0 %v24819_v46  ;;  %20449 = vmatpush3.bf16.msra.mxu1 %v24819_v46 }
 0x933   : > { %20414 = vmatprep.subr.bf16.mxu0 %v23617_v49  ;;  %20450 = vmatprep.subr.bf16.mxu1 %v23617_v49 }
 0x936   : > { %20415 = vmatpush3.bf16.msra.mxu0 %v24833_v13  ;;  %20451 = vmatpush3.bf16.msra.mxu1 %v24833_v13 }
 0x937   : > { %20416 = vmatprep.subr.bf16.mxu0 %v23617_v49  ;;  %20452 = vmatprep.subr.bf16.mxu1 %v23617_v49 }
 0x93a   : > { %20417 = vmatpush3.bf16.msra.mxu0 %v24831_v7  ;;  %20453 = vmatpush3.bf16.msra.mxu1 %v24831_v7 }
 0x93b   : > { %20434 = vmatprep.subr.bf16.mxu0 %v23617_v49  ;;  %20470 = vmatprep.subr.bf16.mxu1 %v23617_v49 }
 0x93d   : > { %20419 = vmatmul.mubr.msk.bf16.vlgmr.msra.gmra.mrb[104].mxu0 %vm2902_vm0, %v21873_v25  ;;  %20455 = vmatmul.mubr.msk.bf16.vlgmr.msra.gmra.mrb[88].mxu1 %vm2902_vm0, %v21874_v47 }
 0x93e   : > { %20435 = vmatpush3.bf16.msra.mxu0 %v24821_v52  ;;  %20471 = vmatpush3.bf16.msra.mxu1 %v24821_v52 }
 0x93f   : > { %20436 = vmatprep.subr.bf16.mxu0 %v23617_v49  ;;  %20472 = vmatprep.subr.bf16.mxu1 %v23617_v49 }
 0x940   : > { %20442 = vmatprep.mubr.msk.bf16.mxu0 %vm23618_vm1, %v23617_v49  ;;  %20478 = vmatprep.mubr.msk.bf16.mxu1 %vm23618_vm1, %v23617_v49 }
 0x942   : > { %20437 = vmatpush3.bf16.msra.mxu0 %v24819_v46  ;;  %20473 = vmatpush3.bf16.msra.mxu1 %v24819_v46 }
 0x943   : > { %20438 = vmatprep.subr.bf16.mxu0 %v23617_v49  ;;  %20474 = vmatprep.subr.bf16.mxu1 %v23617_v49 }
 0x946   : > { %20439 = vmatpush3.bf16.msra.mxu0 %v24833_v13  ;;  %20475 = vmatpush3.bf16.msra.mxu1 %v24833_v13 }
 0x947   : > { %20440 = vmatprep.subr.bf16.mxu0 %v23617_v49  ;;  %20476 = vmatprep.subr.bf16.mxu1 %v23617_v49 }
 0x94a   : > { %20441 = vmatpush3.bf16.msra.mxu0 %v24831_v7  ;;  %20477 = vmatpush3.bf16.msra.mxu1 %v24831_v7 }
 0x94b   : > { %20458 = vmatprep.subr.bf16.mxu0 %v23617_v49  ;;  %19077 = vmatprep.subr.bf16.mxu1 %v21888_v10 }
 0x94d   : > { %20443 = vmatmul.mubr.msk.bf16.vlgmr.msra.gmra.mrb[108].mxu0 %vm2902_vm0, %v21875_v32  ;;  %20479 = vmatmul.mubr.msk.bf16.vlgmr.msra.gmra.mrb[92].mxu1 %vm2902_vm0, %v21877_v20  ;;  %v21906_v32 = vld [vmem:[%s26482_s16 + $0x148] sm:$0xff]  }
 0x94e   : > { %20459 = vmatpush3.bf16.msra.mxu0 %v24821_v52  ;;  %20466 = vmatprep.mubr.msk.bf16.mxu0 %vm23618_vm1, %v23617_v49  ;;  %v21908_v20 = vld [vmem:[%s26482_s16 + $0x108] sm:$0xff]  }
 0x94f   : > { %20460 = vmatprep.subr.bf16.mxu0 %v23617_v49  ;;  %19078 = vmatpush3.bf16.msra.mxu1 %v21889_v11 }
 0x950   : > { %19079 = vmatprep.subr.bf16.mxu1 %v21892_v15  ;;  %v21921_v15 = vld [vmem:[%s26482_s16 + $0x180] sm:$0xff]  }
 0x952   : > { %20461 = vmatpush3.bf16.msra.mxu0 %v24819_v46 }
 0x953   : > { %20462 = vmatprep.subr.bf16.mxu0 %v23617_v49  ;;  %19080 = vmatpush3.bf16.msra.mxu1 %v21893_v3 }
 0x954   : > { %19081 = vmatprep.subr.bf16.mxu1 %v21896_v19  ;;  %v21924_v19 = vld [vmem:[%s26482_s16 + $0x1c8] sm:$0xff]  }
 0x956   : > { %20463 = vmatpush3.bf16.msra.mxu0 %v24833_v13 }
 0x957   : > { %20464 = vmatprep.subr.bf16.mxu0 %v23617_v49  ;;  %19082 = vmatpush3.bf16.msra.mxu1 %v21897_v42  ;;  %v21925_v42 = vld [vmem:[%s26482_s16 + $0x188] sm:$0xff]  }
 0x958   : > { %19083 = vmatprep.subr.bf16.mxu1 %v21900_v22  ;;  %v21927_v22 = vld [vmem:[%s26482_s16 + $0x130] sm:$0xff]  }
 0x95a   : > { %20465 = vmatpush3.bf16.msra.mxu0 %v24831_v7 }
 0x95b   : > { %19055 = vmatprep.subr.bf16.mxu0 %v21878_v4  ;;  %19084 = vmatpush3.bf16.msra.mxu1 %v21901_v55  ;;  %v21910_v4 = vld [vmem:[%s26482_s16 + $0x150] sm:$0xff]  }
 0x95c   : > { %19085 = vmatprep.subr.bf16.mxu1 %v21903_v0  ;;  %v21929_v55 = vld [vmem:[%s26482_s16 + $0x190] sm:$0xff]   ;;  %v21932_v0 = vld [vmem:[%s26482_s16 + $0x1d8] sm:$0xff]  }
 0x95d   : > { %20467 = vmatmul.mubr.msk.bf16.vlgmr.msra.gmra.mrb[112].mxu0 %vm2902_vm0, %v21876_v48  ;;  %v21912_v48 = vld [vmem:[%s26482_s16 + $0x110] sm:$0xff]  }
 0x95e   : > { %19056 = vmatpush3.bf16.msra.mxu0 %v21879_v9  ;;  %v21914_v9 = vld [vmem:[%s26482_s16 + $0x158] sm:$0xff]  }
 0x95f   : > { %19057 = vmatprep.subr.bf16.mxu0 %v21880_v12  ;;  %19086 = vmatpush3.bf16.msra.mxu1 %v21905_v27  ;;  %v21916_v12 = vld [vmem:[%s26482_s16 + $0x118] sm:$0xff]  }
 0x960   : > { %19087 = vmatprep.subr.bf16.mxu1 %v21907_v33  ;;  %v21931_v27 = vld [vmem:[%s26482_s16 + $0x138] sm:$0xff]  }
 0x961   : > { %v21933_v33 = vld [vmem:[%s26482_s16 + $0x198] sm:$0xff]  }
 0x962   : > { %19058 = vmatpush3.bf16.msra.mxu0 %v21881_v26 }
 0x963   : > { %19059 = vmatprep.subr.bf16.mxu0 %v21882_v30  ;;  %19088 = vmatpush3.bf16.msra.mxu1 %v21909_v28  ;;  %v21918_v30 = vld [vmem:[%s26482_s16 + $0x160] sm:$0xff]  }
 0x964   : > { %19089 = vmatprep.subr.bf16.mxu1 %v21911_v34  ;;  %v21934_v34 = vld [vmem:[%s26482_s16 + $0x1e0] sm:$0xff]  }
 0x966   : > { %19060 = vmatpush3.bf16.msra.mxu0 %v21883_v50 }
 0x967   : > { %19061 = vmatprep.subr.bf16.mxu0 %v21884_v6  ;;  %19090 = vmatpush3.bf16.msra.mxu1 %v21913_v36 }
 0x968   : > { %19091 = vmatprep.subr.bf16.mxu1 %v21915_v35 }
 0x96a   : > { %19062 = vmatpush3.bf16.msra.mxu0 %v21885_v8 }
 0x96b   : > { %19063 = vmatprep.subr.bf16.mxu0 %v21886_v40  ;;  %19092 = vmatpush3.bf16.msra.mxu1 %v21917_v39 }
 0x96c   : > { %19121 = vmatprep.subr.bf16.mxu1 %v21920_v43 }
 0x96e   : > { %19064 = vmatpush3.bf16.msra.mxu0 %v21887_v5 }
 0x96f   : > { %19065 = vmatprep.subr.bf16.mxu0 %v21890_v14  ;;  %v21919_v14 = vld [vmem:[%s26482_s16 + $0x120] sm:$0xff]  }
 0x972   : > { %19066 = vmatpush3.bf16.msra.mxu0 %v21891_v62 }
 0x973   : > { %19067 = vmatprep.subr.bf16.mxu0 %v21894_v18  ;;  %v21922_v18 = vld [vmem:[%s26482_s16 + $0x168] sm:$0xff]  }
 0x976   : > { %19068 = vmatpush3.bf16.msra.mxu0 %v21895_v21  ;;  %v21923_v21 = vld [vmem:[%s26482_s16 + $0x128] sm:$0xff]  }
 0x977   : > { %19069 = vmatprep.subr.bf16.mxu0 %v21898_v44  ;;  %v21926_v44 = vld [vmem:[%s26482_s16 + $0x170] sm:$0xff]  }
 0x97a   : > { %19070 = vmatpush3.bf16.msra.mxu0 %v21899_v51  ;;  %v21928_v51 = vld [vmem:[%s26482_s16 + $0x1d0] sm:$0xff]  }
 0x97b   : > { %19099 = vmatprep.subr.bf16.mxu0 %v21902_v61  ;;  %v21930_v61 = vld [vmem:[%s26482_s16 + $0x178] sm:$0xff]  }
 0x9f0   : > { %v5196_v46 = vpop.f32.mrb[96].mxu0  ;;  %v5300_v52 = vpop.f32.mrb[80].mxu1 }
 0x9f1   : > { %v20384_v53 = vpop.f32.mrb[97].mxu0  ;;  %v20408_v57 = vpop.f32.mrb[81].mxu1 }
 0x9f2   : > { %v5199_v60 = vpop.f32.mrb[98].mxu0  ;;  %v5303_v54 = vpop.f32.mrb[82].mxu1  ;;  %v21935_v57 = vld [vmem:[%s26482_s16 + $0x200] sm:$0xff]  }
 0x9f3   : > { %v5619_v56 = vpack.c.bf16 %v5199_v60, %v5196_v46  ;;  %v20385_v58 = vpop.f32.mrb[99].mxu0  ;;  %v5621_v59 = vpack.c.bf16 %v5303_v54, %v5300_v52  ;;  %v20409_v63 = vpop.f32.mrb[83].mxu1  ;;  %v21936_v60 = vld [vmem:[%s26482_s16 + $0x1a0] sm:$0xff]  }
 0x9f4   : > { %v21937_v58 = vld [vmem:[%s26482_s16 + $0x1e8] sm:$0xff]  }
 0x9f5   : > { %v21939_v63 = vld [vmem:[%s26482_s16 + $0x1a8] sm:$0xff]  }
 0xa00   : > { %v5248_v1 = vpop.f32.mrb[100].mxu0  ;;  %v24966_v23 = vpop.f32.mrb[84].mxu1 }
 0xa01   : > { %v20396_v31 = vpop.f32.mrb[101].mxu0  ;;  %v20432_v24 = vpop.f32.mrb[85].mxu1 }
 0xa02   : > { %v5251_v7 = vpop.f32.mrb[102].mxu0  ;;  %v24968_v13 = vpop.f32.mrb[86].mxu1  ;;  %v21941_v31 = vld [vmem:[%s26482_s16 + $0x210] sm:$0xff]  }
 0xa03   : > { %v5620_v16 = vpack.c.bf16 %v5251_v7, %v5248_v1  ;;  %v20397_v37 = vpop.f32.mrb[103].mxu0  ;;  %v5623_v25 = vpack.c.bf16 %v24968_v13, %v24966_v23  ;;  %v20433_v47 = vpop.f32.mrb[87].mxu1  ;;  %v21940_v1 = vld [vmem:[%s26482_s16 + $0x1f0] sm:$0xff]   ;;  %v21943_v23 = vld [vmem:[%s26482_s16 + $0x1f8] sm:$0xff]  }
 0xa04   : > { %v21942_v24 = vld [vmem:[%s26482_s16 + $0x1b0] sm:$0xff]   ;;  %v21944_v7 = vld [vmem:[%s26482_s16 + $0x218] sm:$0xff]   ;;  %v21946_v47 = vld [vmem:[%s26482_s16 + $0x220] sm:$0xff]  }
 0xa05   : > { %6098 = vmatprep.mubr.bf16.mxu0 %v5620_v16  ;;  %v21945_v13 = vld [vmem:[%s26482_s16 + $0x1b8] sm:$0xff]  }
 0xa06   : > { %6099 = vmatmul.mubr.bf16.vlgmr.msra.gmra.mrb[116].mxu0 %v5619_v56 }
 0xa07   : > { %19100 = vmatpush3.bf16.msra.mxu0 %v21904_v2 }
 0xa08   : > { %19101 = vmatprep.subr.bf16.mxu0 %v21906_v32 }
 0xa0b   : > { %19102 = vmatpush3.bf16.msra.mxu0 %v21908_v20  ;;  %v21947_v20 = vld [vmem:[%s26482_s16 + $0x228] sm:$0xff]  }
 0xa0c   : > { %19103 = vmatprep.subr.bf16.mxu0 %v21910_v4  ;;  %v21948_v4 = vld [vmem:[%s26482_s16 + $0x230] sm:$0xff]  }
 0xa0f   : > { %19104 = vmatpush3.bf16.msra.mxu0 %v21912_v48  ;;  %v21949_v48 = vld [vmem:[%s26482_s16 + $0x238] sm:$0xff]  }
 0xa10   : > { %v5352_v26 = vpop.f32.mrb[104].mxu0  ;;  %19105 = vmatprep.subr.bf16.mxu0 %v21914_v9  ;;  %v24980_v50 = vpop.f32.mrb[88].mxu1  ;;  %v21951_v9 = vld [vmem:[#allocation6 + $0x8] sm:$0xff]  }
 0xa11   : > { %v20420_v6 = vpop.f32.mrb[105].mxu0  ;;  %v20456_v8 = vpop.f32.mrb[89].mxu1 }
 0xa12   : > { %v5355_v40 = vpop.f32.mrb[106].mxu0  ;;  %v24982_v5 = vpop.f32.mrb[90].mxu1 }
 0xa13   : > { %v5622_v10 = vpack.c.bf16 %v5355_v40, %v5352_v26  ;;  %19106 = vmatpush3.bf16.msra.mxu0 %v21916_v12  ;;  %v20421_v11 = vpop.f32.mrb[107].mxu0  ;;  %v5625_v62 = vpack.c.bf16 %v24982_v5, %v24980_v50  ;;  %v20457_v3 = vpop.f32.mrb[91].mxu1  ;;  %v21956_v12 = vld [vmem:[#allocation6 + $0x30] sm:$0xff]   ;;  %v21957_v26 = vld [vmem:[#allocation6 + $0x38] sm:$0xff]  }
 0xa14   : > { %19107 = vmatprep.subr.bf16.mxu0 %v21918_v30 }
 0xa15   : > { %6139 = vmatprep.mubr.bf16.mxu1 %v5622_v10  ;;  %v17817_v10 = vld [vmem:[%s26483_s15] ss:$0 sm:$0xff]  ;;  %s26489_s15 = sld [smem:[#allocation76_spill]] }
 0xa16   : > { %6140 = vmatmul.mubr.bf16.vlgmr.msra.gmra.mrb[96].mxu1 %v5621_v59  ;;  %v21938_v59 = vld [vmem:[%s26482_s16 + $0x208] sm:$0xff]  }
 0xa17   : > { %19108 = vmatpush3.bf16.msra.mxu0 %v21919_v14  ;;  %19122 = vmatpush3.bf16.msra.mxu1 %v21921_v15 }
 0xa18   : > { %19109 = vmatprep.subr.bf16.mxu0 %v21922_v18  ;;  %19123 = vmatprep.subr.bf16.mxu1 %v21924_v19 }
 0xa1b   : > { %19110 = vmatpush3.bf16.msra.mxu0 %v21923_v21  ;;  %19124 = vmatpush3.bf16.msra.mxu1 %v21925_v42 }
 0xa1c   : > { %19111 = vmatprep.subr.bf16.mxu0 %v21926_v44  ;;  %19125 = vmatprep.subr.bf16.mxu1 %v21928_v51 }
 0xa1f   : > { %19112 = vmatpush3.bf16.msra.mxu0 %v21927_v22  ;;  %19126 = vmatpush3.bf16.msra.mxu1 %v21929_v55 }
 0xa20   : > { %v5456_v28 = vpop.f32.mrb[108].mxu0  ;;  %19113 = vmatprep.subr.bf16.mxu0 %v21930_v61  ;;  %19127 = vmatprep.subr.bf16.mxu1 %v21932_v0  ;;  %v25001_v36 = vpop.f32.mrb[92].mxu1 }
 0xa21   : > { %v20444_v35 = vpop.f32.mrb[109].mxu0  ;;  %v20480_v39 = vpop.f32.mrb[93].mxu1 }
 0xa22   : > { %v5459_v43 = vpop.f32.mrb[110].mxu0  ;;  %v5615_v46 = vpop.f32.mrb[94].mxu1 }
 0xa23   : > { %v5624_v52 = vpack.c.bf16 %v5459_v43, %v5456_v28  ;;  %19114 = vmatpush3.bf16.msra.mxu0 %v21931_v27  ;;  %v20445_v53 = vpop.f32.mrb[111].mxu0  ;;  %19128 = vmatpush3.bf16.msra.mxu1 %v21933_v33  ;;  %v5627_v54 = vpack.c.bf16 %v5615_v46, %v25001_v36  ;;  %v20481_v56 = vpop.f32.mrb[95].mxu1 }
 0xa24   : > { %20482 = vmatprep.subr.bf16.mxu0 %v23617_v49  ;;  %19129 = vmatprep.subr.bf16.mxu1 %v21934_v34 }
 0xa25   : > { %6180 = vmatprep.mubr.bf16.mxu0 %v5624_v52 }
 0xa26   : > { %6181 = vmatmul.mubr.bf16.vlgmr.msra.gmra.mrb[120].mxu0 %v5623_v25 }
 0xa27   : > { %20483 = vmatpush3.bf16.msra.mxu0 %v21935_v57  ;;  %19130 = vmatpush3.bf16.msra.mxu1 %v21936_v60 }
 0xa28   : > { %20484 = vmatprep.subr.bf16.mxu0 %v23617_v49  ;;  %19131 = vmatprep.subr.bf16.mxu1 %v21937_v58 }
 0xa29   : > { %20498 = vmatprep.mubr.msk.bf16.mxu0 %vm23618_vm1, %v23617_v49 }
 0xa2b   : > { %20485 = vmatpush3.bf16.msra.mxu0 %v21938_v59  ;;  %19132 = vmatpush3.bf16.msra.mxu1 %v21939_v63 }
 0xa2c   : > { %20486 = vmatprep.subr.bf16.mxu0 %v23617_v49  ;;  %19133 = vmatprep.subr.bf16.mxu1 %v21940_v1 }
 0xa2f   : > { %20487 = vmatpush3.bf16.msra.mxu0 %v21941_v31  ;;  %19134 = vmatpush3.bf16.msra.mxu1 %v21942_v24  ;;  %v21958_v31 = vld [vmem:[#allocation7] sm:$0xff]  }
 0xa30   : > { %v5560_v16 = vpop.f32.mrb[112].mxu0  ;;  %20488 = vmatprep.subr.bf16.mxu0 %v23617_v49  ;;  %19135 = vmatprep.subr.bf16.mxu1 %v21943_v23  ;;  %v21959_v23 = vld [vmem:[#allocation7 + $0x8] sm:$0xff]  }
 0xa31   : > { %v20468_v37 = vpop.f32.mrb[113].mxu0 }
 0xa32   : > { %v5563_v2 = vpop.f32.mrb[114].mxu0  ;;  %v21961_v37 = vld [vmem:[#allocation7 + $0x18] sm:$0xff]  }
 0xa33   : > { %v5626_v25 = vpack.c.bf16 %v5563_v2, %v5560_v16  ;;  %20489 = vmatpush3.bf16.msra.mxu0 %v21944_v7  ;;  %19136 = vmatpush3.bf16.msra.mxu1 %v21945_v13  ;;  %v20469_v32 = vpop.f32.mrb[115].mxu0  ;;  %v21960_v7 = vld [vmem:[#allocation7 + $0x10] sm:$0xff]  }
 0xa34   : > { %20490 = vmatprep.subr.bf16.mxu0 %v23617_v49  ;;  %20502 = vmatprep.subr.bf16.mxu1 %v23617_v49  ;;  %v21962_v32 = vld [vmem:[#allocation7 + $0x20] sm:$0xff]  }
 0xa35   : > { %6221 = vmatprep.mubr.bf16.mxu1 %v5626_v25 }
 0xa36   : > { %6222 = vmatmul.mubr.bf16.vlgmr.msra.gmra.mrb[100].mxu1 %v5625_v62 }
 0xa37   : > { %20491 = vmatpush3.bf16.msra.mxu0 %v21946_v47  ;;  %20518 = vmatprep.mubr.msk.bf16.mxu1 %vm23618_vm1, %v23617_v49 }
 0xa38   : > { %20492 = vmatprep.subr.bf16.mxu0 %v23617_v49 }
 0xa3b   : > { %20493 = vmatpush3.bf16.msra.mxu0 %v21947_v20  ;;  %v21963_v20 = vld [vmem:[#allocation7 + $0x28] sm:$0xff]  }
 0xa3c   : > { %20494 = vmatprep.subr.bf16.mxu0 %v23617_v49 }
 0xa3f   : > { %20495 = vmatpush3.bf16.msra.mxu0 %v21948_v4  ;;  %v21964_v4 = vld [vmem:[#allocation7 + $0x30] sm:$0xff]  }
 0xa40   : > { %20496 = vmatprep.subr.bf16.mxu0 %v23617_v49 }
 0xa43   : > { %20497 = vmatpush3.bf16.msra.mxu0 %v21949_v48  ;;  %v21965_v48 = vld [vmem:[#allocation7 + $0x38] sm:$0xff]  }
 0xa44   : > { %20522 = vmatprep.subr.bf16.mxu0 %v23617_v49 }
 0xa46   : > { %20499 = vmatmul.mubr.bf16.vlgmr.msra.gmra.mrb[124].mxu0 %v5627_v54 }
 0xa47   : > { %20523 = vmatpush3.bf16.msra.mxu0 %v24802_v17  ;;  %20530 = vmatprep.mubr.msk.bf16.mxu0 %vm23618_vm1, %v23617_v49  ;;  %v21950_v17 = vld [vmem:[#allocation6] sm:$0xff]  }
 0xa48   : > { %20524 = vmatprep.subr.bf16.mxu0 %v23617_v49  ;;  %20503 = vmatpush3.bf16.msra.mxu1 %v21950_v17  ;;  %v21966_v17 = vld [vmem:[%s26484_s1] sm:$0xff]  }
 0xa49   : > { %20504 = vmatprep.subr.bf16.mxu1 %v23617_v49 }
 0xa4b   : > { %20525 = vmatpush3.bf16.msra.mxu0 %v24800_v29  ;;  %v21952_v29 = vld [vmem:[#allocation6 + $0x10] sm:$0xff]  }
 0xa4c   : > { %20526 = vmatprep.subr.bf16.mxu0 %v23617_v49  ;;  %20505 = vmatpush3.bf16.msra.mxu1 %v21951_v9  ;;  %v21967_v9 = vld [vmem:[%s26484_s1 + $0x8] sm:$0xff]  }
 0xa4d   : > { %20506 = vmatprep.subr.bf16.mxu1 %v23617_v49 }
 0xa4f   : > { %20527 = vmatpush3.bf16.msra.mxu0 %v24808_v41  ;;  %v21954_v41 = vld [vmem:[#allocation6 + $0x20] sm:$0xff]  }
 0xa50   : > { %20528 = vmatprep.subr.bf16.mxu0 %v23617_v49  ;;  %20507 = vmatpush3.bf16.msra.mxu1 %v21952_v29  ;;  %v21968_v29 = vld [vmem:[%s26484_s1 + $0x10] sm:$0xff]  }
 0xa51   : > { %20508 = vmatprep.subr.bf16.mxu1 %v23617_v49 }
 0xa53   : > { %20529 = vmatpush3.bf16.msra.mxu0 %v24806_v38  ;;  %v21953_v38 = vld [vmem:[#allocation6 + $0x18] sm:$0xff]  }
 0xa54   : > { %20554 = vmatprep.subr.bf16.mxu0 %v23617_v49  ;;  %20509 = vmatpush3.bf16.msra.mxu1 %v21953_v38  ;;  %v21969_v38 = vld [vmem:[%s26484_s1 + $0x18] sm:$0xff]  }
 0xa55   : > { %20510 = vmatprep.subr.bf16.mxu1 %v23617_v49 }
 0xa56   : > { %20531 = vmatmul.mubr.msk.bf16.vlgmr.msra.gmra.mrb[128].mxu0 %vm2902_vm0, %v24865_v45  ;;  %v21955_v45 = vld [vmem:[#allocation6 + $0x28] sm:$0xff]  }
 0xa57   : > { %20570 = vmatprep.mubr.msk.bf16.mxu0 %vm23618_vm1, %v23617_v49  ;;  %20555 = vmatpush3.bf16.msra.mxu0 %v21966_v17  ;;  %v21999_v17 = vld [vmem:[%s26488_s17 + $0x68] sm:$0xff]  }
 0xa58   : > { %20511 = vmatpush3.bf16.msra.mxu1 %v21954_v41  ;;  %20556 = vmatprep.subr.bf16.mxu0 %v23617_v49  ;;  %v21970_v41 = vld [vmem:[%s26484_s1 + $0x20] sm:$0xff]  }
 0xa59   : > { %20512 = vmatprep.subr.bf16.mxu1 %v23617_v49 }
 0xa5b   : > { %20557 = vmatpush3.bf16.msra.mxu0 %v21967_v9  ;;  %v22000_v9 = vld [vmem:[%s26488_s17 + $0xd8] sm:$0xff]  }
 0xa5c   : > { %20513 = vmatpush3.bf16.msra.mxu1 %v21955_v45  ;;  %20558 = vmatprep.subr.bf16.mxu0 %v23617_v49  ;;  %v21971_v45 = vld [vmem:[%s26484_s1 + $0x28] sm:$0xff]  }
 0xa5d   : > { %20514 = vmatprep.subr.bf16.mxu1 %v23617_v49 }
 0xa5f   : > { %20559 = vmatpush3.bf16.msra.mxu0 %v21968_v29  ;;  %v22001_v29 = vld [vmem:[%s26488_s17 + $0x28] sm:$0xff]  }
 0xa60   : > { %20515 = vmatpush3.bf16.msra.mxu1 %v21956_v12  ;;  %20560 = vmatprep.subr.bf16.mxu0 %v23617_v49  ;;  %v21972_v12 = vld [vmem:[%s26484_s1 + $0x30] sm:$0xff]  }
 0xa61   : > { %20516 = vmatprep.subr.bf16.mxu1 %v23617_v49 }
 0xa63   : > { %20561 = vmatpush3.bf16.msra.mxu0 %v21969_v38  ;;  %v22002_v38 = vld [vmem:[%s26488_s17 + $0x98] sm:$0xff]  }
 0xa64   : > { %20517 = vmatpush3.bf16.msra.mxu1 %v21957_v26  ;;  %20562 = vmatprep.subr.bf16.mxu0 %v23617_v49  ;;  %v21973_v26 = vld [vmem:[%s26484_s1 + $0x38] sm:$0xff]   ;;  %s26496_s1 = sld [smem:[#allocation86_spill]] }
 0xa65   : > { %20534 = vmatprep.subr.bf16.mxu1 %v23617_v49 }
 0xa67   : > { %20563 = vmatpush3.bf16.msra.mxu0 %v21970_v41  ;;  %v22003_v41 = vld [vmem:[%s26488_s17 + $0x70] sm:$0xff]  }
 0xa68   : > { %20564 = vmatprep.subr.bf16.mxu0 %v23617_v49 }
 0xa6b   : > { %20565 = vmatpush3.bf16.msra.mxu0 %v21971_v45  ;;  %v22004_v45 = vld [vmem:[%s26488_s17 + $0xe0] sm:$0xff]  }
 0xa6c   : > { %20566 = vmatprep.subr.bf16.mxu0 %v23617_v49 }
 0xa6f   : > { %20567 = vmatpush3.bf16.msra.mxu0 %v21972_v12  ;;  %v22005_v12 = vld [vmem:[%s26488_s17 + $0x30] sm:$0xff]  }
 0xa70   : > { %20568 = vmatprep.subr.bf16.mxu0 %v23617_v49 }
 0xa73   : > { %20569 = vmatpush3.bf16.msra.mxu0 %v21973_v26  ;;  %v22006_v26 = vld [vmem:[%s26488_s17 + $0xa0] sm:$0xff]  }
 0xa74   : > { %20586 = vmatprep.subr.bf16.mxu0 %v23617_v49 }
 0xad9   : > { %v19071_v30 = vpop.f32.mrb[116].mxu0 }
 0xada   : > { %v19072_v50 = vpop.f32.mrb[117].mxu0 }
 0xadb   : > { %v19073_v6 = vadd.f32 %v19072_v50, %v19071_v30  ;;  %v19074_v8 = vpop.f32.mrb[118].mxu0  ;;  %v17890_v30 = vld [vmem:[%s26485_s5] ss:$0 sm:$0xff]  ;;  %s26490_s5 = sld [smem:[#allocation78_spill]] }
 0xadc   : > { %v19075_v40 = vpop.f32.mrb[119].mxu0 }
 0xadd   : > { %v19076_v5 = vadd.f32 %v19075_v40, %v19074_v8  ;;  %v6101_v15 = vadd.f32 %v19073_v6, %v17817_v10 }
 0xadf   : > { %v6104_v19 = vadd.f32 %v19076_v5, %v17817_v10 }
 0xae9   : > { %v19093_v11 = vpop.f32.mrb[96].mxu1 }
 0xaea   : > { %v19094_v14 = vpop.f32.mrb[97].mxu1 }
 0xaeb   : > { %v19095_v62 = vadd.f32 %v19094_v14, %v19093_v11  ;;  %v19096_v3 = vpop.f32.mrb[98].mxu1 }
 0xaec   : > { %v19097_v18 = vpop.f32.mrb[99].mxu1 }
 0xaed   : > { %v6142_v21 = vadd.f32 %v19095_v62, %v6101_v15  ;;  %v19098_v42 = vadd.f32 %v19097_v18, %v19096_v3 }
 0xaef   : > { %v6145_v44 = vadd.f32 %v19098_v42, %v6104_v19 }
 0xaf9   : > { %v19115_v51 = vpop.f32.mrb[120].mxu0 }
 0xafa   : > { %v19116_v22 = vpop.f32.mrb[121].mxu0 }
 0xafb   : > { %v19117_v55 = vadd.f32 %v19116_v22, %v19115_v51  ;;  %v19118_v61 = vpop.f32.mrb[122].mxu0 }
 0xafc   : > { %v19119_v0 = vpop.f32.mrb[123].mxu0 }
 0xafd   : > { %v6183_v27 = vadd.f32 %v19117_v55, %v6142_v21  ;;  %v19120_v33 = vadd.f32 %v19119_v0, %v19118_v61  ;;  %v17908_v61 = vld [vmem:[%s26486_s2] ss:$0 sm:$0xff]  ;;  %s26491_s2 = sld [smem:[#allocation80_spill]] }
 0xaff   : > { %v6186_v28 = vadd.f32 %v19120_v33, %v6145_v44 }
 0xb09   : > { %v19137_v34 = vpop.f32.mrb[100].mxu1 }
 0xb0a   : > { %v19138_v36 = vpop.f32.mrb[101].mxu1 }
 0xb0b   : > { %v19139_v35 = vadd.f32 %v19138_v36, %v19137_v34  ;;  %v19140_v39 = vpop.f32.mrb[102].mxu1 }
 0xb0c   : > { %v19141_v43 = vpop.f32.mrb[103].mxu1 }
 0xb0d   : > { %v19142_v46 = vadd.f32 %v19141_v43, %v19140_v39  ;;  %v6224_v52 = vadd.f32 %v19139_v35, %v6183_v27 }
 0xb0f   : > { %v6227_v53 = vadd.f32 %v19142_v46, %v6186_v28  ;;  %v21974_v46 = vld [vmem:[%s26487_s14] sm:$0xff]  }
 0xb19   : > { %v6264_v57 = vpop.f32.mrb[124].mxu0 }
 0xb1a   : > { %v6265_v60 = vadd.f32 %v6264_v57, %v6224_v52  ;;  %v20500_v54 = vpop.f32.mrb[125].mxu0  ;;  %v21975_v52 = vld [vmem:[%s26487_s14 + $0x10] sm:$0xff]   ;;  %v21977_v57 = vld [vmem:[%s26487_s14 + $0x20] sm:$0xff]  }
 0xb1b   : > { %v6267_v56 = vpop.f32.mrb[126].mxu0  ;;  %v21979_v54 = vld [vmem:[%s26487_s14 + $0x30] sm:$0xff]  }
 0xb1c   : > { %v6268_v58 = vadd.f32 %v6267_v56, %v6227_v53  ;;  %v20501_v59 = vpop.f32.mrb[127].mxu0  ;;  %v6271_v63 = vmax.f32 %v6265_v60, 0.0  ;;  %v21976_v53 = vld [vmem:[%s26487_s14 + $0x8] sm:$0xff]   ;;  %v21978_v60 = vld [vmem:[%s26487_s14 + $0x18] sm:$0xff]   ;;  %v21988_v56 = vld [vmem:[%s26488_s17 + $0xc0] sm:$0xff]  }
 0xb1d   : > { %v21982_v59 = vld [vmem:[%s26487_s14 + $0x40] sm:$0xff]  }
 0xb1e   : > { %v6272_v1 = vmax.f32 %v6268_v58, 0.0  ;;  %v21980_v58 = vld [vmem:[%s26487_s14 + $0x28] sm:$0xff]  }
 0xb20   : > { %v6273_v24 = vpack.c.bf16 %v6272_v1, %v6271_v63  ;;  %v21983_v63 = vld [vmem:[%s26488_s17 + $0x40] sm:$0xff]  }
 0xb21   : > { %v21990_v1 = vld [vmem:[%s26488_s17 + $0x80] sm:$0xff]  }
 0xb22   : > { %20519 = vmatmul.mubr.bf16.vlgmr.msra.gmra.mrb[104].mxu1 %v6273_v24  ;;  %v21994_v24 = vld [vmem:[%s26488_s17 + $0x88] sm:$0xff]  }
 0xb23   : > { %20535 = vmatpush3.bf16.msra.mxu1 %v21958_v31  ;;  %20550 = vmatprep.mubr.msk.bf16.mxu1 %vm23618_vm1, %v23617_v49  ;;  %v21992_v31 = vld [vmem:[%s26488_s17 + $0xc8] sm:$0xff]  }
 0xb24   : > { %20536 = vmatprep.subr.bf16.mxu1 %v23617_v49 }
 0xb27   : > { %20537 = vmatpush3.bf16.msra.mxu1 %v21959_v23  ;;  %v21996_v23 = vld [vmem:[%s26488_s17 + $0xd0] sm:$0xff]  }
 0xb28   : > { %20538 = vmatprep.subr.bf16.mxu1 %v23617_v49 }
 0xb29   : > { %v6403_v13 = vpop.f32.mrb[128].mxu0 }
 0xb2a   : > { %v20532_v16 = vpop.f32.mrb[129].mxu0 }
 0xb2b   : > { %20539 = vmatpush3.bf16.msra.mxu1 %v21960_v7  ;;  %v6406_v2 = vpop.f32.mrb[130].mxu0  ;;  %v21981_v7 = vld [vmem:[%s26487_s14 + $0x38] sm:$0xff]   ;;  %v21985_v16 = vld [vmem:[%s26488_s17 + $0x48] sm:$0xff]  }
 0xb2c   : > { %20540 = vmatprep.subr.bf16.mxu1 %v23617_v49  ;;  %v6410_v25 = vpack.c.bf16 %v6406_v2, %v6403_v13  ;;  %v20533_v47 = vpop.f32.mrb[131].mxu0  ;;  %v21984_v13 = vld [vmem:[%s26488_s17] sm:$0xff]   ;;  %v21986_v2 = vld [vmem:[%s26488_s17 + $0x8] sm:$0xff]  }
 0xb2d   : > { %v21989_v47 = vld [vmem:[%s26488_s17 + $0x10] sm:$0xff]  }
 0xb2f   : > { %20541 = vmatpush3.bf16.msra.mxu1 %v21961_v37  ;;  %v21998_v37 = vld [vmem:[%s26488_s17 + $0x90] sm:$0xff]  }
 0xb30   : > { %20542 = vmatprep.subr.bf16.mxu1 %v23617_v49 }
 0xb33   : > { %20543 = vmatpush3.bf16.msra.mxu1 %v21962_v32  ;;  %v21991_v32 = vld [vmem:[%s26488_s17 + $0x58] sm:$0xff]  }
 0xb34   : > { %20544 = vmatprep.subr.bf16.mxu1 %v23617_v49 }
 0xb37   : > { %20545 = vmatpush3.bf16.msra.mxu1 %v21963_v20  ;;  %v21993_v20 = vld [vmem:[%s26488_s17 + $0x18] sm:$0xff]  }
 0xb38   : > { %20546 = vmatprep.subr.bf16.mxu1 %v23617_v49 }
 0xb3b   : > { %20547 = vmatpush3.bf16.msra.mxu1 %v21964_v4  ;;  %v21995_v4 = vld [vmem:[%s26488_s17 + $0x60] sm:$0xff]  }
 0xb3c   : > { %20548 = vmatprep.subr.bf16.mxu1 %v23617_v49 }
 0xb3f   : > { %20549 = vmatpush3.bf16.msra.mxu1 %v21965_v48  ;;  %v21997_v48 = vld [vmem:[%s26488_s17 + $0x20] sm:$0xff]  }
 0xb40   : > { %20574 = vmatprep.subr.bf16.mxu1 %v23617_v49 }
 0xb42   : > { %20551 = vmatmul.mubr.bf16.vlgmr.msra.gmra.mrb[104].mxu1 %v6410_v25  ;;  %v21987_v25 = vld [vmem:[%s26488_s17 + $0x50] sm:$0xff]  }
 0xb43   : > { %20576 = vmatprep.mubr.msk.bf16.mxu1 %vm23618_vm1, %v23617_v49 }
 0xc15   : > { %v6493_v50 = vpop.f32.mrb[104].mxu1 }
 0xc16   : > { %v21364_v6 = vadd.f32 %v17890_v30, %v6493_v50  ;;  %v20552_v8 = vpop.f32.mrb[105].mxu1  ;;  %v22008_v50 = vld [vmem:[%s26488_s17 + $0xe8] sm:$0xff]  }
 0xc17   : > { %v6496_v40 = vpop.f32.mrb[106].mxu1  ;;  %v22010_v8 = vld [vmem:[%s26488_s17 + $0xa8] sm:$0xff]  }
 0xc18   : > { %v6502_v5 = vmax.f32 %v21364_v6, 0.0  ;;  %v21365_v10 = vadd.f32 %v17890_v30, %v6496_v40  ;;  %v20553_v11 = vpop.f32.mrb[107].mxu1  ;;  %v22007_v30 = vld [vmem:[%s26488_s17 + $0x78] sm:$0xff]   ;;  %v22011_v40 = vld [vmem:[%s26488_s17 + $0xf0] sm:$0xff]  }
 0xc19   : > { %v22009_v6 = vld [vmem:[%s26488_s17 + $0x38] sm:$0xff]  }
 0xc1a   : > { %v6504_v14 = vsub.f32 0.0, %v6502_v5  ;;  %v6503_v15 = vmax.f32 %v21365_v10, 0.0  ;;  %v22012_v5 = vld [vmem:[%s26488_s17 + $0x140] sm:$0xff]   ;;  %v22013_v10 = vld [vmem:[%s26488_s17 + $0xb0] sm:$0xff]   ;;  %v22015_v11 = vld [vmem:[%s26488_s17 + $0xf8] sm:$0xff]  }
 0xc1c   : > { %v6506_v62 = vmul.f32 1.442695, %v6504_v14  ;;  %v6505_v3 = vsub.f32 0.0, %v6503_v15  ;;  %v22017_v14 = vld [vmem:[%s26488_s17 + $0xb8] sm:$0xff]   ;;  %v22020_v15 = vld [vmem:[%s26488_s17 + $0x1c0] sm:$0xff]  }
 0xc1e   : > { %22680 = vpow2.f32 %v6506_v62  ;;  %v6508_v18 = vmul.f32 1.442695, %v6505_v3 }
 0xc20   : > { %22682 = vpow2.f32 %v6508_v18 }
 0xc28   : > { %v22681_v19 = vpop.eup %22680 }
 0xc29   : > { %v6510_v21 = vadd.f32 1.0, %v22681_v19 }
 0xc2a   : > { %v22683_v42 = vpop.eup %22682 }
 0xc2b   : > { %v6511_v44 = vadd.f32 1.0, %v22683_v42  ;;  %22684 = vrcp.f32 %v6510_v21 }
 0xc2d   : > { %22686 = vrcp.f32 %v6511_v44 }
 0xc35   : > { %v22685_v51 = vpop.eup %22684 }
 0xc37   : > { %v22687_v22 = vpop.eup %22686 }
 0xc38   : > { %v25091_v55 = vpack.c.bf16 %v22687_v22, %v22685_v51 }
 0xc3a   : > { %20571 = vmatmul.mubr.bf16.vlgmr.msra.gmra.mrb[132].mxu0 %v25091_v55 }
 0xc3b   : > { %20588 = vmatprep.mubr.msk.bf16.mxu0 %vm23618_vm1, %v23617_v49 }
 0xd0d   : > { %v6782_v0 = vpop.f32.mrb[132].mxu0 }
 0xd0e   : > { %v6783_v27 = vadd.f32 %v17908_v61, %v6782_v0  ;;  %v20572_v33 = vpop.f32.mrb[133].mxu0 }
 0xd0f   : > { %v6785_v28 = vpop.f32.mrb[134].mxu0 }
 0xd10   : > { %v6786_v34 = vadd.f32 %v17908_v61, %v6785_v28  ;;  %v20573_v36 = vpop.f32.mrb[135].mxu0  ;;  %v6789_v35 = vmax.f32 %v6783_v27, 0.0 }
 0xd12   : > { %v6790_v39 = vmax.f32 %v6786_v34, 0.0 }
 0xd14   : > { %v6791_v43 = vpack.c.bf16 %v6790_v39, %v6789_v35 }
 0xd16   : > { %20575 = vmatpush3.bf16.msra.mxu1 %v6791_v43  ;;  %20587 = vmatpush3.bf16.msra.mxu0 %v6791_v43 }
 0xd17   : > { %20580 = vmatprep.subr.bf16.mxu1 %v23617_v49  ;;  %20598 = vmatprep.subr.bf16.mxu0 %v23617_v49 }
 0xd19   : > { %20577 = vmatmul.mubr.msk.bf16.vlgmr.msra.gmra.mrb[108].mxu1 %vm6799_vm2, %v21974_v46  ;;  %20589 = vmatmul.mubr.msk.bf16.vlgmr.msra.gmra.mrb[136].mxu0 %vm6799_vm2, %v21975_v52 }
 0xd1a   : > { %20581 = vmatpush3.bf16.msra.mxu1 %v6791_v43  ;;  %20599 = vmatpush3.bf16.msra.mxu0 %v6791_v43 }
 0xd1b   : > { %20582 = vmatprep.mubr.msk.bf16.mxu1 %vm23618_vm1, %v23617_v49  ;;  %20592 = vmatprep.subr.bf16.mxu1 %v23617_v49 }
 0xd1c   : > { %20600 = vmatprep.mubr.msk.bf16.mxu0 %vm23618_vm1, %v23617_v49  ;;  %20610 = vmatprep.subr.bf16.mxu0 %v23617_v49 }
 0xd21   : > { %20583 = vmatmul.mubr.msk.bf16.vlgmr.msra.gmra.mrb[112].mxu1 %vm6799_vm2, %v21976_v53  ;;  %20601 = vmatmul.mubr.msk.bf16.vlgmr.msra.gmra.mrb[140].mxu0 %vm6799_vm2, %v21977_v57  ;;  %v22016_v53 = vld [vmem:[%s26488_s17 + $0x148] sm:$0xff]  }
 0xd22   : > { %20593 = vmatpush3.bf16.msra.mxu1 %v6791_v43  ;;  %20611 = vmatpush3.bf16.msra.mxu0 %v6791_v43  ;;  %v22018_v57 = vld [vmem:[%s26488_s17 + $0x108] sm:$0xff]  }
 0xd23   : > { %20594 = vmatprep.mubr.msk.bf16.mxu1 %vm23618_vm1, %v23617_v49  ;;  %20604 = vmatprep.subr.bf16.mxu1 %v23617_v49 }
 0xd24   : > { %20612 = vmatprep.mubr.msk.bf16.mxu0 %vm23618_vm1, %v23617_v49  ;;  %20622 = vmatprep.subr.bf16.mxu0 %v23617_v49 }
 0xd29   : > { %20595 = vmatmul.mubr.msk.bf16.vlgmr.msra.gmra.mrb[116].mxu1 %vm6799_vm2, %v21978_v60  ;;  %20613 = vmatmul.mubr.msk.bf16.vlgmr.msra.gmra.mrb[144].mxu0 %vm6799_vm2, %v21979_v54  ;;  %v22019_v54 = vld [vmem:[%s26488_s17 + $0x150] sm:$0xff]  }
 0xd2a   : > { %20605 = vmatpush3.bf16.msra.mxu1 %v6791_v43  ;;  %20623 = vmatpush3.bf16.msra.mxu0 %v6791_v43 }
 0xd2b   : > { %20606 = vmatprep.mubr.msk.bf16.mxu1 %vm23618_vm1, %v23617_v49  ;;  %20616 = vmatprep.subr.bf16.mxu1 %v23617_v49 }
 0xd2c   : > { %20624 = vmatprep.mubr.msk.bf16.mxu0 %vm23618_vm1, %v23617_v49  ;;  %19224 = vmatprep.subr.bf16.mxu0 %v21988_v56 }
 0xd31   : > { %20607 = vmatmul.mubr.msk.bf16.vlgmr.msra.gmra.mrb[120].mxu1 %vm6799_vm2, %v21980_v58  ;;  %20625 = vmatmul.mubr.msk.bf16.vlgmr.msra.gmra.mrb[148].mxu0 %vm6799_vm2, %v21982_v59 }
 0xd32   : > { %20617 = vmatpush3.bf16.msra.mxu1 %v6791_v43  ;;  %20618 = vmatprep.mubr.msk.bf16.mxu1 %vm23618_vm1, %v23617_v49  ;;  %v22014_v43 = vld [vmem:[%s26488_s17 + $0x100] sm:$0xff]  }
 0xd33   : > { %19202 = vmatprep.subr.bf16.mxu1 %v21983_v63  ;;  %19225 = vmatpush3.bf16.msra.mxu0 %v21990_v1 }
 0xd34   : > { %19226 = vmatprep.subr.bf16.mxu0 %v21992_v31 }
 0xd37   : > { %19227 = vmatpush3.bf16.msra.mxu0 %v21994_v24  ;;  %v22021_v24 = vld [vmem:[%s26488_s17 + $0x110] sm:$0xff]  }
 0xd38   : > { %19228 = vmatprep.subr.bf16.mxu0 %v21996_v23  ;;  %v22022_v23 = vld [vmem:[%s26488_s17 + $0x180] sm:$0xff]  }
 0xd39   : > { %20619 = vmatmul.mubr.msk.bf16.vlgmr.msra.gmra.mrb[124].mxu1 %vm6799_vm2, %v21981_v7 }
 0xd3a   : > { %19203 = vmatpush3.bf16.msra.mxu1 %v21984_v13 }
 0xd3b   : > { %19204 = vmatprep.subr.bf16.mxu1 %v21985_v16  ;;  %19229 = vmatpush3.bf16.msra.mxu0 %v21998_v37  ;;  %v22023_v37 = vld [vmem:[%s26488_s17 + $0x158] sm:$0xff]  }
 0xd3c   : > { %19230 = vmatprep.subr.bf16.mxu0 %v22000_v9 }
 0xd3e   : > { %19205 = vmatpush3.bf16.msra.mxu1 %v21986_v2  ;;  %v22024_v2 = vld [vmem:[%s26488_s17 + $0x1c8] sm:$0xff]  }
 0xd3f   : > { %19206 = vmatprep.subr.bf16.mxu1 %v21987_v25  ;;  %19231 = vmatpush3.bf16.msra.mxu0 %v22002_v38  ;;  %v22025_v25 = vld [vmem:[%s26488_s17 + $0x118] sm:$0xff]  }
 0xd40   : > { %19232 = vmatprep.subr.bf16.mxu0 %v22004_v45  ;;  %v22030_v45 = vld [vmem:[%s26488_s17 + $0x190] sm:$0xff]  }
 0xd42   : > { %19207 = vmatpush3.bf16.msra.mxu1 %v21989_v47  ;;  %v22026_v47 = vld [vmem:[%s26488_s17 + $0x188] sm:$0xff]  }
 0xd43   : > { %19208 = vmatprep.subr.bf16.mxu1 %v21991_v32  ;;  %19233 = vmatpush3.bf16.msra.mxu0 %v22006_v26  ;;  %v22027_v32 = vld [vmem:[%s26488_s17 + $0x160] sm:$0xff]  }
 0xd44   : > { %19234 = vmatprep.subr.bf16.mxu0 %v22008_v50 }
 0xd46   : > { %19209 = vmatpush3.bf16.msra.mxu1 %v21993_v20  ;;  %v22028_v20 = vld [vmem:[%s26488_s17 + $0x1d0] sm:$0xff]  }
 0xd47   : > { %19210 = vmatprep.subr.bf16.mxu1 %v21995_v4  ;;  %19235 = vmatpush3.bf16.msra.mxu0 %v22010_v8  ;;  %v22032_v8 = vld [vmem:[%s26488_s17 + $0x1d8] sm:$0xff]  }
 0xd48   : > { %19236 = vmatprep.subr.bf16.mxu0 %v22011_v40  ;;  %v22033_v40 = vld [vmem:[%s26488_s17 + $0x128] sm:$0xff]  }
 0xd4a   : > { %19211 = vmatpush3.bf16.msra.mxu1 %v21997_v48 }
 0xd4b   : > { %19212 = vmatprep.subr.bf16.mxu1 %v21999_v17  ;;  %19237 = vmatpush3.bf16.msra.mxu0 %v22013_v10  ;;  %v22035_v10 = vld [vmem:[%s26488_s17 + $0x170] sm:$0xff]  }
 0xd4c   : > { %19238 = vmatprep.subr.bf16.mxu0 %v22015_v11  ;;  %v22036_v11 = vld [vmem:[%s26488_s17 + $0x1e0] sm:$0xff]  }
 0xd4e   : > { %19213 = vmatpush3.bf16.msra.mxu1 %v22001_v29 }
 0xd4f   : > { %19214 = vmatprep.subr.bf16.mxu1 %v22003_v41  ;;  %19239 = vmatpush3.bf16.msra.mxu0 %v22017_v14  ;;  %v22029_v41 = vld [vmem:[%s26488_s17 + $0x120] sm:$0xff]  }
 0xd50   : > { %19268 = vmatprep.subr.bf16.mxu0 %v22020_v15 }
 0xd52   : > { %19215 = vmatpush3.bf16.msra.mxu1 %v22005_v12 }
 0xd53   : > { %19216 = vmatprep.subr.bf16.mxu1 %v22007_v30 }
 0xd56   : > { %19217 = vmatpush3.bf16.msra.mxu1 %v22009_v6  ;;  %v22031_v6 = vld [vmem:[%s26488_s17 + $0x168] sm:$0xff]  }
 0xd57   : > { %19246 = vmatprep.subr.bf16.mxu1 %v22012_v5  ;;  %v22034_v5 = vld [vmem:[%s26488_s17 + $0x198] sm:$0xff]  }
 0xdec   : > { %v6837_v62 = vpop.f32.mrb[108].mxu1  ;;  %v6941_v3 = vpop.f32.mrb[136].mxu0 }
 0xded   : > { %v20578_v18 = vpop.f32.mrb[109].mxu1  ;;  %v20590_v19 = vpop.f32.mrb[137].mxu0 }
 0xdee   : > { %v6840_v21 = vpop.f32.mrb[110].mxu1  ;;  %v6944_v42 = vpop.f32.mrb[138].mxu0  ;;  %v22038_v18 = vld [vmem:[%s26488_s17 + $0x1a0] sm:$0xff]  }
 0xdef   : > { %v7260_v44 = vpack.c.bf16 %v6840_v21, %v6837_v62  ;;  %v20579_v51 = vpop.f32.mrb[111].mxu1  ;;  %v7262_v22 = vpack.c.bf16 %v6944_v42, %v6941_v3  ;;  %v20591_v61 = vpop.f32.mrb[139].mxu0  ;;  %v22037_v3 = vld [vmem:[%s26488_s17 + $0x130] sm:$0xff]   ;;  %v22039_v42 = vld [vmem:[%s26488_s17 + $0x178] sm:$0xff]  }
 0xdf0   : > { %v22041_v51 = vld [vmem:[%s26488_s17 + $0x138] sm:$0xff]   ;;  %v22043_v61 = vld [vmem:[%s26488_s17 + $0x1f0] sm:$0xff]  }
 0xdf4   : > { %v6889_v0 = vpop.f32.mrb[112].mxu1  ;;  %v25170_v27 = vpop.f32.mrb[140].mxu0 }
 0xdf5   : > { %v20584_v33 = vpop.f32.mrb[113].mxu1  ;;  %v20602_v28 = vpop.f32.mrb[141].mxu0 }
 0xdf6   : > { %v6892_v34 = vpop.f32.mrb[114].mxu1  ;;  %v25172_v36 = vpop.f32.mrb[142].mxu0  ;;  %v22045_v33 = vld [vmem:[%s26488_s17 + $0x200] sm:$0xff]   ;;  %v22046_v28 = vld [vmem:[%s26488_s17 + $0x1f8] sm:$0xff]  }
 0xdf7   : > { %v7261_v35 = vpack.c.bf16 %v6892_v34, %v6889_v0  ;;  %v20585_v39 = vpop.f32.mrb[115].mxu1  ;;  %v7264_v46 = vpack.c.bf16 %v25172_v36, %v25170_v27  ;;  %v20603_v52 = vpop.f32.mrb[143].mxu0  ;;  %v22044_v0 = vld [vmem:[%s26488_s17 + $0x1b0] sm:$0xff]   ;;  %v22047_v34 = vld [vmem:[%s26488_s17 + $0x1b8] sm:$0xff]   ;;  %v22051_v36 = vld [vmem:[%s26488_s17 + $0x220] sm:$0xff]  }
 0xdf8   : > { %v22049_v39 = vld [vmem:[%s26488_s17 + $0x210] sm:$0xff]   ;;  %v22050_v27 = vld [vmem:[%s26488_s17 + $0x218] sm:$0xff]  }
 0xdf9   : > { %7739 = vmatprep.mubr.bf16.mxu1 %v7261_v35  ;;  %v22048_v35 = vld [vmem:[%s26488_s17 + $0x208] sm:$0xff]   ;;  %v22054_v52 = vld [vmem:[%s26488_s17 + $0x238] sm:$0xff]  }
 0xdfa   : > { %7740 = vmatmul.mubr.bf16.vlgmr.msra.gmra.mrb[128].mxu1 %v7260_v44  ;;  %v22040_v44 = vld [vmem:[%s26488_s17 + $0x1e8] sm:$0xff]  }
 0xdfb   : > { %19247 = vmatpush3.bf16.msra.mxu1 %v22014_v43  ;;  %v22052_v43 = vld [vmem:[%s26488_s17 + $0x228] sm:$0xff]  }
 0xdfc   : > { %v6993_v60 = vpop.f32.mrb[116].mxu1  ;;  %19248 = vmatprep.subr.bf16.mxu1 %v22016_v53  ;;  %v25180_v56 = vpop.f32.mrb[144].mxu0  ;;  %v22055_v53 = vld [vmem:[#allocation9] sm:$0xff]  }
 0xdfd   : > { %v20596_v58 = vpop.f32.mrb[117].mxu1  ;;  %v20614_v59 = vpop.f32.mrb[145].mxu0 }
 0xdfe   : > { %v6996_v63 = vpop.f32.mrb[118].mxu1  ;;  %v25182_v1 = vpop.f32.mrb[146].mxu0  ;;  %v22060_v58 = vld [vmem:[#allocation9 + $0x28] sm:$0xff]   ;;  %v22061_v59 = vld [vmem:[#allocation9 + $0x30] sm:$0xff]  }
 0xdff   : > { %v7263_v31 = vpack.c.bf16 %v6996_v63, %v6993_v60  ;;  %19249 = vmatpush3.bf16.msra.mxu1 %v22018_v57  ;;  %v20597_v7 = vpop.f32.mrb[119].mxu1  ;;  %v7266_v13 = vpack.c.bf16 %v25182_v1, %v25180_v56  ;;  %v20615_v16 = vpop.f32.mrb[147].mxu0  ;;  %v22056_v57 = vld [vmem:[#allocation9 + $0x8] sm:$0xff]   ;;  %v22057_v60 = vld [vmem:[#allocation9 + $0x10] sm:$0xff]   ;;  %v22059_v56 = vld [vmem:[#allocation9 + $0x20] sm:$0xff]  }
 0xe00   : > { %19250 = vmatprep.subr.bf16.mxu1 %v22019_v54  ;;  %v22058_v54 = vld [vmem:[#allocation9 + $0x18] sm:$0xff]   ;;  %v17951_v16 = vld [vmem:[%s26489_s15] ss:$0 sm:$0xff]  ;;  %s26492_s15 = sld [smem:[#allocation85_spill]] }
 0xe01   : > { %7780 = vmatprep.mubr.bf16.mxu0 %v7263_v31  ;;  %v22062_v63 = vld [vmem:[#allocation9 + $0x38] sm:$0xff]  }
 0xe02   : > { %7781 = vmatmul.mubr.bf16.vlgmr.msra.gmra.mrb[152].mxu0 %v7262_v22  ;;  %v22042_v22 = vld [vmem:[%s26488_s17 + $0x1a8] sm:$0xff]  }
 0xe03   : > { %19251 = vmatpush3.bf16.msra.mxu1 %v22021_v24  ;;  %19269 = vmatpush3.bf16.msra.mxu0 %v22022_v23 }
 0xe04   : > { %19252 = vmatprep.subr.bf16.mxu1 %v22023_v37  ;;  %19270 = vmatprep.subr.bf16.mxu0 %v22024_v2  ;;  %v7097_v4 = vpop.f32.mrb[120].mxu1  ;;  %v25194_v48 = vpop.f32.mrb[148].mxu0 }
 0xe05   : > { %v20608_v17 = vpop.f32.mrb[121].mxu1  ;;  %v20626_v9 = vpop.f32.mrb[149].mxu0 }
 0xe06   : > { %v7100_v29 = vpop.f32.mrb[122].mxu1  ;;  %v25196_v38 = vpop.f32.mrb[150].mxu0 }
 0xe07   : > { %19253 = vmatpush3.bf16.msra.mxu1 %v22025_v25  ;;  %19271 = vmatpush3.bf16.msra.mxu0 %v22026_v47  ;;  %v7265_v12 = vpack.c.bf16 %v7100_v29, %v7097_v4  ;;  %v20609_v26 = vpop.f32.mrb[123].mxu1  ;;  %v7268_v30 = vpack.c.bf16 %v25196_v38, %v25194_v48  ;;  %v20627_v50 = vpop.f32.mrb[151].mxu0 }
 0xe08   : > { %19254 = vmatprep.subr.bf16.mxu1 %v22027_v32  ;;  %19272 = vmatprep.subr.bf16.mxu0 %v22028_v20 }
 0xe09   : > { %7821 = vmatprep.mubr.bf16.mxu1 %v7265_v12 }
 0xe0b   : > { %19255 = vmatpush3.bf16.msra.mxu1 %v22029_v41  ;;  %19273 = vmatpush3.bf16.msra.mxu0 %v22030_v45 }
 0xe0c   : > { %19256 = vmatprep.subr.bf16.mxu1 %v22031_v6  ;;  %19274 = vmatprep.subr.bf16.mxu0 %v22032_v8  ;;  %v7201_v14 = vpop.f32.mrb[124].mxu1 }
 0xe0d   : > { %v20620_v15 = vpop.f32.mrb[125].mxu1 }
 0xe0e   : > { %v7204_v62 = vpop.f32.mrb[126].mxu1 }
 0xe0f   : > { %19257 = vmatpush3.bf16.msra.mxu1 %v22033_v40  ;;  %19275 = vmatpush3.bf16.msra.mxu0 %v22034_v5  ;;  %v7267_v19 = vpack.c.bf16 %v7204_v62, %v7201_v14  ;;  %v20621_v21 = vpop.f32.mrb[127].mxu1 }
 0xe10   : > { %19258 = vmatprep.subr.bf16.mxu1 %v22035_v10  ;;  %19276 = vmatprep.subr.bf16.mxu0 %v22036_v11 }
 0xe11   : > { %7862 = vmatprep.mubr.bf16.mxu0 %v7267_v19 }
 0xe13   : > { %19259 = vmatpush3.bf16.msra.mxu1 %v22037_v3  ;;  %19277 = vmatpush3.bf16.msra.mxu0 %v22038_v18 }
 0xe14   : > { %19260 = vmatprep.subr.bf16.mxu1 %v22039_v42  ;;  %19278 = vmatprep.subr.bf16.mxu0 %v22040_v44 }
 0xe17   : > { %19261 = vmatpush3.bf16.msra.mxu1 %v22041_v51  ;;  %19279 = vmatpush3.bf16.msra.mxu0 %v22042_v22 }
 0xe18   : > { %19280 = vmatprep.subr.bf16.mxu0 %v22043_v61  ;;  %20628 = vmatprep.subr.bf16.mxu1 %v23617_v49  ;;  %v22063_v61 = vld [vmem:[#allocation10] sm:$0xff]  }
 0xe1a   : > { %7822 = vmatmul.mubr.bf16.vlgmr.msra.gmra.mrb[132].mxu1 %v7264_v46  ;;  %v22053_v46 = vld [vmem:[%s26488_s17 + $0x230] sm:$0xff]  }
 0xe1b   : > { %19281 = vmatpush3.bf16.msra.mxu0 %v22044_v0  ;;  %20629 = vmatpush3.bf16.msra.mxu1 %v22045_v33  ;;  %v22064_v0 = vld [vmem:[#allocation10 + $0x8] sm:$0xff]   ;;  %v22065_v33 = vld [vmem:[#allocation10 + $0x10] sm:$0xff]  }
 0xe1c   : > { %19282 = vmatprep.subr.bf16.mxu0 %v22046_v28  ;;  %20630 = vmatprep.subr.bf16.mxu1 %v23617_v49  ;;  %v22066_v28 = vld [vmem:[#allocation10 + $0x18] sm:$0xff]  }
 0xe1d   : > { %20644 = vmatprep.mubr.msk.bf16.mxu1 %vm23618_vm1, %v23617_v49 }
 0xe1f   : > { %19283 = vmatpush3.bf16.msra.mxu0 %v22047_v34  ;;  %20631 = vmatpush3.bf16.msra.mxu1 %v22048_v35  ;;  %v22067_v34 = vld [vmem:[#allocation10 + $0x20] sm:$0xff]   ;;  %v22068_v35 = vld [vmem:[#allocation10 + $0x28] sm:$0xff]  }
 0xe20   : > { %20632 = vmatprep.subr.bf16.mxu1 %v23617_v49  ;;  %20648 = vmatprep.subr.bf16.mxu0 %v23617_v49 }
 0xe22   : > { %7863 = vmatmul.mubr.bf16.vlgmr.msra.gmra.mrb[156].mxu0 %v7266_v13 }
 0xe23   : > { %20633 = vmatpush3.bf16.msra.mxu1 %v22049_v39  ;;  %20664 = vmatprep.mubr.msk.bf16.mxu0 %vm23618_vm1, %v23617_v49  ;;  %v22069_v39 = vld [vmem:[#allocation10 + $0x30] sm:$0xff]  }
 0xe24   : > { %20634 = vmatprep.subr.bf16.mxu1 %v23617_v49  ;;  %20649 = vmatpush3.bf16.msra.mxu0 %v22055_v53 }
 0xe25   : > { %20650 = vmatprep.subr.bf16.mxu0 %v23617_v49 }
 0xe27   : > { %20635 = vmatpush3.bf16.msra.mxu1 %v22050_v27  ;;  %v22070_v27 = vld [vmem:[#allocation10 + $0x38] sm:$0xff]  }
 0xe28   : > { %20636 = vmatprep.subr.bf16.mxu1 %v23617_v49  ;;  %20651 = vmatpush3.bf16.msra.mxu0 %v22056_v57 }
 0xe29   : > { %20652 = vmatprep.subr.bf16.mxu0 %v23617_v49 }
 0xe2b   : > { %20637 = vmatpush3.bf16.msra.mxu1 %v22051_v36  ;;  %v18024_v36 = vld [vmem:[%s26490_s5] ss:$0 sm:$0xff]  ;;  %s26493_s5 = sld [smem:[#allocation81_spill]] }
 0xe2c   : > { %20638 = vmatprep.subr.bf16.mxu1 %v23617_v49  ;;  %20653 = vmatpush3.bf16.msra.mxu0 %v22057_v60 }
 0xe2d   : > { %20654 = vmatprep.subr.bf16.mxu0 %v23617_v49 }
 0xe2f   : > { %20639 = vmatpush3.bf16.msra.mxu1 %v22052_v43 }
 0xe30   : > { %20640 = vmatprep.subr.bf16.mxu1 %v23617_v49  ;;  %20655 = vmatpush3.bf16.msra.mxu0 %v22058_v54 }
 0xe31   : > { %20656 = vmatprep.subr.bf16.mxu0 %v23617_v49 }
 0xe33   : > { %20641 = vmatpush3.bf16.msra.mxu1 %v22053_v46 }
 0xe34   : > { %20642 = vmatprep.subr.bf16.mxu1 %v23617_v49  ;;  %20657 = vmatpush3.bf16.msra.mxu0 %v22059_v56  ;;  %v8011_v56 = vunpack.c.h.bf16 %v25091_v55 }
 0xe35   : > { %20658 = vmatprep.subr.bf16.mxu0 %v23617_v49 }
 0xe37   : > { %20643 = vmatpush3.bf16.msra.mxu1 %v22054_v52  ;;  %v8010_v52 = vunpack.c.l.bf16 %v25091_v55 }
 0xe38   : > { %20668 = vmatprep.subr.bf16.mxu1 %v23617_v49  ;;  %20659 = vmatpush3.bf16.msra.mxu0 %v22060_v58 }
 0xe39   : > { %20660 = vmatprep.subr.bf16.mxu0 %v23617_v49 }
 0xe3a   : > { %20645 = vmatmul.mubr.bf16.vlgmr.msra.gmra.mrb[136].mxu1 %v7268_v30 }
 0xe3b   : > { %20684 = vmatprep.mubr.msk.bf16.mxu1 %vm23618_vm1, %v23617_v49  ;;  %20669 = vmatpush3.bf16.msra.mxu1 %v22063_v61  ;;  %v22092_v61 = vld [vmem:[%s26493_s5 + $0x68] sm:$0xff]  }
 0xe3c   : > { %20661 = vmatpush3.bf16.msra.mxu0 %v22061_v59  ;;  %20670 = vmatprep.subr.bf16.mxu1 %v23617_v49 }
 0xe3d   : > { %20662 = vmatprep.subr.bf16.mxu0 %v23617_v49 }
 0xe3f   : > { %20671 = vmatpush3.bf16.msra.mxu1 %v22064_v0  ;;  %v22093_v0 = vld [vmem:[%s26493_s5 + $0xc8] sm:$0xff]  }
 0xe40   : > { %20663 = vmatpush3.bf16.msra.mxu0 %v22062_v63  ;;  %20672 = vmatprep.subr.bf16.mxu1 %v23617_v49 }
 0xe41   : > { %20688 = vmatprep.subr.bf16.mxu0 %v23617_v49 }
 0xe43   : > { %20673 = vmatpush3.bf16.msra.mxu1 %v22065_v33  ;;  %v22094_v33 = vld [vmem:[%s26493_s5 + $0x28] sm:$0xff]  }
 0xe44   : > { %20674 = vmatprep.subr.bf16.mxu1 %v23617_v49 }
 0xe47   : > { %20675 = vmatpush3.bf16.msra.mxu1 %v22066_v28  ;;  %v22095_v28 = vld [vmem:[%s26493_s5 + $0x88] sm:$0xff]  }
 0xe48   : > { %20676 = vmatprep.subr.bf16.mxu1 %v23617_v49 }
 0xe4b   : > { %20677 = vmatpush3.bf16.msra.mxu1 %v22067_v34  ;;  %v22096_v34 = vld [vmem:[%s26493_s5 + $0x70] sm:$0xff]  }
 0xe4c   : > { %20678 = vmatprep.subr.bf16.mxu1 %v23617_v49 }
 0xe4f   : > { %20679 = vmatpush3.bf16.msra.mxu1 %v22068_v35  ;;  %v22097_v35 = vld [vmem:[%s26493_s5 + $0xd0] sm:$0xff]  }
 0xe50   : > { %20680 = vmatprep.subr.bf16.mxu1 %v23617_v49 }
 0xe53   : > { %20681 = vmatpush3.bf16.msra.mxu1 %v22069_v39  ;;  %v22098_v39 = vld [vmem:[%s26493_s5 + $0x30] sm:$0xff]  }
 0xe54   : > { %20682 = vmatprep.subr.bf16.mxu1 %v23617_v49 }
 0xe57   : > { %20683 = vmatpush3.bf16.msra.mxu1 %v22070_v27  ;;  %v22099_v27 = vld [vmem:[%s26493_s5 + $0x90] sm:$0xff]  }
 0xe58   : > { %20712 = vmatprep.subr.bf16.mxu1 %v23617_v49 }
 0xecd   : > { %v19218_v1 = vpop.f32.mrb[128].mxu1 }
 0xece   : > { %v19219_v31 = vpop.f32.mrb[129].mxu1 }
 0xecf   : > { %v19220_v24 = vadd.f32 %v19219_v31, %v19218_v1  ;;  %v19221_v23 = vpop.f32.mrb[130].mxu1 }
 0xed0   : > { %v19222_v7 = vpop.f32.mrb[131].mxu1 }
 0xed1   : > { %v19223_v13 = vadd.f32 %v19222_v7, %v19221_v23  ;;  %v7742_v25 = vadd.f32 %v19220_v24, %v17951_v16 }
 0xed3   : > { %v7745_v4 = vadd.f32 %v19223_v13, %v17951_v16 }
 0xed5   : > { %v19240_v37 = vpop.f32.mrb[152].mxu0 }
 0xed6   : > { %v19241_v2 = vpop.f32.mrb[153].mxu0 }
 0xed7   : > { %v19242_v47 = vadd.f32 %v19241_v2, %v19240_v37  ;;  %v19243_v32 = vpop.f32.mrb[154].mxu0 }
 0xed8   : > { %v19244_v20 = vpop.f32.mrb[155].mxu0 }
 0xed9   : > { %v7783_v48 = vadd.f32 %v19242_v47, %v7742_v25  ;;  %v19245_v17 = vadd.f32 %v19244_v20, %v19243_v32  ;;  %v18033_v32 = vld [vmem:[%s26491_s2] ss:$0 sm:$0xff]  ;;  %s26494_s2 = sld [smem:[#allocation82_spill]] }
 0xedb   : > { %v7786_v9 = vadd.f32 %v19245_v17, %v7745_v4 }
 0xeed   : > { %v19262_v29 = vpop.f32.mrb[132].mxu1 }
 0xeee   : > { %v19263_v38 = vpop.f32.mrb[133].mxu1 }
 0xeef   : > { %v19264_v41 = vadd.f32 %v19263_v38, %v19262_v29  ;;  %v19265_v45 = vpop.f32.mrb[134].mxu1 }
 0xef0   : > { %v19266_v12 = vpop.f32.mrb[135].mxu1 }
 0xef1   : > { %v7824_v26 = vadd.f32 %v19264_v41, %v7783_v48  ;;  %v19267_v30 = vadd.f32 %v19266_v12, %v19265_v45  ;;  %v22071_v12 = vld [vmem:[%s26492_s15] sm:$0xff]  }
 0xef3   : > { %v7827_v50 = vadd.f32 %v19267_v30, %v7786_v9  ;;  %v22073_v30 = vld [vmem:[%s26492_s15 + $0x8] sm:$0xff]  }
 0xef5   : > { %v19284_v6 = vpop.f32.mrb[156].mxu0 }
 0xef6   : > { %v19285_v8 = vpop.f32.mrb[157].mxu0 }
 0xef7   : > { %v19286_v40 = vadd.f32 %v19285_v8, %v19284_v6  ;;  %v19287_v5 = vpop.f32.mrb[158].mxu0  ;;  %v22089_v6 = vld [vmem:[%s26493_s5 + $0xc0] sm:$0xff]   ;;  %v22075_v8 = vld [vmem:[%s26492_s15 + $0x10] sm:$0xff]  }
 0xef8   : > { %v19288_v10 = vpop.f32.mrb[159].mxu0 }
 0xef9   : > { %v19289_v11 = vadd.f32 %v19288_v10, %v19287_v5  ;;  %v7865_v14 = vadd.f32 %v19286_v40, %v7824_v26  ;;  %v22072_v26 = vld [vmem:[%s26492_s15 + $0x20] sm:$0xff]   ;;  %v22076_v10 = vld [vmem:[%s26492_s15 + $0x18] sm:$0xff]  }
 0xefa   : > { %v22079_v40 = vld [vmem:[%s26492_s15 + $0x40] sm:$0xff]  }
 0xefb   : > { %v7868_v15 = vadd.f32 %v19289_v11, %v7827_v50  ;;  %v22074_v50 = vld [vmem:[%s26492_s15 + $0x30] sm:$0xff]   ;;  %v22091_v5 = vld [vmem:[%s26493_s5 + $0x80] sm:$0xff]   ;;  %v22077_v11 = vld [vmem:[%s26492_s15 + $0x28] sm:$0xff]  }
 0xf0d   : > { %v7905_v62 = vpop.f32.mrb[136].mxu1 }
 0xf0e   : > { %v7906_v3 = vadd.f32 %v7905_v62, %v7865_v14  ;;  %v20646_v18 = vpop.f32.mrb[137].mxu1  ;;  %v22080_v14 = vld [vmem:[%s26493_s5 + $0x40] sm:$0xff]  }
 0xf0f   : > { %v7908_v19 = vpop.f32.mrb[138].mxu1  ;;  %v22081_v62 = vld [vmem:[%s26493_s5] sm:$0xff]   ;;  %v22083_v18 = vld [vmem:[%s26493_s5 + $0x8] sm:$0xff]  }
 0xf10   : > { %v7909_v21 = vadd.f32 %v7908_v19, %v7868_v15  ;;  %v20647_v42 = vpop.f32.mrb[139].mxu1  ;;  %v7912_v44 = vmax.f32 %v7906_v3, 0.0  ;;  %v22078_v15 = vld [vmem:[%s26492_s15 + $0x38] sm:$0xff]   ;;  %v22082_v3 = vld [vmem:[%s26493_s5 + $0x48] sm:$0xff]   ;;  %v22084_v19 = vld [vmem:[%s26493_s5 + $0x50] sm:$0xff]  }
 0xf11   : > { %v22086_v42 = vld [vmem:[%s26493_s5 + $0x58] sm:$0xff]  }
 0xf12   : > { %v7913_v51 = vmax.f32 %v7909_v21, 0.0  ;;  %v22085_v21 = vld [vmem:[%s26493_s5 + $0x10] sm:$0xff]  }
 0xf14   : > { %v7914_v22 = vpack.c.bf16 %v7913_v51, %v7912_v44  ;;  %v22087_v44 = vld [vmem:[%s26493_s5 + $0x18] sm:$0xff]   ;;  %v22088_v51 = vld [vmem:[%s26493_s5 + $0x60] sm:$0xff]  }
 0xf16   : > { %20665 = vmatmul.mubr.bf16.vlgmr.msra.gmra.mrb[160].mxu0 %v7914_v22  ;;  %v22090_v22 = vld [vmem:[%s26493_s5 + $0x20] sm:$0xff]  }
 0xf17   : > { %20690 = vmatprep.mubr.msk.bf16.mxu0 %vm23618_vm1, %v23617_v49 }
 0xfe9   : > { %v8003_v43 = vpop.f32.mrb[160].mxu0 }
 0xfea   : > { %v8004_v46 = vadd.f32 %v18024_v36, %v8003_v43  ;;  %v20666_v53 = vpop.f32.mrb[161].mxu0  ;;  %v22101_v43 = vld [vmem:[%s26493_s5 + $0xd8] sm:$0xff]  }
 0xfeb   : > { %v8006_v57 = vpop.f32.mrb[162].mxu0  ;;  %v22104_v53 = vld [vmem:[%s26493_s5 + $0xe0] sm:$0xff]  }
 0xfec   : > { %v8012_v60 = vadd.f32 %v8010_v52, %v8004_v46  ;;  %v8007_v54 = vadd.f32 %v18024_v36, %v8006_v57  ;;  %v20667_v58 = vpop.f32.mrb[163].mxu0  ;;  %v22100_v36 = vld [vmem:[%s26493_s5 + $0x78] sm:$0xff]   ;;  %v22105_v57 = vld [vmem:[%s26493_s5 + $0x140] sm:$0xff]  }
 0xfed   : > { %v22102_v46 = vld [vmem:[%s26493_s5 + $0x38] sm:$0xff]   ;;  %v22112_v58 = vld [vmem:[%s26493_s5 + $0xf0] sm:$0xff]  }
 0xfee   : > { %v8014_v59 = vmax.f32 %v8012_v60, 0.0  ;;  %v8013_v63 = vadd.f32 %v8011_v56, %v8007_v54  ;;  %v22103_v52 = vld [vmem:[%s26493_s5 + $0x98] sm:$0xff]   ;;  %v22106_v60 = vld [vmem:[%s26493_s5 + $0xa0] sm:$0xff]   ;;  %v22108_v54 = vld [vmem:[%s26493_s5 + $0xe8] sm:$0xff]  }
 0xfef   : > { %v22110_v56 = vld [vmem:[%s26493_s5 + $0xa8] sm:$0xff]  }
 0xff0   : > { %v8016_v1 = vsub.f32 0.0, %v8014_v59  ;;  %v8015_v31 = vmax.f32 %v8013_v63, 0.0  ;;  %v22114_v59 = vld [vmem:[%s26493_s5 + $0xb0] sm:$0xff]   ;;  %v22116_v63 = vld [vmem:[%s26493_s5 + $0xf8] sm:$0xff]  }
 0xff2   : > { %v8018_v24 = vmul.f32 1.442695, %v8016_v1  ;;  %v8017_v23 = vsub.f32 0.0, %v8015_v31  ;;  %v22118_v1 = vld [vmem:[%s26493_s5 + $0xb8] sm:$0xff]   ;;  %v22121_v31 = vld [vmem:[%s26493_s5 + $0x1c0] sm:$0xff]  }
 0xff4   : > { %22688 = vpow2.f32 %v8018_v24  ;;  %v8020_v7 = vmul.f32 1.442695, %v8017_v23 }
 0xff6   : > { %22690 = vpow2.f32 %v8020_v7 }
 0xffe   : > { %v22689_v13 = vpop.eup %22688 }
 0xfff   : > { %v8022_v16 = vadd.f32 1.0, %v22689_v13 }
0x1000   : > { %v22691_v37 = vpop.eup %22690 }
0x1001   : > { %v8023_v2 = vadd.f32 1.0, %v22691_v37  ;;  %22692 = vrcp.f32 %v8022_v16 }
0x1003   : > { %22694 = vrcp.f32 %v8023_v2 }
0x100b   : > { %v22693_v25 = vpop.eup %22692 }
0x100d   : > { %v22695_v55 = vpop.eup %22694 }
0x100e   : > { %v25273_v47 = vpack.c.bf16 %v22695_v55, %v22693_v25 }
0x1010   : > { %20685 = vmatmul.mubr.bf16.vlgmr.msra.gmra.mrb[140].mxu1 %v25273_v47 }
0x1011   : > { %20714 = vmatprep.mubr.msk.bf16.mxu1 %vm23618_vm1, %v23617_v49 }
0x10e3   : > { %v8294_v20 = vpop.f32.mrb[140].mxu1 }
0x10e4   : > { %v8295_v4 = vadd.f32 %v18033_v32, %v8294_v20  ;;  %v20686_v48 = vpop.f32.mrb[141].mxu1 }
0x10e5   : > { %v8297_v17 = vpop.f32.mrb[142].mxu1 }
0x10e6   : > { %v8298_v9 = vadd.f32 %v18033_v32, %v8297_v17  ;;  %v20687_v29 = vpop.f32.mrb[143].mxu1  ;;  %v8301_v38 = vmax.f32 %v8295_v4, 0.0 }
0x10e8   : > { %v8302_v41 = vmax.f32 %v8298_v9, 0.0 }
0x10ea   : > { %v8303_v45 = vpack.c.bf16 %v8302_v41, %v8301_v38 }
0x10ec   : > { %20689 = vmatpush3.bf16.msra.mxu0 %v8303_v45  ;;  %20713 = vmatpush3.bf16.msra.mxu1 %v8303_v45 }
0x10ed   : > { %20694 = vmatprep.subr.bf16.mxu0 %v23617_v49  ;;  %20724 = vmatprep.subr.bf16.mxu1 %v23617_v49 }
0x10ef   : > { %20691 = vmatmul.mubr.msk.bf16.vlgmr.msra.gmra.mrb[164].mxu0 %vm6799_vm2, %v22071_v12  ;;  %20715 = vmatmul.mubr.msk.bf16.vlgmr.msra.gmra.mrb[144].mxu1 %vm6799_vm2, %v22072_v26 }
0x10f0   : > { %20695 = vmatpush3.bf16.msra.mxu0 %v8303_v45  ;;  %20725 = vmatpush3.bf16.msra.mxu1 %v8303_v45 }
0x10f1   : > { %20696 = vmatprep.mubr.msk.bf16.mxu0 %vm23618_vm1, %v23617_v49  ;;  %20700 = vmatprep.subr.bf16.mxu0 %v23617_v49 }
0x10f2   : > { %20726 = vmatprep.mubr.msk.bf16.mxu1 %vm23618_vm1, %v23617_v49  ;;  %20736 = vmatprep.subr.bf16.mxu1 %v23617_v49 }
0x10f7   : > { %20697 = vmatmul.mubr.msk.bf16.vlgmr.msra.gmra.mrb[168].mxu0 %vm6799_vm2, %v22073_v30  ;;  %20727 = vmatmul.mubr.msk.bf16.vlgmr.msra.gmra.mrb[148].mxu1 %vm6799_vm2, %v22074_v50  ;;  %v22109_v30 = vld [vmem:[%s26493_s5 + $0x148] sm:$0xff]  }
0x10f8   : > { %20701 = vmatpush3.bf16.msra.mxu0 %v8303_v45  ;;  %20737 = vmatpush3.bf16.msra.mxu1 %v8303_v45  ;;  %v22111_v50 = vld [vmem:[%s26493_s5 + $0x108] sm:$0xff]  }
0x10f9   : > { %20702 = vmatprep.mubr.msk.bf16.mxu0 %vm23618_vm1, %v23617_v49  ;;  %20706 = vmatprep.subr.bf16.mxu0 %v23617_v49 }
0x10fa   : > { %20738 = vmatprep.mubr.msk.bf16.mxu1 %vm23618_vm1, %v23617_v49  ;;  %19357 = vmatprep.subr.bf16.mxu1 %v22089_v6 }
0x10ff   : > { %20703 = vmatmul.mubr.msk.bf16.vlgmr.msra.gmra.mrb[172].mxu0 %vm6799_vm2, %v22075_v8  ;;  %20739 = vmatmul.mubr.msk.bf16.vlgmr.msra.gmra.mrb[152].mxu1 %vm6799_vm2, %v22079_v40  ;;  %v22113_v8 = vld [vmem:[%s26493_s5 + $0x150] sm:$0xff]  }
0x1100   : > { %20707 = vmatpush3.bf16.msra.mxu0 %v8303_v45  ;;  %20708 = vmatprep.mubr.msk.bf16.mxu0 %vm23618_vm1, %v23617_v49 }
0x1101   : > { %20718 = vmatprep.subr.bf16.mxu0 %v23617_v49  ;;  %19358 = vmatpush3.bf16.msra.mxu1 %v22091_v5 }
0x1102   : > { %19359 = vmatprep.subr.bf16.mxu1 %v22093_v0 }
0x1105   : > { %19360 = vmatpush3.bf16.msra.mxu1 %v22095_v28  ;;  %v22123_v28 = vld [vmem:[%s26493_s5 + $0x180] sm:$0xff]  }
0x1106   : > { %19361 = vmatprep.subr.bf16.mxu1 %v22097_v35  ;;  %v22124_v35 = vld [vmem:[%s26493_s5 + $0x168] sm:$0xff]  }
0x1107   : > { %20709 = vmatmul.mubr.msk.bf16.vlgmr.msra.gmra.mrb[176].mxu0 %vm6799_vm2, %v22076_v10 }
0x1108   : > { %20719 = vmatpush3.bf16.msra.mxu0 %v8303_v45  ;;  %20720 = vmatprep.mubr.msk.bf16.mxu0 %vm23618_vm1, %v23617_v49 }
0x1109   : > { %20730 = vmatprep.subr.bf16.mxu0 %v23617_v49  ;;  %19362 = vmatpush3.bf16.msra.mxu1 %v22099_v27  ;;  %v22126_v27 = vld [vmem:[%s26493_s5 + $0x128] sm:$0xff]  }
0x110a   : > { %19363 = vmatprep.subr.bf16.mxu1 %v22101_v43 }
0x110d   : > { %19364 = vmatpush3.bf16.msra.mxu1 %v22103_v52  ;;  %v22129_v52 = vld [vmem:[%s26493_s5 + $0x1d0] sm:$0xff]  }
0x110e   : > { %19365 = vmatprep.subr.bf16.mxu1 %v22104_v53 }
0x110f   : > { %20721 = vmatmul.mubr.msk.bf16.vlgmr.msra.gmra.mrb[180].mxu0 %vm6799_vm2, %v22077_v11 }
0x1110   : > { %20731 = vmatpush3.bf16.msra.mxu0 %v8303_v45  ;;  %20732 = vmatprep.mubr.msk.bf16.mxu0 %vm23618_vm1, %v23617_v49  ;;  %v22107_v45 = vld [vmem:[%s26493_s5 + $0x100] sm:$0xff]  }
0x1111   : > { %19335 = vmatprep.subr.bf16.mxu0 %v22080_v14  ;;  %19366 = vmatpush3.bf16.msra.mxu1 %v22106_v60  ;;  %v22130_v60 = vld [vmem:[%s26493_s5 + $0x130] sm:$0xff]  }
0x1112   : > { %19367 = vmatprep.subr.bf16.mxu1 %v22108_v54  ;;  %v22131_v54 = vld [vmem:[%s26493_s5 + $0x190] sm:$0xff]  }
0x1115   : > { %19368 = vmatpush3.bf16.msra.mxu1 %v22110_v56 }
0x1116   : > { %19369 = vmatprep.subr.bf16.mxu1 %v22112_v58 }
0x1117   : > { %20733 = vmatmul.mubr.msk.bf16.vlgmr.msra.gmra.mrb[184].mxu0 %vm6799_vm2, %v22078_v15 }
0x1118   : > { %19336 = vmatpush3.bf16.msra.mxu0 %v22081_v62  ;;  %v22115_v62 = vld [vmem:[%s26493_s5 + $0x110] sm:$0xff]  }
0x1119   : > { %19337 = vmatprep.subr.bf16.mxu0 %v22082_v3  ;;  %19370 = vmatpush3.bf16.msra.mxu1 %v22114_v59  ;;  %v22132_v59 = vld [vmem:[%s26493_s5 + $0x178] sm:$0xff]  }
0x111a   : > { %19371 = vmatprep.subr.bf16.mxu1 %v22116_v63  ;;  %v22133_v63 = vld [vmem:[%s26493_s5 + $0x1d8] sm:$0xff]  }
0x111c   : > { %19338 = vmatpush3.bf16.msra.mxu0 %v22083_v18 }
0x111d   : > { %19339 = vmatprep.subr.bf16.mxu0 %v22084_v19  ;;  %19372 = vmatpush3.bf16.msra.mxu1 %v22118_v1  ;;  %v22134_v1 = vld [vmem:[%s26493_s5 + $0x138] sm:$0xff]  }
0x111e   : > { %19401 = vmatprep.subr.bf16.mxu1 %v22121_v31  ;;  %v22135_v31 = vld [vmem:[%s26493_s5 + $0x198] sm:$0xff]  }
0x1120   : > { %19340 = vmatpush3.bf16.msra.mxu0 %v22085_v21  ;;  %v22117_v21 = vld [vmem:[%s26493_s5 + $0x158] sm:$0xff]  }
0x1121   : > { %19341 = vmatprep.subr.bf16.mxu0 %v22086_v42  ;;  %v22119_v42 = vld [vmem:[%s26493_s5 + $0x118] sm:$0xff]  }
0x1124   : > { %19342 = vmatpush3.bf16.msra.mxu0 %v22087_v44 }
0x1125   : > { %19343 = vmatprep.subr.bf16.mxu0 %v22088_v51  ;;  %v22120_v51 = vld [vmem:[%s26493_s5 + $0x160] sm:$0xff]  }
0x1128   : > { %19344 = vmatpush3.bf16.msra.mxu0 %v22090_v22 }
0x1129   : > { %19345 = vmatprep.subr.bf16.mxu0 %v22092_v61 }
0x112c   : > { %19346 = vmatpush3.bf16.msra.mxu0 %v22094_v33  ;;  %v22122_v33 = vld [vmem:[%s26493_s5 + $0x120] sm:$0xff]  }
0x112d   : > { %19347 = vmatprep.subr.bf16.mxu0 %v22096_v34 }
0x1130   : > { %19348 = vmatpush3.bf16.msra.mxu0 %v22098_v39  ;;  %v22125_v39 = vld [vmem:[%s26493_s5 + $0x1c8] sm:$0xff]  }
0x1131   : > { %19349 = vmatprep.subr.bf16.mxu0 %v22100_v36  ;;  %v22127_v36 = vld [vmem:[%s26493_s5 + $0x188] sm:$0xff]  }
0x1134   : > { %19350 = vmatpush3.bf16.msra.mxu0 %v22102_v46  ;;  %v22128_v46 = vld [vmem:[%s26493_s5 + $0x170] sm:$0xff]  }
0x1135   : > { %19379 = vmatprep.subr.bf16.mxu0 %v22105_v57 }
0x11c2   : > { %v8348_v24 = vpop.f32.mrb[164].mxu0  ;;  %v25352_v23 = vpop.f32.mrb[144].mxu1 }
0x11c3   : > { %v20692_v7 = vpop.f32.mrb[165].mxu0  ;;  %v20716_v13 = vpop.f32.mrb[145].mxu1 }
0x11c4   : > { %v8351_v16 = vpop.f32.mrb[166].mxu0  ;;  %v25354_v37 = vpop.f32.mrb[146].mxu1 }
0x11c5   : > { %v8771_v2 = vpack.c.bf16 %v8351_v16, %v8348_v24  ;;  %v20693_v25 = vpop.f32.mrb[167].mxu0  ;;  %v8775_v55 = vpack.c.bf16 %v25354_v37, %v25352_v23  ;;  %v20717_v32 = vpop.f32.mrb[147].mxu1  ;;  %v22136_v24 = vld [vmem:[%s26493_s5 + $0x1e0] sm:$0xff]   ;;  %v22144_v23 = vld [vmem:[%s26493_s5 + $0x210] sm:$0xff]   ;;  %v22145_v37 = vld [vmem:[%s26493_s5 + $0x1f8] sm:$0xff]  }
0x11c6   : > { %v22138_v25 = vld [vmem:[%s26493_s5 + $0x200] sm:$0xff]  }
0x11ca   : > { %v8400_v20 = vpop.f32.mrb[168].mxu0  ;;  %v25358_v4 = vpop.f32.mrb[148].mxu1 }
0x11cb   : > { %v20698_v48 = vpop.f32.mrb[169].mxu0  ;;  %v20728_v17 = vpop.f32.mrb[149].mxu1 }
0x11cc   : > { %v8403_v9 = vpop.f32.mrb[170].mxu0  ;;  %v25360_v29 = vpop.f32.mrb[150].mxu1  ;;  %v22139_v48 = vld [vmem:[%s26493_s5 + $0x1e8] sm:$0xff]  }
0x11cd   : > { %v8772_v38 = vpack.c.bf16 %v8403_v9, %v8400_v20  ;;  %v20699_v41 = vpop.f32.mrb[171].mxu0  ;;  %v8777_v12 = vpack.c.bf16 %v25360_v29, %v25358_v4  ;;  %v20729_v26 = vpop.f32.mrb[151].mxu1  ;;  %v22140_v17 = vld [vmem:[%s26493_s5 + $0x1a8] sm:$0xff]   ;;  %v22152_v4 = vld [vmem:[#allocation12] sm:$0xff]  }
0x11ce   : > { %v22141_v9 = vld [vmem:[%s26493_s5 + $0x208] sm:$0xff]   ;;  %v22143_v41 = vld [vmem:[%s26493_s5 + $0x1b0] sm:$0xff]   ;;  %v22148_v26 = vld [vmem:[%s26493_s5 + $0x220] sm:$0xff]  }
0x11cf   : > { %9250 = vmatprep.mubr.bf16.mxu0 %v8772_v38  ;;  %v22142_v38 = vld [vmem:[%s26493_s5 + $0x1f0] sm:$0xff]   ;;  %v22153_v29 = vld [vmem:[#allocation12 + $0x8] sm:$0xff]  }
0x11d0   : > { %9251 = vmatmul.mubr.bf16.vlgmr.msra.gmra.mrb[188].mxu0 %v8771_v2  ;;  %v22137_v2 = vld [vmem:[%s26493_s5 + $0x1a0] sm:$0xff]  }
0x11d1   : > { %19380 = vmatpush3.bf16.msra.mxu0 %v22107_v45  ;;  %v22147_v45 = vld [vmem:[%s26493_s5 + $0x218] sm:$0xff]  }
0x11d2   : > { %19381 = vmatprep.subr.bf16.mxu0 %v22109_v30  ;;  %v8452_v6 = vpop.f32.mrb[172].mxu0  ;;  %v25368_v40 = vpop.f32.mrb[152].mxu1  ;;  %v22149_v30 = vld [vmem:[%s26493_s5 + $0x228] sm:$0xff]  }
0x11d3   : > { %v20704_v5 = vpop.f32.mrb[173].mxu0  ;;  %v20740_v10 = vpop.f32.mrb[153].mxu1 }
0x11d4   : > { %v8455_v11 = vpop.f32.mrb[174].mxu0  ;;  %v25370_v14 = vpop.f32.mrb[154].mxu1  ;;  %v22156_v5 = vld [vmem:[#allocation12 + $0x20] sm:$0xff]   ;;  %v22158_v10 = vld [vmem:[#allocation12 + $0x30] sm:$0xff]  }
0x11d5   : > { %19382 = vmatpush3.bf16.msra.mxu0 %v22111_v50  ;;  %v8773_v15 = vpack.c.bf16 %v8455_v11, %v8452_v6  ;;  %v20705_v3 = vpop.f32.mrb[175].mxu0  ;;  %v8779_v18 = vpack.c.bf16 %v25370_v14, %v25368_v40  ;;  %v20741_v19 = vpop.f32.mrb[155].mxu1  ;;  %v22150_v50 = vld [vmem:[%s26493_s5 + $0x230] sm:$0xff]   ;;  %v22151_v6 = vld [vmem:[%s26493_s5 + $0x238] sm:$0xff]   ;;  %v22157_v40 = vld [vmem:[#allocation12 + $0x28] sm:$0xff]  }
0x11d6   : > { %19383 = vmatprep.subr.bf16.mxu0 %v22113_v8  ;;  %v22155_v8 = vld [vmem:[#allocation12 + $0x18] sm:$0xff]  }
0x11d7   : > { %v22159_v11 = vld [vmem:[#allocation12 + $0x38] sm:$0xff]  }
0x11d9   : > { %19384 = vmatpush3.bf16.msra.mxu0 %v22115_v62 }
0x11da   : > { %v8504_v44 = vpop.f32.mrb[176].mxu0  ;;  %19385 = vmatprep.subr.bf16.mxu0 %v22117_v21  ;;  %v18076_v21 = vld [vmem:[%s26494_s2] ss:$0 sm:$0xff]  ;;  %s26495_s2 = sld [smem:[#allocation84_spill]] }
0x11db   : > { %v20710_v22 = vpop.f32.mrb[177].mxu0 }
0x11dc   : > { %v8507_v61 = vpop.f32.mrb[178].mxu0 }
0x11dd   : > { %v8774_v0 = vpack.c.bf16 %v8507_v61, %v8504_v44  ;;  %19386 = vmatpush3.bf16.msra.mxu0 %v22119_v42  ;;  %v20711_v34 = vpop.f32.mrb[179].mxu0 }
0x11de   : > { %19387 = vmatprep.subr.bf16.mxu0 %v22120_v51 }
0x11df   : > { %9291 = vmatprep.mubr.bf16.mxu1 %v8774_v0 }
0x11e0   : > { %9292 = vmatmul.mubr.bf16.vlgmr.msra.gmra.mrb[156].mxu1 %v8773_v15 }
0x11e1   : > { %19388 = vmatpush3.bf16.msra.mxu0 %v22122_v33  ;;  %19402 = vmatpush3.bf16.msra.mxu1 %v22123_v28 }
0x11e2   : > { %19389 = vmatprep.subr.bf16.mxu0 %v22124_v35  ;;  %19403 = vmatprep.subr.bf16.mxu1 %v22125_v39  ;;  %v8608_v43 = vpop.f32.mrb[180].mxu0 }
0x11e3   : > { %v20722_v53 = vpop.f32.mrb[181].mxu0 }
0x11e4   : > { %v8611_v57 = vpop.f32.mrb[182].mxu0 }
0x11e5   : > { %19390 = vmatpush3.bf16.msra.mxu0 %v22126_v27  ;;  %19404 = vmatpush3.bf16.msra.mxu1 %v22127_v36  ;;  %v8776_v56 = vpack.c.bf16 %v8611_v57, %v8608_v43  ;;  %v20723_v58 = vpop.f32.mrb[183].mxu0 }
0x11e6   : > { %19391 = vmatprep.subr.bf16.mxu0 %v22128_v46  ;;  %19405 = vmatprep.subr.bf16.mxu1 %v22129_v52 }
0x11e7   : > { %9332 = vmatprep.mubr.bf16.mxu0 %v8776_v56 }
0x11e9   : > { %19392 = vmatpush3.bf16.msra.mxu0 %v22130_v60  ;;  %19406 = vmatpush3.bf16.msra.mxu1 %v22131_v54 }
0x11ea   : > { %19393 = vmatprep.subr.bf16.mxu0 %v22132_v59  ;;  %19407 = vmatprep.subr.bf16.mxu1 %v22133_v63  ;;  %v8712_v7 = vpop.f32.mrb[184].mxu0 }
0x11eb   : > { %v20734_v13 = vpop.f32.mrb[185].mxu0 }
0x11ec   : > { %v8715_v16 = vpop.f32.mrb[186].mxu0 }
0x11ed   : > { %19394 = vmatpush3.bf16.msra.mxu0 %v22134_v1  ;;  %19408 = vmatpush3.bf16.msra.mxu1 %v22135_v31  ;;  %v8778_v32 = vpack.c.bf16 %v8715_v16, %v8712_v7  ;;  %v20735_v20 = vpop.f32.mrb[187].mxu0 }
0x11ee   : > { %19409 = vmatprep.subr.bf16.mxu1 %v22136_v24  ;;  %20742 = vmatprep.subr.bf16.mxu0 %v23617_v49 }
0x11ef   : > { %9373 = vmatprep.mubr.bf16.mxu1 %v8778_v32 }
0x11f0   : > { %9333 = vmatmul.mubr.bf16.vlgmr.msra.gmra.mrb[192].mxu0 %v8775_v55  ;;  %v22146_v55 = vld [vmem:[%s26493_s5 + $0x1b8] sm:$0xff]  }
0x11f1   : > { %19410 = vmatpush3.bf16.msra.mxu1 %v22137_v2  ;;  %20743 = vmatpush3.bf16.msra.mxu0 %v22138_v25 }
0x11f2   : > { %19411 = vmatprep.subr.bf16.mxu1 %v22139_v48  ;;  %20744 = vmatprep.subr.bf16.mxu0 %v23617_v49 }
0x11f3   : > { %20758 = vmatprep.mubr.msk.bf16.mxu0 %vm23618_vm1, %v23617_v49 }
0x11f5   : > { %19412 = vmatpush3.bf16.msra.mxu1 %v22140_v17  ;;  %20745 = vmatpush3.bf16.msra.mxu0 %v22141_v9  ;;  %v22160_v17 = vld [vmem:[#allocation13] sm:$0xff]   ;;  %v22161_v9 = vld [vmem:[#allocation13 + $0x8] sm:$0xff]  }
0x11f6   : > { %19413 = vmatprep.subr.bf16.mxu1 %v22142_v38  ;;  %20746 = vmatprep.subr.bf16.mxu0 %v23617_v49  ;;  %v22162_v38 = vld [vmem:[#allocation13 + $0x10] sm:$0xff]  }
0x11f9   : > { %19414 = vmatpush3.bf16.msra.mxu1 %v22143_v41  ;;  %20747 = vmatpush3.bf16.msra.mxu0 %v22144_v23  ;;  %v22163_v41 = vld [vmem:[#allocation13 + $0x18] sm:$0xff]   ;;  %v22164_v23 = vld [vmem:[#allocation13 + $0x20] sm:$0xff]  }
0x11fa   : > { %19415 = vmatprep.subr.bf16.mxu1 %v22145_v37  ;;  %20748 = vmatprep.subr.bf16.mxu0 %v23617_v49  ;;  %v22165_v37 = vld [vmem:[#allocation13 + $0x28] sm:$0xff]  }
0x11fd   : > { %19416 = vmatpush3.bf16.msra.mxu1 %v22146_v55  ;;  %20749 = vmatpush3.bf16.msra.mxu0 %v22147_v45  ;;  %v22166_v55 = vld [vmem:[#allocation13 + $0x30] sm:$0xff]   ;;  %v22167_v45 = vld [vmem:[#allocation13 + $0x38] sm:$0xff]  }
0x11fe   : > { %20750 = vmatprep.subr.bf16.mxu0 %v23617_v49  ;;  %20762 = vmatprep.subr.bf16.mxu1 %v23617_v49 }
0x1200   : > { %9374 = vmatmul.mubr.bf16.vlgmr.msra.gmra.mrb[160].mxu1 %v8777_v12  ;;  %v22154_v12 = vld [vmem:[#allocation12 + $0x10] sm:$0xff]  }
0x1201   : > { %20751 = vmatpush3.bf16.msra.mxu0 %v22148_v26  ;;  %20778 = vmatprep.mubr.msk.bf16.mxu1 %vm23618_vm1, %v23617_v49  ;;  %v18149_v26 = vld [vmem:[%s26495_s2] ss:$0 sm:$0xff]  ;;  %s26497_s2 = sld [smem:[#allocation87_spill]] }
0x1202   : > { %20752 = vmatprep.subr.bf16.mxu0 %v23617_v49  ;;  %20763 = vmatpush3.bf16.msra.mxu1 %v22152_v4 }
0x1203   : > { %20764 = vmatprep.subr.bf16.mxu1 %v23617_v49 }
0x1205   : > { %20753 = vmatpush3.bf16.msra.mxu0 %v22149_v30 }
0x1206   : > { %20754 = vmatprep.subr.bf16.mxu0 %v23617_v49  ;;  %20765 = vmatpush3.bf16.msra.mxu1 %v22153_v29 }
0x1207   : > { %20766 = vmatprep.subr.bf16.mxu1 %v23617_v49 }
0x1209   : > { %20755 = vmatpush3.bf16.msra.mxu0 %v22150_v50 }
0x120a   : > { %20756 = vmatprep.subr.bf16.mxu0 %v23617_v49  ;;  %20767 = vmatpush3.bf16.msra.mxu1 %v22154_v12 }
0x120b   : > { %20768 = vmatprep.subr.bf16.mxu1 %v23617_v49 }
0x120d   : > { %20757 = vmatpush3.bf16.msra.mxu0 %v22151_v6  ;;  %v9521_v6 = vunpack.c.l.bf16 %v25273_v47 }
0x120e   : > { %20782 = vmatprep.subr.bf16.mxu0 %v23617_v49  ;;  %20769 = vmatpush3.bf16.msra.mxu1 %v22155_v8 }
0x120f   : > { %20770 = vmatprep.subr.bf16.mxu1 %v23617_v49 }
0x1210   : > { %20759 = vmatmul.mubr.bf16.vlgmr.msra.gmra.mrb[196].mxu0 %v8779_v18 }
0x1211   : > { %20798 = vmatprep.mubr.msk.bf16.mxu0 %vm23618_vm1, %v23617_v49  ;;  %20783 = vmatpush3.bf16.msra.mxu0 %v22160_v17  ;;  %v22178_v17 = vld [vmem:[%s26497_s2 + $0x20] sm:$0xff]  }
0x1212   : > { %20771 = vmatpush3.bf16.msra.mxu1 %v22156_v5  ;;  %20784 = vmatprep.subr.bf16.mxu0 %v23617_v49  ;;  %v9522_v5 = vunpack.c.h.bf16 %v25273_v47 }
0x1213   : > { %20772 = vmatprep.subr.bf16.mxu1 %v23617_v49 }
0x1215   : > { %20785 = vmatpush3.bf16.msra.mxu0 %v22161_v9  ;;  %v22180_v9 = vld [vmem:[%s26497_s2 + $0x68] sm:$0xff]  }
0x1216   : > { %20773 = vmatpush3.bf16.msra.mxu1 %v22157_v40  ;;  %20786 = vmatprep.subr.bf16.mxu0 %v23617_v49 }
0x1217   : > { %20774 = vmatprep.subr.bf16.mxu1 %v23617_v49 }
0x1219   : > { %20787 = vmatpush3.bf16.msra.mxu0 %v22162_v38  ;;  %v22182_v38 = vld [vmem:[%s26497_s2 + $0x28] sm:$0xff]  }
0x121a   : > { %20775 = vmatpush3.bf16.msra.mxu1 %v22158_v10  ;;  %20788 = vmatprep.subr.bf16.mxu0 %v23617_v49 }
0x121b   : > { %20776 = vmatprep.subr.bf16.mxu1 %v23617_v49 }
0x121d   : > { %20789 = vmatpush3.bf16.msra.mxu0 %v22163_v41  ;;  %v22183_v41 = vld [vmem:[%s26497_s2 + $0x88] sm:$0xff]  }
0x121e   : > { %20777 = vmatpush3.bf16.msra.mxu1 %v22159_v11  ;;  %20790 = vmatprep.subr.bf16.mxu0 %v23617_v49 }
0x121f   : > { %20802 = vmatprep.subr.bf16.mxu1 %v23617_v49 }
0x1221   : > { %20791 = vmatpush3.bf16.msra.mxu0 %v22164_v23  ;;  %v22184_v23 = vld [vmem:[%s26497_s2 + $0x70] sm:$0xff]  }
0x1222   : > { %20792 = vmatprep.subr.bf16.mxu0 %v23617_v49 }
0x1225   : > { %20793 = vmatpush3.bf16.msra.mxu0 %v22165_v37  ;;  %v22185_v37 = vld [vmem:[%s26497_s2 + $0xd0] sm:$0xff]  }
0x1226   : > { %20794 = vmatprep.subr.bf16.mxu0 %v23617_v49 }
0x1229   : > { %20795 = vmatpush3.bf16.msra.mxu0 %v22166_v55  ;;  %v22186_v55 = vld [vmem:[%s26497_s2 + $0x30] sm:$0xff]  }
0x122a   : > { %20796 = vmatprep.subr.bf16.mxu0 %v23617_v49 }
0x122d   : > { %20797 = vmatpush3.bf16.msra.mxu0 %v22167_v45  ;;  %v22187_v45 = vld [vmem:[%s26497_s2 + $0x90] sm:$0xff]  }
0x122e   : > { %20826 = vmatprep.subr.bf16.mxu0 %v23617_v49 }
0x12a3   : > { %v19351_v14 = vpop.f32.mrb[188].mxu0 }
0x12a4   : > { %v19352_v15 = vpop.f32.mrb[189].mxu0 }
0x12a5   : > { %v19353_v62 = vadd.f32 %v19352_v15, %v19351_v14  ;;  %v19354_v3 = vpop.f32.mrb[190].mxu0 }
0x12a6   : > { %v19355_v18 = vpop.f32.mrb[191].mxu0 }
0x12a7   : > { %v19356_v19 = vadd.f32 %v19355_v18, %v19354_v3  ;;  %v9253_v51 = vadd.f32 %v19353_v62, %v18076_v21 }
0x12a9   : > { %v9256_v33 = vadd.f32 %v19356_v19, %v18076_v21 }
0x12b3   : > { %v19373_v42 = vpop.f32.mrb[156].mxu1 }
0x12b4   : > { %v19374_v44 = vpop.f32.mrb[157].mxu1 }
0x12b5   : > { %v19375_v22 = vadd.f32 %v19374_v44, %v19373_v42  ;;  %v19376_v61 = vpop.f32.mrb[158].mxu1 }
0x12b6   : > { %v19377_v0 = vpop.f32.mrb[159].mxu1 }
0x12b7   : > { %v9294_v28 = vadd.f32 %v19375_v22, %v9253_v51  ;;  %v19378_v34 = vadd.f32 %v19377_v0, %v19376_v61  ;;  %v18158_v61 = vld [vmem:[%s26496_s1] ss:$0 sm:$0xff]  ;;  %s26498_s1 = sld [smem:[#allocation89_spill]] }
0x12b9   : > { %v9297_v35 = vadd.f32 %v19378_v34, %v9256_v33 }
0x12c3   : > { %v19395_v39 = vpop.f32.mrb[192].mxu0 }
0x12c4   : > { %v19396_v27 = vpop.f32.mrb[193].mxu0 }
0x12c5   : > { %v19397_v36 = vadd.f32 %v19396_v27, %v19395_v39  ;;  %v19398_v43 = vpop.f32.mrb[194].mxu0 }
0x12c6   : > { %v19399_v46 = vpop.f32.mrb[195].mxu0 }
0x12c7   : > { %v9335_v52 = vadd.f32 %v19397_v36, %v9294_v28  ;;  %v19400_v53 = vadd.f32 %v19399_v46, %v19398_v43  ;;  %v9831_v46 = vld [vmem:[#allocation15] sm:$0xf] }
0x12c9   : > { %v9338_v57 = vadd.f32 %v19400_v53, %v9297_v35  ;;  %v9876_v53 = vld [vmem:[#allocation15 + $0x4] sm:$0xf] }
0x12d3   : > { %v19417_v60 = vpop.f32.mrb[160].mxu1 }
0x12d4   : > { %v19418_v54 = vpop.f32.mrb[161].mxu1 }
0x12d5   : > { %v19419_v56 = vadd.f32 %v19418_v54, %v19417_v60  ;;  %v19420_v58 = vpop.f32.mrb[162].mxu1  ;;  %v22177_v60 = vld [vmem:[%s26497_s2 + $0xc0] sm:$0xff]   ;;  %v9921_v54 = vld [vmem:[#allocation15 + $0x8] sm:$0xf] }
0x12d6   : > { %v19421_v59 = vpop.f32.mrb[163].mxu1 }
0x12d7   : > { %v19422_v63 = vadd.f32 %v19421_v59, %v19420_v58  ;;  %v9376_v1 = vadd.f32 %v19419_v56, %v9335_v52  ;;  %v25461_v52 = vld [vmem:[#allocation15 + $0x10] sm:$0xf]  ;;  %v10191_v56 = vld [vmem:[#allocation15 + $0x20] sm:$0xf]  ;;  %v22181_v59 = vld [vmem:[%s26497_s2 + $0xc8] sm:$0xff]  }
0x12d8   : > { %v22179_v58 = vld [vmem:[%s26497_s2 + $0x80] sm:$0xff]  }
0x12d9   : > { %v9379_v31 = vadd.f32 %v19422_v63, %v9338_v57  ;;  %v10101_v57 = vld [vmem:[#allocation15 + $0x18] sm:$0xf]  ;;  %v9966_v63 = vld [vmem:[#allocation15 + $0xc] sm:$0xf] }
0x12e3   : > { %v9416_v24 = vpop.f32.mrb[196].mxu0 }
0x12e4   : > { %v9417_v7 = vadd.f32 %v9416_v24, %v9376_v1  ;;  %v20760_v13 = vpop.f32.mrb[197].mxu0  ;;  %v10056_v1 = vld [vmem:[#allocation15 + $0x14] sm:$0xf]  ;;  %v10146_v24 = vld [vmem:[#allocation15 + $0x1c] sm:$0xf] }
0x12e5   : > { %v9419_v16 = vpop.f32.mrb[198].mxu0  ;;  %v22170_v13 = vld [vmem:[%s26497_s2 + $0x48] sm:$0xff]  }
0x12e6   : > { %v9420_v2 = vadd.f32 %v9419_v16, %v9379_v31  ;;  %v20761_v25 = vpop.f32.mrb[199].mxu0  ;;  %v9423_v32 = vmax.f32 %v9417_v7, 0.0  ;;  %v22168_v31 = vld [vmem:[%s26497_s2 + $0x40] sm:$0xff]   ;;  %v22171_v16 = vld [vmem:[%s26497_s2 + $0x8] sm:$0xff]  }
0x12e7   : > { %v22169_v7 = vld [vmem:[%s26497_s2] sm:$0xff]   ;;  %v22173_v25 = vld [vmem:[%s26497_s2 + $0x10] sm:$0xff]  }
0x12e8   : > { %v9424_v20 = vmax.f32 %v9420_v2, 0.0  ;;  %v22172_v2 = vld [vmem:[%s26497_s2 + $0x50] sm:$0xff]  }
0x12ea   : > { %v9425_v48 = vpack.c.bf16 %v9424_v20, %v9423_v32  ;;  %v22174_v32 = vld [vmem:[%s26497_s2 + $0x58] sm:$0xff]  }
0x12eb   : > { %v22175_v20 = vld [vmem:[%s26497_s2 + $0x18] sm:$0xff]  }
0x12ec   : > { %20779 = vmatmul.mubr.bf16.vlgmr.msra.gmra.mrb[164].mxu1 %v9425_v48  ;;  %v22176_v48 = vld [vmem:[%s26497_s2 + $0x60] sm:$0xff]  }
0x12ed   : > { %20804 = vmatprep.mubr.msk.bf16.mxu1 %vm23618_vm1, %v23617_v49 }
0x13bf   : > { %v9514_v30 = vpop.f32.mrb[164].mxu1 }
0x13c0   : > { %v9515_v50 = vadd.f32 %v18149_v26, %v9514_v30  ;;  %v20780_v4 = vpop.f32.mrb[165].mxu1  ;;  %v22189_v30 = vld [vmem:[%s26497_s2 + $0xd8] sm:$0xff]  }
0x13c1   : > { %v9517_v29 = vpop.f32.mrb[166].mxu1  ;;  %v22192_v4 = vld [vmem:[%s26497_s2 + $0xe0] sm:$0xff]  }
0x13c2   : > { %v9523_v12 = vadd.f32 %v9521_v6, %v9515_v50  ;;  %v9518_v8 = vadd.f32 %v18149_v26, %v9517_v29  ;;  %v20781_v40 = vpop.f32.mrb[167].mxu1  ;;  %v22188_v26 = vld [vmem:[%s26497_s2 + $0x78] sm:$0xff]   ;;  %v22193_v29 = vld [vmem:[%s26497_s2 + $0x140] sm:$0xff]  }
0x13c3   : > { %v22190_v50 = vld [vmem:[%s26497_s2 + $0x38] sm:$0xff]   ;;  %v22200_v40 = vld [vmem:[%s26497_s2 + $0xf0] sm:$0xff]  }
0x13c4   : > { %v9525_v10 = vmax.f32 %v9523_v12, 0.0  ;;  %v9524_v11 = vadd.f32 %v9522_v5, %v9518_v8  ;;  %v22191_v6 = vld [vmem:[%s26497_s2 + $0x98] sm:$0xff]   ;;  %v22194_v12 = vld [vmem:[%s26497_s2 + $0xa0] sm:$0xff]   ;;  %v22196_v8 = vld [vmem:[%s26497_s2 + $0xe8] sm:$0xff]  }
0x13c5   : > { %v22198_v5 = vld [vmem:[%s26497_s2 + $0xa8] sm:$0xff]  }
0x13c6   : > { %v9527_v14 = vsub.f32 0.0, %v9525_v10  ;;  %v9526_v15 = vmax.f32 %v9524_v11, 0.0  ;;  %v22202_v10 = vld [vmem:[%s26497_s2 + $0xb0] sm:$0xff]   ;;  %v22204_v11 = vld [vmem:[%s26497_s2 + $0xf8] sm:$0xff]  }
0x13c8   : > { %v9529_v62 = vmul.f32 1.442695, %v9527_v14  ;;  %v9528_v3 = vsub.f32 0.0, %v9526_v15  ;;  %v22206_v14 = vld [vmem:[%s26497_s2 + $0xb8] sm:$0xff]   ;;  %v22209_v15 = vld [vmem:[%s26497_s2 + $0x1c0] sm:$0xff]  }
0x13ca   : > { %22696 = vpow2.f32 %v9529_v62  ;;  %v9531_v18 = vmul.f32 1.442695, %v9528_v3 }
0x13cc   : > { %22698 = vpow2.f32 %v9531_v18 }
0x13d4   : > { %v22697_v19 = vpop.eup %22696 }
0x13d5   : > { %v9533_v21 = vadd.f32 1.0, %v22697_v19 }
0x13d6   : > { %v22699_v42 = vpop.eup %22698 }
0x13d7   : > { %v9534_v44 = vadd.f32 1.0, %v22699_v42  ;;  %22700 = vrcp.f32 %v9533_v21 }
0x13d9   : > { %22702 = vrcp.f32 %v9534_v44 }
0x13e1   : > { %v22701_v51 = vpop.eup %22700 }
0x13e3   : > { %v22703_v22 = vpop.eup %22702 }
0x13e4   : > { %v25455_v47 = vpack.c.bf16 %v22703_v22, %v22701_v51 }
0x13e6   : > { %20799 = vmatmul.mubr.bf16.vlgmr.msra.gmra.mrb[200].mxu0 %v25455_v47 }
0x13e7   : > { %20828 = vmatprep.mubr.msk.bf16.mxu0 %vm23618_vm1, %v23617_v49 }
0x14b9   : > { %v9821_v0 = vpop.f32.mrb[200].mxu0 }
0x14ba   : > { %v9822_v33 = vadd.f32 %v18158_v61, %v9821_v0  ;;  %v20800_v28 = vpop.f32.mrb[201].mxu0 }
0x14bb   : > { %v9824_v34 = vpop.f32.mrb[202].mxu0  ;;  %v22195_v28 = vld [vmem:[%s26497_s2 + $0x100] sm:$0xff]  }
0x14bc   : > { %v9825_v35 = vadd.f32 %v18158_v61, %v9824_v34  ;;  %v20801_v39 = vpop.f32.mrb[203].mxu0  ;;  %v9828_v27 = vmax.f32 %v9822_v33, 0.0 }
0x14be   : > { %v9829_v36 = vmax.f32 %v9825_v35, 0.0 }
0x14c0   : > { %v9830_v43 = vpack.c.bf16 %v9829_v36, %v9828_v27  ;;  %v22197_v27 = vld [vmem:[%s26497_s2 + $0x148] sm:$0xff]  }
0x14c2   : > { %20803 = vmatpush3.bf16.msra.mxu1 %v9830_v43  ;;  %20827 = vmatpush3.bf16.msra.mxu0 %v9830_v43 }
0x14c3   : > { %20808 = vmatprep.subr.bf16.mxu1 %v23617_v49  ;;  %20838 = vmatprep.subr.bf16.mxu0 %v23617_v49 }
0x14c5   : > { %20805 = vmatmul.mubr.msk.bf16.vlgmr.msra.gmra.mrb[168].mxu1 %vm6799_vm2, %v9831_v46  ;;  %20829 = vmatmul.mubr.msk.bf16.vlgmr.msra.gmra.mrb[204].mxu0 %vm6799_vm2, %v25461_v52 }
0x14c6   : > { %20809 = vmatpush3.bf16.msra.mxu1 %v9830_v43  ;;  %20839 = vmatpush3.bf16.msra.mxu0 %v9830_v43 }
0x14c7   : > { %20810 = vmatprep.mubr.msk.bf16.mxu1 %vm23618_vm1, %v23617_v49  ;;  %20814 = vmatprep.subr.bf16.mxu1 %v23617_v49 }
0x14c8   : > { %20840 = vmatprep.mubr.msk.bf16.mxu0 %vm23618_vm1, %v23617_v49  ;;  %20850 = vmatprep.subr.bf16.mxu0 %v23617_v49 }
0x14cd   : > { %20811 = vmatmul.mubr.msk.bf16.vlgmr.msra.gmra.mrb[172].mxu1 %vm6799_vm2, %v9876_v53  ;;  %20841 = vmatmul.mubr.msk.bf16.vlgmr.msra.gmra.mrb[208].mxu0 %vm6799_vm2, %v10101_v57  ;;  %v22199_v53 = vld [vmem:[%s26497_s2 + $0x108] sm:$0xff]   ;;  %v22201_v57 = vld [vmem:[%s26497_s2 + $0x150] sm:$0xff]  }
0x14ce   : > { %20815 = vmatpush3.bf16.msra.mxu1 %v9830_v43  ;;  %20851 = vmatpush3.bf16.msra.mxu0 %v9830_v43 }
0x14cf   : > { %20816 = vmatprep.mubr.msk.bf16.mxu1 %vm23618_vm1, %v23617_v49  ;;  %20820 = vmatprep.subr.bf16.mxu1 %v23617_v49 }
0x14d0   : > { %20852 = vmatprep.mubr.msk.bf16.mxu0 %vm23618_vm1, %v23617_v49  ;;  %19490 = vmatprep.subr.bf16.mxu0 %v22177_v60 }
0x14d5   : > { %20817 = vmatmul.mubr.msk.bf16.vlgmr.msra.gmra.mrb[176].mxu1 %vm6799_vm2, %v9921_v54  ;;  %20853 = vmatmul.mubr.msk.bf16.vlgmr.msra.gmra.mrb[212].mxu0 %vm6799_vm2, %v10191_v56  ;;  %v22203_v56 = vld [vmem:[%s26497_s2 + $0x110] sm:$0xff]  }
0x14d6   : > { %20821 = vmatpush3.bf16.msra.mxu1 %v9830_v43  ;;  %20822 = vmatprep.mubr.msk.bf16.mxu1 %vm23618_vm1, %v23617_v49 }
0x14d7   : > { %20832 = vmatprep.subr.bf16.mxu1 %v23617_v49  ;;  %19491 = vmatpush3.bf16.msra.mxu0 %v22179_v58 }
0x14d8   : > { %19492 = vmatprep.subr.bf16.mxu0 %v22181_v59 }
0x14db   : > { %19493 = vmatpush3.bf16.msra.mxu0 %v22183_v41  ;;  %v22213_v41 = vld [vmem:[%s26497_s2 + $0x1c8] sm:$0xff]  }
0x14dc   : > { %19494 = vmatprep.subr.bf16.mxu0 %v22185_v37  ;;  %v22214_v37 = vld [vmem:[%s26497_s2 + $0x128] sm:$0xff]  }
0x14dd   : > { %20823 = vmatmul.mubr.msk.bf16.vlgmr.msra.gmra.mrb[180].mxu1 %vm6799_vm2, %v9966_v63 }
0x14de   : > { %20833 = vmatpush3.bf16.msra.mxu1 %v9830_v43  ;;  %20834 = vmatprep.mubr.msk.bf16.mxu1 %vm23618_vm1, %v23617_v49 }
0x14df   : > { %20844 = vmatprep.subr.bf16.mxu1 %v23617_v49  ;;  %19495 = vmatpush3.bf16.msra.mxu0 %v22187_v45  ;;  %v22216_v45 = vld [vmem:[%s26497_s2 + $0x170] sm:$0xff]  }
0x14e0   : > { %19496 = vmatprep.subr.bf16.mxu0 %v22189_v30 }
0x14e3   : > { %19497 = vmatpush3.bf16.msra.mxu0 %v22191_v6  ;;  %v22219_v6 = vld [vmem:[%s26497_s2 + $0x190] sm:$0xff]  }
0x14e4   : > { %19498 = vmatprep.subr.bf16.mxu0 %v22192_v4 }
0x14e5   : > { %20835 = vmatmul.mubr.msk.bf16.vlgmr.msra.gmra.mrb[184].mxu1 %vm6799_vm2, %v10056_v1  ;;  %v22205_v1 = vld [vmem:[%s26497_s2 + $0x158] sm:$0xff]  }
0x14e6   : > { %20845 = vmatpush3.bf16.msra.mxu1 %v9830_v43  ;;  %20846 = vmatprep.mubr.msk.bf16.mxu1 %vm23618_vm1, %v23617_v49 }
0x14e7   : > { %19468 = vmatprep.subr.bf16.mxu1 %v22168_v31  ;;  %19499 = vmatpush3.bf16.msra.mxu0 %v22194_v12 }
0x14e8   : > { %19500 = vmatprep.subr.bf16.mxu0 %v22196_v8  ;;  %v22220_v8 = vld [vmem:[%s26497_s2 + $0x178] sm:$0xff]  }
0x14eb   : > { %19501 = vmatpush3.bf16.msra.mxu0 %v22198_v5  ;;  %v22221_v5 = vld [vmem:[%s26497_s2 + $0x1d8] sm:$0xff]  }
0x14ec   : > { %19502 = vmatprep.subr.bf16.mxu0 %v22200_v40 }
0x14ed   : > { %20847 = vmatmul.mubr.msk.bf16.vlgmr.msra.gmra.mrb[188].mxu1 %vm6799_vm2, %v10146_v24 }
0x14ee   : > { %19469 = vmatpush3.bf16.msra.mxu1 %v22169_v7 }
0x14ef   : > { %19470 = vmatprep.subr.bf16.mxu1 %v22170_v13  ;;  %19503 = vmatpush3.bf16.msra.mxu0 %v22202_v10  ;;  %v22207_v13 = vld [vmem:[%s26497_s2 + $0x118] sm:$0xff]  }
0x14f0   : > { %19504 = vmatprep.subr.bf16.mxu0 %v22204_v11  ;;  %v22222_v10 = vld [vmem:[%s26497_s2 + $0x138] sm:$0xff]  }
0x14f1   : > { %v22223_v11 = vld [vmem:[%s26497_s2 + $0x198] sm:$0xff]  }
0x14f2   : > { %19471 = vmatpush3.bf16.msra.mxu1 %v22171_v16  ;;  %v22208_v16 = vld [vmem:[%s26497_s2 + $0x160] sm:$0xff]  }
0x14f3   : > { %19472 = vmatprep.subr.bf16.mxu1 %v22172_v2  ;;  %19505 = vmatpush3.bf16.msra.mxu0 %v22206_v14  ;;  %v22224_v14 = vld [vmem:[%s26497_s2 + $0x1e0] sm:$0xff]  }
0x14f4   : > { %19534 = vmatprep.subr.bf16.mxu0 %v22209_v15 }
0x14f6   : > { %19473 = vmatpush3.bf16.msra.mxu1 %v22173_v25 }
0x14f7   : > { %19474 = vmatprep.subr.bf16.mxu1 %v22174_v32 }
0x14fa   : > { %19475 = vmatpush3.bf16.msra.mxu1 %v22175_v20  ;;  %v22210_v20 = vld [vmem:[%s26497_s2 + $0x120] sm:$0xff]  }
0x14fb   : > { %19476 = vmatprep.subr.bf16.mxu1 %v22176_v48  ;;  %v22211_v48 = vld [vmem:[%s26497_s2 + $0x180] sm:$0xff]  }
0x14fe   : > { %19477 = vmatpush3.bf16.msra.mxu1 %v22178_v17 }
0x14ff   : > { %19478 = vmatprep.subr.bf16.mxu1 %v22180_v9 }
0x1502   : > { %19479 = vmatpush3.bf16.msra.mxu1 %v22182_v38  ;;  %v22212_v38 = vld [vmem:[%s26497_s2 + $0x168] sm:$0xff]  }
0x1503   : > { %19480 = vmatprep.subr.bf16.mxu1 %v22184_v23 }
0x1506   : > { %19481 = vmatpush3.bf16.msra.mxu1 %v22186_v55  ;;  %v22215_v55 = vld [vmem:[%s26497_s2 + $0x188] sm:$0xff]  }
0x1507   : > { %19482 = vmatprep.subr.bf16.mxu1 %v22188_v26  ;;  %v22217_v26 = vld [vmem:[%s26497_s2 + $0x1d0] sm:$0xff]  }
0x150a   : > { %19483 = vmatpush3.bf16.msra.mxu1 %v22190_v50  ;;  %v22218_v50 = vld [vmem:[%s26497_s2 + $0x130] sm:$0xff]  }
0x150b   : > { %19512 = vmatprep.subr.bf16.mxu1 %v22193_v29 }
0x1598   : > { %v9869_v62 = vpop.f32.mrb[168].mxu1  ;;  %v25528_v3 = vpop.f32.mrb[204].mxu0 }
0x1599   : > { %v20806_v18 = vpop.f32.mrb[169].mxu1  ;;  %v20830_v19 = vpop.f32.mrb[205].mxu0  ;;  %v10235_v35 = vpack.c.bf16 %v9869_v62, %v9869_v62  ;;  %v10239_v15 = vpack.c.bf16 %v25528_v3, %v25528_v3  ;;  %v22228_v3 = vld [vmem:[%s26497_s2 + $0x1a8] sm:$0xff]  }
0x159a   : > { %v9872_v21 = vpop.f32.mrb[170].mxu1  ;;  %v10052_v42 = vpop.f32.mrb[206].mxu0  ;;  %v22225_v18 = vld [vmem:[%s26497_s2 + $0x1a0] sm:$0xff]  }
0x159b   : > { %v20807_v44 = vpop.f32.mrb[171].mxu1  ;;  %v20831_v51 = vpop.f32.mrb[207].mxu0  ;;  %v22226_v19 = vld [vmem:[%s26497_s2 + $0x200] sm:$0xff]  }
0x159c   : > { %v22227_v44 = vld [vmem:[%s26497_s2 + $0x1e8] sm:$0xff]  }
0x15a0   : > { %v9914_v22 = vpop.f32.mrb[172].mxu1  ;;  %v25530_v61 = vpop.f32.mrb[208].mxu0 }
0x15a1   : > { %v10236_v0 = vpack.c.bf16 %v9914_v22, %v9914_v22  ;;  %v20812_v33 = vpop.f32.mrb[173].mxu1  ;;  %v20842_v34 = vpop.f32.mrb[209].mxu0 }
0x15a2   : > { %v9917_v39 = vpop.f32.mrb[174].mxu1  ;;  %v10142_v36 = vpop.f32.mrb[210].mxu0  ;;  %v22230_v33 = vld [vmem:[%s26497_s2 + $0x1f0] sm:$0xff]  }
0x15a3   : > { %v20813_v43 = vpop.f32.mrb[175].mxu1  ;;  %10714 = vmatprep.mubr.bf16.mxu1 %v10236_v0  ;;  %v20843_v46 = vpop.f32.mrb[211].mxu0  ;;  %v22229_v0 = vld [vmem:[%s26497_s2 + $0x208] sm:$0xff]   ;;  %v22232_v34 = vld [vmem:[%s26497_s2 + $0x210] sm:$0xff]   ;;  %v22234_v39 = vld [vmem:[%s26497_s2 + $0x1b8] sm:$0xff]   ;;  %v10241_v36 = vpack.c.bf16 %v25530_v61, %v25530_v61 }
0x15a4   : > { %10715 = vmatmul.mubr.bf16.vlgmr.msra.gmra.mrb[192].mxu1 %v10235_v35  ;;  %v22233_v35 = vld [vmem:[%s26497_s2 + $0x1f8] sm:$0xff]   ;;  %v22236_v43 = vld [vmem:[%s26497_s2 + $0x220] sm:$0xff]   ;;  %v22237_v46 = vld [vmem:[%s26497_s2 + $0x228] sm:$0xff]  }
0x15a5   : > { %19513 = vmatpush3.bf16.msra.mxu1 %v22195_v28  ;;  %v22231_v28 = vld [vmem:[%s26497_s2 + $0x1b0] sm:$0xff]   ;;  %v22239_v61 = vld [vmem:[%s26497_s2 + $0x238] sm:$0xff]  }
0x15a6   : > { %19514 = vmatprep.subr.bf16.mxu1 %v22197_v27  ;;  %v22235_v27 = vld [vmem:[%s26497_s2 + $0x218] sm:$0xff]  }
0x15a8   : > { %v9959_v60 = vpop.f32.mrb[176].mxu1  ;;  %v25536_v54 = vpop.f32.mrb[212].mxu0 }
0x15a9   : > { %19515 = vmatpush3.bf16.msra.mxu1 %v22199_v53  ;;  %v20818_v58 = vpop.f32.mrb[177].mxu1  ;;  %v20854_v59 = vpop.f32.mrb[213].mxu0  ;;  %v10237_v2 = vpack.c.bf16 %v9959_v60, %v9959_v60  ;;  %v22238_v53 = vld [vmem:[%s26497_s2 + $0x230] sm:$0xff]   ;;  %v22240_v60 = vld [vmem:[%s26498_s1] sm:$0xff]   ;;  %s26499_s2 = sld [smem:[#allocation88_spill]] }
0x15aa   : > { %19516 = vmatprep.subr.bf16.mxu1 %v22201_v57  ;;  %v9962_v63 = vpop.f32.mrb[178].mxu1  ;;  %v10232_v31 = vpop.f32.mrb[214].mxu0  ;;  %v10243_v57 = vpack.c.bf16 %v25536_v54, %v25536_v54  ;;  %v22241_v54 = vld [vmem:[%s26498_s1 + $0x8] sm:$0xff]   ;;  %v22246_v59 = vld [vmem:[%s26498_s1 + $0x30] sm:$0xff]  }
0x15ab   : > { %v20819_v24 = vpop.f32.mrb[179].mxu1  ;;  %v20855_v7 = vpop.f32.mrb[215].mxu0  ;;  %v22245_v58 = vld [vmem:[%s26498_s1 + $0x28] sm:$0xff]   ;;  %v22247_v63 = vld [vmem:[%s26498_s1 + $0x38] sm:$0xff]  }
0x15ad   : > { %19517 = vmatpush3.bf16.msra.mxu1 %v22203_v56  ;;  %v22243_v56 = vld [vmem:[%s26498_s1 + $0x18] sm:$0xff]  }
0x15ae   : > { %19518 = vmatprep.subr.bf16.mxu1 %v22205_v1 }
0x15b0   : > { %v10004_v25 = vpop.f32.mrb[180].mxu1 }
0x15b1   : > { %v10238_v32 = vpack.c.bf16 %v10004_v25, %v10004_v25  ;;  %19519 = vmatpush3.bf16.msra.mxu1 %v22207_v13  ;;  %v20824_v17 = vpop.f32.mrb[181].mxu1 }
0x15b2   : > { %19520 = vmatprep.subr.bf16.mxu1 %v22208_v16  ;;  %v10007_v9 = vpop.f32.mrb[182].mxu1  ;;  %v18176_v16 = vld [vmem:[%s26499_s2] ss:$0 sm:$0xff]  ;;  %s26500_s2 = sld [smem:[#allocation90_spill]] }
0x15b3   : > { %10754 = vmatprep.mubr.bf16.mxu0 %v10238_v32  ;;  %v20825_v23 = vpop.f32.mrb[183].mxu1 }
0x15b4   : > { %10755 = vmatmul.mubr.bf16.vlgmr.msra.gmra.mrb[216].mxu0 %v10237_v2 }
0x15b5   : > { %19521 = vmatpush3.bf16.msra.mxu1 %v22210_v20  ;;  %19535 = vmatpush3.bf16.msra.mxu0 %v22211_v48 }
0x15b6   : > { %19522 = vmatprep.subr.bf16.mxu1 %v22212_v38  ;;  %19536 = vmatprep.subr.bf16.mxu0 %v22213_v41 }
0x15b8   : > { %v10094_v30 = vpop.f32.mrb[184].mxu1 }
0x15b9   : > { %19523 = vmatpush3.bf16.msra.mxu1 %v22214_v37  ;;  %19537 = vmatpush3.bf16.msra.mxu0 %v22215_v55  ;;  %v10240_v4 = vpack.c.bf16 %v10094_v30, %v10094_v30  ;;  %v20836_v29 = vpop.f32.mrb[185].mxu1 }
0x15ba   : > { %19524 = vmatprep.subr.bf16.mxu1 %v22216_v45  ;;  %19538 = vmatprep.subr.bf16.mxu0 %v22217_v26  ;;  %v10097_v12 = vpop.f32.mrb[186].mxu1 }
0x15bb   : > { %v20837_v40 = vpop.f32.mrb[187].mxu1  ;;  %10794 = vmatprep.mubr.bf16.mxu1 %v10240_v4 }
0x15bd   : > { %19525 = vmatpush3.bf16.msra.mxu1 %v22218_v50  ;;  %19539 = vmatpush3.bf16.msra.mxu0 %v22219_v6 }
0x15be   : > { %19526 = vmatprep.subr.bf16.mxu1 %v22220_v8  ;;  %19540 = vmatprep.subr.bf16.mxu0 %v22221_v5 }
0x15c0   : > { %v10184_v62 = vpop.f32.mrb[188].mxu1 }
0x15c1   : > { %19527 = vmatpush3.bf16.msra.mxu1 %v22222_v10  ;;  %19541 = vmatpush3.bf16.msra.mxu0 %v22223_v11  ;;  %v10242_v21 = vpack.c.bf16 %v10184_v62, %v10184_v62  ;;  %v20848_v42 = vpop.f32.mrb[189].mxu1  ;;  %v22249_v62 = vld [vmem:[#allocation16 + $0x8] sm:$0xff]  }
0x15c2   : > { %19542 = vmatprep.subr.bf16.mxu0 %v22224_v14  ;;  %20856 = vmatprep.subr.bf16.mxu1 %v23617_v49  ;;  %v10187_v51 = vpop.f32.mrb[190].mxu1  ;;  %v22248_v14 = vld [vmem:[#allocation16] sm:$0xff]  }
0x15c3   : > { %10834 = vmatprep.mubr.bf16.mxu0 %v10242_v21  ;;  %v20849_v22 = vpop.f32.mrb[191].mxu1  ;;  %v22251_v51 = vld [vmem:[#allocation16 + $0x18] sm:$0xff]  }
0x15c4   : > { %10795 = vmatmul.mubr.bf16.vlgmr.msra.gmra.mrb[196].mxu1 %v10239_v15  ;;  %v22252_v22 = vld [vmem:[#allocation16 + $0x20] sm:$0xff]  }
0x15c5   : > { %19543 = vmatpush3.bf16.msra.mxu0 %v22225_v18  ;;  %20857 = vmatpush3.bf16.msra.mxu1 %v22226_v19 }
0x15c6   : > { %19544 = vmatprep.subr.bf16.mxu0 %v22227_v44  ;;  %20858 = vmatprep.subr.bf16.mxu1 %v23617_v49  ;;  %v22250_v44 = vld [vmem:[#allocation16 + $0x10] sm:$0xff]  }
0x15c7   : > { %20872 = vmatprep.mubr.msk.bf16.mxu1 %vm23618_vm1, %v23617_v49 }
0x15c9   : > { %19545 = vmatpush3.bf16.msra.mxu0 %v22228_v3  ;;  %20859 = vmatpush3.bf16.msra.mxu1 %v22229_v0  ;;  %v22253_v3 = vld [vmem:[#allocation16 + $0x28] sm:$0xff]   ;;  %v22254_v0 = vld [vmem:[#allocation16 + $0x30] sm:$0xff]  }
0x15ca   : > { %19546 = vmatprep.subr.bf16.mxu0 %v22230_v33  ;;  %20860 = vmatprep.subr.bf16.mxu1 %v23617_v49  ;;  %v22255_v33 = vld [vmem:[#allocation16 + $0x38] sm:$0xff]  }
0x15cd   : > { %19547 = vmatpush3.bf16.msra.mxu0 %v22231_v28  ;;  %20861 = vmatpush3.bf16.msra.mxu1 %v22232_v34  ;;  %v22256_v34 = vld [vmem:[#allocation18] sm:$0xff]  }
0x15ce   : > { %19548 = vmatprep.subr.bf16.mxu0 %v22233_v35  ;;  %20862 = vmatprep.subr.bf16.mxu1 %v23617_v49  ;;  %v22257_v35 = vld [vmem:[#allocation18 + $0x8] sm:$0xff]  }
0x15d1   : > { %19549 = vmatpush3.bf16.msra.mxu0 %v22234_v39  ;;  %20863 = vmatpush3.bf16.msra.mxu1 %v22235_v27  ;;  %v22258_v39 = vld [vmem:[#allocation18 + $0x10] sm:$0xff]   ;;  %v22259_v27 = vld [vmem:[#allocation18 + $0x18] sm:$0xff]  }
0x15d2   : > { %20864 = vmatprep.subr.bf16.mxu1 %v23617_v49  ;;  %20876 = vmatprep.subr.bf16.mxu0 %v23617_v49 }
0x15d4   : > { %10835 = vmatmul.mubr.bf16.vlgmr.msra.gmra.mrb[220].mxu0 %v10241_v36  ;;  %v22260_v36 = vld [vmem:[#allocation18 + $0x20] sm:$0xff]  }
0x15d5   : > { %20865 = vmatpush3.bf16.msra.mxu1 %v22236_v43  ;;  %20892 = vmatprep.mubr.msk.bf16.mxu0 %vm23618_vm1, %v23617_v49  ;;  %v22261_v43 = vld [vmem:[#allocation18 + $0x28] sm:$0xff]  }
0x15d6   : > { %20866 = vmatprep.subr.bf16.mxu1 %v23617_v49  ;;  %20877 = vmatpush3.bf16.msra.mxu0 %v22240_v60 }
0x15d7   : > { %20878 = vmatprep.subr.bf16.mxu0 %v23617_v49 }
0x15d9   : > { %20867 = vmatpush3.bf16.msra.mxu1 %v22237_v46  ;;  %v22262_v46 = vld [vmem:[#allocation18 + $0x30] sm:$0xff]  }
0x15da   : > { %20868 = vmatprep.subr.bf16.mxu1 %v23617_v49  ;;  %20879 = vmatpush3.bf16.msra.mxu0 %v22241_v54 }
0x15db   : > { %20880 = vmatprep.subr.bf16.mxu0 %v23617_v49 }
0x15dd   : > { %20869 = vmatpush3.bf16.msra.mxu1 %v22238_v53  ;;  %v22263_v53 = vld [vmem:[#allocation18 + $0x38] sm:$0xff]  }
0x15de   : > { %20870 = vmatprep.subr.bf16.mxu1 %v23617_v49 }
0x15e1   : > { %20871 = vmatpush3.bf16.msra.mxu1 %v22239_v61  ;;  %v18249_v61 = vld [vmem:[%s26500_s2] ss:$0 sm:$0xff]  ;;  %s26504_s2 = sld [smem:[#allocation95_spill]] }
0x15e2   : > { %20896 = vmatprep.subr.bf16.mxu1 %v23617_v49 }
0x15e4   : > { %20873 = vmatmul.mubr.bf16.vlgmr.msra.gmra.mrb[200].mxu1 %v10243_v57 }
0x15e5   : > { %20897 = vmatpush3.bf16.msra.mxu1 %v25455_v47  ;;  %20898 = vmatprep.mubr.msk.bf16.mxu1 %vm23618_vm1, %v23617_v49  ;;  %v22242_v47 = vld [vmem:[%s26498_s1 + $0x10] sm:$0xff]  }
0x15e6   : > { %20922 = vmatprep.subr.bf16.mxu1 %v23617_v49  ;;  %20881 = vmatpush3.bf16.msra.mxu0 %v22242_v47 }
0x15e7   : > { %20882 = vmatprep.subr.bf16.mxu0 %v23617_v49 }
0x15ea   : > { %20883 = vmatpush3.bf16.msra.mxu0 %v22243_v56 }
0x15eb   : > { %20884 = vmatprep.subr.bf16.mxu0 %v23617_v49 }
0x15ec   : > { %20899 = vmatmul.mubr.msk.bf16.vlgmr.msra.gmra.mrb[204].mxu1 %vm6799_vm2, %v25461_v52  ;;  %v22244_v52 = vld [vmem:[%s26498_s1 + $0x20] sm:$0xff]   ;;  %s26501_s1 = sld [smem:[#allocation93_spill]] }
0x15ed   : > { %20938 = vmatprep.mubr.msk.bf16.mxu1 %vm23618_vm1, %v23617_v49  ;;  %20923 = vmatpush3.bf16.msra.mxu1 %v22256_v34 }
0x15ee   : > { %20885 = vmatpush3.bf16.msra.mxu0 %v22244_v52  ;;  %20924 = vmatprep.subr.bf16.mxu1 %v23617_v49 }
0x15ef   : > { %20886 = vmatprep.subr.bf16.mxu0 %v23617_v49 }
0x15f1   : > { %20925 = vmatpush3.bf16.msra.mxu1 %v22257_v35 }
0x15f2   : > { %20887 = vmatpush3.bf16.msra.mxu0 %v22245_v58  ;;  %20926 = vmatprep.subr.bf16.mxu1 %v23617_v49 }
0x15f3   : > { %20888 = vmatprep.subr.bf16.mxu0 %v23617_v49 }
0x15f5   : > { %20927 = vmatpush3.bf16.msra.mxu1 %v22258_v39 }
0x15f6   : > { %20889 = vmatpush3.bf16.msra.mxu0 %v22246_v59  ;;  %20928 = vmatprep.subr.bf16.mxu1 %v23617_v49 }
0x15f7   : > { %20890 = vmatprep.subr.bf16.mxu0 %v23617_v49 }
0x15f9   : > { %20929 = vmatpush3.bf16.msra.mxu1 %v22259_v27 }
0x15fa   : > { %20891 = vmatpush3.bf16.msra.mxu0 %v22247_v63  ;;  %20930 = vmatprep.subr.bf16.mxu1 %v23617_v49 }
0x15fb   : > { %20902 = vmatprep.subr.bf16.mxu0 %v23617_v49 }
0x15fd   : > { %20931 = vmatpush3.bf16.msra.mxu1 %v22260_v36 }
0x15fe   : > { %20932 = vmatprep.subr.bf16.mxu1 %v23617_v49 }
0x1601   : > { %20933 = vmatpush3.bf16.msra.mxu1 %v22261_v43 }
0x1602   : > { %20934 = vmatprep.subr.bf16.mxu1 %v23617_v49 }
0x1605   : > { %20935 = vmatpush3.bf16.msra.mxu1 %v22262_v46 }
0x1606   : > { %20936 = vmatprep.subr.bf16.mxu1 %v23617_v49 }
0x1609   : > { %20937 = vmatpush3.bf16.msra.mxu1 %v22263_v53 }
0x160a   : > { %20948 = vmatprep.subr.bf16.mxu1 %v23617_v49 }
0x1677   : > { %v19484_v1 = vpop.f32.mrb[192].mxu1 }
0x1678   : > { %v19485_v31 = vpop.f32.mrb[193].mxu1 }
0x1679   : > { %v19486_v24 = vadd.f32 %v19485_v31, %v19484_v1  ;;  %v19487_v7 = vpop.f32.mrb[194].mxu1 }
0x167a   : > { %v19488_v13 = vpop.f32.mrb[195].mxu1  ;;  %v18267_v7 = vld [vmem:[%s26501_s1] ss:$0 sm:$0xff]  ;;  %s26503_s1 = sld [smem:[#allocation94_spill]] }
0x167b   : > { %v10717_v32 = vadd.f32 %v19486_v24, %v18176_v16 }
0x1680   : > { %v22289_v34 = vld [vmem:[%s26503_s1 + $0xe8] sm:$0xff]   ;;  %v22288_v35 = vld [vmem:[%s26503_s1 + $0x78] sm:$0xff]   ;;  %v22292_v36 = vld [vmem:[%s26503_s1 + $0xf0] sm:$0xff]  }
0x1681   : > { %v22290_v39 = vld [vmem:[%s26503_s1 + $0x38] sm:$0xff]   ;;  %v22291_v27 = vld [vmem:[%s26503_s1 + $0xa8] sm:$0xff]   ;;  %v22293_v43 = vld [vmem:[%s26503_s1 + $0x140] sm:$0xff]  }
0x1682   : > { %v22294_v46 = vld [vmem:[%s26503_s1 + $0xb0] sm:$0xff]   ;;  %v22296_v53 = vld [vmem:[%s26503_s1 + $0xf8] sm:$0xff]  }
0x1687   : > { %v19506_v2 = vpop.f32.mrb[216].mxu0 }
0x1688   : > { %v19507_v25 = vpop.f32.mrb[217].mxu0 }
0x1689   : > { %v19508_v20 = vadd.f32 %v19507_v25, %v19506_v2  ;;  %v19509_v48 = vpop.f32.mrb[218].mxu0 }
0x168a   : > { %v19510_v17 = vpop.f32.mrb[219].mxu0 }
0x168b   : > { %v10757_v9 = vadd.f32 %v19508_v20, %v10717_v32 }
0x1697   : > { %v19528_v38 = vpop.f32.mrb[196].mxu1 }
0x1698   : > { %v19529_v41 = vpop.f32.mrb[197].mxu1 }
0x1699   : > { %v19530_v23 = vadd.f32 %v19529_v41, %v19528_v38  ;;  %v19531_v37 = vpop.f32.mrb[198].mxu1  ;;  %v18277_v38 = vld [vmem:[%s26502_s3 + $0x4] sm:$0xf]  ;;  %v18279_v41 = vld [vmem:[%s26502_s3 + $0x8] sm:$0xf] }
0x169a   : > { %v19532_v55 = vpop.f32.mrb[199].mxu1  ;;  %v18283_v37 = vld [vmem:[%s26502_s3 + $0x10] sm:$0xf] }
0x169b   : > { %v10797_v45 = vadd.f32 %v19530_v23, %v10757_v9  ;;  %v11390_v9 = vld [vmem:[%s26502_s3] sm:$0xf]  ;;  %v18281_v23 = vld [vmem:[%s26502_s3 + $0xc] sm:$0xf]  ;;  %v18285_v55 = vld [vmem:[%s26502_s3 + $0x14] sm:$0xf] }
0x16a7   : > { %v19550_v26 = vpop.f32.mrb[220].mxu0 }
0x16a8   : > { %v19551_v30 = vpop.f32.mrb[221].mxu0 }
0x16a9   : > { %v19552_v50 = vadd.f32 %v19551_v30, %v19550_v26  ;;  %v19553_v6 = vpop.f32.mrb[222].mxu0  ;;  %v18287_v26 = vld [vmem:[%s26502_s3 + $0x18] sm:$0xf]  ;;  %v18289_v30 = vld [vmem:[%s26502_s3 + $0x1c] sm:$0xf] }
0x16aa   : > { %v19554_v4 = vpop.f32.mrb[223].mxu0  ;;  %v22269_v6 = vld [vmem:[%s26503_s1 + $0xc0] sm:$0xff]  }
0x16ab   : > { %v10837_v29 = vadd.f32 %v19552_v50, %v10797_v45  ;;  %v22264_v45 = vld [vmem:[%s26503_s1 + $0x40] sm:$0xff]   ;;  %v22266_v4 = vld [vmem:[%s26503_s1 + $0x48] sm:$0xff]  }
0x16ac   : > { %v22265_v50 = vld [vmem:[%s26503_s1] sm:$0xff]  }
0x16b7   : > { %v10876_v12 = vpop.f32.mrb[200].mxu1 }
0x16b8   : > { %v10877_v8 = vadd.f32 %v10876_v12, %v10837_v29  ;;  %v20874_v5 = vpop.f32.mrb[201].mxu1  ;;  %v22267_v29 = vld [vmem:[%s26503_s1 + $0x8] sm:$0xff]   ;;  %v22268_v12 = vld [vmem:[%s26503_s1 + $0x50] sm:$0xff]  }
0x16b9   : > { %v10879_v40 = vpop.f32.mrb[202].mxu1  ;;  %v22271_v5 = vld [vmem:[%s26503_s1 + $0x80] sm:$0xff]  }
0x16ba   : > { %v10882_v10 = vmax.f32 %v10877_v8, 0.0  ;;  %v20875_v11 = vpop.f32.mrb[203].mxu1  ;;  %v18291_v8 = vld [vmem:[%s26502_s3 + $0x20] sm:$0xf]  ;;  %v22270_v40 = vld [vmem:[%s26503_s1 + $0x10] sm:$0xff]  }
0x16bb   : > { %v22272_v11 = vld [vmem:[%s26503_s1 + $0x58] sm:$0xff]  }
0x16bc   : > { %v10883_v15 = vpack.c.bf16 %v10882_v10, %v10882_v10  ;;  %v22273_v10 = vld [vmem:[%s26503_s1 + $0xc8] sm:$0xff]  }
0x16be   : > { %20893 = vmatmul.mubr.bf16.vlgmr.msra.gmra.mrb[224].mxu0 %v10883_v15  ;;  %v22274_v15 = vld [vmem:[%s26503_s1 + $0x18] sm:$0xff]  }
0x16bf   : > { %20903 = vmatpush3.bf16.msra.mxu0 %v22248_v14  ;;  %v11012_v18 = vpop.f32.mrb[204].mxu1  ;;  %20918 = vmatprep.mubr.msk.bf16.mxu0 %vm23618_vm1, %v23617_v49  ;;  %v22275_v14 = vld [vmem:[%s26503_s1 + $0x88] sm:$0xff]  }
0x16c0   : > { %20904 = vmatprep.subr.bf16.mxu0 %v23617_v49  ;;  %v20900_v19 = vpop.f32.mrb[205].mxu1  ;;  %v11018_v28 = vpack.c.bf16 %v11012_v18, %v11012_v18  ;;  %v22276_v18 = vld [vmem:[%s26503_s1 + $0x60] sm:$0xff]  }
0x16c1   : > { %v11015_v21 = vpop.f32.mrb[206].mxu1  ;;  %v22279_v19 = vld [vmem:[%s26503_s1 + $0x90] sm:$0xff]  }
0x16c2   : > { %v20901_v42 = vpop.f32.mrb[207].mxu1  ;;  %v22278_v21 = vld [vmem:[%s26503_s1 + $0x20] sm:$0xff]  }
0x16c3   : > { %20905 = vmatpush3.bf16.msra.mxu0 %v22249_v62  ;;  %v22277_v62 = vld [vmem:[%s26503_s1 + $0xd0] sm:$0xff]   ;;  %v22281_v42 = vld [vmem:[%s26503_s1 + $0xd8] sm:$0xff]  }
0x16c4   : > { %20906 = vmatprep.subr.bf16.mxu0 %v23617_v49 }
0x16c7   : > { %20907 = vmatpush3.bf16.msra.mxu0 %v22250_v44  ;;  %v22280_v44 = vld [vmem:[%s26503_s1 + $0x68] sm:$0xff]  }
0x16c8   : > { %20908 = vmatprep.subr.bf16.mxu0 %v23617_v49 }
0x16cb   : > { %20909 = vmatpush3.bf16.msra.mxu0 %v22251_v51  ;;  %v22283_v51 = vld [vmem:[%s26503_s1 + $0x98] sm:$0xff]  }
0x16cc   : > { %20910 = vmatprep.subr.bf16.mxu0 %v23617_v49 }
0x16cf   : > { %20911 = vmatpush3.bf16.msra.mxu0 %v22252_v22  ;;  %v22282_v22 = vld [vmem:[%s26503_s1 + $0x28] sm:$0xff]  }
0x16d0   : > { %20912 = vmatprep.subr.bf16.mxu0 %v23617_v49 }
0x16d3   : > { %20913 = vmatpush3.bf16.msra.mxu0 %v22253_v3  ;;  %v22285_v3 = vld [vmem:[%s26503_s1 + $0xe0] sm:$0xff]  }
0x16d4   : > { %20914 = vmatprep.subr.bf16.mxu0 %v23617_v49 }
0x16d7   : > { %20915 = vmatpush3.bf16.msra.mxu0 %v22254_v0  ;;  %v22284_v0 = vld [vmem:[%s26503_s1 + $0x70] sm:$0xff]  }
0x16d8   : > { %20916 = vmatprep.subr.bf16.mxu0 %v23617_v49 }
0x16db   : > { %20917 = vmatpush3.bf16.msra.mxu0 %v22255_v33  ;;  %v22287_v33 = vld [vmem:[%s26503_s1 + $0xa0] sm:$0xff]  }
0x16dc   : > { %20942 = vmatprep.subr.bf16.mxu0 %v23617_v49 }
0x16de   : > { %20919 = vmatmul.mubr.bf16.vlgmr.msra.gmra.mrb[224].mxu0 %v11018_v28  ;;  %v22286_v28 = vld [vmem:[%s26503_s1 + $0x30] sm:$0xff]  }
0x16df   : > { %20944 = vmatprep.mubr.msk.bf16.mxu0 %vm23618_vm1, %v23617_v49 }
0x17b1   : > { %v11101_v57 = vpop.f32.mrb[224].mxu0 }
0x17b2   : > { %v21366_v60 = vadd.f32 %v18249_v61, %v11101_v57  ;;  %v20920_v54 = vpop.f32.mrb[225].mxu0  ;;  %v22298_v61 = vld [vmem:[%s26503_s1 + $0xb8] sm:$0xff]   ;;  %v22301_v57 = vld [vmem:[%s26503_s1 + $0x1c0] sm:$0xff]  }
0x17b3   : > { %v11104_v47 = vpop.f32.mrb[226].mxu0 }
0x17b4   : > { %v11108_v56 = vmax.f32 %v21366_v60, 0.0  ;;  %v20921_v52 = vpop.f32.mrb[227].mxu0 }
0x17b6   : > { %v11109_v58 = vsub.f32 0.0, %v11108_v56 }
0x17b8   : > { %v11110_v59 = vmul.f32 1.442695, %v11109_v58 }
0x17ba   : > { %22704 = vpow2.f32 %v11110_v59  ;;  %v22295_v59 = vld [vmem:[%s26503_s1 + $0x100] sm:$0xff]  }
0x17c4   : > { %v22705_v63 = vpop.eup %22704 }
0x17c5   : > { %v11112_v1 = vadd.f32 1.0, %v22705_v63 }
0x17c7   : > { %22706 = vrcp.f32 %v11112_v1 }
0x17d1   : > { %v22707_v31 = vpop.eup %22706 }
0x17d2   : > { %v25638_v24 = vpack.c.bf16 %v22707_v31, %v22707_v31  ;;  %v22297_v31 = vld [vmem:[%s26503_s1 + $0x148] sm:$0xff]  }
0x17d4   : > { %20939 = vmatmul.mubr.bf16.vlgmr.msra.gmra.mrb[208].mxu1 %v25638_v24 }
0x17d5   : > { %20950 = vmatprep.mubr.msk.bf16.mxu1 %vm23618_vm1, %v23617_v49 }
0x18a7   : > { %v11382_v13 = vpop.f32.mrb[208].mxu1 }
0x18a8   : > { %v11383_v16 = vadd.f32 %v18267_v7, %v11382_v13  ;;  %v20940_v2 = vpop.f32.mrb[209].mxu1 }
0x18a9   : > { %v11385_v25 = vpop.f32.mrb[210].mxu1  ;;  %v22300_v2 = vld [vmem:[%s26503_s1 + $0x150] sm:$0xff]  }
0x18aa   : > { %v11388_v32 = vmax.f32 %v11383_v16, 0.0  ;;  %v20941_v20 = vpop.f32.mrb[211].mxu1  ;;  %v22299_v16 = vld [vmem:[%s26503_s1 + $0x108] sm:$0xff]  }
0x18ac   : > { %v11389_v48 = vpack.c.bf16 %v11388_v32, %v11388_v32 }
0x18ae   : > { %v11397_v17 = vsel %vm11395_vm3, %v11389_v48, 0 }
0x18af   : > { %20943 = vmatpush3.bf16.msra.mxu0 %v11397_v17  ;;  %20949 = vmatpush3.bf16.msra.mxu1 %v11397_v17 }
0x18b0   : > { %20954 = vmatprep.subr.bf16.mxu0 %v23617_v49  ;;  %20960 = vmatprep.subr.bf16.mxu1 %v23617_v49 }
0x18b2   : > { %20945 = vmatmul.mubr.msk.bf16.vlgmr.msra.gmra.mrb[228].mxu0 %vm11391_vm4, %v11390_v9  ;;  %20951 = vmatmul.mubr.msk.bf16.vlgmr.msra.gmra.mrb[212].mxu1 %vm11391_vm4, %v18277_v38  ;;  %v22303_v9 = vld [vmem:[%s26503_s1 + $0x180] sm:$0xff]  }
0x18b3   : > { %20955 = vmatpush3.bf16.msra.mxu0 %v11397_v17  ;;  %20961 = vmatpush3.bf16.msra.mxu1 %v11397_v17 }
0x18b4   : > { %20956 = vmatprep.mubr.msk.bf16.mxu0 %vm23618_vm1, %v23617_v49  ;;  %20962 = vmatprep.mubr.msk.bf16.mxu1 %vm23618_vm1, %v23617_v49 }
0x18b5   : > { %20966 = vmatprep.subr.bf16.mxu0 %v23617_v49  ;;  %20972 = vmatprep.subr.bf16.mxu1 %v23617_v49 }
0x18ba   : > { %20957 = vmatmul.mubr.msk.bf16.vlgmr.msra.gmra.mrb[232].mxu0 %vm11391_vm4, %v18279_v41  ;;  %20963 = vmatmul.mubr.msk.bf16.vlgmr.msra.gmra.mrb[216].mxu1 %vm11391_vm4, %v18281_v23  ;;  %v22304_v23 = vld [vmem:[%s26503_s1 + $0x158] sm:$0xff]  }
0x18bb   : > { %20967 = vmatpush3.bf16.msra.mxu0 %v11397_v17  ;;  %20973 = vmatpush3.bf16.msra.mxu1 %v11397_v17 }
0x18bc   : > { %20968 = vmatprep.mubr.msk.bf16.mxu0 %vm23618_vm1, %v23617_v49  ;;  %20974 = vmatprep.mubr.msk.bf16.mxu1 %vm23618_vm1, %v23617_v49 }
0x18bd   : > { %20978 = vmatprep.subr.bf16.mxu0 %v23617_v49  ;;  %20984 = vmatprep.subr.bf16.mxu1 %v23617_v49 }
0x18c2   : > { %20969 = vmatmul.mubr.msk.bf16.vlgmr.msra.gmra.mrb[236].mxu0 %vm11391_vm4, %v18283_v37  ;;  %20975 = vmatmul.mubr.msk.bf16.vlgmr.msra.gmra.mrb[220].mxu1 %vm11391_vm4, %v18285_v55  ;;  %v22305_v37 = vld [vmem:[%s26503_s1 + $0x1c8] sm:$0xff]  }
0x18c3   : > { %20979 = vmatpush3.bf16.msra.mxu0 %v11397_v17  ;;  %20985 = vmatpush3.bf16.msra.mxu1 %v11397_v17 }
0x18c4   : > { %20980 = vmatprep.mubr.msk.bf16.mxu0 %vm23618_vm1, %v23617_v49  ;;  %20990 = vmatprep.subr.bf16.mxu0 %v23617_v49 }
0x18c5   : > { %20986 = vmatprep.mubr.msk.bf16.mxu1 %vm23618_vm1, %v23617_v49  ;;  %19612 = vmatprep.subr.bf16.mxu1 %v22264_v45 }
0x18ca   : > { %20981 = vmatmul.mubr.msk.bf16.vlgmr.msra.gmra.mrb[240].mxu0 %vm11391_vm4, %v18287_v26  ;;  %20987 = vmatmul.mubr.msk.bf16.vlgmr.msra.gmra.mrb[224].mxu1 %vm11391_vm4, %v18289_v30 }
0x18cb   : > { %20991 = vmatpush3.bf16.msra.mxu0 %v11397_v17  ;;  %20992 = vmatprep.mubr.msk.bf16.mxu0 %vm23618_vm1, %v23617_v49  ;;  %v22302_v17 = vld [vmem:[%s26503_s1 + $0x110] sm:$0xff]  }
0x18cc   : > { %19613 = vmatpush3.bf16.msra.mxu1 %v22265_v50  ;;  %19634 = vmatprep.subr.bf16.mxu0 %v22269_v6  ;;  %v22306_v50 = vld [vmem:[%s26503_s1 + $0x118] sm:$0xff]   ;;  %v22307_v6 = vld [vmem:[%s26503_s1 + $0x188] sm:$0xff]  }
0x18cd   : > { %19614 = vmatprep.subr.bf16.mxu1 %v22266_v4  ;;  %v22308_v4 = vld [vmem:[%s26503_s1 + $0x160] sm:$0xff]  }
0x18d0   : > { %19615 = vmatpush3.bf16.msra.mxu1 %v22267_v29  ;;  %v22309_v29 = vld [vmem:[%s26503_s1 + $0x1d0] sm:$0xff]  }
0x18d1   : > { %19616 = vmatprep.subr.bf16.mxu1 %v22268_v12 }
0x18d2   : > { %20993 = vmatmul.mubr.msk.bf16.vlgmr.msra.gmra.mrb[244].mxu0 %vm11391_vm4, %v18291_v8 }
0x18d3   : > { %19635 = vmatpush3.bf16.msra.mxu0 %v22271_v5  ;;  %v22310_v5 = vld [vmem:[%s26503_s1 + $0x120] sm:$0xff]  }
0x18d4   : > { %19617 = vmatpush3.bf16.msra.mxu1 %v22270_v40  ;;  %19636 = vmatprep.subr.bf16.mxu0 %v22273_v10  ;;  %v22311_v40 = vld [vmem:[%s26503_s1 + $0x190] sm:$0xff]  }
0x18d5   : > { %19618 = vmatprep.subr.bf16.mxu1 %v22272_v11 }
0x18d7   : > { %19637 = vmatpush3.bf16.msra.mxu0 %v22275_v14 }
0x18d8   : > { %19619 = vmatpush3.bf16.msra.mxu1 %v22274_v15  ;;  %19638 = vmatprep.subr.bf16.mxu0 %v22277_v62  ;;  %v22312_v15 = vld [vmem:[%s26503_s1 + $0x168] sm:$0xff]   ;;  %v22313_v62 = vld [vmem:[%s26503_s1 + $0x1d8] sm:$0xff]  }
0x18d9   : > { %19620 = vmatprep.subr.bf16.mxu1 %v22276_v18 }
0x18db   : > { %19639 = vmatpush3.bf16.msra.mxu0 %v22279_v19 }
0x18dc   : > { %19621 = vmatpush3.bf16.msra.mxu1 %v22278_v21  ;;  %19640 = vmatprep.subr.bf16.mxu0 %v22281_v42 }
0x18dd   : > { %19622 = vmatprep.subr.bf16.mxu1 %v22280_v44  ;;  %v22314_v44 = vld [vmem:[%s26503_s1 + $0x128] sm:$0xff]  }
0x18df   : > { %19641 = vmatpush3.bf16.msra.mxu0 %v22283_v51  ;;  %v22315_v51 = vld [vmem:[%s26503_s1 + $0x198] sm:$0xff]  }
0x18e0   : > { %19623 = vmatpush3.bf16.msra.mxu1 %v22282_v22  ;;  %19642 = vmatprep.subr.bf16.mxu0 %v22285_v3  ;;  %v22316_v22 = vld [vmem:[%s26503_s1 + $0x170] sm:$0xff]   ;;  %v22317_v3 = vld [vmem:[%s26503_s1 + $0x1e0] sm:$0xff]  }
0x18e1   : > { %19624 = vmatprep.subr.bf16.mxu1 %v22284_v0 }
0x18e3   : > { %19643 = vmatpush3.bf16.msra.mxu0 %v22287_v33 }
0x18e4   : > { %19625 = vmatpush3.bf16.msra.mxu1 %v22286_v28  ;;  %19644 = vmatprep.subr.bf16.mxu0 %v22289_v34  ;;  %v22318_v28 = vld [vmem:[%s26503_s1 + $0x130] sm:$0xff]   ;;  %v22319_v34 = vld [vmem:[%s26503_s1 + $0x1a0] sm:$0xff]  }
0x18e5   : > { %19626 = vmatprep.subr.bf16.mxu1 %v22288_v35 }
0x18e7   : > { %19645 = vmatpush3.bf16.msra.mxu0 %v22291_v27 }
0x18e8   : > { %19627 = vmatpush3.bf16.msra.mxu1 %v22290_v39  ;;  %19646 = vmatprep.subr.bf16.mxu0 %v22292_v36  ;;  %v22320_v36 = vld [vmem:[%s26503_s1 + $0x178] sm:$0xff]  }
0x18e9   : > { %19656 = vmatprep.subr.bf16.mxu1 %v22293_v43  ;;  %v22321_v43 = vld [vmem:[%s26503_s1 + $0x1e8] sm:$0xff]  }
0x18eb   : > { %19647 = vmatpush3.bf16.msra.mxu0 %v22294_v46 }
0x18ec   : > { %19648 = vmatprep.subr.bf16.mxu0 %v22296_v53 }
0x18ef   : > { %19649 = vmatpush3.bf16.msra.mxu0 %v22298_v61 }
0x18f0   : > { %19678 = vmatprep.subr.bf16.mxu0 %v22301_v57 }
0x1985   : > { %v11433_v60 = vpop.f32.mrb[228].mxu0  ;;  %v11478_v54 = vpop.f32.mrb[212].mxu1 }
0x1986   : > { %v11799_v47 = vpack.c.bf16 %v11433_v60, %v11433_v60  ;;  %v11800_v56 = vpack.c.bf16 %v11478_v54, %v11478_v54  ;;  %v20946_v52 = vpop.f32.mrb[229].mxu0  ;;  %v20952_v58 = vpop.f32.mrb[213].mxu1  ;;  %v22322_v60 = vld [vmem:[%s26503_s1 + $0x138] sm:$0xff]   ;;  %v22323_v54 = vld [vmem:[%s26503_s1 + $0x1a8] sm:$0xff]  }
0x1987   : > { %v11436_v63 = vpop.f32.mrb[230].mxu0  ;;  %v11481_v1 = vpop.f32.mrb[214].mxu1  ;;  %v22325_v58 = vld [vmem:[%s26503_s1 + $0x1b0] sm:$0xff]  }
0x1988   : > { %v20947_v7 = vpop.f32.mrb[231].mxu0  ;;  %v20953_v13 = vpop.f32.mrb[215].mxu1  ;;  %12278 = vmatprep.mubr.bf16.mxu1 %v11800_v56  ;;  %v22327_v1 = vld [vmem:[%s26503_s1 + $0x1f8] sm:$0xff]  }
0x1989   : > { %12279 = vmatmul.mubr.bf16.vlgmr.msra.gmra.mrb[228].mxu1 %v11799_v47  ;;  %v22324_v47 = vld [vmem:[%s26503_s1 + $0x1f0] sm:$0xff]   ;;  %v22328_v13 = vld [vmem:[%s26503_s1 + $0x1b8] sm:$0xff]  }
0x198a   : > { %19657 = vmatpush3.bf16.msra.mxu1 %v22295_v59  ;;  %v22326_v59 = vld [vmem:[%s26503_s1 + $0x200] sm:$0xff]  }
0x198b   : > { %19658 = vmatprep.subr.bf16.mxu1 %v22297_v31 }
0x198d   : > { %v11568_v25 = vpop.f32.mrb[216].mxu1  ;;  %v11523_v32 = vpop.f32.mrb[232].mxu0 }
0x198e   : > { %v11802_v20 = vpack.c.bf16 %v11568_v25, %v11568_v25  ;;  %19659 = vmatpush3.bf16.msra.mxu1 %v22299_v16  ;;  %v11801_v48 = vpack.c.bf16 %v11523_v32, %v11523_v32  ;;  %v20964_v38 = vpop.f32.mrb[217].mxu1  ;;  %v20958_v41 = vpop.f32.mrb[233].mxu0  ;;  %v22329_v16 = vld [vmem:[%s26503_s1 + $0x208] sm:$0xff]   ;;  %v22330_v25 = vld [vmem:[%s26503_s1 + $0x210] sm:$0xff]   ;;  %v22331_v32 = vld [vmem:[%s26503_s1 + $0x218] sm:$0xff]  }
0x198f   : > { %19660 = vmatprep.subr.bf16.mxu1 %v22300_v2  ;;  %v11571_v55 = vpop.f32.mrb[218].mxu1  ;;  %v11526_v45 = vpop.f32.mrb[234].mxu0  ;;  %v22336_v41 = vld [vmem:[#allocation19] sm:$0xff]  }
0x1990   : > { %12318 = vmatprep.mubr.bf16.mxu0 %v11802_v20  ;;  %v20965_v26 = vpop.f32.mrb[219].mxu1  ;;  %v20959_v30 = vpop.f32.mrb[235].mxu0  ;;  %v22332_v20 = vld [vmem:[%s26503_s1 + $0x220] sm:$0xff]  }
0x1991   : > { %12319 = vmatmul.mubr.bf16.vlgmr.msra.gmra.mrb[248].mxu0 %v11801_v48  ;;  %v22333_v48 = vld [vmem:[%s26503_s1 + $0x228] sm:$0xff]   ;;  %v22339_v55 = vld [vmem:[#allocation19 + $0x18] sm:$0xff]   ;;  %v22342_v30 = vld [vmem:[#allocation19 + $0x30] sm:$0xff]  }
0x1992   : > { %19661 = vmatpush3.bf16.msra.mxu1 %v22302_v17  ;;  %19679 = vmatpush3.bf16.msra.mxu0 %v22303_v9  ;;  %v22334_v17 = vld [vmem:[%s26503_s1 + $0x230] sm:$0xff]   ;;  %v22335_v9 = vld [vmem:[%s26503_s1 + $0x238] sm:$0xff]   ;;  %v22340_v45 = vld [vmem:[#allocation19 + $0x20] sm:$0xff]   ;;  %s26506_s1 = sld [smem:[#allocation105_spill]] }
0x1993   : > { %19662 = vmatprep.subr.bf16.mxu1 %v22304_v23  ;;  %19680 = vmatprep.subr.bf16.mxu0 %v22305_v37  ;;  %v22337_v23 = vld [vmem:[#allocation19 + $0x8] sm:$0xff]   ;;  %v22338_v37 = vld [vmem:[#allocation19 + $0x10] sm:$0xff]  }
0x1994   : > { %v22341_v26 = vld [vmem:[#allocation19 + $0x28] sm:$0xff]  }
0x1995   : > { %v11658_v12 = vpop.f32.mrb[220].mxu1  ;;  %v11613_v8 = vpop.f32.mrb[236].mxu0 }
0x1996   : > { %19663 = vmatpush3.bf16.msra.mxu1 %v22306_v50  ;;  %19681 = vmatpush3.bf16.msra.mxu0 %v22307_v6  ;;  %v11804_v10 = vpack.c.bf16 %v11658_v12, %v11658_v12  ;;  %v20976_v11 = vpop.f32.mrb[221].mxu1  ;;  %v20970_v14 = vpop.f32.mrb[237].mxu0  ;;  %v11803_v56 = vpack.c.bf16 %v11613_v8, %v11613_v8  ;;  %v22343_v50 = vld [vmem:[#allocation19 + $0x38] sm:$0xff]  }
0x1997   : > { %19664 = vmatprep.subr.bf16.mxu1 %v22308_v4  ;;  %19682 = vmatprep.subr.bf16.mxu0 %v22309_v29  ;;  %v11661_v18 = vpop.f32.mrb[222].mxu1  ;;  %v11616_v19 = vpop.f32.mrb[238].mxu0 }
0x1998   : > { %v20977_v21 = vpop.f32.mrb[223].mxu1  ;;  %v20971_v42 = vpop.f32.mrb[239].mxu0  ;;  %12358 = vmatprep.mubr.bf16.mxu1 %v11804_v10 }
0x199a   : > { %19665 = vmatpush3.bf16.msra.mxu1 %v22310_v5  ;;  %19683 = vmatpush3.bf16.msra.mxu0 %v22311_v40  ;;  %v18293_v5 = vld [vmem:[%s26504_s2] ss:$0 sm:$0xff]  ;;  %s26505_s2 = sld [smem:[#allocation97_spill]] }
0x199b   : > { %19666 = vmatprep.subr.bf16.mxu1 %v22312_v15  ;;  %19684 = vmatprep.subr.bf16.mxu0 %v22313_v62 }
0x199d   : > { %v11748_v0 = vpop.f32.mrb[224].mxu1  ;;  %v11703_v33 = vpop.f32.mrb[240].mxu0 }
0x199e   : > { %19667 = vmatpush3.bf16.msra.mxu1 %v22314_v44  ;;  %19685 = vmatpush3.bf16.msra.mxu0 %v22315_v51  ;;  %v11806_v35 = vpack.c.bf16 %v11748_v0, %v11748_v0  ;;  %v20982_v39 = vpop.f32.mrb[241].mxu0  ;;  %v20988_v27 = vpop.f32.mrb[225].mxu1  ;;  %v11805_v2 = vpack.c.bf16 %v11703_v33, %v11703_v33 }
0x199f   : > { %19668 = vmatprep.subr.bf16.mxu1 %v22316_v22  ;;  %19686 = vmatprep.subr.bf16.mxu0 %v22317_v3  ;;  %v11706_v46 = vpop.f32.mrb[242].mxu0  ;;  %v11751_v53 = vpop.f32.mrb[226].mxu1 }
0x19a0   : > { %12398 = vmatprep.mubr.bf16.mxu0 %v11806_v35  ;;  %v20983_v61 = vpop.f32.mrb[243].mxu0  ;;  %v20989_v57 = vpop.f32.mrb[227].mxu1 }
0x19a1   : > { %v22344_v57 = vld [vmem:[#allocation21] sm:$0xff]  }
0x19a2   : > { %19669 = vmatpush3.bf16.msra.mxu1 %v22318_v28  ;;  %19687 = vmatpush3.bf16.msra.mxu0 %v22319_v34 }
0x19a3   : > { %19670 = vmatprep.subr.bf16.mxu1 %v22320_v36  ;;  %19688 = vmatprep.subr.bf16.mxu0 %v22321_v43 }
0x19a5   : > { %v11793_v52 = vpop.f32.mrb[244].mxu0 }
0x19a6   : > { %19671 = vmatpush3.bf16.msra.mxu1 %v22322_v60  ;;  %19689 = vmatpush3.bf16.msra.mxu0 %v22323_v54  ;;  %v20994_v63 = vpop.f32.mrb[245].mxu0  ;;  %v11807_v38 = vpack.c.bf16 %v11793_v52, %v11793_v52  ;;  %v22345_v60 = vld [vmem:[#allocation21 + $0x8] sm:$0xff]   ;;  %v22346_v54 = vld [vmem:[#allocation21 + $0x10] sm:$0xff]  }
0x19a7   : > { %19690 = vmatprep.subr.bf16.mxu0 %v22324_v47  ;;  %20996 = vmatprep.subr.bf16.mxu1 %v23617_v49  ;;  %v11796_v31 = vpop.f32.mrb[246].mxu0  ;;  %v22347_v47 = vld [vmem:[#allocation21 + $0x18] sm:$0xff]   ;;  %v22349_v52 = vld [vmem:[#allocation21 + $0x28] sm:$0xff]  }
0x19a8   : > { %v20995_v7 = vpop.f32.mrb[247].mxu0  ;;  %v18366_v63 = vld [vmem:[%s26505_s2] ss:$0 sm:$0xff]  ;;  %s26507_s2 = sld [smem:[#allocation101_spill]] }
0x19a9   : > { %12359 = vmatmul.mubr.bf16.vlgmr.msra.gmra.mrb[232].mxu1 %v11803_v56  ;;  %v22348_v56 = vld [vmem:[#allocation21 + $0x20] sm:$0xff]   ;;  %v12542_v7 = vunpack.c.l.bf16 %v25638_v24 }
0x19aa   : > { %19691 = vmatpush3.bf16.msra.mxu0 %v22325_v58  ;;  %20997 = vmatpush3.bf16.msra.mxu1 %v22326_v59  ;;  %v22350_v58 = vld [vmem:[#allocation21 + $0x30] sm:$0xff]   ;;  %v22351_v59 = vld [vmem:[#allocation21 + $0x38] sm:$0xff]   ;;  %v18375_v24 = vld [vmem:[#allocation22] ss:$0 sm:$0xff] }
0x19ab   : > { %19692 = vmatprep.subr.bf16.mxu0 %v22327_v1  ;;  %20998 = vmatprep.subr.bf16.mxu1 %v23617_v49 }
0x19ac   : > { %21012 = vmatprep.mubr.msk.bf16.mxu1 %vm23618_vm1, %v23617_v49 }
0x19ae   : > { %19693 = vmatpush3.bf16.msra.mxu0 %v22328_v13  ;;  %20999 = vmatpush3.bf16.msra.mxu1 %v22329_v16 }
0x19af   : > { %21000 = vmatprep.subr.bf16.mxu1 %v23617_v49  ;;  %21016 = vmatprep.subr.bf16.mxu0 %v23617_v49 }
0x19b1   : > { %12399 = vmatmul.mubr.bf16.vlgmr.msra.gmra.mrb[252].mxu0 %v11805_v2 }
0x19b2   : > { %21001 = vmatpush3.bf16.msra.mxu1 %v22330_v25  ;;  %21032 = vmatprep.mubr.msk.bf16.mxu0 %vm23618_vm1, %v23617_v49 }
0x19b3   : > { %21002 = vmatprep.subr.bf16.mxu1 %v23617_v49  ;;  %21017 = vmatpush3.bf16.msra.mxu0 %v22336_v41 }
0x19b4   : > { %21018 = vmatprep.subr.bf16.mxu0 %v23617_v49 }
0x19b6   : > { %21003 = vmatpush3.bf16.msra.mxu1 %v22331_v32 }
0x19b7   : > { %21004 = vmatprep.subr.bf16.mxu1 %v23617_v49  ;;  %21019 = vmatpush3.bf16.msra.mxu0 %v22337_v23 }
0x19b8   : > { %21020 = vmatprep.subr.bf16.mxu0 %v23617_v49 }
0x19ba   : > { %21005 = vmatpush3.bf16.msra.mxu1 %v22332_v20 }
0x19bb   : > { %21006 = vmatprep.subr.bf16.mxu1 %v23617_v49  ;;  %21021 = vmatpush3.bf16.msra.mxu0 %v22338_v37 }
0x19bc   : > { %21022 = vmatprep.subr.bf16.mxu0 %v23617_v49 }
0x19be   : > { %21007 = vmatpush3.bf16.msra.mxu1 %v22333_v48 }
0x19bf   : > { %21008 = vmatprep.subr.bf16.mxu1 %v23617_v49  ;;  %21023 = vmatpush3.bf16.msra.mxu0 %v22339_v55 }
0x19c0   : > { %21024 = vmatprep.subr.bf16.mxu0 %v23617_v49 }
0x19c2   : > { %21009 = vmatpush3.bf16.msra.mxu1 %v22334_v17 }
0x19c3   : > { %21010 = vmatprep.subr.bf16.mxu1 %v23617_v49  ;;  %21025 = vmatpush3.bf16.msra.mxu0 %v22340_v45 }
0x19c4   : > { %21026 = vmatprep.subr.bf16.mxu0 %v23617_v49 }
0x19c6   : > { %21011 = vmatpush3.bf16.msra.mxu1 %v22335_v9 }
0x19c7   : > { %21036 = vmatprep.subr.bf16.mxu1 %v23617_v49  ;;  %21027 = vmatpush3.bf16.msra.mxu0 %v22341_v26 }
0x19c8   : > { %21028 = vmatprep.subr.bf16.mxu0 %v23617_v49 }
0x19c9   : > { %21013 = vmatmul.mubr.bf16.vlgmr.msra.gmra.mrb[236].mxu1 %v11807_v38 }
0x19ca   : > { %21052 = vmatprep.mubr.msk.bf16.mxu1 %vm23618_vm1, %v23617_v49  ;;  %21037 = vmatpush3.bf16.msra.mxu1 %v22344_v57  ;;  %v22374_v57 = vld [vmem:[%s26507_s2 + $0x38] sm:$0xff]  }
0x19cb   : > { %21029 = vmatpush3.bf16.msra.mxu0 %v22342_v30  ;;  %21038 = vmatprep.subr.bf16.mxu1 %v23617_v49 }
0x19cc   : > { %21030 = vmatprep.subr.bf16.mxu0 %v23617_v49 }
0x19ce   : > { %21039 = vmatpush3.bf16.msra.mxu1 %v22345_v60  ;;  %v22375_v60 = vld [vmem:[%s26507_s2 + $0x98] sm:$0xff]  }
0x19cf   : > { %21031 = vmatpush3.bf16.msra.mxu0 %v22343_v50  ;;  %21040 = vmatprep.subr.bf16.mxu1 %v23617_v49 }
0x19d0   : > { %21056 = vmatprep.subr.bf16.mxu0 %v23617_v49 }
0x19d2   : > { %21041 = vmatpush3.bf16.msra.mxu1 %v22346_v54  ;;  %v22376_v54 = vld [vmem:[%s26507_s2 + $0xe0] sm:$0xff]  }
0x19d3   : > { %21042 = vmatprep.subr.bf16.mxu1 %v23617_v49 }
0x19d6   : > { %21043 = vmatpush3.bf16.msra.mxu1 %v22347_v47  ;;  %v22377_v47 = vld [vmem:[%s26507_s2 + $0x140] sm:$0xff]  }
0x19d7   : > { %21044 = vmatprep.subr.bf16.mxu1 %v23617_v49 }
0x19da   : > { %21045 = vmatpush3.bf16.msra.mxu1 %v22348_v56  ;;  %v22378_v56 = vld [vmem:[%s26507_s2 + $0xa0] sm:$0xff]  }
0x19db   : > { %21046 = vmatprep.subr.bf16.mxu1 %v23617_v49 }
0x19de   : > { %21047 = vmatpush3.bf16.msra.mxu1 %v22349_v52  ;;  %v22380_v52 = vld [vmem:[%s26507_s2 + $0xe8] sm:$0xff]  }
0x19df   : > { %21048 = vmatprep.subr.bf16.mxu1 %v23617_v49 }
0x19e2   : > { %21049 = vmatpush3.bf16.msra.mxu1 %v22350_v58  ;;  %v22382_v58 = vld [vmem:[%s26507_s2 + $0xa8] sm:$0xff]  }
0x19e3   : > { %21050 = vmatprep.subr.bf16.mxu1 %v23617_v49 }
0x19e6   : > { %21051 = vmatpush3.bf16.msra.mxu1 %v22351_v59  ;;  %v22384_v59 = vld [vmem:[%s26507_s2 + $0xf0] sm:$0xff]  }
0x19e7   : > { %21080 = vmatprep.subr.bf16.mxu1 %v23617_v49 }
0x1a5c   : > { %v19628_v6 = vpop.f32.mrb[228].mxu1 }
0x1a5d   : > { %v19629_v4 = vpop.f32.mrb[229].mxu1 }
0x1a5e   : > { %v19630_v29 = vadd.f32 %v19629_v4, %v19628_v6  ;;  %v19631_v12 = vpop.f32.mrb[230].mxu1  ;;  %v12826_v4 = vld [vmem:[%s26506_s1] sm:$0xf] }
0x1a5f   : > { %v19632_v8 = vpop.f32.mrb[231].mxu1  ;;  %v18385_v12 = vld [vmem:[%s26506_s1 + $0x4] sm:$0xf] }
0x1a60   : > { %v12281_v11 = vadd.f32 %v19630_v29, %v18293_v5  ;;  %v18391_v29 = vld [vmem:[%s26506_s1 + $0x10] sm:$0xf]  ;;  %v18395_v8 = vld [vmem:[%s26506_s1 + $0x18] sm:$0xf]  ;;  %v22361_v5 = vld [vmem:[%s26507_s2 + $0xc0] sm:$0xff]  }
0x1a64   : > { %v19650_v40 = vpop.f32.mrb[248].mxu0 }
0x1a65   : > { %v19651_v10 = vpop.f32.mrb[249].mxu0 }
0x1a66   : > { %v19652_v14 = vadd.f32 %v19651_v10, %v19650_v40  ;;  %v19653_v15 = vpop.f32.mrb[250].mxu0  ;;  %v18387_v40 = vld [vmem:[%s26506_s1 + $0x8] sm:$0xf]  ;;  %v18399_v10 = vld [vmem:[%s26506_s1 + $0x20] sm:$0xf] }
0x1a67   : > { %v19654_v62 = vpop.f32.mrb[251].mxu0  ;;  %v18389_v15 = vld [vmem:[%s26506_s1 + $0xc] sm:$0xf] }
0x1a68   : > { %v12321_v18 = vadd.f32 %v19652_v14, %v12281_v11  ;;  %v22363_v11 = vld [vmem:[%s26507_s2 + $0x80] sm:$0xff]   ;;  %v22365_v14 = vld [vmem:[%s26507_s2 + $0xc8] sm:$0xff]   ;;  %v18393_v62 = vld [vmem:[%s26506_s1 + $0x14] sm:$0xf] }
0x1a7c   : > { %v19672_v19 = vpop.f32.mrb[232].mxu1 }
0x1a7d   : > { %v19673_v21 = vpop.f32.mrb[233].mxu1 }
0x1a7e   : > { %v19674_v42 = vadd.f32 %v19673_v21, %v19672_v19  ;;  %v19675_v44 = vpop.f32.mrb[234].mxu1  ;;  %v18397_v19 = vld [vmem:[%s26506_s1 + $0x1c] sm:$0xf]  ;;  %v22353_v21 = vld [vmem:[%s26507_s2] sm:$0xff]   ;;  %s26508_s1 = sld [smem:[#allocation110_spill]] }
0x1a7f   : > { %v19676_v51 = vpop.f32.mrb[235].mxu1  ;;  %v22355_v44 = vld [vmem:[%s26507_s2 + $0x8] sm:$0xff]  }
0x1a80   : > { %v12361_v22 = vadd.f32 %v19674_v42, %v12321_v18  ;;  %v22352_v18 = vld [vmem:[%s26507_s2 + $0x40] sm:$0xff]   ;;  %v22354_v42 = vld [vmem:[%s26507_s2 + $0x48] sm:$0xff]   ;;  %v22356_v51 = vld [vmem:[%s26507_s2 + $0x50] sm:$0xff]  }
0x1a84   : > { %v19694_v3 = vpop.f32.mrb[252].mxu0 }
0x1a85   : > { %v19695_v0 = vpop.f32.mrb[253].mxu0 }
0x1a86   : > { %v19696_v33 = vadd.f32 %v19695_v0, %v19694_v3  ;;  %v19697_v28 = vpop.f32.mrb[254].mxu0  ;;  %v22358_v3 = vld [vmem:[%s26507_s2 + $0x58] sm:$0xff]  }
0x1a87   : > { %v19698_v34 = vpop.f32.mrb[255].mxu0  ;;  %v22359_v0 = vld [vmem:[%s26507_s2 + $0x18] sm:$0xff]   ;;  %v22362_v28 = vld [vmem:[%s26507_s2 + $0x20] sm:$0xff]  }
0x1a88   : > { %v12401_v35 = vadd.f32 %v19696_v33, %v12361_v22  ;;  %v22357_v22 = vld [vmem:[%s26507_s2 + $0x10] sm:$0xff]   ;;  %v22360_v33 = vld [vmem:[%s26507_s2 + $0x60] sm:$0xff]   ;;  %v22364_v34 = vld [vmem:[%s26507_s2 + $0x68] sm:$0xff]  }
0x1a9c   : > { %v12440_v39 = vpop.f32.mrb[236].mxu1 }
0x1a9d   : > { %v12441_v27 = vadd.f32 %v12440_v39, %v12401_v35  ;;  %v21014_v36 = vpop.f32.mrb[237].mxu1  ;;  %v22366_v35 = vld [vmem:[%s26507_s2 + $0x28] sm:$0xff]  }
0x1a9e   : > { %v12443_v43 = vpop.f32.mrb[238].mxu1  ;;  %v22367_v39 = vld [vmem:[%s26507_s2 + $0x88] sm:$0xff]   ;;  %v22369_v36 = vld [vmem:[%s26507_s2 + $0xd0] sm:$0xff]  }
0x1a9f   : > { %v12446_v46 = vmax.f32 %v12441_v27, 0.0  ;;  %v21015_v53 = vpop.f32.mrb[239].mxu1  ;;  %v22368_v27 = vld [vmem:[%s26507_s2 + $0x70] sm:$0xff]  }
0x1aa0   : > { %v22370_v43 = vld [vmem:[%s26507_s2 + $0x30] sm:$0xff]   ;;  %v22372_v53 = vld [vmem:[%s26507_s2 + $0x78] sm:$0xff]  }
0x1aa1   : > { %v12447_v61 = vpack.c.bf16 %v12446_v46, %v12446_v46  ;;  %v22371_v46 = vld [vmem:[%s26507_s2 + $0x90] sm:$0xff]  }
0x1aa3   : > { %21033 = vmatmul.mubr.bf16.vlgmr.msra.gmra.mrb[0].mxu0 %v12447_v61  ;;  %v22373_v61 = vld [vmem:[%s26507_s2 + $0xd8] sm:$0xff]  }
0x1aa4   : > { %21058 = vmatprep.mubr.msk.bf16.mxu0 %vm23618_vm1, %v23617_v49 }
0x1b76   : > { %v12536_v1 = vpop.f32.mrb[0].mxu0 }
0x1b77   : > { %v12537_v31 = vadd.f32 %v18366_v63, %v12536_v1  ;;  %v21034_v13 = vpop.f32.mrb[1].mxu0  ;;  %v22386_v63 = vld [vmem:[%s26507_s2 + $0xb0] sm:$0xff]   ;;  %v22388_v1 = vld [vmem:[%s26507_s2 + $0xf8] sm:$0xff]  }
0x1b78   : > { %v12539_v16 = vpop.f32.mrb[2].mxu0 }
0x1b79   : > { %v12543_v2 = vadd.f32 %v12542_v7, %v12537_v31  ;;  %v21035_v25 = vpop.f32.mrb[3].mxu0  ;;  %v22390_v31 = vld [vmem:[%s26507_s2 + $0xb8] sm:$0xff]   ;;  %v22393_v7 = vld [vmem:[%s26507_s2 + $0x1c0] sm:$0xff]  }
0x1b7b   : > { %v12544_v32 = vmax.f32 %v12543_v2, 0.0 }
0x1b7d   : > { %v12545_v20 = vsub.f32 0.0, %v12544_v32 }
0x1b7f   : > { %v12546_v48 = vmul.f32 1.442695, %v12545_v20 }
0x1b81   : > { %22708 = vpow2.f32 %v12546_v48 }
0x1b8b   : > { %v22709_v17 = vpop.eup %22708 }
0x1b8c   : > { %v12548_v9 = vadd.f32 1.0, %v22709_v17 }
0x1b8e   : > { %22710 = vrcp.f32 %v12548_v9 }
0x1b98   : > { %v22711_v38 = vpop.eup %22710 }
0x1b99   : > { %v25793_v41 = vpack.c.bf16 %v22711_v38, %v22711_v38 }
0x1b9b   : > { %21053 = vmatmul.mubr.bf16.vlgmr.msra.gmra.mrb[240].mxu1 %v25793_v41 }
0x1b9c   : > { %21082 = vmatprep.mubr.msk.bf16.mxu1 %vm23618_vm1, %v23617_v49 }
0x1c6e   : > { %v12818_v23 = vpop.f32.mrb[240].mxu1 }
0x1c6f   : > { %v12819_v37 = vadd.f32 %v18375_v24, %v12818_v23  ;;  %v21054_v55 = vpop.f32.mrb[241].mxu1 }
0x1c70   : > { %v12821_v45 = vpop.f32.mrb[242].mxu1 }
0x1c71   : > { %v12824_v26 = vmax.f32 %v12819_v37, 0.0  ;;  %v21055_v30 = vpop.f32.mrb[243].mxu1  ;;  %v22379_v37 = vld [vmem:[%s26507_s2 + $0x100] sm:$0xff]  }
0x1c72   : > { %v22381_v30 = vld [vmem:[%s26507_s2 + $0x148] sm:$0xff]  }
0x1c73   : > { %v12825_v50 = vpack.c.bf16 %v12824_v26, %v12824_v26 }
0x1c75   : > { %v12831_v6 = vsel %vm11395_vm3, %v12825_v50, 0 }
0x1c76   : > { %21057 = vmatpush3.bf16.msra.mxu0 %v12831_v6  ;;  %21081 = vmatpush3.bf16.msra.mxu1 %v12831_v6 }
0x1c77   : > { %21062 = vmatprep.subr.bf16.mxu0 %v23617_v49  ;;  %21092 = vmatprep.subr.bf16.mxu1 %v23617_v49 }
0x1c79   : > { %21059 = vmatmul.mubr.msk.bf16.vlgmr.msra.gmra.mrb[4].mxu0 %vm11391_vm4, %v12826_v4  ;;  %21083 = vmatmul.mubr.msk.bf16.vlgmr.msra.gmra.mrb[244].mxu1 %vm11391_vm4, %v18391_v29  ;;  %v22383_v29 = vld [vmem:[%s26507_s2 + $0x108] sm:$0xff]  }
0x1c7a   : > { %21063 = vmatpush3.bf16.msra.mxu0 %v12831_v6  ;;  %21093 = vmatpush3.bf16.msra.mxu1 %v12831_v6 }
0x1c7b   : > { %21064 = vmatprep.mubr.msk.bf16.mxu0 %vm23618_vm1, %v23617_v49  ;;  %21068 = vmatprep.subr.bf16.mxu0 %v23617_v49 }
0x1c7c   : > { %21094 = vmatprep.mubr.msk.bf16.mxu1 %vm23618_vm1, %v23617_v49  ;;  %21104 = vmatprep.subr.bf16.mxu1 %v23617_v49 }
0x1c81   : > { %21065 = vmatmul.mubr.msk.bf16.vlgmr.msra.gmra.mrb[8].mxu0 %vm11391_vm4, %v18385_v12  ;;  %21095 = vmatmul.mubr.msk.bf16.vlgmr.msra.gmra.mrb[248].mxu1 %vm11391_vm4, %v18395_v8  ;;  %v22385_v12 = vld [vmem:[%s26507_s2 + $0x150] sm:$0xff]  }
0x1c82   : > { %21069 = vmatpush3.bf16.msra.mxu0 %v12831_v6  ;;  %21105 = vmatpush3.bf16.msra.mxu1 %v12831_v6 }
0x1c83   : > { %21070 = vmatprep.mubr.msk.bf16.mxu0 %vm23618_vm1, %v23617_v49  ;;  %21074 = vmatprep.subr.bf16.mxu0 %v23617_v49 }
0x1c84   : > { %21106 = vmatprep.mubr.msk.bf16.mxu1 %vm23618_vm1, %v23617_v49  ;;  %19767 = vmatprep.subr.bf16.mxu1 %v22361_v5 }
0x1c89   : > { %21071 = vmatmul.mubr.msk.bf16.vlgmr.msra.gmra.mrb[12].mxu0 %vm11391_vm4, %v18387_v40  ;;  %21107 = vmatmul.mubr.msk.bf16.vlgmr.msra.gmra.mrb[252].mxu1 %vm11391_vm4, %v18399_v10  ;;  %v22387_v40 = vld [vmem:[%s26507_s2 + $0x110] sm:$0xff]  }
0x1c8a   : > { %21075 = vmatpush3.bf16.msra.mxu0 %v12831_v6  ;;  %21076 = vmatprep.mubr.msk.bf16.mxu0 %vm23618_vm1, %v23617_v49 }
0x1c8b   : > { %21086 = vmatprep.subr.bf16.mxu0 %v23617_v49  ;;  %19768 = vmatpush3.bf16.msra.mxu1 %v22363_v11 }
0x1c8c   : > { %19769 = vmatprep.subr.bf16.mxu1 %v22365_v14 }
0x1c8f   : > { %19770 = vmatpush3.bf16.msra.mxu1 %v22367_v39 }
0x1c90   : > { %19771 = vmatprep.subr.bf16.mxu1 %v22369_v36  ;;  %v22399_v36 = vld [vmem:[%s26507_s2 + $0x188] sm:$0xff]  }
0x1c91   : > { %21077 = vmatmul.mubr.msk.bf16.vlgmr.msra.gmra.mrb[16].mxu0 %vm11391_vm4, %v18389_v15  ;;  %v22389_v15 = vld [vmem:[%s26507_s2 + $0x158] sm:$0xff]  }
0x1c92   : > { %21087 = vmatpush3.bf16.msra.mxu0 %v12831_v6  ;;  %21088 = vmatprep.mubr.msk.bf16.mxu0 %vm23618_vm1, %v23617_v49 }
0x1c93   : > { %21098 = vmatprep.subr.bf16.mxu0 %v23617_v49  ;;  %19772 = vmatpush3.bf16.msra.mxu1 %v22371_v46  ;;  %v22401_v46 = vld [vmem:[%s26507_s2 + $0x1d0] sm:$0xff]  }
0x1c94   : > { %19773 = vmatprep.subr.bf16.mxu1 %v22373_v61  ;;  %v22402_v61 = vld [vmem:[%s26507_s2 + $0x130] sm:$0xff]  }
0x1c97   : > { %19774 = vmatpush3.bf16.msra.mxu1 %v22375_v60 }
0x1c98   : > { %19775 = vmatprep.subr.bf16.mxu1 %v22376_v54 }
0x1c99   : > { %21089 = vmatmul.mubr.msk.bf16.vlgmr.msra.gmra.mrb[20].mxu0 %vm11391_vm4, %v18393_v62 }
0x1c9a   : > { %21099 = vmatpush3.bf16.msra.mxu0 %v12831_v6  ;;  %21100 = vmatprep.mubr.msk.bf16.mxu0 %vm23618_vm1, %v23617_v49 }
0x1c9b   : > { %19745 = vmatprep.subr.bf16.mxu0 %v22352_v18  ;;  %19776 = vmatpush3.bf16.msra.mxu1 %v22378_v56  ;;  %v22404_v56 = vld [vmem:[%s26507_s2 + $0x178] sm:$0xff]  }
0x1c9c   : > { %19777 = vmatprep.subr.bf16.mxu1 %v22380_v52  ;;  %v22405_v52 = vld [vmem:[%s26507_s2 + $0x1d8] sm:$0xff]  }
0x1c9f   : > { %19778 = vmatpush3.bf16.msra.mxu1 %v22382_v58 }
0x1ca0   : > { %19779 = vmatprep.subr.bf16.mxu1 %v22384_v59  ;;  %v22406_v59 = vld [vmem:[%s26507_s2 + $0x138] sm:$0xff]  }
0x1ca1   : > { %21101 = vmatmul.mubr.msk.bf16.vlgmr.msra.gmra.mrb[24].mxu0 %vm11391_vm4, %v18397_v19 }
0x1ca2   : > { %19746 = vmatpush3.bf16.msra.mxu0 %v22353_v21  ;;  %v22391_v21 = vld [vmem:[%s26507_s2 + $0x118] sm:$0xff]  }
0x1ca3   : > { %19747 = vmatprep.subr.bf16.mxu0 %v22354_v42  ;;  %19780 = vmatpush3.bf16.msra.mxu1 %v22386_v63  ;;  %v22392_v42 = vld [vmem:[%s26507_s2 + $0x160] sm:$0xff]   ;;  %v22407_v63 = vld [vmem:[%s26507_s2 + $0x198] sm:$0xff]  }
0x1ca4   : > { %19781 = vmatprep.subr.bf16.mxu1 %v22388_v1  ;;  %v22408_v1 = vld [vmem:[%s26507_s2 + $0x1e0] sm:$0xff]  }
0x1ca6   : > { %19748 = vmatpush3.bf16.msra.mxu0 %v22355_v44 }
0x1ca7   : > { %19749 = vmatprep.subr.bf16.mxu0 %v22356_v51  ;;  %19782 = vmatpush3.bf16.msra.mxu1 %v22390_v31 }
0x1ca8   : > { %19811 = vmatprep.subr.bf16.mxu1 %v22393_v7 }
0x1caa   : > { %19750 = vmatpush3.bf16.msra.mxu0 %v22357_v22 }
0x1cab   : > { %19751 = vmatprep.subr.bf16.mxu0 %v22358_v3  ;;  %v22394_v3 = vld [vmem:[%s26507_s2 + $0x120] sm:$0xff]  }
0x1cae   : > { %19752 = vmatpush3.bf16.msra.mxu0 %v22359_v0  ;;  %v22395_v0 = vld [vmem:[%s26507_s2 + $0x180] sm:$0xff]  }
0x1caf   : > { %19753 = vmatprep.subr.bf16.mxu0 %v22360_v33 }
0x1cb2   : > { %19754 = vmatpush3.bf16.msra.mxu0 %v22362_v28 }
0x1cb3   : > { %19755 = vmatprep.subr.bf16.mxu0 %v22364_v34  ;;  %v22396_v34 = vld [vmem:[%s26507_s2 + $0x168] sm:$0xff]  }
0x1cb6   : > { %19756 = vmatpush3.bf16.msra.mxu0 %v22366_v35  ;;  %v22397_v35 = vld [vmem:[%s26507_s2 + $0x1c8] sm:$0xff]  }
0x1cb7   : > { %19757 = vmatprep.subr.bf16.mxu0 %v22368_v27  ;;  %v22398_v27 = vld [vmem:[%s26507_s2 + $0x128] sm:$0xff]  }
0x1cba   : > { %19758 = vmatpush3.bf16.msra.mxu0 %v22370_v43  ;;  %v22400_v43 = vld [vmem:[%s26507_s2 + $0x170] sm:$0xff]  }
0x1cbb   : > { %19759 = vmatprep.subr.bf16.mxu0 %v22372_v53 }
0x1cbe   : > { %19760 = vmatpush3.bf16.msra.mxu0 %v22374_v57  ;;  %v22403_v57 = vld [vmem:[%s26507_s2 + $0x190] sm:$0xff]  }
0x1cbf   : > { %19789 = vmatprep.subr.bf16.mxu0 %v22377_v47 }
0x1d4c   : > { %v12867_v13 = vpop.f32.mrb[4].mxu0  ;;  %v25872_v16 = vpop.f32.mrb[244].mxu1 }
0x1d4d   : > { %v21060_v2 = vpop.f32.mrb[5].mxu0  ;;  %v21084_v25 = vpop.f32.mrb[245].mxu1  ;;  %v13233_v45 = vpack.c.bf16 %v12867_v13, %v12867_v13  ;;  %v13237_v31 = vpack.c.bf16 %v25872_v16, %v25872_v16  ;;  %v22409_v13 = vld [vmem:[%s26507_s2 + $0x1a0] sm:$0xff]   ;;  %v22412_v16 = vld [vmem:[%s26507_s2 + $0x1a8] sm:$0xff]  }
0x1d4e   : > { %v12870_v32 = vpop.f32.mrb[6].mxu0  ;;  %v13050_v20 = vpop.f32.mrb[246].mxu1  ;;  %v22410_v2 = vld [vmem:[%s26507_s2 + $0x200] sm:$0xff]  }
0x1d4f   : > { %v21061_v48 = vpop.f32.mrb[7].mxu0  ;;  %v21085_v17 = vpop.f32.mrb[247].mxu1  ;;  %v22411_v20 = vld [vmem:[%s26507_s2 + $0x1e8] sm:$0xff]  }
0x1d54   : > { %v12912_v9 = vpop.f32.mrb[8].mxu0  ;;  %v25874_v38 = vpop.f32.mrb[248].mxu1 }
0x1d55   : > { %v13234_v24 = vpack.c.bf16 %v12912_v9, %v12912_v9  ;;  %v21066_v23 = vpop.f32.mrb[9].mxu0  ;;  %v21096_v55 = vpop.f32.mrb[249].mxu1  ;;  %v22413_v9 = vld [vmem:[%s26507_s2 + $0x208] sm:$0xff]  }
0x1d56   : > { %v12915_v26 = vpop.f32.mrb[10].mxu0  ;;  %v13140_v50 = vpop.f32.mrb[250].mxu1  ;;  %v22415_v23 = vld [vmem:[%s26507_s2 + $0x1b0] sm:$0xff]   ;;  %v22417_v55 = vld [vmem:[%s26507_s2 + $0x1f8] sm:$0xff]  }
0x1d57   : > { %v21067_v6 = vpop.f32.mrb[11].mxu0  ;;  %13712 = vmatprep.mubr.bf16.mxu0 %v13234_v24  ;;  %v21097_v4 = vpop.f32.mrb[251].mxu1  ;;  %v22414_v24 = vld [vmem:[%s26507_s2 + $0x1f0] sm:$0xff]   ;;  %v22419_v26 = vld [vmem:[%s26507_s2 + $0x218] sm:$0xff]   ;;  %v22420_v50 = vld [vmem:[%s26507_s2 + $0x220] sm:$0xff]  }
0x1d58   : > { %13713 = vmatmul.mubr.bf16.vlgmr.msra.gmra.mrb[28].mxu0 %v13233_v45  ;;  %v22418_v45 = vld [vmem:[%s26507_s2 + $0x1b8] sm:$0xff]   ;;  %v22421_v6 = vld [vmem:[%s26507_s2 + $0x228] sm:$0xff]   ;;  %v22422_v4 = vld [vmem:[%s26507_s2 + $0x230] sm:$0xff]  }
0x1d59   : > { %19790 = vmatpush3.bf16.msra.mxu0 %v22379_v37  ;;  %v22416_v37 = vld [vmem:[%s26507_s2 + $0x210] sm:$0xff]  }
0x1d5a   : > { %19791 = vmatprep.subr.bf16.mxu0 %v22381_v30  ;;  %v13239_v30 = vpack.c.bf16 %v25874_v38, %v25874_v38  ;;  %v22423_v38 = vld [vmem:[%s26507_s2 + $0x238] sm:$0xff]   ;;  %s26509_s2 = sld [smem:[#allocation107_spill]] }
0x1d5c   : > { %v12957_v8 = vpop.f32.mrb[12].mxu0  ;;  %v25880_v5 = vpop.f32.mrb[252].mxu1 }
0x1d5d   : > { %19792 = vmatpush3.bf16.msra.mxu0 %v22383_v29  ;;  %v21072_v10 = vpop.f32.mrb[13].mxu0  ;;  %v21108_v11 = vpop.f32.mrb[253].mxu1  ;;  %v13235_v44 = vpack.c.bf16 %v12957_v8, %v12957_v8  ;;  %v13241_v29 = vpack.c.bf16 %v25880_v5, %v25880_v5  ;;  %v22425_v8 = vld [vmem:[#allocation25 + $0x8] sm:$0xff]   ;;  %v22427_v5 = vld [vmem:[#allocation25 + $0x18] sm:$0xff]  }
0x1d5e   : > { %19793 = vmatprep.subr.bf16.mxu0 %v22385_v12  ;;  %v12960_v14 = vpop.f32.mrb[14].mxu0  ;;  %v13230_v62 = vpop.f32.mrb[254].mxu1  ;;  %v22424_v12 = vld [vmem:[#allocation25] sm:$0xff]   ;;  %v22429_v11 = vld [vmem:[#allocation25 + $0x28] sm:$0xff]  }
0x1d5f   : > { %v21073_v18 = vpop.f32.mrb[15].mxu0  ;;  %v21109_v19 = vpop.f32.mrb[255].mxu1  ;;  %v22428_v10 = vld [vmem:[#allocation25 + $0x20] sm:$0xff]   ;;  %v22430_v14 = vld [vmem:[#allocation25 + $0x30] sm:$0xff]  }
0x1d61   : > { %19794 = vmatpush3.bf16.msra.mxu0 %v22387_v40  ;;  %v22426_v40 = vld [vmem:[#allocation25 + $0x10] sm:$0xff]  }
0x1d62   : > { %19795 = vmatprep.subr.bf16.mxu0 %v22389_v15  ;;  %v22431_v15 = vld [vmem:[#allocation25 + $0x38] sm:$0xff]  }
0x1d64   : > { %v13002_v51 = vpop.f32.mrb[16].mxu0 }
0x1d65   : > { %v13236_v22 = vpack.c.bf16 %v13002_v51, %v13002_v51  ;;  %19796 = vmatpush3.bf16.msra.mxu0 %v22391_v21  ;;  %v21078_v33 = vpop.f32.mrb[17].mxu0 }
0x1d66   : > { %19797 = vmatprep.subr.bf16.mxu0 %v22392_v42  ;;  %v13005_v28 = vpop.f32.mrb[18].mxu0 }
0x1d67   : > { %13752 = vmatprep.mubr.bf16.mxu1 %v13236_v22  ;;  %v21079_v39 = vpop.f32.mrb[19].mxu0 }
0x1d68   : > { %13753 = vmatmul.mubr.bf16.vlgmr.msra.gmra.mrb[0].mxu1 %v13235_v44  ;;  %v18401_v44 = vld [vmem:[#allocation24] ss:$0 sm:$0xff] }
0x1d69   : > { %19798 = vmatpush3.bf16.msra.mxu0 %v22394_v3  ;;  %19812 = vmatpush3.bf16.msra.mxu1 %v22395_v0 }
0x1d6a   : > { %19799 = vmatprep.subr.bf16.mxu0 %v22396_v34  ;;  %19813 = vmatprep.subr.bf16.mxu1 %v22397_v35 }
0x1d6c   : > { %v13092_v53 = vpop.f32.mrb[20].mxu0 }
0x1d6d   : > { %19800 = vmatpush3.bf16.msra.mxu0 %v22398_v27  ;;  %19814 = vmatpush3.bf16.msra.mxu1 %v22399_v36  ;;  %v13238_v60 = vpack.c.bf16 %v13092_v53, %v13092_v53  ;;  %v21090_v54 = vpop.f32.mrb[21].mxu0 }
0x1d6e   : > { %19801 = vmatprep.subr.bf16.mxu0 %v22400_v43  ;;  %19815 = vmatprep.subr.bf16.mxu1 %v22401_v46  ;;  %v13095_v47 = vpop.f32.mrb[22].mxu0 }
0x1d6f   : > { %v21091_v58 = vpop.f32.mrb[23].mxu0  ;;  %13792 = vmatprep.mubr.bf16.mxu0 %v13238_v60 }
0x1d71   : > { %19802 = vmatpush3.bf16.msra.mxu0 %v22402_v61  ;;  %19816 = vmatpush3.bf16.msra.mxu1 %v22403_v57 }
0x1d72   : > { %19803 = vmatprep.subr.bf16.mxu0 %v22404_v56  ;;  %19817 = vmatprep.subr.bf16.mxu1 %v22405_v52 }
0x1d74   : > { %v13182_v7 = vpop.f32.mrb[24].mxu0 }
0x1d75   : > { %19804 = vmatpush3.bf16.msra.mxu0 %v22406_v59  ;;  %19818 = vmatpush3.bf16.msra.mxu1 %v22407_v63  ;;  %v13240_v25 = vpack.c.bf16 %v13182_v7, %v13182_v7  ;;  %v21102_v32 = vpop.f32.mrb[25].mxu0  ;;  %v22432_v7 = vld [vmem:[#allocation28] sm:$0xff]  }
0x1d76   : > { %19819 = vmatprep.subr.bf16.mxu1 %v22408_v1  ;;  %21110 = vmatprep.subr.bf16.mxu0 %v23617_v49  ;;  %v13185_v48 = vpop.f32.mrb[26].mxu0  ;;  %v22436_v32 = vld [vmem:[#allocation28 + $0x20] sm:$0xff]  }
0x1d77   : > { %13832 = vmatprep.mubr.bf16.mxu1 %v13240_v25  ;;  %v21103_v17 = vpop.f32.mrb[27].mxu0  ;;  %v22435_v25 = vld [vmem:[#allocation28 + $0x18] sm:$0xff]   ;;  %v22438_v48 = vld [vmem:[#allocation28 + $0x30] sm:$0xff]  }
0x1d78   : > { %13793 = vmatmul.mubr.bf16.vlgmr.msra.gmra.mrb[32].mxu0 %v13237_v31  ;;  %v22439_v17 = vld [vmem:[#allocation28 + $0x38] sm:$0xff]  }
0x1d79   : > { %19820 = vmatpush3.bf16.msra.mxu1 %v22409_v13  ;;  %21111 = vmatpush3.bf16.msra.mxu0 %v22410_v2  ;;  %v22433_v13 = vld [vmem:[#allocation28 + $0x8] sm:$0xff]   ;;  %v22434_v2 = vld [vmem:[#allocation28 + $0x10] sm:$0xff]  }
0x1d7a   : > { %19821 = vmatprep.subr.bf16.mxu1 %v22411_v20  ;;  %21112 = vmatprep.subr.bf16.mxu0 %v23617_v49  ;;  %v22437_v20 = vld [vmem:[#allocation28 + $0x28] sm:$0xff]  }
0x1d7b   : > { %21126 = vmatprep.mubr.msk.bf16.mxu0 %vm23618_vm1, %v23617_v49 }
0x1d7d   : > { %19822 = vmatpush3.bf16.msra.mxu1 %v22412_v16  ;;  %21113 = vmatpush3.bf16.msra.mxu0 %v22413_v9  ;;  %v18474_v16 = vld [vmem:[#allocation27] ss:$0 sm:$0xff] }
0x1d7e   : > { %19823 = vmatprep.subr.bf16.mxu1 %v22414_v24  ;;  %21114 = vmatprep.subr.bf16.mxu0 %v23617_v49 }
0x1d81   : > { %19824 = vmatpush3.bf16.msra.mxu1 %v22415_v23  ;;  %21115 = vmatpush3.bf16.msra.mxu0 %v22416_v37  ;;  %v13976_v23 = vunpack.c.l.bf16 %v25793_v41  ;;  %v18483_v41 = vld [vmem:[#allocation30] ss:$0 sm:$0xff] }
0x1d82   : > { %19825 = vmatprep.subr.bf16.mxu1 %v22417_v55  ;;  %21116 = vmatprep.subr.bf16.mxu0 %v23617_v49 }
0x1d85   : > { %19826 = vmatpush3.bf16.msra.mxu1 %v22418_v45  ;;  %21117 = vmatpush3.bf16.msra.mxu0 %v22419_v26 }
0x1d86   : > { %21118 = vmatprep.subr.bf16.mxu0 %v23617_v49  ;;  %21130 = vmatprep.subr.bf16.mxu1 %v23617_v49 }
0x1d88   : > { %13833 = vmatmul.mubr.bf16.vlgmr.msra.gmra.mrb[4].mxu1 %v13239_v30 }
0x1d89   : > { %21119 = vmatpush3.bf16.msra.mxu0 %v22420_v50  ;;  %21146 = vmatprep.mubr.msk.bf16.mxu1 %vm23618_vm1, %v23617_v49 }
0x1d8a   : > { %21120 = vmatprep.subr.bf16.mxu0 %v23617_v49  ;;  %21131 = vmatpush3.bf16.msra.mxu1 %v22424_v12 }
0x1d8b   : > { %21132 = vmatprep.subr.bf16.mxu1 %v23617_v49 }
0x1d8d   : > { %21121 = vmatpush3.bf16.msra.mxu0 %v22421_v6 }
0x1d8e   : > { %21122 = vmatprep.subr.bf16.mxu0 %v23617_v49  ;;  %21133 = vmatpush3.bf16.msra.mxu1 %v22425_v8 }
0x1d8f   : > { %21134 = vmatprep.subr.bf16.mxu1 %v23617_v49 }
0x1d91   : > { %21123 = vmatpush3.bf16.msra.mxu0 %v22422_v4 }
0x1d92   : > { %21124 = vmatprep.subr.bf16.mxu0 %v23617_v49  ;;  %21135 = vmatpush3.bf16.msra.mxu1 %v22426_v40 }
0x1d93   : > { %21136 = vmatprep.subr.bf16.mxu1 %v23617_v49 }
0x1d95   : > { %21125 = vmatpush3.bf16.msra.mxu0 %v22423_v38 }
0x1d96   : > { %21150 = vmatprep.subr.bf16.mxu0 %v23617_v49  ;;  %21137 = vmatpush3.bf16.msra.mxu1 %v22427_v5 }
0x1d97   : > { %21138 = vmatprep.subr.bf16.mxu1 %v23617_v49 }
0x1d98   : > { %21127 = vmatmul.mubr.bf16.vlgmr.msra.gmra.mrb[36].mxu0 %v13241_v29 }
0x1d99   : > { %21166 = vmatprep.mubr.msk.bf16.mxu0 %vm23618_vm1, %v23617_v49  ;;  %21151 = vmatpush3.bf16.msra.mxu0 %v22432_v7  ;;  %v22462_v7 = vld [vmem:[%s26509_s2 + $0x38] sm:$0xff]  }
0x1d9a   : > { %21139 = vmatpush3.bf16.msra.mxu1 %v22428_v10  ;;  %21152 = vmatprep.subr.bf16.mxu0 %v23617_v49 }
0x1d9b   : > { %21140 = vmatprep.subr.bf16.mxu1 %v23617_v49 }
0x1d9d   : > { %21153 = vmatpush3.bf16.msra.mxu0 %v22433_v13  ;;  %v22463_v13 = vld [vmem:[%s26509_s2 + $0x98] sm:$0xff]  }
0x1d9e   : > { %21141 = vmatpush3.bf16.msra.mxu1 %v22429_v11  ;;  %21154 = vmatprep.subr.bf16.mxu0 %v23617_v49 }
0x1d9f   : > { %21142 = vmatprep.subr.bf16.mxu1 %v23617_v49 }
0x1da1   : > { %21155 = vmatpush3.bf16.msra.mxu0 %v22434_v2  ;;  %v22464_v2 = vld [vmem:[%s26509_s2 + $0xe0] sm:$0xff]  }
0x1da2   : > { %21143 = vmatpush3.bf16.msra.mxu1 %v22430_v14  ;;  %21156 = vmatprep.subr.bf16.mxu0 %v23617_v49 }
0x1da3   : > { %21144 = vmatprep.subr.bf16.mxu1 %v23617_v49 }
0x1da5   : > { %21157 = vmatpush3.bf16.msra.mxu0 %v22435_v25  ;;  %v22465_v25 = vld [vmem:[%s26509_s2 + $0x140] sm:$0xff]  }
0x1da6   : > { %21145 = vmatpush3.bf16.msra.mxu1 %v22431_v15  ;;  %21158 = vmatprep.subr.bf16.mxu0 %v23617_v49 }
0x1da7   : > { %21170 = vmatprep.subr.bf16.mxu1 %v23617_v49 }
0x1da9   : > { %21159 = vmatpush3.bf16.msra.mxu0 %v22436_v32  ;;  %v22466_v32 = vld [vmem:[%s26509_s2 + $0xa0] sm:$0xff]  }
0x1daa   : > { %21160 = vmatprep.subr.bf16.mxu0 %v23617_v49 }
0x1dad   : > { %21161 = vmatpush3.bf16.msra.mxu0 %v22437_v20  ;;  %v22468_v20 = vld [vmem:[%s26509_s2 + $0xe8] sm:$0xff]  }
0x1dae   : > { %21162 = vmatprep.subr.bf16.mxu0 %v23617_v49 }
0x1db1   : > { %21163 = vmatpush3.bf16.msra.mxu0 %v22438_v48  ;;  %v22470_v48 = vld [vmem:[%s26509_s2 + $0xa8] sm:$0xff]  }
0x1db2   : > { %21164 = vmatprep.subr.bf16.mxu0 %v23617_v49 }
0x1db5   : > { %21165 = vmatpush3.bf16.msra.mxu0 %v22439_v17  ;;  %v22472_v17 = vld [vmem:[%s26509_s2 + $0xf0] sm:$0xff]  }
0x1db6   : > { %21194 = vmatprep.subr.bf16.mxu0 %v23617_v49 }
0x1e2b   : > { %v19761_v62 = vpop.f32.mrb[28].mxu0 }
0x1e2c   : > { %v19762_v18 = vpop.f32.mrb[29].mxu0 }
0x1e2d   : > { %v19763_v19 = vadd.f32 %v19762_v18, %v19761_v62  ;;  %v19764_v21 = vpop.f32.mrb[30].mxu0  ;;  %v14260_v18 = vld [vmem:[%s26508_s1] sm:$0xf] }
0x1e2e   : > { %v19765_v42 = vpop.f32.mrb[31].mxu0  ;;  %v18493_v21 = vld [vmem:[%s26508_s1 + $0x4] sm:$0xf] }
0x1e2f   : > { %v13715_v3 = vadd.f32 %v19763_v19, %v18401_v44  ;;  %v18499_v19 = vld [vmem:[%s26508_s1 + $0x10] sm:$0xf]  ;;  %v18503_v42 = vld [vmem:[%s26508_s1 + $0x18] sm:$0xf]  ;;  %v22449_v44 = vld [vmem:[%s26509_s2 + $0xc0] sm:$0xff]  }
0x1e3b   : > { %v19783_v51 = vpop.f32.mrb[0].mxu1 }
0x1e3c   : > { %v19784_v22 = vpop.f32.mrb[1].mxu1 }
0x1e3d   : > { %v19785_v0 = vadd.f32 %v19784_v22, %v19783_v51  ;;  %v19786_v33 = vpop.f32.mrb[2].mxu1  ;;  %v18495_v51 = vld [vmem:[%s26508_s1 + $0x8] sm:$0xf]  ;;  %v18507_v22 = vld [vmem:[%s26508_s1 + $0x20] sm:$0xf] }
0x1e3e   : > { %v19787_v28 = vpop.f32.mrb[3].mxu1  ;;  %v18497_v33 = vld [vmem:[%s26508_s1 + $0xc] sm:$0xf] }
0x1e3f   : > { %v13755_v34 = vadd.f32 %v19785_v0, %v13715_v3  ;;  %v22451_v3 = vld [vmem:[%s26509_s2 + $0x80] sm:$0xff]   ;;  %v22453_v0 = vld [vmem:[%s26509_s2 + $0xc8] sm:$0xff]   ;;  %v18501_v28 = vld [vmem:[%s26508_s1 + $0x14] sm:$0xf] }
0x1e4b   : > { %v19805_v35 = vpop.f32.mrb[32].mxu0 }
0x1e4c   : > { %v19806_v39 = vpop.f32.mrb[33].mxu0 }
0x1e4d   : > { %v19807_v27 = vadd.f32 %v19806_v39, %v19805_v35  ;;  %v19808_v36 = vpop.f32.mrb[34].mxu0  ;;  %v18505_v35 = vld [vmem:[%s26508_s1 + $0x1c] sm:$0xf]  ;;  %v22441_v39 = vld [vmem:[%s26509_s2] sm:$0xff]   ;;  %s26510_s1 = sld [smem:[#allocation112_spill]] }
0x1e4e   : > { %v19809_v43 = vpop.f32.mrb[35].mxu0  ;;  %v22443_v36 = vld [vmem:[%s26509_s2 + $0x8] sm:$0xff]  }
0x1e4f   : > { %v13795_v46 = vadd.f32 %v19807_v27, %v13755_v34  ;;  %v22440_v34 = vld [vmem:[%s26509_s2 + $0x40] sm:$0xff]   ;;  %v22442_v27 = vld [vmem:[%s26509_s2 + $0x48] sm:$0xff]   ;;  %v22444_v43 = vld [vmem:[%s26509_s2 + $0x50] sm:$0xff]  }
0x1e5b   : > { %v19827_v53 = vpop.f32.mrb[4].mxu1 }
0x1e5c   : > { %v19828_v61 = vpop.f32.mrb[5].mxu1 }
0x1e5d   : > { %v19829_v57 = vadd.f32 %v19828_v61, %v19827_v53  ;;  %v19830_v60 = vpop.f32.mrb[6].mxu1  ;;  %v22446_v53 = vld [vmem:[%s26509_s2 + $0x58] sm:$0xff]  }
0x1e5e   : > { %v19831_v54 = vpop.f32.mrb[7].mxu1  ;;  %v22447_v61 = vld [vmem:[%s26509_s2 + $0x18] sm:$0xff]   ;;  %v22450_v60 = vld [vmem:[%s26509_s2 + $0x20] sm:$0xff]  }
0x1e5f   : > { %v13835_v47 = vadd.f32 %v19829_v57, %v13795_v46  ;;  %v22445_v46 = vld [vmem:[%s26509_s2 + $0x10] sm:$0xff]   ;;  %v22448_v57 = vld [vmem:[%s26509_s2 + $0x60] sm:$0xff]   ;;  %v22452_v54 = vld [vmem:[%s26509_s2 + $0x68] sm:$0xff]  }
0x1e6b   : > { %v13874_v56 = vpop.f32.mrb[36].mxu0 }
0x1e6c   : > { %v13875_v52 = vadd.f32 %v13874_v56, %v13835_v47  ;;  %v21128_v58 = vpop.f32.mrb[37].mxu0  ;;  %v22454_v47 = vld [vmem:[%s26509_s2 + $0x28] sm:$0xff]  }
0x1e6d   : > { %v13877_v59 = vpop.f32.mrb[38].mxu0  ;;  %v22455_v56 = vld [vmem:[%s26509_s2 + $0x88] sm:$0xff]   ;;  %v22457_v58 = vld [vmem:[%s26509_s2 + $0xd0] sm:$0xff]  }
0x1e6e   : > { %v13880_v63 = vmax.f32 %v13875_v52, 0.0  ;;  %v21129_v1 = vpop.f32.mrb[39].mxu0  ;;  %v22456_v52 = vld [vmem:[%s26509_s2 + $0x70] sm:$0xff]  }
0x1e6f   : > { %v22458_v59 = vld [vmem:[%s26509_s2 + $0x30] sm:$0xff]   ;;  %v22460_v1 = vld [vmem:[%s26509_s2 + $0x78] sm:$0xff]  }
0x1e70   : > { %v13881_v31 = vpack.c.bf16 %v13880_v63, %v13880_v63  ;;  %v22459_v63 = vld [vmem:[%s26509_s2 + $0x90] sm:$0xff]  }
0x1e72   : > { %21147 = vmatmul.mubr.bf16.vlgmr.msra.gmra.mrb[8].mxu1 %v13881_v31  ;;  %v22461_v31 = vld [vmem:[%s26509_s2 + $0xd8] sm:$0xff]  }
0x1e73   : > { %21172 = vmatprep.mubr.msk.bf16.mxu1 %vm23618_vm1, %v23617_v49 }
0x1f45   : > { %v13970_v9 = vpop.f32.mrb[8].mxu1 }
0x1f46   : > { %v13971_v24 = vadd.f32 %v18474_v16, %v13970_v9  ;;  %v21148_v37 = vpop.f32.mrb[9].mxu1  ;;  %v22474_v16 = vld [vmem:[%s26509_s2 + $0xb0] sm:$0xff]   ;;  %v22476_v9 = vld [vmem:[%s26509_s2 + $0xf8] sm:$0xff]  }
0x1f47   : > { %v13973_v55 = vpop.f32.mrb[10].mxu1 }
0x1f48   : > { %v13977_v45 = vadd.f32 %v13976_v23, %v13971_v24  ;;  %v21149_v26 = vpop.f32.mrb[11].mxu1  ;;  %v22478_v24 = vld [vmem:[%s26509_s2 + $0xb8] sm:$0xff]   ;;  %v22481_v23 = vld [vmem:[%s26509_s2 + $0x1c0] sm:$0xff]  }
0x1f4a   : > { %v13978_v30 = vmax.f32 %v13977_v45, 0.0 }
0x1f4c   : > { %v13979_v50 = vsub.f32 0.0, %v13978_v30 }
0x1f4e   : > { %v13980_v6 = vmul.f32 1.442695, %v13979_v50 }
0x1f50   : > { %22712 = vpow2.f32 %v13980_v6 }
0x1f5a   : > { %v22713_v4 = vpop.eup %22712 }
0x1f5b   : > { %v13982_v38 = vadd.f32 1.0, %v22713_v4 }
0x1f5d   : > { %22714 = vrcp.f32 %v13982_v38 }
0x1f67   : > { %v22715_v29 = vpop.eup %22714 }
0x1f68   : > { %v25957_v12 = vpack.c.bf16 %v22715_v29, %v22715_v29 }
0x1f6a   : > { %21167 = vmatmul.mubr.bf16.vlgmr.msra.gmra.mrb[40].mxu0 %v25957_v12 }
0x1f6b   : > { %21196 = vmatprep.mubr.msk.bf16.mxu0 %vm23618_vm1, %v23617_v49 }
0x203d   : > { %v14252_v8 = vpop.f32.mrb[40].mxu0 }
0x203e   : > { %v14253_v40 = vadd.f32 %v18483_v41, %v14252_v8  ;;  %v21168_v5 = vpop.f32.mrb[41].mxu0 }
0x203f   : > { %v14255_v10 = vpop.f32.mrb[42].mxu0 }
0x2040   : > { %v14258_v11 = vmax.f32 %v14253_v40, 0.0  ;;  %v21169_v14 = vpop.f32.mrb[43].mxu0  ;;  %v22467_v40 = vld [vmem:[%s26509_s2 + $0x100] sm:$0xff]  }
0x2041   : > { %v22469_v14 = vld [vmem:[%s26509_s2 + $0x148] sm:$0xff]  }
0x2042   : > { %v14259_v15 = vpack.c.bf16 %v14258_v11, %v14258_v11 }
0x2044   : > { %v14265_v62 = vsel %vm11395_vm3, %v14259_v15, 0 }
0x2045   : > { %21171 = vmatpush3.bf16.msra.mxu1 %v14265_v62  ;;  %21195 = vmatpush3.bf16.msra.mxu0 %v14265_v62 }
0x2046   : > { %21176 = vmatprep.subr.bf16.mxu1 %v23617_v49  ;;  %21206 = vmatprep.subr.bf16.mxu0 %v23617_v49 }
0x2048   : > { %21173 = vmatmul.mubr.msk.bf16.vlgmr.msra.gmra.mrb[12].mxu1 %vm11391_vm4, %v14260_v18  ;;  %21197 = vmatmul.mubr.msk.bf16.vlgmr.msra.gmra.mrb[44].mxu0 %vm11391_vm4, %v18499_v19  ;;  %v22471_v19 = vld [vmem:[%s26509_s2 + $0x108] sm:$0xff]  }
0x2049   : > { %21177 = vmatpush3.bf16.msra.mxu1 %v14265_v62  ;;  %21207 = vmatpush3.bf16.msra.mxu0 %v14265_v62 }
0x204a   : > { %21178 = vmatprep.mubr.msk.bf16.mxu1 %vm23618_vm1, %v23617_v49  ;;  %21182 = vmatprep.subr.bf16.mxu1 %v23617_v49 }
0x204b   : > { %21208 = vmatprep.mubr.msk.bf16.mxu0 %vm23618_vm1, %v23617_v49  ;;  %21218 = vmatprep.subr.bf16.mxu0 %v23617_v49 }
0x2050   : > { %21179 = vmatmul.mubr.msk.bf16.vlgmr.msra.gmra.mrb[16].mxu1 %vm11391_vm4, %v18493_v21  ;;  %21209 = vmatmul.mubr.msk.bf16.vlgmr.msra.gmra.mrb[48].mxu0 %vm11391_vm4, %v18503_v42  ;;  %v22473_v21 = vld [vmem:[%s26509_s2 + $0x150] sm:$0xff]  }
0x2051   : > { %21183 = vmatpush3.bf16.msra.mxu1 %v14265_v62  ;;  %21219 = vmatpush3.bf16.msra.mxu0 %v14265_v62 }
0x2052   : > { %21184 = vmatprep.mubr.msk.bf16.mxu1 %vm23618_vm1, %v23617_v49  ;;  %21188 = vmatprep.subr.bf16.mxu1 %v23617_v49 }
0x2053   : > { %21220 = vmatprep.mubr.msk.bf16.mxu0 %vm23618_vm1, %v23617_v49  ;;  %19900 = vmatprep.subr.bf16.mxu0 %v22449_v44 }
0x2058   : > { %21185 = vmatmul.mubr.msk.bf16.vlgmr.msra.gmra.mrb[20].mxu1 %vm11391_vm4, %v18495_v51  ;;  %21221 = vmatmul.mubr.msk.bf16.vlgmr.msra.gmra.mrb[52].mxu0 %vm11391_vm4, %v18507_v22  ;;  %v22475_v51 = vld [vmem:[%s26509_s2 + $0x110] sm:$0xff]  }
0x2059   : > { %21189 = vmatpush3.bf16.msra.mxu1 %v14265_v62  ;;  %21190 = vmatprep.mubr.msk.bf16.mxu1 %vm23618_vm1, %v23617_v49 }
0x205a   : > { %21200 = vmatprep.subr.bf16.mxu1 %v23617_v49  ;;  %19901 = vmatpush3.bf16.msra.mxu0 %v22451_v3 }
0x205b   : > { %19902 = vmatprep.subr.bf16.mxu0 %v22453_v0 }
0x205e   : > { %19903 = vmatpush3.bf16.msra.mxu0 %v22455_v56 }
0x205f   : > { %19904 = vmatprep.subr.bf16.mxu0 %v22457_v58  ;;  %v22487_v58 = vld [vmem:[%s26509_s2 + $0x188] sm:$0xff]  }
0x2060   : > { %21191 = vmatmul.mubr.msk.bf16.vlgmr.msra.gmra.mrb[24].mxu1 %vm11391_vm4, %v18497_v33  ;;  %v22477_v33 = vld [vmem:[%s26509_s2 + $0x158] sm:$0xff]  }
0x2061   : > { %21201 = vmatpush3.bf16.msra.mxu1 %v14265_v62  ;;  %21202 = vmatprep.mubr.msk.bf16.mxu1 %vm23618_vm1, %v23617_v49 }
0x2062   : > { %21212 = vmatprep.subr.bf16.mxu1 %v23617_v49  ;;  %19905 = vmatpush3.bf16.msra.mxu0 %v22459_v63  ;;  %v22489_v63 = vld [vmem:[%s26509_s2 + $0x1d0] sm:$0xff]  }
0x2063   : > { %19906 = vmatprep.subr.bf16.mxu0 %v22461_v31  ;;  %v22490_v31 = vld [vmem:[%s26509_s2 + $0x130] sm:$0xff]  }
0x2066   : > { %19907 = vmatpush3.bf16.msra.mxu0 %v22463_v13 }
0x2067   : > { %19908 = vmatprep.subr.bf16.mxu0 %v22464_v2 }
0x2068   : > { %21203 = vmatmul.mubr.msk.bf16.vlgmr.msra.gmra.mrb[28].mxu1 %vm11391_vm4, %v18501_v28 }
0x2069   : > { %21213 = vmatpush3.bf16.msra.mxu1 %v14265_v62  ;;  %21214 = vmatprep.mubr.msk.bf16.mxu1 %vm23618_vm1, %v23617_v49 }
0x206a   : > { %19878 = vmatprep.subr.bf16.mxu1 %v22440_v34  ;;  %19909 = vmatpush3.bf16.msra.mxu0 %v22466_v32  ;;  %v22492_v32 = vld [vmem:[%s26509_s2 + $0x178] sm:$0xff]  }
0x206b   : > { %19910 = vmatprep.subr.bf16.mxu0 %v22468_v20  ;;  %v22493_v20 = vld [vmem:[%s26509_s2 + $0x1d8] sm:$0xff]  }
0x206e   : > { %19911 = vmatpush3.bf16.msra.mxu0 %v22470_v48 }
0x206f   : > { %19912 = vmatprep.subr.bf16.mxu0 %v22472_v17  ;;  %v22494_v17 = vld [vmem:[%s26509_s2 + $0x138] sm:$0xff]  }
0x2070   : > { %21215 = vmatmul.mubr.msk.bf16.vlgmr.msra.gmra.mrb[32].mxu1 %vm11391_vm4, %v18505_v35 }
0x2071   : > { %19879 = vmatpush3.bf16.msra.mxu1 %v22441_v39  ;;  %v22479_v39 = vld [vmem:[%s26509_s2 + $0x118] sm:$0xff]  }
0x2072   : > { %19880 = vmatprep.subr.bf16.mxu1 %v22442_v27  ;;  %19913 = vmatpush3.bf16.msra.mxu0 %v22474_v16  ;;  %v22480_v27 = vld [vmem:[%s26509_s2 + $0x160] sm:$0xff]   ;;  %v22495_v16 = vld [vmem:[%s26509_s2 + $0x198] sm:$0xff]  }
0x2073   : > { %19914 = vmatprep.subr.bf16.mxu0 %v22476_v9  ;;  %v22496_v9 = vld [vmem:[%s26509_s2 + $0x1e0] sm:$0xff]  }
0x2075   : > { %19881 = vmatpush3.bf16.msra.mxu1 %v22443_v36 }
0x2076   : > { %19882 = vmatprep.subr.bf16.mxu1 %v22444_v43  ;;  %19915 = vmatpush3.bf16.msra.mxu0 %v22478_v24 }
0x2077   : > { %19944 = vmatprep.subr.bf16.mxu0 %v22481_v23 }
0x2079   : > { %19883 = vmatpush3.bf16.msra.mxu1 %v22445_v46 }
0x207a   : > { %19884 = vmatprep.subr.bf16.mxu1 %v22446_v53  ;;  %v22482_v53 = vld [vmem:[%s26509_s2 + $0x120] sm:$0xff]  }
0x207d   : > { %19885 = vmatpush3.bf16.msra.mxu1 %v22447_v61  ;;  %v22483_v61 = vld [vmem:[%s26509_s2 + $0x180] sm:$0xff]  }
0x207e   : > { %19886 = vmatprep.subr.bf16.mxu1 %v22448_v57 }
0x2081   : > { %19887 = vmatpush3.bf16.msra.mxu1 %v22450_v60 }
0x2082   : > { %19888 = vmatprep.subr.bf16.mxu1 %v22452_v54  ;;  %v22484_v54 = vld [vmem:[%s26509_s2 + $0x168] sm:$0xff]  }
0x2085   : > { %19889 = vmatpush3.bf16.msra.mxu1 %v22454_v47  ;;  %v22485_v47 = vld [vmem:[%s26509_s2 + $0x1c8] sm:$0xff]  }
0x2086   : > { %19890 = vmatprep.subr.bf16.mxu1 %v22456_v52  ;;  %v22486_v52 = vld [vmem:[%s26509_s2 + $0x128] sm:$0xff]  }
0x2089   : > { %19891 = vmatpush3.bf16.msra.mxu1 %v22458_v59  ;;  %v22488_v59 = vld [vmem:[%s26509_s2 + $0x170] sm:$0xff]  }
0x208a   : > { %19892 = vmatprep.subr.bf16.mxu1 %v22460_v1 }
0x208d   : > { %19893 = vmatpush3.bf16.msra.mxu1 %v22462_v7  ;;  %v22491_v7 = vld [vmem:[%s26509_s2 + $0x190] sm:$0xff]  }
0x208e   : > { %19922 = vmatprep.subr.bf16.mxu1 %v22465_v25 }
0x211b   : > { %v14301_v37 = vpop.f32.mrb[12].mxu1  ;;  %v26036_v55 = vpop.f32.mrb[44].mxu0 }
0x211c   : > { %v21174_v45 = vpop.f32.mrb[13].mxu1  ;;  %v21198_v26 = vpop.f32.mrb[45].mxu0  ;;  %v14667_v10 = vpack.c.bf16 %v14301_v37, %v14301_v37  ;;  %v14671_v24 = vpack.c.bf16 %v26036_v55, %v26036_v55  ;;  %v22497_v37 = vld [vmem:[%s26509_s2 + $0x1a0] sm:$0xff]   ;;  %v22500_v55 = vld [vmem:[%s26509_s2 + $0x1a8] sm:$0xff]  }
0x211d   : > { %v14304_v30 = vpop.f32.mrb[14].mxu1  ;;  %v14484_v50 = vpop.f32.mrb[46].mxu0  ;;  %v22498_v45 = vld [vmem:[%s26509_s2 + $0x200] sm:$0xff]  }
0x211e   : > { %v21175_v6 = vpop.f32.mrb[15].mxu1  ;;  %v21199_v4 = vpop.f32.mrb[47].mxu0  ;;  %v22499_v50 = vld [vmem:[%s26509_s2 + $0x1e8] sm:$0xff]  }
0x2123   : > { %v14346_v38 = vpop.f32.mrb[16].mxu1  ;;  %v26038_v29 = vpop.f32.mrb[48].mxu0 }
0x2124   : > { %v14668_v41 = vpack.c.bf16 %v14346_v38, %v14346_v38  ;;  %v21180_v8 = vpop.f32.mrb[17].mxu1  ;;  %v21210_v5 = vpop.f32.mrb[49].mxu0  ;;  %v22501_v38 = vld [vmem:[%s26509_s2 + $0x208] sm:$0xff]  }
0x2125   : > { %v14349_v11 = vpop.f32.mrb[18].mxu1  ;;  %v14574_v15 = vpop.f32.mrb[50].mxu0  ;;  %v22503_v8 = vld [vmem:[%s26509_s2 + $0x1b0] sm:$0xff]   ;;  %v22505_v5 = vld [vmem:[%s26509_s2 + $0x1f8] sm:$0xff]  }
0x2126   : > { %v21181_v62 = vpop.f32.mrb[19].mxu1  ;;  %15146 = vmatprep.mubr.bf16.mxu1 %v14668_v41  ;;  %v21211_v18 = vpop.f32.mrb[51].mxu0  ;;  %v22502_v41 = vld [vmem:[%s26509_s2 + $0x1f0] sm:$0xff]   ;;  %v22507_v11 = vld [vmem:[%s26509_s2 + $0x218] sm:$0xff]   ;;  %v22508_v15 = vld [vmem:[%s26509_s2 + $0x220] sm:$0xff]  }
0x2127   : > { %15147 = vmatmul.mubr.bf16.vlgmr.msra.gmra.mrb[36].mxu1 %v14667_v10  ;;  %v22506_v10 = vld [vmem:[%s26509_s2 + $0x1b8] sm:$0xff]   ;;  %v22509_v62 = vld [vmem:[%s26509_s2 + $0x228] sm:$0xff]   ;;  %v22510_v18 = vld [vmem:[%s26509_s2 + $0x230] sm:$0xff]  }
0x2128   : > { %19923 = vmatpush3.bf16.msra.mxu1 %v22467_v40  ;;  %v22504_v40 = vld [vmem:[%s26509_s2 + $0x210] sm:$0xff]  }
0x2129   : > { %19924 = vmatprep.subr.bf16.mxu1 %v22469_v14  ;;  %v14673_v14 = vpack.c.bf16 %v26038_v29, %v26038_v29  ;;  %v22511_v29 = vld [vmem:[%s26509_s2 + $0x238] sm:$0xff]   ;;  %s26511_s2 = sld [smem:[#allocation114_spill]] }
0x212b   : > { %v14391_v42 = vpop.f32.mrb[20].mxu1  ;;  %v26044_v44 = vpop.f32.mrb[52].mxu0 }
0x212c   : > { %19925 = vmatpush3.bf16.msra.mxu1 %v22471_v19  ;;  %v21186_v22 = vpop.f32.mrb[21].mxu1  ;;  %v21222_v3 = vpop.f32.mrb[53].mxu0  ;;  %v14669_v36 = vpack.c.bf16 %v14391_v42, %v14391_v42  ;;  %v14675_v19 = vpack.c.bf16 %v26044_v44, %v26044_v44  ;;  %v22513_v42 = vld [vmem:[#allocation33 + $0x8] sm:$0xff]   ;;  %v22515_v44 = vld [vmem:[#allocation33 + $0x18] sm:$0xff]  }
0x212d   : > { %19926 = vmatprep.subr.bf16.mxu1 %v22473_v21  ;;  %v14394_v0 = vpop.f32.mrb[22].mxu1  ;;  %v14664_v28 = vpop.f32.mrb[54].mxu0  ;;  %v22512_v21 = vld [vmem:[#allocation33] sm:$0xff]   ;;  %v22517_v3 = vld [vmem:[#allocation33 + $0x28] sm:$0xff]  }
0x212e   : > { %v21187_v34 = vpop.f32.mrb[23].mxu1  ;;  %v21223_v35 = vpop.f32.mrb[55].mxu0  ;;  %v22516_v22 = vld [vmem:[#allocation33 + $0x20] sm:$0xff]   ;;  %v22518_v0 = vld [vmem:[#allocation33 + $0x30] sm:$0xff]  }
0x2130   : > { %19927 = vmatpush3.bf16.msra.mxu1 %v22475_v51  ;;  %v22514_v51 = vld [vmem:[#allocation33 + $0x10] sm:$0xff]  }
0x2131   : > { %19928 = vmatprep.subr.bf16.mxu1 %v22477_v33  ;;  %v22519_v33 = vld [vmem:[#allocation33 + $0x38] sm:$0xff]  }
0x2133   : > { %v14436_v43 = vpop.f32.mrb[24].mxu1 }
0x2134   : > { %v14670_v46 = vpack.c.bf16 %v14436_v43, %v14436_v43  ;;  %19929 = vmatpush3.bf16.msra.mxu1 %v22479_v39  ;;  %v21192_v57 = vpop.f32.mrb[25].mxu1 }
0x2135   : > { %19930 = vmatprep.subr.bf16.mxu1 %v22480_v27  ;;  %v14439_v60 = vpop.f32.mrb[26].mxu1 }
0x2136   : > { %15186 = vmatprep.mubr.bf16.mxu0 %v14670_v46  ;;  %v21193_v56 = vpop.f32.mrb[27].mxu1 }
0x2137   : > { %15187 = vmatmul.mubr.bf16.vlgmr.msra.gmra.mrb[56].mxu0 %v14669_v36  ;;  %v18509_v36 = vld [vmem:[#allocation31] ss:$0 sm:$0xff] }
0x2138   : > { %19931 = vmatpush3.bf16.msra.mxu1 %v22482_v53  ;;  %19945 = vmatpush3.bf16.msra.mxu0 %v22483_v61 }
0x2139   : > { %19932 = vmatprep.subr.bf16.mxu1 %v22484_v54  ;;  %19946 = vmatprep.subr.bf16.mxu0 %v22485_v47 }
0x213b   : > { %v14526_v1 = vpop.f32.mrb[28].mxu1 }
0x213c   : > { %19933 = vmatpush3.bf16.msra.mxu1 %v22486_v52  ;;  %19947 = vmatpush3.bf16.msra.mxu0 %v22487_v58  ;;  %v14672_v13 = vpack.c.bf16 %v14526_v1, %v14526_v1  ;;  %v21204_v2 = vpop.f32.mrb[29].mxu1 }
0x213d   : > { %19934 = vmatprep.subr.bf16.mxu1 %v22488_v59  ;;  %19948 = vmatprep.subr.bf16.mxu0 %v22489_v63  ;;  %v14529_v25 = vpop.f32.mrb[30].mxu1 }
0x213e   : > { %v21205_v48 = vpop.f32.mrb[31].mxu1  ;;  %15226 = vmatprep.mubr.bf16.mxu1 %v14672_v13 }
0x2140   : > { %19935 = vmatpush3.bf16.msra.mxu1 %v22490_v31  ;;  %19949 = vmatpush3.bf16.msra.mxu0 %v22491_v7 }
0x2141   : > { %19936 = vmatprep.subr.bf16.mxu1 %v22492_v32  ;;  %19950 = vmatprep.subr.bf16.mxu0 %v22493_v20 }
0x2143   : > { %v14616_v23 = vpop.f32.mrb[32].mxu1 }
0x2144   : > { %19937 = vmatpush3.bf16.msra.mxu1 %v22494_v17  ;;  %19951 = vmatpush3.bf16.msra.mxu0 %v22495_v16  ;;  %v14674_v26 = vpack.c.bf16 %v14616_v23, %v14616_v23  ;;  %v21216_v30 = vpop.f32.mrb[33].mxu1  ;;  %v22520_v23 = vld [vmem:[#allocation36] sm:$0xff]  }
0x2145   : > { %19952 = vmatprep.subr.bf16.mxu0 %v22496_v9  ;;  %21224 = vmatprep.subr.bf16.mxu1 %v23617_v49  ;;  %v14619_v6 = vpop.f32.mrb[34].mxu1  ;;  %v22524_v30 = vld [vmem:[#allocation36 + $0x20] sm:$0xff]  }
0x2146   : > { %15266 = vmatprep.mubr.bf16.mxu0 %v14674_v26  ;;  %v21217_v4 = vpop.f32.mrb[35].mxu1  ;;  %v22523_v26 = vld [vmem:[#allocation36 + $0x18] sm:$0xff]   ;;  %v22526_v6 = vld [vmem:[#allocation36 + $0x30] sm:$0xff]  }
0x2147   : > { %15227 = vmatmul.mubr.bf16.vlgmr.msra.gmra.mrb[40].mxu1 %v14671_v24  ;;  %v22527_v4 = vld [vmem:[#allocation36 + $0x38] sm:$0xff]  }
0x2148   : > { %19953 = vmatpush3.bf16.msra.mxu0 %v22497_v37  ;;  %21225 = vmatpush3.bf16.msra.mxu1 %v22498_v45  ;;  %v22521_v37 = vld [vmem:[#allocation36 + $0x8] sm:$0xff]   ;;  %v22522_v45 = vld [vmem:[#allocation36 + $0x10] sm:$0xff]  }
0x2149   : > { %19954 = vmatprep.subr.bf16.mxu0 %v22499_v50  ;;  %21226 = vmatprep.subr.bf16.mxu1 %v23617_v49  ;;  %v22525_v50 = vld [vmem:[#allocation36 + $0x28] sm:$0xff]  }
0x214a   : > { %21240 = vmatprep.mubr.msk.bf16.mxu1 %vm23618_vm1, %v23617_v49 }
0x214c   : > { %19955 = vmatpush3.bf16.msra.mxu0 %v22500_v55  ;;  %21227 = vmatpush3.bf16.msra.mxu1 %v22501_v38  ;;  %v18582_v55 = vld [vmem:[#allocation34] ss:$0 sm:$0xff] }
0x214d   : > { %19956 = vmatprep.subr.bf16.mxu0 %v22502_v41  ;;  %21228 = vmatprep.subr.bf16.mxu1 %v23617_v49 }
0x2150   : > { %19957 = vmatpush3.bf16.msra.mxu0 %v22503_v8  ;;  %21229 = vmatpush3.bf16.msra.mxu1 %v22504_v40  ;;  %v15410_v8 = vunpack.c.l.bf16 %v25957_v12  ;;  %v18591_v12 = vld [vmem:[#allocation37] ss:$0 sm:$0xff] }
0x2151   : > { %19958 = vmatprep.subr.bf16.mxu0 %v22505_v5  ;;  %21230 = vmatprep.subr.bf16.mxu1 %v23617_v49 }
0x2154   : > { %19959 = vmatpush3.bf16.msra.mxu0 %v22506_v10  ;;  %21231 = vmatpush3.bf16.msra.mxu1 %v22507_v11 }
0x2155   : > { %21232 = vmatprep.subr.bf16.mxu1 %v23617_v49  ;;  %21244 = vmatprep.subr.bf16.mxu0 %v23617_v49 }
0x2157   : > { %15267 = vmatmul.mubr.bf16.vlgmr.msra.gmra.mrb[60].mxu0 %v14673_v14 }
0x2158   : > { %21233 = vmatpush3.bf16.msra.mxu1 %v22508_v15  ;;  %21260 = vmatprep.mubr.msk.bf16.mxu0 %vm23618_vm1, %v23617_v49 }
0x2159   : > { %21234 = vmatprep.subr.bf16.mxu1 %v23617_v49  ;;  %21245 = vmatpush3.bf16.msra.mxu0 %v22512_v21 }
0x215a   : > { %21246 = vmatprep.subr.bf16.mxu0 %v23617_v49 }
0x215c   : > { %21235 = vmatpush3.bf16.msra.mxu1 %v22509_v62 }
0x215d   : > { %21236 = vmatprep.subr.bf16.mxu1 %v23617_v49  ;;  %21247 = vmatpush3.bf16.msra.mxu0 %v22513_v42 }
0x215e   : > { %21248 = vmatprep.subr.bf16.mxu0 %v23617_v49 }
0x2160   : > { %21237 = vmatpush3.bf16.msra.mxu1 %v22510_v18 }
0x2161   : > { %21238 = vmatprep.subr.bf16.mxu1 %v23617_v49  ;;  %21249 = vmatpush3.bf16.msra.mxu0 %v22514_v51 }
0x2162   : > { %21250 = vmatprep.subr.bf16.mxu0 %v23617_v49 }
0x2164   : > { %21239 = vmatpush3.bf16.msra.mxu1 %v22511_v29 }
0x2165   : > { %21264 = vmatprep.subr.bf16.mxu1 %v23617_v49  ;;  %21251 = vmatpush3.bf16.msra.mxu0 %v22515_v44 }
0x2166   : > { %21252 = vmatprep.subr.bf16.mxu0 %v23617_v49 }
0x2167   : > { %21241 = vmatmul.mubr.bf16.vlgmr.msra.gmra.mrb[44].mxu1 %v14675_v19 }
0x2168   : > { %21280 = vmatprep.mubr.msk.bf16.mxu1 %vm23618_vm1, %v23617_v49  ;;  %21265 = vmatpush3.bf16.msra.mxu1 %v22520_v23  ;;  %v22550_v23 = vld [vmem:[%s26510_s1 + $0x38] sm:$0xff]  }
0x2169   : > { %21253 = vmatpush3.bf16.msra.mxu0 %v22516_v22  ;;  %21266 = vmatprep.subr.bf16.mxu1 %v23617_v49 }
0x216a   : > { %21254 = vmatprep.subr.bf16.mxu0 %v23617_v49 }
0x216c   : > { %21267 = vmatpush3.bf16.msra.mxu1 %v22521_v37  ;;  %v22551_v37 = vld [vmem:[%s26510_s1 + $0x98] sm:$0xff]  }
0x216d   : > { %21255 = vmatpush3.bf16.msra.mxu0 %v22517_v3  ;;  %21268 = vmatprep.subr.bf16.mxu1 %v23617_v49 }
0x216e   : > { %21256 = vmatprep.subr.bf16.mxu0 %v23617_v49 }
0x2170   : > { %21269 = vmatpush3.bf16.msra.mxu1 %v22522_v45  ;;  %v22552_v45 = vld [vmem:[%s26510_s1 + $0xe0] sm:$0xff]  }
0x2171   : > { %21257 = vmatpush3.bf16.msra.mxu0 %v22518_v0  ;;  %21270 = vmatprep.subr.bf16.mxu1 %v23617_v49 }
0x2172   : > { %21258 = vmatprep.subr.bf16.mxu0 %v23617_v49 }
0x2174   : > { %21271 = vmatpush3.bf16.msra.mxu1 %v22523_v26  ;;  %v22553_v26 = vld [vmem:[%s26510_s1 + $0x140] sm:$0xff]  }
0x2175   : > { %21259 = vmatpush3.bf16.msra.mxu0 %v22519_v33  ;;  %21272 = vmatprep.subr.bf16.mxu1 %v23617_v49 }
0x2176   : > { %21284 = vmatprep.subr.bf16.mxu0 %v23617_v49 }
0x2178   : > { %21273 = vmatpush3.bf16.msra.mxu1 %v22524_v30  ;;  %v22554_v30 = vld [vmem:[%s26510_s1 + $0xa0] sm:$0xff]  }
0x2179   : > { %21274 = vmatprep.subr.bf16.mxu1 %v23617_v49 }
0x217c   : > { %21275 = vmatpush3.bf16.msra.mxu1 %v22525_v50  ;;  %v22556_v50 = vld [vmem:[%s26510_s1 + $0xe8] sm:$0xff]  }
0x217d   : > { %21276 = vmatprep.subr.bf16.mxu1 %v23617_v49 }
0x2180   : > { %21277 = vmatpush3.bf16.msra.mxu1 %v22526_v6  ;;  %v22558_v6 = vld [vmem:[%s26510_s1 + $0xa8] sm:$0xff]  }
0x2181   : > { %21278 = vmatprep.subr.bf16.mxu1 %v23617_v49 }
0x2184   : > { %21279 = vmatpush3.bf16.msra.mxu1 %v22527_v4  ;;  %v22560_v4 = vld [vmem:[%s26510_s1 + $0xf0] sm:$0xff]  }
0x2185   : > { %21308 = vmatprep.subr.bf16.mxu1 %v23617_v49 }
0x21fa   : > { %v19894_v28 = vpop.f32.mrb[36].mxu1 }
0x21fb   : > { %v19895_v34 = vpop.f32.mrb[37].mxu1 }
0x21fc   : > { %v19896_v35 = vadd.f32 %v19895_v34, %v19894_v28  ;;  %v19897_v39 = vpop.f32.mrb[38].mxu1  ;;  %v15710_v34 = vld [vmem:[#allocation40] sm:$0xf] }
0x21fd   : > { %v19898_v27 = vpop.f32.mrb[39].mxu1  ;;  %v15758_v39 = vld [vmem:[#allocation40 + $0x4] sm:$0xf] }
0x21fe   : > { %v15149_v53 = vadd.f32 %v19896_v35, %v18509_v36  ;;  %v26127_v35 = vld [vmem:[#allocation40 + $0x10] sm:$0xf]  ;;  %v15983_v27 = vld [vmem:[#allocation40 + $0x18] sm:$0xf] }
0x21ff   : > { %v22537_v36 = vld [vmem:[%s26510_s1 + $0xc0] sm:$0xff]  }
0x220a   : > { %v19916_v43 = vpop.f32.mrb[56].mxu0 }
0x220b   : > { %v19917_v46 = vpop.f32.mrb[57].mxu0 }
0x220c   : > { %v19918_v61 = vadd.f32 %v19917_v46, %v19916_v43  ;;  %v19919_v57 = vpop.f32.mrb[58].mxu0  ;;  %v15803_v43 = vld [vmem:[#allocation40 + $0x8] sm:$0xf]  ;;  %v16073_v46 = vld [vmem:[#allocation40 + $0x20] sm:$0xf] }
0x220d   : > { %v19920_v60 = vpop.f32.mrb[59].mxu0  ;;  %v22543_v57 = vld [vmem:[%s26510_s1 + $0x88] sm:$0xff]  }
0x220e   : > { %v15189_v54 = vadd.f32 %v19918_v61, %v15149_v53  ;;  %v22539_v53 = vld [vmem:[%s26510_s1 + $0x80] sm:$0xff]   ;;  %v22541_v61 = vld [vmem:[%s26510_s1 + $0xc8] sm:$0xff]  }
0x220f   : > { %v15848_v60 = vld [vmem:[#allocation40 + $0xc] sm:$0xf] }
0x221a   : > { %v19938_v47 = vpop.f32.mrb[40].mxu1 }
0x221b   : > { %v19939_v56 = vpop.f32.mrb[41].mxu1 }
0x221c   : > { %v19940_v52 = vadd.f32 %v19939_v56, %v19938_v47  ;;  %v19941_v58 = vpop.f32.mrb[42].mxu1  ;;  %v22528_v47 = vld [vmem:[%s26510_s1 + $0x40] sm:$0xff]   ;;  %v16028_v56 = vld [vmem:[#allocation40 + $0x1c] sm:$0xf] }
0x221d   : > { %v19942_v59 = vpop.f32.mrb[43].mxu1  ;;  %v22530_v58 = vld [vmem:[%s26510_s1 + $0x48] sm:$0xff]  }
0x221e   : > { %v15229_v63 = vadd.f32 %v19940_v52, %v15189_v54  ;;  %v15938_v54 = vld [vmem:[#allocation40 + $0x14] sm:$0xf]  ;;  %v22529_v52 = vld [vmem:[%s26510_s1] sm:$0xff]  }
0x221f   : > { %v22531_v59 = vld [vmem:[%s26510_s1 + $0x8] sm:$0xff]  }
0x222a   : > { %v19960_v1 = vpop.f32.mrb[60].mxu0 }
0x222b   : > { %v19961_v31 = vpop.f32.mrb[61].mxu0 }
0x222c   : > { %v19962_v7 = vadd.f32 %v19961_v31, %v19960_v1  ;;  %v19963_v13 = vpop.f32.mrb[62].mxu0  ;;  %v22533_v1 = vld [vmem:[%s26510_s1 + $0x10] sm:$0xff]   ;;  %v22534_v31 = vld [vmem:[%s26510_s1 + $0x58] sm:$0xff]  }
0x222d   : > { %v19964_v2 = vpop.f32.mrb[63].mxu0  ;;  %v22536_v13 = vld [vmem:[%s26510_s1 + $0x60] sm:$0xff]  }
0x222e   : > { %v15269_v25 = vadd.f32 %v19962_v7, %v15229_v63  ;;  %v22532_v63 = vld [vmem:[%s26510_s1 + $0x50] sm:$0xff]   ;;  %v22535_v7 = vld [vmem:[%s26510_s1 + $0x18] sm:$0xff]   ;;  %v22538_v2 = vld [vmem:[%s26510_s1 + $0x20] sm:$0xff]  }
0x223a   : > { %v15308_v32 = vpop.f32.mrb[44].mxu1 }
0x223b   : > { %v15309_v20 = vadd.f32 %v15308_v32, %v15269_v25  ;;  %v21242_v48 = vpop.f32.mrb[45].mxu1  ;;  %v22540_v25 = vld [vmem:[%s26510_s1 + $0x68] sm:$0xff]  }
0x223c   : > { %v15311_v17 = vpop.f32.mrb[46].mxu1  ;;  %v22542_v32 = vld [vmem:[%s26510_s1 + $0x28] sm:$0xff]   ;;  %v22545_v48 = vld [vmem:[%s26510_s1 + $0xd0] sm:$0xff]  }
0x223d   : > { %v15314_v16 = vmax.f32 %v15309_v20, 0.0  ;;  %v21243_v9 = vpop.f32.mrb[47].mxu1  ;;  %v22544_v20 = vld [vmem:[%s26510_s1 + $0x70] sm:$0xff]  }
0x223e   : > { %v22546_v17 = vld [vmem:[%s26510_s1 + $0x30] sm:$0xff]   ;;  %v22548_v9 = vld [vmem:[%s26510_s1 + $0x78] sm:$0xff]  }
0x223f   : > { %v15315_v24 = vpack.c.bf16 %v15314_v16, %v15314_v16  ;;  %v22547_v16 = vld [vmem:[%s26510_s1 + $0x90] sm:$0xff]  }
0x2241   : > { %21261 = vmatmul.mubr.bf16.vlgmr.msra.gmra.mrb[64].mxu0 %v15315_v24  ;;  %v22549_v24 = vld [vmem:[%s26510_s1 + $0xd8] sm:$0xff]  }
0x2242   : > { %21286 = vmatprep.mubr.msk.bf16.mxu0 %vm23618_vm1, %v23617_v49 }
0x2314   : > { %v15404_v38 = vpop.f32.mrb[64].mxu0 }
0x2315   : > { %v15405_v41 = vadd.f32 %v18582_v55, %v15404_v38  ;;  %v21262_v40 = vpop.f32.mrb[65].mxu0  ;;  %v22562_v55 = vld [vmem:[%s26510_s1 + $0xb0] sm:$0xff]   ;;  %v22564_v38 = vld [vmem:[%s26510_s1 + $0xf8] sm:$0xff]  }
0x2316   : > { %v15407_v5 = vpop.f32.mrb[66].mxu0 }
0x2317   : > { %v15411_v10 = vadd.f32 %v15410_v8, %v15405_v41  ;;  %v21263_v11 = vpop.f32.mrb[67].mxu0  ;;  %v22566_v41 = vld [vmem:[%s26510_s1 + $0xb8] sm:$0xff]   ;;  %v22569_v8 = vld [vmem:[%s26510_s1 + $0x1c0] sm:$0xff]  }
0x2319   : > { %v15412_v14 = vmax.f32 %v15411_v10, 0.0 }
0x231b   : > { %v15413_v15 = vsub.f32 0.0, %v15412_v14 }
0x231d   : > { %v15414_v62 = vmul.f32 1.442695, %v15413_v15 }
0x231f   : > { %22716 = vpow2.f32 %v15414_v62 }
0x2329   : > { %v22717_v18 = vpop.eup %22716 }
0x232a   : > { %v15416_v29 = vadd.f32 1.0, %v22717_v18 }
0x232c   : > { %22718 = vrcp.f32 %v15416_v29 }
0x2336   : > { %v22719_v19 = vpop.eup %22718 }
0x2337   : > { %v26121_v21 = vpack.c.bf16 %v22719_v19, %v22719_v19 }
0x2339   : > { %21281 = vmatmul.mubr.bf16.vlgmr.msra.gmra.mrb[48].mxu1 %v26121_v21 }
0x233a   : > { %21310 = vmatprep.mubr.msk.bf16.mxu1 %vm23618_vm1, %v23617_v49 }
0x240c   : > { %v15702_v42 = vpop.f32.mrb[48].mxu1 }
0x240d   : > { %v15703_v51 = vadd.f32 %v18591_v12, %v15702_v42  ;;  %v21282_v44 = vpop.f32.mrb[49].mxu1 }
0x240e   : > { %v15705_v22 = vpop.f32.mrb[50].mxu1 }
0x240f   : > { %v15708_v3 = vmax.f32 %v15703_v51, 0.0  ;;  %v21283_v0 = vpop.f32.mrb[51].mxu1  ;;  %v22555_v51 = vld [vmem:[%s26510_s1 + $0x100] sm:$0xff]  }
0x2410   : > { %v22557_v0 = vld [vmem:[%s26510_s1 + $0x148] sm:$0xff]  }
0x2411   : > { %v15709_v33 = vpack.c.bf16 %v15708_v3, %v15708_v3 }
0x2413   : > { %v15715_v28 = vsel %vm11395_vm3, %v15709_v33, 0 }
0x2414   : > { %21285 = vmatpush3.bf16.msra.mxu0 %v15715_v28  ;;  %21309 = vmatpush3.bf16.msra.mxu1 %v15715_v28 }
0x2415   : > { %21290 = vmatprep.subr.bf16.mxu0 %v23617_v49  ;;  %21320 = vmatprep.subr.bf16.mxu1 %v23617_v49 }
0x2417   : > { %21287 = vmatmul.mubr.msk.bf16.vlgmr.msra.gmra.mrb[68].mxu0 %vm11391_vm4, %v15710_v34  ;;  %21311 = vmatmul.mubr.msk.bf16.vlgmr.msra.gmra.mrb[52].mxu1 %vm11391_vm4, %v26127_v35 }
0x2418   : > { %21291 = vmatpush3.bf16.msra.mxu0 %v15715_v28  ;;  %21321 = vmatpush3.bf16.msra.mxu1 %v15715_v28 }
0x2419   : > { %21292 = vmatprep.mubr.msk.bf16.mxu0 %vm23618_vm1, %v23617_v49  ;;  %21296 = vmatprep.subr.bf16.mxu0 %v23617_v49 }
0x241a   : > { %21322 = vmatprep.mubr.msk.bf16.mxu1 %vm23618_vm1, %v23617_v49  ;;  %21332 = vmatprep.subr.bf16.mxu1 %v23617_v49 }
0x241f   : > { %21293 = vmatmul.mubr.msk.bf16.vlgmr.msra.gmra.mrb[72].mxu0 %vm11391_vm4, %v15758_v39  ;;  %21323 = vmatmul.mubr.msk.bf16.vlgmr.msra.gmra.mrb[56].mxu1 %vm11391_vm4, %v15983_v27  ;;  %v22559_v39 = vld [vmem:[%s26510_s1 + $0x108] sm:$0xff]   ;;  %v22561_v27 = vld [vmem:[%s26510_s1 + $0x150] sm:$0xff]  }
0x2420   : > { %21297 = vmatpush3.bf16.msra.mxu0 %v15715_v28  ;;  %21333 = vmatpush3.bf16.msra.mxu1 %v15715_v28 }
0x2421   : > { %21298 = vmatprep.mubr.msk.bf16.mxu0 %vm23618_vm1, %v23617_v49  ;;  %21302 = vmatprep.subr.bf16.mxu0 %v23617_v49 }
0x2422   : > { %21334 = vmatprep.mubr.msk.bf16.mxu1 %vm23618_vm1, %v23617_v49  ;;  %20033 = vmatprep.subr.bf16.mxu1 %v22537_v36 }
0x2427   : > { %21299 = vmatmul.mubr.msk.bf16.vlgmr.msra.gmra.mrb[76].mxu0 %vm11391_vm4, %v15803_v43  ;;  %21335 = vmatmul.mubr.msk.bf16.vlgmr.msra.gmra.mrb[60].mxu1 %vm11391_vm4, %v16073_v46  ;;  %v22563_v46 = vld [vmem:[%s26510_s1 + $0x110] sm:$0xff]  }
0x2428   : > { %21303 = vmatpush3.bf16.msra.mxu0 %v15715_v28  ;;  %21304 = vmatprep.mubr.msk.bf16.mxu0 %vm23618_vm1, %v23617_v49 }
0x2429   : > { %21314 = vmatprep.subr.bf16.mxu0 %v23617_v49  ;;  %20034 = vmatpush3.bf16.msra.mxu1 %v22539_v53 }
0x242a   : > { %20035 = vmatprep.subr.bf16.mxu1 %v22541_v61 }
0x242d   : > { %20036 = vmatpush3.bf16.msra.mxu1 %v22543_v57 }
0x242e   : > { %20037 = vmatprep.subr.bf16.mxu1 %v22545_v48  ;;  %v22574_v48 = vld [vmem:[%s26510_s1 + $0x128] sm:$0xff]  }
0x242f   : > { %21305 = vmatmul.mubr.msk.bf16.vlgmr.msra.gmra.mrb[80].mxu0 %vm11391_vm4, %v15848_v60  ;;  %v22565_v60 = vld [vmem:[%s26510_s1 + $0x158] sm:$0xff]  }
0x2430   : > { %21315 = vmatpush3.bf16.msra.mxu0 %v15715_v28  ;;  %21316 = vmatprep.mubr.msk.bf16.mxu0 %vm23618_vm1, %v23617_v49 }
0x2431   : > { %21326 = vmatprep.subr.bf16.mxu0 %v23617_v49  ;;  %20038 = vmatpush3.bf16.msra.mxu1 %v22547_v16  ;;  %v22576_v16 = vld [vmem:[%s26510_s1 + $0x170] sm:$0xff]  }
0x2432   : > { %20039 = vmatprep.subr.bf16.mxu1 %v22549_v24 }
0x2435   : > { %20040 = vmatpush3.bf16.msra.mxu1 %v22551_v37  ;;  %v22579_v37 = vld [vmem:[%s26510_s1 + $0x190] sm:$0xff]  }
0x2436   : > { %20041 = vmatprep.subr.bf16.mxu1 %v22552_v45 }
0x2437   : > { %21317 = vmatmul.mubr.msk.bf16.vlgmr.msra.gmra.mrb[84].mxu0 %vm11391_vm4, %v15938_v54 }
0x2438   : > { %21327 = vmatpush3.bf16.msra.mxu0 %v15715_v28  ;;  %21328 = vmatprep.mubr.msk.bf16.mxu0 %vm23618_vm1, %v23617_v49 }
0x2439   : > { %20011 = vmatprep.subr.bf16.mxu0 %v22528_v47  ;;  %20042 = vmatpush3.bf16.msra.mxu1 %v22554_v30  ;;  %v22580_v30 = vld [vmem:[%s26510_s1 + $0x178] sm:$0xff]  }
0x243a   : > { %20043 = vmatprep.subr.bf16.mxu1 %v22556_v50  ;;  %v22581_v50 = vld [vmem:[%s26510_s1 + $0x1d8] sm:$0xff]  }
0x243d   : > { %20044 = vmatpush3.bf16.msra.mxu1 %v22558_v6 }
0x243e   : > { %20045 = vmatprep.subr.bf16.mxu1 %v22560_v4 }
0x243f   : > { %21329 = vmatmul.mubr.msk.bf16.vlgmr.msra.gmra.mrb[88].mxu0 %vm11391_vm4, %v16028_v56 }
0x2440   : > { %20012 = vmatpush3.bf16.msra.mxu0 %v22529_v52  ;;  %v22567_v52 = vld [vmem:[%s26510_s1 + $0x118] sm:$0xff]  }
0x2441   : > { %20013 = vmatprep.subr.bf16.mxu0 %v22530_v58  ;;  %20046 = vmatpush3.bf16.msra.mxu1 %v22562_v55  ;;  %v22568_v58 = vld [vmem:[%s26510_s1 + $0x160] sm:$0xff]   ;;  %v22582_v55 = vld [vmem:[%s26510_s1 + $0x138] sm:$0xff]  }
0x2442   : > { %20047 = vmatprep.subr.bf16.mxu1 %v22564_v38  ;;  %v22583_v38 = vld [vmem:[%s26510_s1 + $0x198] sm:$0xff]  }
0x2444   : > { %20014 = vmatpush3.bf16.msra.mxu0 %v22531_v59 }
0x2445   : > { %20015 = vmatprep.subr.bf16.mxu0 %v22532_v63  ;;  %20048 = vmatpush3.bf16.msra.mxu1 %v22566_v41  ;;  %v22584_v41 = vld [vmem:[%s26510_s1 + $0x1e0] sm:$0xff]  }
0x2446   : > { %20077 = vmatprep.subr.bf16.mxu1 %v22569_v8 }
0x2448   : > { %20016 = vmatpush3.bf16.msra.mxu0 %v22533_v1 }
0x2449   : > { %20017 = vmatprep.subr.bf16.mxu0 %v22534_v31  ;;  %v22570_v31 = vld [vmem:[%s26510_s1 + $0x120] sm:$0xff]  }
0x244c   : > { %20018 = vmatpush3.bf16.msra.mxu0 %v22535_v7  ;;  %v22571_v7 = vld [vmem:[%s26510_s1 + $0x180] sm:$0xff]  }
0x244d   : > { %20019 = vmatprep.subr.bf16.mxu0 %v22536_v13 }
0x2450   : > { %20020 = vmatpush3.bf16.msra.mxu0 %v22538_v2  ;;  %v22572_v2 = vld [vmem:[%s26510_s1 + $0x168] sm:$0xff]  }
0x2451   : > { %20021 = vmatprep.subr.bf16.mxu0 %v22540_v25  ;;  %v22573_v25 = vld [vmem:[%s26510_s1 + $0x1c8] sm:$0xff]  }
0x2454   : > { %20022 = vmatpush3.bf16.msra.mxu0 %v22542_v32 }
0x2455   : > { %20023 = vmatprep.subr.bf16.mxu0 %v22544_v20 }
0x2458   : > { %20024 = vmatpush3.bf16.msra.mxu0 %v22546_v17  ;;  %v22575_v17 = vld [vmem:[%s26510_s1 + $0x188] sm:$0xff]  }
0x2459   : > { %20025 = vmatprep.subr.bf16.mxu0 %v22548_v9  ;;  %v22577_v9 = vld [vmem:[%s26510_s1 + $0x1d0] sm:$0xff]  }
0x245c   : > { %20026 = vmatpush3.bf16.msra.mxu0 %v22550_v23  ;;  %v22578_v23 = vld [vmem:[%s26510_s1 + $0x130] sm:$0xff]  }
0x245d   : > { %20055 = vmatprep.subr.bf16.mxu0 %v22553_v26 }
0x24ea   : > { %v15751_v40 = vpop.f32.mrb[68].mxu0  ;;  %v26194_v5 = vpop.f32.mrb[52].mxu1 }
0x24eb   : > { %v21288_v10 = vpop.f32.mrb[69].mxu0  ;;  %v21312_v11 = vpop.f32.mrb[53].mxu1  ;;  %v16117_v22 = vpack.c.bf16 %v15751_v40, %v15751_v40  ;;  %v16121_v8 = vpack.c.bf16 %v26194_v5, %v26194_v5  ;;  %v22588_v5 = vld [vmem:[%s26510_s1 + $0x1a8] sm:$0xff]  }
0x24ec   : > { %v15754_v14 = vpop.f32.mrb[70].mxu0  ;;  %v15934_v15 = vpop.f32.mrb[54].mxu1  ;;  %v22585_v10 = vld [vmem:[%s26510_s1 + $0x1a0] sm:$0xff]  }
0x24ed   : > { %v21289_v62 = vpop.f32.mrb[71].mxu0  ;;  %v21313_v18 = vpop.f32.mrb[55].mxu1  ;;  %v22586_v11 = vld [vmem:[%s26510_s1 + $0x200] sm:$0xff]  }
0x24ee   : > { %v22587_v62 = vld [vmem:[%s26510_s1 + $0x1e8] sm:$0xff]  }
0x24f2   : > { %v15796_v29 = vpop.f32.mrb[72].mxu0  ;;  %v26196_v19 = vpop.f32.mrb[56].mxu1 }
0x24f3   : > { %v16118_v12 = vpack.c.bf16 %v15796_v29, %v15796_v29  ;;  %v21294_v42 = vpop.f32.mrb[73].mxu0  ;;  %v21324_v44 = vpop.f32.mrb[57].mxu1 }
0x24f4   : > { %v15799_v3 = vpop.f32.mrb[74].mxu0  ;;  %v16024_v33 = vpop.f32.mrb[58].mxu1  ;;  %v22590_v42 = vld [vmem:[%s26510_s1 + $0x1f0] sm:$0xff]  }
0x24f5   : > { %16596 = vmatprep.mubr.bf16.mxu0 %v16118_v12  ;;  %v21295_v28 = vpop.f32.mrb[75].mxu0  ;;  %v21325_v34 = vpop.f32.mrb[59].mxu1  ;;  %v22589_v12 = vld [vmem:[%s26510_s1 + $0x208] sm:$0xff]   ;;  %v22592_v44 = vld [vmem:[%s26510_s1 + $0x210] sm:$0xff]   ;;  %v22594_v3 = vld [vmem:[%s26510_s1 + $0x1b8] sm:$0xff]   ;;  %v16123_v33 = vpack.c.bf16 %v26196_v19, %v26196_v19 }
0x24f6   : > { %16597 = vmatmul.mubr.bf16.vlgmr.msra.gmra.mrb[92].mxu0 %v16117_v22  ;;  %v22593_v22 = vld [vmem:[%s26510_s1 + $0x1f8] sm:$0xff]   ;;  %v22596_v28 = vld [vmem:[%s26510_s1 + $0x220] sm:$0xff]   ;;  %v22597_v34 = vld [vmem:[%s26510_s1 + $0x228] sm:$0xff]  }
0x24f7   : > { %20056 = vmatpush3.bf16.msra.mxu0 %v22555_v51  ;;  %v22591_v51 = vld [vmem:[%s26510_s1 + $0x1b0] sm:$0xff]   ;;  %v22599_v19 = vld [vmem:[%s26510_s1 + $0x238] sm:$0xff]  }
0x24f8   : > { %20057 = vmatprep.subr.bf16.mxu0 %v22557_v0  ;;  %v22595_v0 = vld [vmem:[%s26510_s1 + $0x218] sm:$0xff]  }
0x24fa   : > { %v15841_v36 = vpop.f32.mrb[76].mxu0  ;;  %v26202_v43 = vpop.f32.mrb[60].mxu1 }
0x24fb   : > { %20058 = vmatpush3.bf16.msra.mxu0 %v22559_v39  ;;  %v21300_v53 = vpop.f32.mrb[77].mxu0  ;;  %v21336_v61 = vpop.f32.mrb[61].mxu1  ;;  %v16119_v59 = vpack.c.bf16 %v15841_v36, %v15841_v36  ;;  %v22598_v39 = vld [vmem:[%s26510_s1 + $0x230] sm:$0xff]   ;;  %v16899_v36 = vsel %vm11395_vm3, %v26121_v21, 0  ;;  %v22608_v21 = vld [vmem:[%s26511_s2 + $0x24] ss:$8 sps:$4 sm:$0xff]  }
0x24fc   : > { %20059 = vmatprep.subr.bf16.mxu0 %v22561_v27  ;;  %v15844_v57 = vpop.f32.mrb[78].mxu0  ;;  %v16114_v54 = vpop.f32.mrb[62].mxu1  ;;  %v16125_v27 = vpack.c.bf16 %v26202_v43, %v26202_v43  ;;  %v22602_v43 = vld [vmem:[%s26511_s2 + $0x4] ss:$8 sps:$4 sm:$0xff]   ;;  %v22605_v53 = vld [vmem:[%s26511_s2 + $0x14] ss:$8 sps:$4 sm:$0xff]  }
0x24fd   : > { %v21301_v47 = vpop.f32.mrb[79].mxu0  ;;  %v21337_v56 = vpop.f32.mrb[63].mxu1  ;;  %v22603_v61 = vld [vmem:[%s26511_s2 + $0x10] ss:$8 sps:$4 sm:$0xff]   ;;  %v22606_v57 = vld [vmem:[%s26511_s2 + $0x20] ss:$8 sps:$4 sm:$0xff]  }
0x24fe   : > { %v22612_v54 = vld [vmem:[%s26511_s2 + $0x40] ss:$8 sps:$4 sm:$0xff]   ;;  %v22617_v47 = vld [vmem:[%s26511_s2 + $0x54] ss:$8 sps:$4 sm:$0xff]   ;;  %v22615_v56 = vld [vmem:[%s26511_s2 + $0x50] ss:$8 sps:$4 sm:$0xff]  }
0x24ff   : > { %20060 = vmatpush3.bf16.msra.mxu0 %v22563_v46  ;;  %v22600_v46 = vld [vmem:[%s26511_s2] ss:$8 sps:$4 sm:$0xff]   ;;  %s17533_s1 = sshll.u32 %s26513_s0, 1 }
0x2500   : > { %20061 = vmatprep.subr.bf16.mxu0 %v22565_v60  ;;  %v22614_v60 = vld [vmem:[%s26511_s2 + $0x44] ss:$8 sps:$4 sm:$0xff]  }
0x2502   : > { %v15886_v63 = vpop.f32.mrb[80].mxu0 }
0x2503   : > { %v16120_v1 = vpack.c.bf16 %v15886_v63, %v15886_v63  ;;  %20062 = vmatpush3.bf16.msra.mxu0 %v22567_v52  ;;  %v21306_v13 = vpop.f32.mrb[81].mxu0  ;;  %v22620_v52 = vld [vmem:[%s26511_s2 + $0x64] ss:$8 sps:$4 sm:$0xff]   ;;  %v22621_v63 = vld [vmem:[%s26511_s2 + $0x70] ss:$8 sps:$4 sm:$0xff]  }
0x2504   : > { %20063 = vmatprep.subr.bf16.mxu0 %v22568_v58  ;;  %v15889_v32 = vpop.f32.mrb[82].mxu0  ;;  %v22618_v58 = vld [vmem:[%s26511_s2 + $0x60] ss:$8 sps:$4 sm:$0xff]  }
0x2505   : > { %16636 = vmatprep.mubr.bf16.mxu1 %v16120_v1  ;;  %v21307_v20 = vpop.f32.mrb[83].mxu0  ;;  %v22626_v1 = vld [vmem:[%s23969_s9 + $0x4] ss:$8 sps:$4 sm:$0xff]  }
0x2506   : > { %16637 = vmatmul.mubr.bf16.vlgmr.msra.gmra.mrb[64].mxu1 %v16119_v59  ;;  %v22623_v59 = vld [vmem:[%s26511_s2 + $0x74] ss:$8 sps:$4 sm:$0xff]   ;;  %v18609_v20 = vld [vmem:[#allocation39] ss:$0 sm:$0xff] }
0x2507   : > { %20064 = vmatpush3.bf16.msra.mxu0 %v22570_v31  ;;  %20078 = vmatpush3.bf16.msra.mxu1 %v22571_v7  ;;  %v23619_v31 = vmov 0  }
0x2508   : > { %20065 = vmatprep.subr.bf16.mxu0 %v22572_v2  ;;  %20079 = vmatprep.subr.bf16.mxu1 %v22573_v25 }
0x250a   : > { %v15976_v24 = vpop.f32.mrb[84].mxu0 }
0x250b   : > { %20066 = vmatpush3.bf16.msra.mxu0 %v22574_v48  ;;  %20080 = vmatpush3.bf16.msra.mxu1 %v22575_v17  ;;  %v16122_v45 = vpack.c.bf16 %v15976_v24, %v15976_v24  ;;  %v21318_v26 = vpop.f32.mrb[85].mxu0 }
0x250c   : > { %20067 = vmatprep.subr.bf16.mxu0 %v22576_v16  ;;  %20081 = vmatprep.subr.bf16.mxu1 %v22577_v9  ;;  %v15979_v6 = vpop.f32.mrb[86].mxu0 }
0x250d   : > { %16676 = vmatprep.mubr.bf16.mxu0 %v16122_v45  ;;  %v21319_v4 = vpop.f32.mrb[87].mxu0 }
0x250f   : > { %20068 = vmatpush3.bf16.msra.mxu0 %v22578_v23  ;;  %20082 = vmatpush3.bf16.msra.mxu1 %v22579_v37 }
0x2510   : > { %20069 = vmatprep.subr.bf16.mxu0 %v22580_v30  ;;  %20083 = vmatprep.subr.bf16.mxu1 %v22581_v50 }
0x2512   : > { %v16066_v40 = vpop.f32.mrb[88].mxu0 }
0x2513   : > { %20070 = vmatpush3.bf16.msra.mxu0 %v22582_v55  ;;  %20084 = vmatpush3.bf16.msra.mxu1 %v22583_v38  ;;  %v16124_v14 = vpack.c.bf16 %v16066_v40, %v16066_v40  ;;  %v21330_v15 = vpop.f32.mrb[89].mxu0 }
0x2514   : > { %20085 = vmatprep.subr.bf16.mxu1 %v22584_v41  ;;  %21338 = vmatprep.subr.bf16.mxu0 %v23617_v49  ;;  %v16069_v18 = vpop.f32.mrb[90].mxu0 }
0x2515   : > { %16716 = vmatprep.mubr.bf16.mxu1 %v16124_v14  ;;  %v21331_v29 = vpop.f32.mrb[91].mxu0 }
0x2516   : > { %16677 = vmatmul.mubr.bf16.vlgmr.msra.gmra.mrb[96].mxu0 %v16121_v8 }
0x2517   : > { %20086 = vmatpush3.bf16.msra.mxu1 %v22585_v10  ;;  %21339 = vmatpush3.bf16.msra.mxu0 %v22586_v11 }
0x2518   : > { %20087 = vmatprep.subr.bf16.mxu1 %v22587_v62  ;;  %21340 = vmatprep.subr.bf16.mxu0 %v23617_v49 }
0x2519   : > { %21354 = vmatprep.mubr.msk.bf16.mxu0 %vm23618_vm1, %v23617_v49 }
0x251b   : > { %20088 = vmatpush3.bf16.msra.mxu1 %v22588_v5  ;;  %21341 = vmatpush3.bf16.msra.mxu0 %v22589_v12  ;;  %v22624_v5 = vld [vmem:[%s23969_s9] ss:$8 sps:$4 sm:$0xff]  }
0x251c   : > { %20089 = vmatprep.subr.bf16.mxu1 %v22590_v42  ;;  %21342 = vmatprep.subr.bf16.mxu0 %v23617_v49  ;;  %v22629_v42 = vld [vmem:[%s23969_s9 + $0x14] ss:$8 sps:$4 sm:$0xff]  }
0x251f   : > { %20090 = vmatpush3.bf16.msra.mxu1 %v22591_v51  ;;  %21343 = vmatpush3.bf16.msra.mxu0 %v22592_v44  ;;  %v22627_v51 = vld [vmem:[%s23969_s9 + $0x10] ss:$8 sps:$4 sm:$0xff]  }
0x2520   : > { %20091 = vmatprep.subr.bf16.mxu1 %v22593_v22  ;;  %21344 = vmatprep.subr.bf16.mxu0 %v23617_v49  ;;  %v22632_v22 = vld [vmem:[%s23969_s9 + $0x24] ss:$8 sps:$4 sm:$0xff]  }
0x2523   : > { %20092 = vmatpush3.bf16.msra.mxu1 %v22594_v3  ;;  %21345 = vmatpush3.bf16.msra.mxu0 %v22595_v0 }
0x2524   : > { %21346 = vmatprep.subr.bf16.mxu0 %v23617_v49  ;;  %16857 = vmatprep.subr.bf16.mxu1 %v22602_v43  ;;  %v22644_v43 = vld [vmem:[%s23969_s9 + $0x64] ss:$8 sps:$4 sm:$0xff]  }
0x2526   : > { %16717 = vmatmul.mubr.bf16.vlgmr.msra.gmra.mrb[68].mxu1 %v16123_v33 }
0x2527   : > { %21347 = vmatpush3.bf16.msra.mxu0 %v22596_v28  ;;  %16858 = vmatpush1.bf16.msra.mxu1 %v22600_v46  ;;  %v22630_v28 = vld [vmem:[%s23969_s9 + $0x20] ss:$8 sps:$4 sm:$0xff]   ;;  %v22639_v46 = vld [vmem:[%s23969_s9 + $0x50] ss:$8 sps:$4 sm:$0xff]  }
0x2528   : > { %21348 = vmatprep.subr.bf16.mxu0 %v23617_v49  ;;  %16859 = vmatprep.subr.bf16.mxu1 %v22605_v53  ;;  %v22642_v53 = vld [vmem:[%s23969_s9 + $0x60] ss:$8 sps:$4 sm:$0xff]  }
0x2529   : > { %16889 = vmatprep.mubr.bf16.mxu1 %v23619_v31 }
0x252b   : > { %21349 = vmatpush3.bf16.msra.mxu0 %v22597_v34  ;;  %16860 = vmatpush1.bf16.msra.mxu1 %v22603_v61  ;;  %v22635_v34 = vld [vmem:[%s23969_s9 + $0x34] ss:$8 sps:$4 sm:$0xff]  }
0x252c   : > { %21350 = vmatprep.subr.bf16.mxu0 %v23617_v49  ;;  %16861 = vmatprep.subr.bf16.mxu1 %v22608_v21  ;;  %v22647_v61 = vld [vmem:[%s23969_s9 + $0x74] ss:$8 sps:$4 sm:$0xff]   ;;  %v22645_v21 = vld [vmem:[%s23969_s9 + $0x70] ss:$8 sps:$4 sm:$0xff]  }
0x252f   : > { %21351 = vmatpush3.bf16.msra.mxu0 %v22598_v39  ;;  %16862 = vmatpush1.bf16.msra.mxu1 %v22606_v57  ;;  %v22633_v39 = vld [vmem:[%s23969_s9 + $0x30] ss:$8 sps:$4 sm:$0xff]  }
0x2530   : > { %21352 = vmatprep.subr.bf16.mxu0 %v23617_v49 }
0x2533   : > { %21353 = vmatpush3.bf16.msra.mxu0 %v22599_v19  ;;  %v22638_v19 = vld [vmem:[%s23969_s9 + $0x44] ss:$8 sps:$4 sm:$0xff]  }
0x2534   : > { %21358 = vmatprep.subr.bf16.mxu0 %v23617_v49 }
0x2536   : > { %21355 = vmatmul.mubr.bf16.vlgmr.msra.gmra.mrb[100].mxu0 %v16125_v27  ;;  %v22636_v27 = vld [vmem:[%s23969_s9 + $0x40] ss:$8 sps:$4 sm:$0xff]  }
0x2537   : > { %21359 = vmatpush3.bf16.msra.mxu0 %v16899_v36  ;;  %21360 = vmatprep.mubr.msk.bf16.mxu0 %vm23618_vm1, %v23617_v49  ;;  %v22611_v49 = vld [vmem:[%s26511_s2 + $0x34] ss:$8 sps:$4 sm:$0xff]  }
0x2538   : > { %16863 = vmatprep.subr.bf16.mxu1 %v22611_v49  ;;  %v22641_v36 = vld [vmem:[%s23969_s9 + $0x54] ss:$8 sps:$4 sm:$0xff]   ;;  %v16767_v49 = vlaneseq }
0x253a   : > { %vm17099_vm5 = vcmp.lt.s32.totalorder %v16767_v49, 256 }
0x253e   : > { %21361 = vmatmul.mubr.msk.bf16.vlgmr.msra.gmra.mrb[104].mxu0 %vm11391_vm4, %v26127_v35  ;;  %v22609_v35 = vld [vmem:[%s26511_s2 + $0x30] ss:$8 sps:$4 sm:$0xff]   ;;  %s2382_s2 = scalar_lea.vmem %s23974_s24, %s17533_s1 }
0x253f   : > { %16864 = vmatpush1.bf16.msra.mxu1 %v22609_v35  ;;  %v16768_v35 = vshrl.u32 %v16767_v49, 7 }
0x2540   : > { %16865 = vmatprep.subr.bf16.mxu1 %v22614_v60 }
0x2541   : > { %v16769_v60 = vsub.s32 0, %v16768_v35 }
0x2543   : > { %16866 = vmatpush1.bf16.msra.mxu1 %v22612_v54  ;;  %v15597_v54 = vld [vmem:[%s23959_s6] sm:$0x3] }
0x2544   : > { %16867 = vmatprep.subr.bf16.mxu1 %v22617_v47  ;;  %v16773_v47 = vsub.s32 1, %v16768_v35 }
0x2547   : > { %16868 = vmatpush1.bf16.msra.mxu1 %v22615_v56  ;;  %v16770_v56 = vrot.slane %v15597_v54, %v16769_v60 }
0x2548   : > { %16869 = vmatprep.subr.bf16.mxu1 %v22620_v52  ;;  %v16774_v52 = vrot.slane %v15597_v54, %v16773_v47 }
0x254b   : > { %16870 = vmatpush1.bf16.msra.mxu1 %v22618_v58 }
0x254c   : > { %16871 = vmatprep.subr.bf16.mxu1 %v22623_v59 }
0x254f   : > { %16872 = vmatpush1.bf16.msra.mxu1 %v22621_v63 }
0x2550   : > { %17022 = vmatprep.subr.bf16.mxu1 %v22626_v1 }
0x25c9   : > { %v20027_v7 = vpop.f32.mrb[92].mxu0 }
0x25ca   : > { %v20028_v13 = vpop.f32.mrb[93].mxu0 }
0x25cb   : > { %v20029_v2 = vadd.f32 %v20028_v13, %v20027_v7  ;;  %v20030_v25 = vpop.f32.mrb[94].mxu0 }
0x25cc   : > { %v20031_v32 = vpop.f32.mrb[95].mxu0 }
0x25cd   : > { %v16599_v16 = vadd.f32 %v20029_v2, %v18609_v20 }
0x25d9   : > { %v20049_v48 = vpop.f32.mrb[64].mxu1 }
0x25da   : > { %v20050_v17 = vpop.f32.mrb[65].mxu1 }
0x25db   : > { %v20051_v9 = vadd.f32 %v20050_v17, %v20049_v48  ;;  %v20052_v24 = vpop.f32.mrb[66].mxu1 }
0x25dc   : > { %v20053_v23 = vpop.f32.mrb[67].mxu1 }
0x25dd   : > { %v16639_v37 = vadd.f32 %v20051_v9, %v16599_v16  ;;  %v23620_v23 = vmov 1966171168  }
0x25e9   : > { %v20071_v45 = vpop.f32.mrb[96].mxu0 }
0x25ea   : > { %v20072_v26 = vpop.f32.mrb[97].mxu0 }
0x25eb   : > { %v20073_v30 = vadd.f32 %v20072_v26, %v20071_v45  ;;  %v20074_v50 = vpop.f32.mrb[98].mxu0 }
0x25ec   : > { %v20075_v6 = vpop.f32.mrb[99].mxu0 }
0x25ed   : > { %v16679_v4 = vadd.f32 %v20073_v30, %v16639_v37  ;;  %v17083_v37 = vunpack.c.l.s4 %v23620_v23 }
0x25ef   : > { %v17084_v45 = vunpack.c.0.s8 %v17083_v37 }
0x25f1   : > { %v17087_v30 = vsub.s32 %v17084_v45, %v16768_v35 }
0x25f9   : > { %v20093_v55 = vpop.f32.mrb[68].mxu1 }
0x25fa   : > { %v20094_v38 = vpop.f32.mrb[69].mxu1 }
0x25fb   : > { %v20095_v41 = vadd.f32 %v20094_v38, %v20093_v55  ;;  %v20096_v8 = vpop.f32.mrb[70].mxu1 }
0x25fc   : > { %v20097_v40 = vpop.f32.mrb[71].mxu1 }
0x25fd   : > { %v16719_v10 = vadd.f32 %v20095_v41, %v16679_v4 }
0x2609   : > { %v16758_v11 = vpop.f32.mrb[100].mxu0 }
0x260a   : > { %v16759_v14 = vadd.f32 %v16758_v11, %v16719_v10  ;;  %v21356_v15 = vpop.f32.mrb[101].mxu0 }
0x260b   : > { %v16761_v62 = vpop.f32.mrb[102].mxu0 }
0x260c   : > { %v16764_v18 = vmax.f32 %v16759_v14, 0.0  ;;  %v21357_v29 = vpop.f32.mrb[103].mxu0 }
0x260e   : > { %v16765_v12 = vpack.c.bf16 %v16764_v18, %v16764_v18 }
0x2610   : > { %16890 = vmatmul.mubr.bf16.vlgmr.msra.gmra.mrb[72].mxu1 %v16765_v12 }
0x2611   : > { %17023 = vmatpush1.bf16.msra.mxu1 %v22624_v5  ;;  %v16935_v44 = vpop.f32.mrb[104].mxu0  ;;  %17054 = vmatprep.mubr.bf16.mxu1 %v23619_v31 }
0x2612   : > { %17024 = vmatprep.subr.bf16.mxu1 %v22629_v42  ;;  %v21362_v3 = vpop.f32.mrb[105].mxu0  ;;  %v16941_v57 = vpack.c.bf16 %v16935_v44, %v16935_v44 }
0x2613   : > { %v16938_v0 = vpop.f32.mrb[106].mxu0 }
0x2614   : > { %v21363_v33 = vpop.f32.mrb[107].mxu0 }
0x2615   : > { %17025 = vmatpush1.bf16.msra.mxu1 %v22627_v51 }
0x2616   : > { %17026 = vmatprep.subr.bf16.mxu1 %v22632_v22 }
0x2619   : > { %17027 = vmatpush1.bf16.msra.mxu1 %v22630_v28 }
0x261a   : > { %17028 = vmatprep.subr.bf16.mxu1 %v22635_v34 }
0x261d   : > { %17029 = vmatpush1.bf16.msra.mxu1 %v22633_v39 }
0x261e   : > { %17030 = vmatprep.subr.bf16.mxu1 %v22638_v19 }
0x2621   : > { %17031 = vmatpush1.bf16.msra.mxu1 %v22636_v27 }
0x2622   : > { %17032 = vmatprep.subr.bf16.mxu1 %v22641_v36 }
0x2625   : > { %17033 = vmatpush1.bf16.msra.mxu1 %v22639_v46 }
0x2626   : > { %17034 = vmatprep.subr.bf16.mxu1 %v22644_v43 }
0x2629   : > { %17035 = vmatpush1.bf16.msra.mxu1 %v22642_v53 }
0x262a   : > { %17036 = vmatprep.subr.bf16.mxu1 %v22647_v61 }
0x262d   : > { %17037 = vmatpush1.bf16.msra.mxu1 %v22645_v21 }
0x2630   : > { %17055 = vmatmul.mubr.bf16.vlgmr.msra.gmra.mrb[72].mxu1 %v16941_v57 }
0x2703   : > { %v17056_v58 = vpop.f32.mrb[72].mxu1 }
0x2704   : > { %v21367_v59 = vadd.f32 %v17056_v58, %v16770_v56  ;;  %v17058_v63 = vpop.f32.mrb[73].mxu1 }
0x2705   : > { %v21368_v1 = vadd.f32 %v17058_v63, %v16774_v52  ;;  %v17060_v31 = vpop.f32.mrb[74].mxu1 }
0x2706   : > { %v17065_v7 = vmax.f32 %v21367_v59, 0.0  ;;  %v17061_v13 = vpop.f32.mrb[75].mxu1 }
0x2707   : > { %v17066_v2 = vmax.f32 %v21368_v1, 0.0 }
0x2708   : > { %v17067_v25 = vsub.f32 0.0, %v17065_v7 }
0x2709   : > { %v17068_v32 = vsub.f32 0.0, %v17066_v2 }
0x270a   : > { %v17069_v20 = vmul.f32 1.442695, %v17067_v25 }
0x270b   : > { %v17071_v48 = vmul.f32 1.442695, %v17068_v32 }
0x270c   : > { %22720 = vpow2.f32 %v17069_v20 }
0x270d   : > { %22722 = vpow2.f32 %v17071_v48 }
0x2716   : > { %v22721_v17 = vpop.eup %22720 }
0x2717   : > { %v22723_v16 = vpop.eup %22722  ;;  %v17073_v9 = vadd.f32 1.0, %v22721_v17 }
0x2718   : > { %v17074_v24 = vadd.f32 1.0, %v22723_v16 }
0x2719   : > { %22724 = vrcp.f32 %v17073_v9 }
0x271a   : > { %22726 = vrcp.f32 %v17074_v24 }
0x2723   : > { %v22725_v26 = vpop.eup %22724 }
0x2724   : > { %v22727_v50 = vpop.eup %22726 }
0x2725   : > { %v17081_v6 = vcombine.low %v22725_v26, %v22727_v50 }
0x2727   : > { %v17088_v4 = vrot.slane %v17081_v6, %v17087_v30 }
0x2729   : > { %v17095_v55 = vrot.slane %v17088_v4, %v17087_v30 }
0x272b   : > { %17101 = vst.msk [vmem:[%s2382_s2] sm:$0x3] %vm17099_vm5, %v17095_v55 }
0x272c PF: > { %s163_s7 = sadd.s32 1, %s23518_s7  }
0x272d   : > { %p160_p7 = scmp.ge.s32.totalorder %s163_s7, 4  }
0x272f   :  { %162 = sbr.rel (!%p160_p7) target bundleno = 146 (0x92), region = 572 }
0x2736   :  { %17121 = vsyncpa [#allocation3], 1 }
0x2737   :  { %17123 = vsyncpa [#allocation3 + $0x1], 1 }
0x2738   :  { %17124 = vsyncpa [#allocation5], 1 }
0x2739   :  { %17125 = vsyncpa [#allocation8], 1 }
0x273a   :  { %17126 = vsyncpa [#allocation11], 1 }
0x273b   :  { %17127 = vsyncpa [#allocation14], 1 }
0x273c   :  { %17128 = vsyncpa [#allocation17], 1 }
0x273d   :  { %17129 = vsyncpa [#allocation20], 1 }
0x273e   :  { %17130 = vsyncpa [#allocation23], 1 }
0x273f   :  { %17131 = vsyncpa [#allocation26], 1 }
0x2740   :  { %17132 = vsyncpa [#allocation29], 1 }
0x2741   :  { %17133 = vsyncpa [#allocation32], 1 }
0x2742   :  { %17134 = vsyncpa [#allocation35], 1 }
0x2743   :  { %17135 = vsyncpa [#allocation38], 1 }
0x2744   :  { %17136 = vsyncpa [#allocation41], 1 }

</bundles_post_ra>
